<compile_context>
chip_gen: v7x
topology: tpu7x:2x2x1
jax: 0.10.0
libtpu: 0.0.40
codegen_flags: <defaults>
</compile_context>

<pallas_src>
import jax
import jax.numpy as jnp
from jax.experimental import pallas as pl
from jax.experimental.pallas import tpu as pltpu

# Feature size n = X.shape[1] in the original script; synthetic value here.
N_FEATURES = 256
BATCH = 128   # small example batch; multiple of 8 (sublane aligned)

# encoder: n->1024->512->256->64->32 ; decoder: 32->64->256->512->1024->n
LAYER_DIMS = [
    (N_FEATURES, 1024), (1024, 512), (512, 256), (256, 64), (64, 32),   # encoder
    (32, 64), (64, 256), (256, 512), (512, 1024), (1024, N_FEATURES),   # decoder
]
N_LAYERS = len(LAYER_DIMS)
# ReLU follows every Linear except the last encoder layer (idx 4) and the
# last decoder layer (idx 9).
RELU_AFTER = tuple(i not in (4, 9) for i in range(N_LAYERS))


def autoencoder_kernel(x_ref, *refs):
    """Fused 10-layer MLP with manually pipelined weight DMA.

    Argument layout:
      x_ref             : [B, n]        bf16, VMEM
      refs[0:10]        : biases        [1, out_i] f32, VMEM
      refs[10:20]       : weights       [in_i, out_i] bf16, HBM (pl.ANY)
      refs[20]          : out           [B, n] f32, VMEM
      refs[21:31]       : per-layer weight VMEM scratch (bf16)
      refs[31]          : DMA semaphore array, shape (10,)
    """
    n = N_LAYERS
    b_refs = refs[:n]
    w_hbm = refs[n:2 * n]
    out_ref = refs[2 * n]
    w_vmem = refs[2 * n + 1:3 * n + 1]
    sems = refs[3 * n + 1]

    # Issue every weight DMA up front (prefetch chain): only W0 is on the
    # critical path, the rest stream in underneath earlier layers' compute.
    for i in range(n):
        pltpu.make_async_copy(w_hbm[i], w_vmem[i], sems.at[i]).start()

    h = x_ref[...]                                       # bf16 activations
    for i in range(n):
        pltpu.make_async_copy(w_hbm[i], w_vmem[i], sems.at[i]).wait()
        acc = jnp.dot(h, w_vmem[i][...],
                      preferred_element_type=jnp.float32)   # MXU, f32 accum
        acc = acc + b_refs[i][...]                           # bias (f32)
        if RELU_AFTER[i]:
            acc = jnp.maximum(acc, 0.0)
        if i < n - 1:
            h = acc.astype(jnp.bfloat16)   # bf16 round-trips between dots
        else:
            out_ref[...] = acc.astype(out_ref.dtype)


def init_params(key):
    """Deterministic synthetic parameters (PyTorch-Linear-like uniform init).

    Weights stored pre-transposed ([in, out]) and in bfloat16; biases in f32,
    so each layer is `h @ W + b` (identical math to x @ W.T + b in PyTorch).
    """
    ws, bs = [], []
    for (fan_in, fan_out) in LAYER_DIMS:
        key, kw, kb = jax.random.split(key, 3)
        bound = 1.0 / jnp.sqrt(fan_in)
        w = jax.random.uniform(kw, (fan_in, fan_out), jnp.float32, -bound, bound)
        b = jax.random.uniform(kb, (1, fan_out), jnp.float32, -bound, bound)
        ws.append(w.astype(jnp.bfloat16))
        bs.append(b)
    return ws, bs


@jax.jit
def autoencoder_forward(x, ws, bs):
    B, F = x.shape
    assert F == N_FEATURES
    assert B % 8 == 0, "batch must be a multiple of 8 (sublane alignment)"

    x_bf16 = x.astype(jnp.bfloat16)

    # Advisory cost hint for XLA's scheduler around this short custom call.
    w_elems = sum(fi * fo for fi, fo in LAYER_DIMS)
    flops = 2 * B * w_elems
    bytes_accessed = (
        w_elems * 2                                   # bf16 weights
        + sum(fo for _, fo in LAYER_DIMS) * 4         # f32 biases
        + B * F * 2                                   # bf16 input
        + B * F * 4                                   # f32 output
    )

    in_specs = (
        [pl.BlockSpec(memory_space=pltpu.MemorySpace.VMEM)]                 # x
        + [pl.BlockSpec(memory_space=pltpu.MemorySpace.VMEM)] * N_LAYERS    # biases
        + [pl.BlockSpec(memory_space=pl.ANY)] * N_LAYERS                    # weights (HBM)
    )
    scratch_shapes = (
        [pltpu.VMEM((fi, fo), jnp.bfloat16) for fi, fo in LAYER_DIMS]       # ~3.75 MB
        + [pltpu.SemaphoreType.DMA((N_LAYERS,))]
    )

    return pl.pallas_call(
        autoencoder_kernel,
        out_shape=jax.ShapeDtypeStruct((B, F), jnp.float32),
        in_specs=in_specs,
        out_specs=pl.BlockSpec(memory_space=pltpu.MemorySpace.VMEM),
        scratch_shapes=scratch_shapes,
        compiler_params=pltpu.CompilerParams(vmem_limit_bytes=32 << 20),
        cost_estimate=pl.CostEstimate(flops=flops, transcendentals=0,
                                      bytes_accessed=bytes_accessed),
    )(x_bf16, *bs, *ws)


def reference_forward(x, ws, bs):
    """Pure-JAX reference with identical quantization (bf16 weights and
    inter-layer activations, f32 accumulation)."""
    h = x.astype(jnp.bfloat16)
    acc = None
    for i, (w, b) in enumerate(zip(ws, bs)):
        acc = jnp.dot(h, w, preferred_element_type=jnp.float32) + b
        if RELU_AFTER[i]:
            acc = jnp.maximum(acc, 0.0)
        h = acc.astype(jnp.bfloat16)
    return acc  # last layer output stays f32


if __name__ == "__main__":
    key = jax.random.PRNGKey(0)
    key, kx = jax.random.split(key)
    x = jax.random.normal(kx, (BATCH, N_FEATURES), jnp.float32)
    ws, bs = init_params(key)

    out = autoencoder_forward(x, ws, bs)
    out = jax.block_until_ready(out)

    ref = reference_forward(x, ws, bs)
    assert out.shape == (BATCH, N_FEATURES)
    assert out.dtype == jnp.float32
    assert jnp.allclose(out, ref, atol=2e-2, rtol=2e-2), \
        float(jnp.max(jnp.abs(out - ref)))

    print("KERNEL_OK")
</pallas_src>

<mosaic_0001>
module attributes {stable_mosaic.version = 11 : i64} {
  func.func @autoencoder_kernel(%arg0: memref<128x256xbf16, #tpu.memory_space<vmem>>, %arg1: memref<1x1024xf32, #tpu.memory_space<vmem>>, %arg2: memref<1x512xf32, #tpu.memory_space<vmem>>, %arg3: memref<1x256xf32, #tpu.memory_space<vmem>>, %arg4: memref<1x64xf32, #tpu.memory_space<vmem>>, %arg5: memref<1x32xf32, #tpu.memory_space<vmem>>, %arg6: memref<1x64xf32, #tpu.memory_space<vmem>>, %arg7: memref<1x256xf32, #tpu.memory_space<vmem>>, %arg8: memref<1x512xf32, #tpu.memory_space<vmem>>, %arg9: memref<1x1024xf32, #tpu.memory_space<vmem>>, %arg10: memref<1x256xf32, #tpu.memory_space<vmem>>, %arg11: memref<256x1024xbf16, #tpu.memory_space<any>>, %arg12: memref<1024x512xbf16, #tpu.memory_space<any>>, %arg13: memref<512x256xbf16, #tpu.memory_space<any>>, %arg14: memref<256x64xbf16, #tpu.memory_space<any>>, %arg15: memref<64x32xbf16, #tpu.memory_space<any>>, %arg16: memref<32x64xbf16, #tpu.memory_space<any>>, %arg17: memref<64x256xbf16, #tpu.memory_space<any>>, %arg18: memref<256x512xbf16, #tpu.memory_space<any>>, %arg19: memref<512x1024xbf16, #tpu.memory_space<any>>, %arg20: memref<1024x256xbf16, #tpu.memory_space<any>>, %arg21: memref<128x256xf32, #tpu.memory_space<vmem>>, %arg22: memref<256x1024xbf16, #tpu.memory_space<vmem>>, %arg23: memref<1024x512xbf16, #tpu.memory_space<vmem>>, %arg24: memref<512x256xbf16, #tpu.memory_space<vmem>>, %arg25: memref<256x64xbf16, #tpu.memory_space<vmem>>, %arg26: memref<64x32xbf16, #tpu.memory_space<vmem>>, %arg27: memref<32x64xbf16, #tpu.memory_space<vmem>>, %arg28: memref<64x256xbf16, #tpu.memory_space<vmem>>, %arg29: memref<256x512xbf16, #tpu.memory_space<vmem>>, %arg30: memref<512x1024xbf16, #tpu.memory_space<vmem>>, %arg31: memref<1024x256xbf16, #tpu.memory_space<vmem>>, %arg32: memref<10x!tpu.dma_semaphore, #tpu.memory_space<semaphore_mem>>) attributes {dimension_semantics = [], scalar_prefetch = 0 : i64, scratch_operands = 11 : i64, tpu.core_type = #tpu.core_type<tc>} {
    %c0_i32 = arith.constant 0 : i32
    %0 = tpu.memref_slice %arg32[%c0_i32] : memref<10x!tpu.dma_semaphore, #tpu.memory_space<semaphore_mem>> -> memref<1x!tpu.dma_semaphore, #tpu.memory_space<semaphore_mem>>
    %1 = tpu.memref_squeeze %0 : memref<1x!tpu.dma_semaphore, #tpu.memory_space<semaphore_mem>> -> memref<!tpu.dma_semaphore, #tpu.memory_space<semaphore_mem>>
    tpu.enqueue_dma source(%arg11 : memref<256x1024xbf16, #tpu.memory_space<any>>) target(%arg22 : memref<256x1024xbf16, #tpu.memory_space<vmem>>) target_semaphore(%1 : memref<!tpu.dma_semaphore, #tpu.memory_space<semaphore_mem>>)
    %c1_i32 = arith.constant 1 : i32
    %2 = tpu.memref_slice %arg32[%c1_i32] : memref<10x!tpu.dma_semaphore, #tpu.memory_space<semaphore_mem>> -> memref<1x!tpu.dma_semaphore, #tpu.memory_space<semaphore_mem>>
    %3 = tpu.memref_squeeze %2 : memref<1x!tpu.dma_semaphore, #tpu.memory_space<semaphore_mem>> -> memref<!tpu.dma_semaphore, #tpu.memory_space<semaphore_mem>>
    tpu.enqueue_dma source(%arg12 : memref<1024x512xbf16, #tpu.memory_space<any>>) target(%arg23 : memref<1024x512xbf16, #tpu.memory_space<vmem>>) target_semaphore(%3 : memref<!tpu.dma_semaphore, #tpu.memory_space<semaphore_mem>>)
    %c2_i32 = arith.constant 2 : i32
    %4 = tpu.memref_slice %arg32[%c2_i32] : memref<10x!tpu.dma_semaphore, #tpu.memory_space<semaphore_mem>> -> memref<1x!tpu.dma_semaphore, #tpu.memory_space<semaphore_mem>>
    %5 = tpu.memref_squeeze %4 : memref<1x!tpu.dma_semaphore, #tpu.memory_space<semaphore_mem>> -> memref<!tpu.dma_semaphore, #tpu.memory_space<semaphore_mem>>
    tpu.enqueue_dma source(%arg13 : memref<512x256xbf16, #tpu.memory_space<any>>) target(%arg24 : memref<512x256xbf16, #tpu.memory_space<vmem>>) target_semaphore(%5 : memref<!tpu.dma_semaphore, #tpu.memory_space<semaphore_mem>>)
    %c3_i32 = arith.constant 3 : i32
    %6 = tpu.memref_slice %arg32[%c3_i32] : memref<10x!tpu.dma_semaphore, #tpu.memory_space<semaphore_mem>> -> memref<1x!tpu.dma_semaphore, #tpu.memory_space<semaphore_mem>>
    %7 = tpu.memref_squeeze %6 : memref<1x!tpu.dma_semaphore, #tpu.memory_space<semaphore_mem>> -> memref<!tpu.dma_semaphore, #tpu.memory_space<semaphore_mem>>
    tpu.enqueue_dma source(%arg14 : memref<256x64xbf16, #tpu.memory_space<any>>) target(%arg25 : memref<256x64xbf16, #tpu.memory_space<vmem>>) target_semaphore(%7 : memref<!tpu.dma_semaphore, #tpu.memory_space<semaphore_mem>>)
    %c4_i32 = arith.constant 4 : i32
    %8 = tpu.memref_slice %arg32[%c4_i32] : memref<10x!tpu.dma_semaphore, #tpu.memory_space<semaphore_mem>> -> memref<1x!tpu.dma_semaphore, #tpu.memory_space<semaphore_mem>>
    %9 = tpu.memref_squeeze %8 : memref<1x!tpu.dma_semaphore, #tpu.memory_space<semaphore_mem>> -> memref<!tpu.dma_semaphore, #tpu.memory_space<semaphore_mem>>
    tpu.enqueue_dma source(%arg15 : memref<64x32xbf16, #tpu.memory_space<any>>) target(%arg26 : memref<64x32xbf16, #tpu.memory_space<vmem>>) target_semaphore(%9 : memref<!tpu.dma_semaphore, #tpu.memory_space<semaphore_mem>>)
    %c5_i32 = arith.constant 5 : i32
    %10 = tpu.memref_slice %arg32[%c5_i32] : memref<10x!tpu.dma_semaphore, #tpu.memory_space<semaphore_mem>> -> memref<1x!tpu.dma_semaphore, #tpu.memory_space<semaphore_mem>>
    %11 = tpu.memref_squeeze %10 : memref<1x!tpu.dma_semaphore, #tpu.memory_space<semaphore_mem>> -> memref<!tpu.dma_semaphore, #tpu.memory_space<semaphore_mem>>
    tpu.enqueue_dma source(%arg16 : memref<32x64xbf16, #tpu.memory_space<any>>) target(%arg27 : memref<32x64xbf16, #tpu.memory_space<vmem>>) target_semaphore(%11 : memref<!tpu.dma_semaphore, #tpu.memory_space<semaphore_mem>>)
    %c6_i32 = arith.constant 6 : i32
    %12 = tpu.memref_slice %arg32[%c6_i32] : memref<10x!tpu.dma_semaphore, #tpu.memory_space<semaphore_mem>> -> memref<1x!tpu.dma_semaphore, #tpu.memory_space<semaphore_mem>>
    %13 = tpu.memref_squeeze %12 : memref<1x!tpu.dma_semaphore, #tpu.memory_space<semaphore_mem>> -> memref<!tpu.dma_semaphore, #tpu.memory_space<semaphore_mem>>
    tpu.enqueue_dma source(%arg17 : memref<64x256xbf16, #tpu.memory_space<any>>) target(%arg28 : memref<64x256xbf16, #tpu.memory_space<vmem>>) target_semaphore(%13 : memref<!tpu.dma_semaphore, #tpu.memory_space<semaphore_mem>>)
    %c7_i32 = arith.constant 7 : i32
    %14 = tpu.memref_slice %arg32[%c7_i32] : memref<10x!tpu.dma_semaphore, #tpu.memory_space<semaphore_mem>> -> memref<1x!tpu.dma_semaphore, #tpu.memory_space<semaphore_mem>>
    %15 = tpu.memref_squeeze %14 : memref<1x!tpu.dma_semaphore, #tpu.memory_space<semaphore_mem>> -> memref<!tpu.dma_semaphore, #tpu.memory_space<semaphore_mem>>
    tpu.enqueue_dma source(%arg18 : memref<256x512xbf16, #tpu.memory_space<any>>) target(%arg29 : memref<256x512xbf16, #tpu.memory_space<vmem>>) target_semaphore(%15 : memref<!tpu.dma_semaphore, #tpu.memory_space<semaphore_mem>>)
    %c8_i32 = arith.constant 8 : i32
    %16 = tpu.memref_slice %arg32[%c8_i32] : memref<10x!tpu.dma_semaphore, #tpu.memory_space<semaphore_mem>> -> memref<1x!tpu.dma_semaphore, #tpu.memory_space<semaphore_mem>>
    %17 = tpu.memref_squeeze %16 : memref<1x!tpu.dma_semaphore, #tpu.memory_space<semaphore_mem>> -> memref<!tpu.dma_semaphore, #tpu.memory_space<semaphore_mem>>
    tpu.enqueue_dma source(%arg19 : memref<512x1024xbf16, #tpu.memory_space<any>>) target(%arg30 : memref<512x1024xbf16, #tpu.memory_space<vmem>>) target_semaphore(%17 : memref<!tpu.dma_semaphore, #tpu.memory_space<semaphore_mem>>)
    %c9_i32 = arith.constant 9 : i32
    %18 = tpu.memref_slice %arg32[%c9_i32] : memref<10x!tpu.dma_semaphore, #tpu.memory_space<semaphore_mem>> -> memref<1x!tpu.dma_semaphore, #tpu.memory_space<semaphore_mem>>
    %19 = tpu.memref_squeeze %18 : memref<1x!tpu.dma_semaphore, #tpu.memory_space<semaphore_mem>> -> memref<!tpu.dma_semaphore, #tpu.memory_space<semaphore_mem>>
    tpu.enqueue_dma source(%arg20 : memref<1024x256xbf16, #tpu.memory_space<any>>) target(%arg31 : memref<1024x256xbf16, #tpu.memory_space<vmem>>) target_semaphore(%19 : memref<!tpu.dma_semaphore, #tpu.memory_space<semaphore_mem>>)
    %c0 = arith.constant 0 : index
    %c0_0 = arith.constant 0 : index
    %20 = vector.load %arg0[%c0, %c0_0] : memref<128x256xbf16, #tpu.memory_space<vmem>>, vector<128x256xbf16>
    %c0_i32_1 = arith.constant 0 : i32
    %21 = tpu.memref_slice %arg32[%c0_i32_1] : memref<10x!tpu.dma_semaphore, #tpu.memory_space<semaphore_mem>> -> memref<1x!tpu.dma_semaphore, #tpu.memory_space<semaphore_mem>>
    %22 = tpu.memref_squeeze %21 : memref<1x!tpu.dma_semaphore, #tpu.memory_space<semaphore_mem>> -> memref<!tpu.dma_semaphore, #tpu.memory_space<semaphore_mem>>
    tpu.wait_dma2 semaphore(%22 : memref<!tpu.dma_semaphore, #tpu.memory_space<semaphore_mem>>) src(%arg11 : memref<256x1024xbf16, #tpu.memory_space<any>>) dst(%arg22 : memref<256x1024xbf16, #tpu.memory_space<vmem>>)
    %c0_2 = arith.constant 0 : index
    %c0_3 = arith.constant 0 : index
    %23 = vector.load %arg22[%c0_2, %c0_3] : memref<256x1024xbf16, #tpu.memory_space<vmem>>, vector<256x1024xbf16>
    %cst = arith.constant dense<0.000000e+00> : vector<128x1024xf32>
    %24 = tpu.matmul %20, %23, %cst {dimension_numbers = #tpu.dot_dimension_numbers<[1], [0], [0], [1], [0, 0, 1, 1], [], []>} : vector<128x256xbf16>, vector<256x1024xbf16>, vector<128x1024xf32> -> vector<128x1024xf32>
    %c0_4 = arith.constant 0 : index
    %c0_5 = arith.constant 0 : index
    %25 = vector.load %arg1[%c0_4, %c0_5] : memref<1x1024xf32, #tpu.memory_space<vmem>>, vector<1x1024xf32>
    %26 = vector.broadcast %25 : vector<1x1024xf32> to vector<128x1024xf32>
    %27 = arith.addf %24, %26 : vector<128x1024xf32>
    %cst_6 = arith.constant 0.000000e+00 : f32
    %28 = vector.broadcast %cst_6 : f32 to vector<128x1024xf32>
    %29 = arith.maximumf %27, %28 : vector<128x1024xf32>
    %30 = arith.truncf %29 : vector<128x1024xf32> to vector<128x1024xbf16>
    %c1_i32_7 = arith.constant 1 : i32
    %31 = tpu.memref_slice %arg32[%c1_i32_7] : memref<10x!tpu.dma_semaphore, #tpu.memory_space<semaphore_mem>> -> memref<1x!tpu.dma_semaphore, #tpu.memory_space<semaphore_mem>>
    %32 = tpu.memref_squeeze %31 : memref<1x!tpu.dma_semaphore, #tpu.memory_space<semaphore_mem>> -> memref<!tpu.dma_semaphore, #tpu.memory_space<semaphore_mem>>
    tpu.wait_dma2 semaphore(%32 : memref<!tpu.dma_semaphore, #tpu.memory_space<semaphore_mem>>) src(%arg12 : memref<1024x512xbf16, #tpu.memory_space<any>>) dst(%arg23 : memref<1024x512xbf16, #tpu.memory_space<vmem>>)
    %c0_8 = arith.constant 0 : index
    %c0_9 = arith.constant 0 : index
    %33 = vector.load %arg23[%c0_8, %c0_9] : memref<1024x512xbf16, #tpu.memory_space<vmem>>, vector<1024x512xbf16>
    %cst_10 = arith.constant dense<0.000000e+00> : vector<128x512xf32>
    %34 = tpu.matmul %30, %33, %cst_10 {dimension_numbers = #tpu.dot_dimension_numbers<[1], [0], [0], [1], [0, 0, 1, 1], [], []>} : vector<128x1024xbf16>, vector<1024x512xbf16>, vector<128x512xf32> -> vector<128x512xf32>
    %c0_11 = arith.constant 0 : index
    %c0_12 = arith.constant 0 : index
    %35 = vector.load %arg2[%c0_11, %c0_12] : memref<1x512xf32, #tpu.memory_space<vmem>>, vector<1x512xf32>
    %36 = vector.broadcast %35 : vector<1x512xf32> to vector<128x512xf32>
    %37 = arith.addf %34, %36 : vector<128x512xf32>
    %cst_13 = arith.constant 0.000000e+00 : f32
    %38 = vector.broadcast %cst_13 : f32 to vector<128x512xf32>
    %39 = arith.maximumf %37, %38 : vector<128x512xf32>
    %40 = arith.truncf %39 : vector<128x512xf32> to vector<128x512xbf16>
    %c2_i32_14 = arith.constant 2 : i32
    %41 = tpu.memref_slice %arg32[%c2_i32_14] : memref<10x!tpu.dma_semaphore, #tpu.memory_space<semaphore_mem>> -> memref<1x!tpu.dma_semaphore, #tpu.memory_space<semaphore_mem>>
    %42 = tpu.memref_squeeze %41 : memref<1x!tpu.dma_semaphore, #tpu.memory_space<semaphore_mem>> -> memref<!tpu.dma_semaphore, #tpu.memory_space<semaphore_mem>>
    tpu.wait_dma2 semaphore(%42 : memref<!tpu.dma_semaphore, #tpu.memory_space<semaphore_mem>>) src(%arg13 : memref<512x256xbf16, #tpu.memory_space<any>>) dst(%arg24 : memref<512x256xbf16, #tpu.memory_space<vmem>>)
    %c0_15 = arith.constant 0 : index
    %c0_16 = arith.constant 0 : index
    %43 = vector.load %arg24[%c0_15, %c0_16] : memref<512x256xbf16, #tpu.memory_space<vmem>>, vector<512x256xbf16>
    %cst_17 = arith.constant dense<0.000000e+00> : vector<128x256xf32>
    %44 = tpu.matmul %40, %43, %cst_17 {dimension_numbers = #tpu.dot_dimension_numbers<[1], [0], [0], [1], [0, 0, 1, 1], [], []>} : vector<128x512xbf16>, vector<512x256xbf16>, vector<128x256xf32> -> vector<128x256xf32>
    %c0_18 = arith.constant 0 : index
    %c0_19 = arith.constant 0 : index
    %45 = vector.load %arg3[%c0_18, %c0_19] : memref<1x256xf32, #tpu.memory_space<vmem>>, vector<1x256xf32>
    %46 = vector.broadcast %45 : vector<1x256xf32> to vector<128x256xf32>
    %47 = arith.addf %44, %46 : vector<128x256xf32>
    %cst_20 = arith.constant 0.000000e+00 : f32
    %48 = vector.broadcast %cst_20 : f32 to vector<128x256xf32>
    %49 = arith.maximumf %47, %48 : vector<128x256xf32>
    %50 = arith.truncf %49 : vector<128x256xf32> to vector<128x256xbf16>
    %c3_i32_21 = arith.constant 3 : i32
    %51 = tpu.memref_slice %arg32[%c3_i32_21] : memref<10x!tpu.dma_semaphore, #tpu.memory_space<semaphore_mem>> -> memref<1x!tpu.dma_semaphore, #tpu.memory_space<semaphore_mem>>
    %52 = tpu.memref_squeeze %51 : memref<1x!tpu.dma_semaphore, #tpu.memory_space<semaphore_mem>> -> memref<!tpu.dma_semaphore, #tpu.memory_space<semaphore_mem>>
    tpu.wait_dma2 semaphore(%52 : memref<!tpu.dma_semaphore, #tpu.memory_space<semaphore_mem>>) src(%arg14 : memref<256x64xbf16, #tpu.memory_space<any>>) dst(%arg25 : memref<256x64xbf16, #tpu.memory_space<vmem>>)
    %c0_22 = arith.constant 0 : index
    %c0_23 = arith.constant 0 : index
    %53 = vector.load %arg25[%c0_22, %c0_23] : memref<256x64xbf16, #tpu.memory_space<vmem>>, vector<256x64xbf16>
    %cst_24 = arith.constant dense<0.000000e+00> : vector<128x64xf32>
    %54 = tpu.matmul %50, %53, %cst_24 {dimension_numbers = #tpu.dot_dimension_numbers<[1], [0], [0], [1], [0, 0, 1, 1], [], []>} : vector<128x256xbf16>, vector<256x64xbf16>, vector<128x64xf32> -> vector<128x64xf32>
    %c0_25 = arith.constant 0 : index
    %c0_26 = arith.constant 0 : index
    %55 = vector.load %arg4[%c0_25, %c0_26] : memref<1x64xf32, #tpu.memory_space<vmem>>, vector<1x64xf32>
    %56 = vector.broadcast %55 : vector<1x64xf32> to vector<128x64xf32>
    %57 = arith.addf %54, %56 : vector<128x64xf32>
    %cst_27 = arith.constant 0.000000e+00 : f32
    %58 = vector.broadcast %cst_27 : f32 to vector<128x64xf32>
    %59 = arith.maximumf %57, %58 : vector<128x64xf32>
    %60 = arith.truncf %59 : vector<128x64xf32> to vector<128x64xbf16>
    %c4_i32_28 = arith.constant 4 : i32
    %61 = tpu.memref_slice %arg32[%c4_i32_28] : memref<10x!tpu.dma_semaphore, #tpu.memory_space<semaphore_mem>> -> memref<1x!tpu.dma_semaphore, #tpu.memory_space<semaphore_mem>>
    %62 = tpu.memref_squeeze %61 : memref<1x!tpu.dma_semaphore, #tpu.memory_space<semaphore_mem>> -> memref<!tpu.dma_semaphore, #tpu.memory_space<semaphore_mem>>
    tpu.wait_dma2 semaphore(%62 : memref<!tpu.dma_semaphore, #tpu.memory_space<semaphore_mem>>) src(%arg15 : memref<64x32xbf16, #tpu.memory_space<any>>) dst(%arg26 : memref<64x32xbf16, #tpu.memory_space<vmem>>)
    %c0_29 = arith.constant 0 : index
    %c0_30 = arith.constant 0 : index
    %63 = vector.load %arg26[%c0_29, %c0_30] : memref<64x32xbf16, #tpu.memory_space<vmem>>, vector<64x32xbf16>
    %cst_31 = arith.constant dense<0.000000e+00> : vector<128x32xf32>
    %64 = tpu.matmul %60, %63, %cst_31 {dimension_numbers = #tpu.dot_dimension_numbers<[1], [0], [0], [1], [0, 0, 1, 1], [], []>} : vector<128x64xbf16>, vector<64x32xbf16>, vector<128x32xf32> -> vector<128x32xf32>
    %c0_32 = arith.constant 0 : index
    %c0_33 = arith.constant 0 : index
    %65 = vector.load %arg5[%c0_32, %c0_33] : memref<1x32xf32, #tpu.memory_space<vmem>>, vector<1x32xf32>
    %66 = vector.broadcast %65 : vector<1x32xf32> to vector<128x32xf32>
    %67 = arith.addf %64, %66 : vector<128x32xf32>
    %68 = arith.truncf %67 : vector<128x32xf32> to vector<128x32xbf16>
    %c5_i32_34 = arith.constant 5 : i32
    %69 = tpu.memref_slice %arg32[%c5_i32_34] : memref<10x!tpu.dma_semaphore, #tpu.memory_space<semaphore_mem>> -> memref<1x!tpu.dma_semaphore, #tpu.memory_space<semaphore_mem>>
    %70 = tpu.memref_squeeze %69 : memref<1x!tpu.dma_semaphore, #tpu.memory_space<semaphore_mem>> -> memref<!tpu.dma_semaphore, #tpu.memory_space<semaphore_mem>>
    tpu.wait_dma2 semaphore(%70 : memref<!tpu.dma_semaphore, #tpu.memory_space<semaphore_mem>>) src(%arg16 : memref<32x64xbf16, #tpu.memory_space<any>>) dst(%arg27 : memref<32x64xbf16, #tpu.memory_space<vmem>>)
    %c0_35 = arith.constant 0 : index
    %c0_36 = arith.constant 0 : index
    %71 = vector.load %arg27[%c0_35, %c0_36] : memref<32x64xbf16, #tpu.memory_space<vmem>>, vector<32x64xbf16>
    %cst_37 = arith.constant dense<0.000000e+00> : vector<128x64xf32>
    %72 = tpu.matmul %68, %71, %cst_37 {dimension_numbers = #tpu.dot_dimension_numbers<[1], [0], [0], [1], [0, 0, 1, 1], [], []>} : vector<128x32xbf16>, vector<32x64xbf16>, vector<128x64xf32> -> vector<128x64xf32>
    %c0_38 = arith.constant 0 : index
    %c0_39 = arith.constant 0 : index
    %73 = vector.load %arg6[%c0_38, %c0_39] : memref<1x64xf32, #tpu.memory_space<vmem>>, vector<1x64xf32>
    %74 = vector.broadcast %73 : vector<1x64xf32> to vector<128x64xf32>
    %75 = arith.addf %72, %74 : vector<128x64xf32>
    %cst_40 = arith.constant 0.000000e+00 : f32
    %76 = vector.broadcast %cst_40 : f32 to vector<128x64xf32>
    %77 = arith.maximumf %75, %76 : vector<128x64xf32>
    %78 = arith.truncf %77 : vector<128x64xf32> to vector<128x64xbf16>
    %c6_i32_41 = arith.constant 6 : i32
    %79 = tpu.memref_slice %arg32[%c6_i32_41] : memref<10x!tpu.dma_semaphore, #tpu.memory_space<semaphore_mem>> -> memref<1x!tpu.dma_semaphore, #tpu.memory_space<semaphore_mem>>
    %80 = tpu.memref_squeeze %79 : memref<1x!tpu.dma_semaphore, #tpu.memory_space<semaphore_mem>> -> memref<!tpu.dma_semaphore, #tpu.memory_space<semaphore_mem>>
    tpu.wait_dma2 semaphore(%80 : memref<!tpu.dma_semaphore, #tpu.memory_space<semaphore_mem>>) src(%arg17 : memref<64x256xbf16, #tpu.memory_space<any>>) dst(%arg28 : memref<64x256xbf16, #tpu.memory_space<vmem>>)
    %c0_42 = arith.constant 0 : index
    %c0_43 = arith.constant 0 : index
    %81 = vector.load %arg28[%c0_42, %c0_43] : memref<64x256xbf16, #tpu.memory_space<vmem>>, vector<64x256xbf16>
    %cst_44 = arith.constant dense<0.000000e+00> : vector<128x256xf32>
    %82 = tpu.matmul %78, %81, %cst_44 {dimension_numbers = #tpu.dot_dimension_numbers<[1], [0], [0], [1], [0, 0, 1, 1], [], []>} : vector<128x64xbf16>, vector<64x256xbf16>, vector<128x256xf32> -> vector<128x256xf32>
    %c0_45 = arith.constant 0 : index
    %c0_46 = arith.constant 0 : index
    %83 = vector.load %arg7[%c0_45, %c0_46] : memref<1x256xf32, #tpu.memory_space<vmem>>, vector<1x256xf32>
    %84 = vector.broadcast %83 : vector<1x256xf32> to vector<128x256xf32>
    %85 = arith.addf %82, %84 : vector<128x256xf32>
    %cst_47 = arith.constant 0.000000e+00 : f32
    %86 = vector.broadcast %cst_47 : f32 to vector<128x256xf32>
    %87 = arith.maximumf %85, %86 : vector<128x256xf32>
    %88 = arith.truncf %87 : vector<128x256xf32> to vector<128x256xbf16>
    %c7_i32_48 = arith.constant 7 : i32
    %89 = tpu.memref_slice %arg32[%c7_i32_48] : memref<10x!tpu.dma_semaphore, #tpu.memory_space<semaphore_mem>> -> memref<1x!tpu.dma_semaphore, #tpu.memory_space<semaphore_mem>>
    %90 = tpu.memref_squeeze %89 : memref<1x!tpu.dma_semaphore, #tpu.memory_space<semaphore_mem>> -> memref<!tpu.dma_semaphore, #tpu.memory_space<semaphore_mem>>
    tpu.wait_dma2 semaphore(%90 : memref<!tpu.dma_semaphore, #tpu.memory_space<semaphore_mem>>) src(%arg18 : memref<256x512xbf16, #tpu.memory_space<any>>) dst(%arg29 : memref<256x512xbf16, #tpu.memory_space<vmem>>)
    %c0_49 = arith.constant 0 : index
    %c0_50 = arith.constant 0 : index
    %91 = vector.load %arg29[%c0_49, %c0_50] : memref<256x512xbf16, #tpu.memory_space<vmem>>, vector<256x512xbf16>
    %cst_51 = arith.constant dense<0.000000e+00> : vector<128x512xf32>
    %92 = tpu.matmul %88, %91, %cst_51 {dimension_numbers = #tpu.dot_dimension_numbers<[1], [0], [0], [1], [0, 0, 1, 1], [], []>} : vector<128x256xbf16>, vector<256x512xbf16>, vector<128x512xf32> -> vector<128x512xf32>
    %c0_52 = arith.constant 0 : index
    %c0_53 = arith.constant 0 : index
    %93 = vector.load %arg8[%c0_52, %c0_53] : memref<1x512xf32, #tpu.memory_space<vmem>>, vector<1x512xf32>
    %94 = vector.broadcast %93 : vector<1x512xf32> to vector<128x512xf32>
    %95 = arith.addf %92, %94 : vector<128x512xf32>
    %cst_54 = arith.constant 0.000000e+00 : f32
    %96 = vector.broadcast %cst_54 : f32 to vector<128x512xf32>
    %97 = arith.maximumf %95, %96 : vector<128x512xf32>
    %98 = arith.truncf %97 : vector<128x512xf32> to vector<128x512xbf16>
    %c8_i32_55 = arith.constant 8 : i32
    %99 = tpu.memref_slice %arg32[%c8_i32_55] : memref<10x!tpu.dma_semaphore, #tpu.memory_space<semaphore_mem>> -> memref<1x!tpu.dma_semaphore, #tpu.memory_space<semaphore_mem>>
    %100 = tpu.memref_squeeze %99 : memref<1x!tpu.dma_semaphore, #tpu.memory_space<semaphore_mem>> -> memref<!tpu.dma_semaphore, #tpu.memory_space<semaphore_mem>>
    tpu.wait_dma2 semaphore(%100 : memref<!tpu.dma_semaphore, #tpu.memory_space<semaphore_mem>>) src(%arg19 : memref<512x1024xbf16, #tpu.memory_space<any>>) dst(%arg30 : memref<512x1024xbf16, #tpu.memory_space<vmem>>)
    %c0_56 = arith.constant 0 : index
    %c0_57 = arith.constant 0 : index
    %101 = vector.load %arg30[%c0_56, %c0_57] : memref<512x1024xbf16, #tpu.memory_space<vmem>>, vector<512x1024xbf16>
    %cst_58 = arith.constant dense<0.000000e+00> : vector<128x1024xf32>
    %102 = tpu.matmul %98, %101, %cst_58 {dimension_numbers = #tpu.dot_dimension_numbers<[1], [0], [0], [1], [0, 0, 1, 1], [], []>} : vector<128x512xbf16>, vector<512x1024xbf16>, vector<128x1024xf32> -> vector<128x1024xf32>
    %c0_59 = arith.constant 0 : index
    %c0_60 = arith.constant 0 : index
    %103 = vector.load %arg9[%c0_59, %c0_60] : memref<1x1024xf32, #tpu.memory_space<vmem>>, vector<1x1024xf32>
    %104 = vector.broadcast %103 : vector<1x1024xf32> to vector<128x1024xf32>
    %105 = arith.addf %102, %104 : vector<128x1024xf32>
    %cst_61 = arith.constant 0.000000e+00 : f32
    %106 = vector.broadcast %cst_61 : f32 to vector<128x1024xf32>
    %107 = arith.maximumf %105, %106 : vector<128x1024xf32>
    %108 = arith.truncf %107 : vector<128x1024xf32> to vector<128x1024xbf16>
    %c9_i32_62 = arith.constant 9 : i32
    %109 = tpu.memref_slice %arg32[%c9_i32_62] : memref<10x!tpu.dma_semaphore, #tpu.memory_space<semaphore_mem>> -> memref<1x!tpu.dma_semaphore, #tpu.memory_space<semaphore_mem>>
    %110 = tpu.memref_squeeze %109 : memref<1x!tpu.dma_semaphore, #tpu.memory_space<semaphore_mem>> -> memref<!tpu.dma_semaphore, #tpu.memory_space<semaphore_mem>>
    tpu.wait_dma2 semaphore(%110 : memref<!tpu.dma_semaphore, #tpu.memory_space<semaphore_mem>>) src(%arg20 : memref<1024x256xbf16, #tpu.memory_space<any>>) dst(%arg31 : memref<1024x256xbf16, #tpu.memory_space<vmem>>)
    %c0_63 = arith.constant 0 : index
    %c0_64 = arith.constant 0 : index
    %111 = vector.load %arg31[%c0_63, %c0_64] : memref<1024x256xbf16, #tpu.memory_space<vmem>>, vector<1024x256xbf16>
    %cst_65 = arith.constant dense<0.000000e+00> : vector<128x256xf32>
    %112 = tpu.matmul %108, %111, %cst_65 {dimension_numbers = #tpu.dot_dimension_numbers<[1], [0], [0], [1], [0, 0, 1, 1], [], []>} : vector<128x1024xbf16>, vector<1024x256xbf16>, vector<128x256xf32> -> vector<128x256xf32>
    %c0_66 = arith.constant 0 : index
    %c0_67 = arith.constant 0 : index
    %113 = vector.load %arg10[%c0_66, %c0_67] : memref<1x256xf32, #tpu.memory_space<vmem>>, vector<1x256xf32>
    %114 = vector.broadcast %113 : vector<1x256xf32> to vector<128x256xf32>
    %115 = arith.addf %112, %114 : vector<128x256xf32>
    %c0_68 = arith.constant 0 : index
    %c0_69 = arith.constant 0 : index
    %116 = vector.load %arg21[%c0_68, %c0_69] : memref<128x256xf32, #tpu.memory_space<vmem>>, vector<128x256xf32>
    tpu.vector_store %arg21[%c0_68, %c0_69], %115 {strides = array<i32>} : memref<128x256xf32, #tpu.memory_space<vmem>>, vector<128x256xf32>,
    return
  }
}

</mosaic_0001>

<bundles_post_ra>
// kernel: autoencoder_forward.1
= control target key start
LH: loop header
LB: loop body
LE: loop exit
PB: predicated region body
PF: predicated region fallthrough
CT: control target
= control target key end

     0   :  { %s10267_s0 = inlined_call_operand.vmem [shape: bf16[128,256], index: 0, kind: input, shape index: {}]   ;;  %s10268_s1 = inlined_call_operand.vmem [shape: f32[1,1024], index: 1, kind: input, shape index: {}]   ;;  %s10269_s2 = inlined_call_operand.vmem [shape: f32[1,512], index: 2, kind: input, shape index: {}]   ;;  %s10270_s3 = inlined_call_operand.vmem [shape: f32[1,256], index: 3, kind: input, shape index: {}]   ;;  %s10271_s4 = inlined_call_operand.vmem [shape: f32[1,64], index: 4, kind: input, shape index: {}]   ;;  %s10272_s5 = inlined_call_operand.vmem [shape: f32[1,32], index: 5, kind: input, shape index: {}]   ;;  %s10273_s6 = inlined_call_operand.vmem [shape: f32[1,64], index: 6, kind: input, shape index: {}]   ;;  %s10274_s7 = inlined_call_operand.vmem [shape: f32[1,256], index: 7, kind: input, shape index: {}]   ;;  %s10275_s8 = inlined_call_operand.vmem [shape: f32[1,512], index: 8, kind: input, shape index: {}]   ;;  %s10276_s9 = inlined_call_operand.vmem [shape: f32[1,1024], index: 9, kind: input, shape index: {}]   ;;  %s10277_s10 = inlined_call_operand.vmem [shape: f32[1,256], index: 10, kind: input, shape index: {}]   ;;  %s10278_s11 = inlined_call_operand.hbm [shape: bf16[256,1024], index: 11, kind: input, shape index: {}]   ;;  %s10279_s12 = inlined_call_operand.hbm [shape: bf16[1024,512], index: 12, kind: input, shape index: {}]   ;;  %s10280_s13 = inlined_call_operand.vmem [shape: bf16[512,256], index: 13, kind: input, shape index: {}]   ;;  %s10281_s14 = inlined_call_operand.vmem [shape: bf16[256,64], index: 14, kind: input, shape index: {}]   ;;  %s10282_s15 = inlined_call_operand.vmem [shape: bf16[64,32], index: 15, kind: input, shape index: {}]   ;;  %s10283_s16 = inlined_call_operand.vmem [shape: bf16[32,64], index: 16, kind: input, shape index: {}]   ;;  %s10284_s17 = inlined_call_operand.vmem [shape: bf16[64,256], index: 17, kind: input, shape index: {}]   ;;  %s10285_s18 = inlined_call_operand.hbm [shape: bf16[256,512], index: 18, kind: input, shape index: {}]   ;;  %s10286_s19 = inlined_call_operand.hbm [shape: bf16[512,1024], index: 19, kind: input, shape index: {}]   ;;  %s10287_s20 = inlined_call_operand.hbm [shape: bf16[1024,256], index: 20, kind: input, shape index: {}]   ;;  %s10288_s21 = inlined_call_operand.hbm [shape: f32[128,256], index: 21, kind: output, shape index: {}]  }
   0x1   :  { %10355 = sst [smem:[#allocation84_spill]] %s10267_s0 }
   0x2   :  { %10356 = sst [smem:[#allocation85_spill]] %s10268_s1 }
   0x3   :  { %10357 = sst [smem:[#allocation86_spill]] %s10269_s2 }
   0x4   :  { %10358 = sst [smem:[#allocation87_spill]] %s10270_s3 }
   0x5   :  { %10359 = sst [smem:[#allocation88_spill]] %s10271_s4 }
   0x6   :  { %10360 = sst [smem:[#allocation89_spill]] %s10272_s5 }
   0x7   :  { %26 = vsyncpa [#allocation14], 0  ;;  %s54_s2 = sld [smem:[#allocation0]]   ;;  %s7830_s25 = smov [#allocation2]  }
   0x8   :  { %s62_s26 = sshll.u32 %s7830_s25, 4  ;;  %s10291_s27 = smov 1024   ;;  %s63_s26 = int_to_ptr.vmem [resolvable:$true] %s62_s26 }
   0x9   :  { %66 = sst [smem:[#allocation16]] %s10291_s27  ;;  %s10290_s3 = smov 8  }
   0xa   :  { %68 = sst [smem:[#allocation16 + $0x1]] %s10291_s27  ;;  %s10299_s28 = smov 64  }
   0xb   :  { %70 = sst [smem:[#allocation16 + $0x2]] %s10290_s3  ;;  %s10297_s0 = smov 128  }
   0xc   :  { %72 = sst [smem:[#allocation16 + $0x3]] %s10299_s28  ;;  %s10293_s30 = smov 2  }
   0xd   :  { %s6847_s29 = sshll.u32 %s54_s2, 26  ;;  %74 = sst [smem:[#allocation16 + $0x4]] %s10297_s0 }
   0xe   :  { %s7971_s4 = sadd.s32 134217728, %s6847_s29  ;;  %76 = sst [smem:[#allocation16 + $0x5]] %s10293_s30 }
   0xf   :  { %s7836_s5 = smov 512   ;;  %80 = sst [smem:[#allocation16 + $0x7]] %s10299_s28 }
  0x10   :  { %78 = sst [smem:[#allocation16 + $0x6]] %s7836_s5  ;;  %s7837_s22 = smov 4  }
  0x11   :  { %82 = sst [smem:[#allocation16 + $0x8]] %s7837_s22  ;;  %s7838_s23 = smov [#allocation12]  }
  0x12   :  { %s7839_s1 = smov [#allocation15]   ;;  %s7840_s25 = smov [#allocation3]  }
  0x13   :  { %84 = dma.general %s10278_s11, 16384, %s63_s26, %s7838_s23, %s7839_s1, [#allocation16], %s7971_s4, 0  }
  0x14   :  { %101 = sst [smem:[#allocation18]] %s7836_s5  ;;  %s97_s29 = sshll.u32 %s7840_s25, 4  ;;  %s98_s29 = int_to_ptr.vmem [resolvable:$true] %s97_s29 }
  0x15   :  { %103 = sst [smem:[#allocation18 + $0x1]] %s7836_s5  ;;  %s10295_s3 = smov 256  }
  0x16   :  { %105 = sst [smem:[#allocation18 + $0x2]] %s7837_s22  ;;  %s7842_s11 = smov [#allocation12 + $0x1]  }
  0x17   :  { %107 = sst [smem:[#allocation18 + $0x3]] %s10299_s28  ;;  %s7843_s26 = smov [#allocation17]  }
  0x18   :  { %109 = sst [smem:[#allocation18 + $0x4]] %s10297_s0 }
  0x19   :  { %111 = sst [smem:[#allocation18 + $0x5]] %s10293_s30 }
  0x1a   :  { %113 = sst [smem:[#allocation18 + $0x6]] %s10295_s3 }
  0x1b   :  { %115 = sst [smem:[#allocation18 + $0x7]] %s10299_s28 }
  0x1c   :  { %117 = sst [smem:[#allocation18 + $0x8]] %s7837_s22 }
  0x1d   :  { %119 = dma.general %s10279_s12, 32768, %s98_s29, %s7842_s11, %s7843_s26, [#allocation18], %s7971_s4, 0  }
  0x1e   :  { %v138_v0 = vld [vmem:[%s10280_s13] sm:$0xf]  ;;  %v140_v1 = vld [vmem:[%s10280_s13 + $0x8] sm:$0xf]  ;;  %v142_v2 = vld [vmem:[%s10280_s13 + $0x4] sm:$0xf] }
  0x1f   :  { %139 = vst [vmem:[#allocation4] sm:$0xf] %v138_v0  ;;  %141 = vst [vmem:[#allocation4 + $0x4] sm:$0xf] %v140_v1  ;;  %v144_v3 = vld [vmem:[%s10280_s13 + $0xc] sm:$0xff]   ;;  %v152_v6 = vld [vmem:[%s10280_s13 + $0x1c] sm:$0xff]  }
  0x20   :  { %143 = vst [vmem:[#allocation4 + $0x8] sm:$0xf] %v142_v2  ;;  %v148_v4 = vld [vmem:[%s10280_s13 + $0x18] sm:$0xf]  ;;  %v150_v5 = vld [vmem:[%s10280_s13 + $0x14] sm:$0xf] }
  0x21   :  { %145 = vst [vmem:[#allocation4 + $0xc] sm:$0xff] %v144_v3   ;;  %149 = vst [vmem:[#allocation4 + $0x14] sm:$0xf] %v148_v4  ;;  %v156_v7 = vld [vmem:[%s10280_s13 + $0x28] sm:$0xf]  ;;  %v160_v9 = vld [vmem:[%s10280_s13 + $0x2c] sm:$0xff]  }
  0x22   :  { %151 = vst [vmem:[#allocation4 + $0x18] sm:$0xf] %v150_v5  ;;  %v158_v8 = vld [vmem:[%s10280_s13 + $0x24] sm:$0xf]  ;;  %153 = vst [vmem:[#allocation4 + $0x1c] sm:$0xff] %v152_v6   ;;  %v168_v12 = vld [vmem:[%s10280_s13 + $0x3c] sm:$0xff]  }
  0x23   :  { %157 = vst [vmem:[#allocation4 + $0x24] sm:$0xf] %v156_v7  ;;  %159 = vst [vmem:[#allocation4 + $0x28] sm:$0xf] %v158_v8  ;;  %v164_v10 = vld [vmem:[%s10280_s13 + $0x38] sm:$0xf] }
  0x24   :  { %v166_v11 = vld [vmem:[%s10280_s13 + $0x34] sm:$0xf]  ;;  %161 = vst [vmem:[#allocation4 + $0x2c] sm:$0xff] %v160_v9   ;;  %165 = vst [vmem:[#allocation4 + $0x34] sm:$0xf] %v164_v10  ;;  %v176_v15 = vld [vmem:[%s10280_s13 + $0x4c] sm:$0xff]  }
  0x25   :  { %167 = vst [vmem:[#allocation4 + $0x38] sm:$0xf] %v166_v11  ;;  %v172_v13 = vld [vmem:[%s10280_s13 + $0x48] sm:$0xf]  ;;  %v174_v14 = vld [vmem:[%s10280_s13 + $0x44] sm:$0xf] }
  0x26   :  { %169 = vst [vmem:[#allocation4 + $0x3c] sm:$0xff] %v168_v12   ;;  %173 = vst [vmem:[#allocation4 + $0x44] sm:$0xf] %v172_v13  ;;  %v180_v16 = vld [vmem:[%s10280_s13 + $0x58] sm:$0xf]  ;;  %v184_v18 = vld [vmem:[%s10280_s13 + $0x5c] sm:$0xff]  }
  0x27   :  { %175 = vst [vmem:[#allocation4 + $0x48] sm:$0xf] %v174_v14  ;;  %v182_v17 = vld [vmem:[%s10280_s13 + $0x54] sm:$0xf]  ;;  %177 = vst [vmem:[#allocation4 + $0x4c] sm:$0xff] %v176_v15   ;;  %v192_v21 = vld [vmem:[%s10280_s13 + $0x6c] sm:$0xff]  }
  0x28   :  { %181 = vst [vmem:[#allocation4 + $0x54] sm:$0xf] %v180_v16  ;;  %183 = vst [vmem:[#allocation4 + $0x58] sm:$0xf] %v182_v17  ;;  %v188_v19 = vld [vmem:[%s10280_s13 + $0x68] sm:$0xf] }
  0x29   :  { %v190_v20 = vld [vmem:[%s10280_s13 + $0x64] sm:$0xf]  ;;  %185 = vst [vmem:[#allocation4 + $0x5c] sm:$0xff] %v184_v18   ;;  %189 = vst [vmem:[#allocation4 + $0x64] sm:$0xf] %v188_v19  ;;  %v200_v24 = vld [vmem:[%s10280_s13 + $0x7c] sm:$0xff]  }
  0x2a   :  { %191 = vst [vmem:[#allocation4 + $0x68] sm:$0xf] %v190_v20  ;;  %v196_v22 = vld [vmem:[%s10280_s13 + $0x78] sm:$0xf]  ;;  %v198_v23 = vld [vmem:[%s10280_s13 + $0x74] sm:$0xf] }
  0x2b   :  { %193 = vst [vmem:[#allocation4 + $0x6c] sm:$0xff] %v192_v21   ;;  %197 = vst [vmem:[#allocation4 + $0x74] sm:$0xf] %v196_v22  ;;  %v204_v25 = vld [vmem:[%s10280_s13 + $0x88] sm:$0xf]  ;;  %v208_v27 = vld [vmem:[%s10280_s13 + $0x8c] sm:$0xff]  }
  0x2c   :  { %199 = vst [vmem:[#allocation4 + $0x78] sm:$0xf] %v198_v23  ;;  %v206_v26 = vld [vmem:[%s10280_s13 + $0x84] sm:$0xf]  ;;  %201 = vst [vmem:[#allocation4 + $0x7c] sm:$0xff] %v200_v24   ;;  %v216_v30 = vld [vmem:[%s10280_s13 + $0x9c] sm:$0xff]  }
  0x2d   :  { %205 = vst [vmem:[#allocation4 + $0x84] sm:$0xf] %v204_v25  ;;  %207 = vst [vmem:[#allocation4 + $0x88] sm:$0xf] %v206_v26  ;;  %v212_v28 = vld [vmem:[%s10280_s13 + $0x98] sm:$0xf] }
  0x2e   :  { %v214_v29 = vld [vmem:[%s10280_s13 + $0x94] sm:$0xf]  ;;  %209 = vst [vmem:[#allocation4 + $0x8c] sm:$0xff] %v208_v27   ;;  %213 = vst [vmem:[#allocation4 + $0x94] sm:$0xf] %v212_v28  ;;  %v224_v33 = vld [vmem:[%s10280_s13 + $0xac] sm:$0xff]  }
  0x2f   :  { %215 = vst [vmem:[#allocation4 + $0x98] sm:$0xf] %v214_v29  ;;  %v220_v31 = vld [vmem:[%s10280_s13 + $0xa8] sm:$0xf]  ;;  %v222_v32 = vld [vmem:[%s10280_s13 + $0xa4] sm:$0xf] }
  0x30   :  { %217 = vst [vmem:[#allocation4 + $0x9c] sm:$0xff] %v216_v30   ;;  %221 = vst [vmem:[#allocation4 + $0xa4] sm:$0xf] %v220_v31  ;;  %v228_v34 = vld [vmem:[%s10280_s13 + $0xb8] sm:$0xf]  ;;  %v232_v36 = vld [vmem:[%s10280_s13 + $0xbc] sm:$0xff]  }
  0x31   :  { %223 = vst [vmem:[#allocation4 + $0xa8] sm:$0xf] %v222_v32  ;;  %v230_v35 = vld [vmem:[%s10280_s13 + $0xb4] sm:$0xf]  ;;  %225 = vst [vmem:[#allocation4 + $0xac] sm:$0xff] %v224_v33   ;;  %v240_v39 = vld [vmem:[%s10280_s13 + $0xcc] sm:$0xff]  }
  0x32   :  { %229 = vst [vmem:[#allocation4 + $0xb4] sm:$0xf] %v228_v34  ;;  %231 = vst [vmem:[#allocation4 + $0xb8] sm:$0xf] %v230_v35  ;;  %v236_v37 = vld [vmem:[%s10280_s13 + $0xc8] sm:$0xf] }
  0x33   :  { %v238_v38 = vld [vmem:[%s10280_s13 + $0xc4] sm:$0xf]  ;;  %233 = vst [vmem:[#allocation4 + $0xbc] sm:$0xff] %v232_v36   ;;  %237 = vst [vmem:[#allocation4 + $0xc4] sm:$0xf] %v236_v37  ;;  %v248_v42 = vld [vmem:[%s10280_s13 + $0xdc] sm:$0xff]  }
  0x34   :  { %239 = vst [vmem:[#allocation4 + $0xc8] sm:$0xf] %v238_v38  ;;  %v244_v40 = vld [vmem:[%s10280_s13 + $0xd8] sm:$0xf]  ;;  %v246_v41 = vld [vmem:[%s10280_s13 + $0xd4] sm:$0xf] }
  0x35   :  { %241 = vst [vmem:[#allocation4 + $0xcc] sm:$0xff] %v240_v39   ;;  %245 = vst [vmem:[#allocation4 + $0xd4] sm:$0xf] %v244_v40  ;;  %v252_v43 = vld [vmem:[%s10280_s13 + $0xe8] sm:$0xf]  ;;  %v256_v45 = vld [vmem:[%s10280_s13 + $0xec] sm:$0xff]  }
  0x36   :  { %247 = vst [vmem:[#allocation4 + $0xd8] sm:$0xf] %v246_v41  ;;  %v254_v44 = vld [vmem:[%s10280_s13 + $0xe4] sm:$0xf]  ;;  %249 = vst [vmem:[#allocation4 + $0xdc] sm:$0xff] %v248_v42   ;;  %v264_v48 = vld [vmem:[%s10280_s13 + $0xfc] sm:$0xff]  }
  0x37   :  { %253 = vst [vmem:[#allocation4 + $0xe4] sm:$0xf] %v252_v43  ;;  %255 = vst [vmem:[#allocation4 + $0xe8] sm:$0xf] %v254_v44  ;;  %v260_v46 = vld [vmem:[%s10280_s13 + $0xf8] sm:$0xf] }
  0x38   :  { %v262_v47 = vld [vmem:[%s10280_s13 + $0xf4] sm:$0xf]  ;;  %257 = vst [vmem:[#allocation4 + $0xec] sm:$0xff] %v256_v45   ;;  %261 = vst [vmem:[#allocation4 + $0xf4] sm:$0xf] %v260_v46  ;;  %v272_v51 = vld [vmem:[%s10280_s13 + $0x10c] sm:$0xff]  }
  0x39   :  { %263 = vst [vmem:[#allocation4 + $0xf8] sm:$0xf] %v262_v47  ;;  %v268_v49 = vld [vmem:[%s10280_s13 + $0x108] sm:$0xf]  ;;  %v270_v50 = vld [vmem:[%s10280_s13 + $0x104] sm:$0xf] }
  0x3a   :  { %265 = vst [vmem:[#allocation4 + $0xfc] sm:$0xff] %v264_v48   ;;  %269 = vst [vmem:[#allocation4 + $0x104] sm:$0xf] %v268_v49  ;;  %v276_v52 = vld [vmem:[%s10280_s13 + $0x118] sm:$0xf]  ;;  %v280_v54 = vld [vmem:[%s10280_s13 + $0x11c] sm:$0xff]  }
  0x3b   :  { %271 = vst [vmem:[#allocation4 + $0x108] sm:$0xf] %v270_v50  ;;  %v278_v53 = vld [vmem:[%s10280_s13 + $0x114] sm:$0xf]  ;;  %273 = vst [vmem:[#allocation4 + $0x10c] sm:$0xff] %v272_v51   ;;  %v288_v57 = vld [vmem:[%s10280_s13 + $0x12c] sm:$0xff]  }
  0x3c   :  { %277 = vst [vmem:[#allocation4 + $0x114] sm:$0xf] %v276_v52  ;;  %279 = vst [vmem:[#allocation4 + $0x118] sm:$0xf] %v278_v53  ;;  %v284_v55 = vld [vmem:[%s10280_s13 + $0x128] sm:$0xf] }
  0x3d   :  { %v286_v56 = vld [vmem:[%s10280_s13 + $0x124] sm:$0xf]  ;;  %281 = vst [vmem:[#allocation4 + $0x11c] sm:$0xff] %v280_v54   ;;  %285 = vst [vmem:[#allocation4 + $0x124] sm:$0xf] %v284_v55  ;;  %v296_v60 = vld [vmem:[%s10280_s13 + $0x13c] sm:$0xff]  }
  0x3e   :  { %287 = vst [vmem:[#allocation4 + $0x128] sm:$0xf] %v286_v56  ;;  %v292_v58 = vld [vmem:[%s10280_s13 + $0x138] sm:$0xf]  ;;  %v294_v59 = vld [vmem:[%s10280_s13 + $0x134] sm:$0xf] }
  0x3f   :  { %289 = vst [vmem:[#allocation4 + $0x12c] sm:$0xff] %v288_v57   ;;  %293 = vst [vmem:[#allocation4 + $0x134] sm:$0xf] %v292_v58  ;;  %v300_v61 = vld [vmem:[%s10280_s13 + $0x148] sm:$0xf]  ;;  %v304_v63 = vld [vmem:[%s10280_s13 + $0x14c] sm:$0xff]  }
  0x40   :  { %295 = vst [vmem:[#allocation4 + $0x138] sm:$0xf] %v294_v59  ;;  %v302_v62 = vld [vmem:[%s10280_s13 + $0x144] sm:$0xf]  ;;  %297 = vst [vmem:[#allocation4 + $0x13c] sm:$0xff] %v296_v60   ;;  %v312_v2 = vld [vmem:[%s10280_s13 + $0x15c] sm:$0xff]  }
  0x41   :  { %301 = vst [vmem:[#allocation4 + $0x144] sm:$0xf] %v300_v61  ;;  %303 = vst [vmem:[#allocation4 + $0x148] sm:$0xf] %v302_v62  ;;  %v308_v0 = vld [vmem:[%s10280_s13 + $0x158] sm:$0xf] }
  0x42   :  { %v310_v1 = vld [vmem:[%s10280_s13 + $0x154] sm:$0xf]  ;;  %305 = vst [vmem:[#allocation4 + $0x14c] sm:$0xff] %v304_v63   ;;  %309 = vst [vmem:[#allocation4 + $0x154] sm:$0xf] %v308_v0  ;;  %v320_v5 = vld [vmem:[%s10280_s13 + $0x16c] sm:$0xff]  }
  0x43   :  { %311 = vst [vmem:[#allocation4 + $0x158] sm:$0xf] %v310_v1  ;;  %v316_v3 = vld [vmem:[%s10280_s13 + $0x168] sm:$0xf]  ;;  %v318_v4 = vld [vmem:[%s10280_s13 + $0x164] sm:$0xf] }
  0x44   :  { %313 = vst [vmem:[#allocation4 + $0x15c] sm:$0xff] %v312_v2   ;;  %317 = vst [vmem:[#allocation4 + $0x164] sm:$0xf] %v316_v3  ;;  %v324_v6 = vld [vmem:[%s10280_s13 + $0x178] sm:$0xf]  ;;  %v328_v8 = vld [vmem:[%s10280_s13 + $0x17c] sm:$0xff]  }
  0x45   :  { %319 = vst [vmem:[#allocation4 + $0x168] sm:$0xf] %v318_v4  ;;  %v326_v7 = vld [vmem:[%s10280_s13 + $0x174] sm:$0xf]  ;;  %321 = vst [vmem:[#allocation4 + $0x16c] sm:$0xff] %v320_v5   ;;  %v336_v11 = vld [vmem:[%s10280_s13 + $0x18c] sm:$0xff]  }
  0x46   :  { %325 = vst [vmem:[#allocation4 + $0x174] sm:$0xf] %v324_v6  ;;  %327 = vst [vmem:[#allocation4 + $0x178] sm:$0xf] %v326_v7  ;;  %v332_v9 = vld [vmem:[%s10280_s13 + $0x188] sm:$0xf] }
  0x47   :  { %v334_v10 = vld [vmem:[%s10280_s13 + $0x184] sm:$0xf]  ;;  %329 = vst [vmem:[#allocation4 + $0x17c] sm:$0xff] %v328_v8   ;;  %333 = vst [vmem:[#allocation4 + $0x184] sm:$0xf] %v332_v9  ;;  %v344_v14 = vld [vmem:[%s10280_s13 + $0x19c] sm:$0xff]  }
  0x48   :  { %335 = vst [vmem:[#allocation4 + $0x188] sm:$0xf] %v334_v10  ;;  %v340_v12 = vld [vmem:[%s10280_s13 + $0x198] sm:$0xf]  ;;  %v342_v13 = vld [vmem:[%s10280_s13 + $0x194] sm:$0xf] }
  0x49   :  { %337 = vst [vmem:[#allocation4 + $0x18c] sm:$0xff] %v336_v11   ;;  %341 = vst [vmem:[#allocation4 + $0x194] sm:$0xf] %v340_v12  ;;  %v348_v15 = vld [vmem:[%s10280_s13 + $0x1a8] sm:$0xf]  ;;  %v352_v17 = vld [vmem:[%s10280_s13 + $0x1ac] sm:$0xff]  }
  0x4a   :  { %343 = vst [vmem:[#allocation4 + $0x198] sm:$0xf] %v342_v13  ;;  %v350_v16 = vld [vmem:[%s10280_s13 + $0x1a4] sm:$0xf]  ;;  %345 = vst [vmem:[#allocation4 + $0x19c] sm:$0xff] %v344_v14   ;;  %v360_v20 = vld [vmem:[%s10280_s13 + $0x1bc] sm:$0xff]  }
  0x4b   :  { %349 = vst [vmem:[#allocation4 + $0x1a4] sm:$0xf] %v348_v15  ;;  %351 = vst [vmem:[#allocation4 + $0x1a8] sm:$0xf] %v350_v16  ;;  %v356_v18 = vld [vmem:[%s10280_s13 + $0x1b8] sm:$0xf] }
  0x4c   :  { %v358_v19 = vld [vmem:[%s10280_s13 + $0x1b4] sm:$0xf]  ;;  %353 = vst [vmem:[#allocation4 + $0x1ac] sm:$0xff] %v352_v17   ;;  %357 = vst [vmem:[#allocation4 + $0x1b4] sm:$0xf] %v356_v18  ;;  %v368_v23 = vld [vmem:[%s10280_s13 + $0x1cc] sm:$0xff]  }
  0x4d   :  { %359 = vst [vmem:[#allocation4 + $0x1b8] sm:$0xf] %v358_v19  ;;  %v364_v21 = vld [vmem:[%s10280_s13 + $0x1c8] sm:$0xf]  ;;  %v366_v22 = vld [vmem:[%s10280_s13 + $0x1c4] sm:$0xf] }
  0x4e   :  { %361 = vst [vmem:[#allocation4 + $0x1bc] sm:$0xff] %v360_v20   ;;  %365 = vst [vmem:[#allocation4 + $0x1c4] sm:$0xf] %v364_v21  ;;  %v372_v24 = vld [vmem:[%s10280_s13 + $0x1d8] sm:$0xf]  ;;  %v376_v26 = vld [vmem:[%s10280_s13 + $0x1dc] sm:$0xff]  }
  0x4f   :  { %367 = vst [vmem:[#allocation4 + $0x1c8] sm:$0xf] %v366_v22  ;;  %v374_v25 = vld [vmem:[%s10280_s13 + $0x1d4] sm:$0xf]  ;;  %369 = vst [vmem:[#allocation4 + $0x1cc] sm:$0xff] %v368_v23   ;;  %v384_v29 = vld [vmem:[%s10280_s13 + $0x1ec] sm:$0xff]  }
  0x50   :  { %373 = vst [vmem:[#allocation4 + $0x1d4] sm:$0xf] %v372_v24  ;;  %375 = vst [vmem:[#allocation4 + $0x1d8] sm:$0xf] %v374_v25  ;;  %v380_v27 = vld [vmem:[%s10280_s13 + $0x1e8] sm:$0xf] }
  0x51   :  { %v382_v28 = vld [vmem:[%s10280_s13 + $0x1e4] sm:$0xf]  ;;  %377 = vst [vmem:[#allocation4 + $0x1dc] sm:$0xff] %v376_v26   ;;  %381 = vst [vmem:[#allocation4 + $0x1e4] sm:$0xf] %v380_v27 }
  0x52   :  { %383 = vst [vmem:[#allocation4 + $0x1e8] sm:$0xf] %v382_v28  ;;  %v388_v30 = vld [vmem:[%s10280_s13 + $0x1f8] sm:$0xf]  ;;  %v390_v31 = vld [vmem:[%s10280_s13 + $0x1f4] sm:$0xf] }
  0x53   :  { %385 = vst [vmem:[#allocation4 + $0x1ec] sm:$0xff] %v384_v29   ;;  %389 = vst [vmem:[#allocation4 + $0x1f4] sm:$0xf] %v388_v30  ;;  %v392_v32 = vld [vmem:[%s10280_s13 + $0x1fc] sm:$0xf] }
  0x54   :  { %391 = vst [vmem:[#allocation4 + $0x1f8] sm:$0xf] %v390_v31  ;;  %393 = vst [vmem:[#allocation4 + $0x1fc] sm:$0xf] %v392_v32 }
  0x55   :  { %680 = vsyncadd [#allocation12 + $0x2], 8192  ;;  %v8288_v33 = vld [vmem:[%s10281_s14] sm:$0xff]  ;;  %v8293_v34 = vld [vmem:[%s10281_s14 + $0x8] sm:$0xff] }
  0x56   :  { %10361 = vst [vmem:[#allocation41_spill] sm:$0xff] %v8288_v33  ;;  %10362 = vst [vmem:[#allocation42_spill] sm:$0xff] %v8293_v34  ;;  %v8298_v35 = vld [vmem:[%s10281_s14 + $0x10] sm:$0xff]  ;;  %v8303_v36 = vld [vmem:[%s10281_s14 + $0x18] sm:$0xff] }
  0x57   :  { %10363 = vst [vmem:[#allocation43_spill] sm:$0xff] %v8298_v35  ;;  %10364 = vst [vmem:[#allocation44_spill] sm:$0xff] %v8303_v36  ;;  %v8308_v37 = vld [vmem:[%s10281_s14 + $0x20] sm:$0xff]  ;;  %v8313_v38 = vld [vmem:[%s10281_s14 + $0x28] sm:$0xff] }
  0x58   :  { %10365 = vst [vmem:[#allocation45_spill] sm:$0xff] %v8308_v37  ;;  %10366 = vst [vmem:[#allocation46_spill] sm:$0xff] %v8313_v38  ;;  %v8318_v39 = vld [vmem:[%s10281_s14 + $0x30] sm:$0xff]  ;;  %v8323_v40 = vld [vmem:[%s10281_s14 + $0x38] sm:$0xff] }
  0x59   :  { %10367 = vst [vmem:[#allocation47_spill] sm:$0xff] %v8318_v39  ;;  %10368 = vst [vmem:[#allocation48_spill] sm:$0xff] %v8323_v40  ;;  %v8328_v41 = vld [vmem:[%s10281_s14 + $0x40] sm:$0xff]  ;;  %v8333_v42 = vld [vmem:[%s10281_s14 + $0x48] sm:$0xff] }
  0x5a   :  { %10369 = vst [vmem:[#allocation49_spill] sm:$0xff] %v8328_v41  ;;  %10370 = vst [vmem:[#allocation50_spill] sm:$0xff] %v8333_v42  ;;  %v8338_v43 = vld [vmem:[%s10281_s14 + $0x50] sm:$0xff]  ;;  %v8343_v44 = vld [vmem:[%s10281_s14 + $0x58] sm:$0xff] }
  0x5b   :  { %10371 = vst [vmem:[#allocation51_spill] sm:$0xff] %v8338_v43  ;;  %10372 = vst [vmem:[#allocation52_spill] sm:$0xff] %v8343_v44  ;;  %v8348_v45 = vld [vmem:[%s10281_s14 + $0x60] sm:$0xff]  ;;  %v8353_v46 = vld [vmem:[%s10281_s14 + $0x68] sm:$0xff] }
  0x5c   :  { %10373 = vst [vmem:[#allocation53_spill] sm:$0xff] %v8348_v45  ;;  %10374 = vst [vmem:[#allocation54_spill] sm:$0xff] %v8353_v46  ;;  %v8358_v47 = vld [vmem:[%s10281_s14 + $0x70] sm:$0xff]  ;;  %v8363_v48 = vld [vmem:[%s10281_s14 + $0x78] sm:$0xff] }
  0x5d   :  { %10375 = vst [vmem:[#allocation55_spill] sm:$0xff] %v8358_v47  ;;  %10376 = vst [vmem:[#allocation56_spill] sm:$0xff] %v8363_v48 }
  0x5e   :  { %753 = vsyncadd [#allocation12 + $0x3], 2048  ;;  %v8368_v49 = vld [vmem:[%s10282_s15] sm:$0xff]  ;;  %v8373_v50 = vld [vmem:[%s10282_s15 + $0x8] sm:$0xff] }
  0x5f   :  { %10377 = vst [vmem:[#allocation57_spill] sm:$0xff] %v8368_v49  ;;  %10378 = vst [vmem:[#allocation58_spill] sm:$0xff] %v8373_v50  ;;  %v8378_v51 = vld [vmem:[%s10282_s15 + $0x10] sm:$0xff]  ;;  %v8383_v52 = vld [vmem:[%s10282_s15 + $0x18] sm:$0xff] }
  0x60   :  { %10379 = vst [vmem:[#allocation59_spill] sm:$0xff] %v8378_v51  ;;  %10380 = vst [vmem:[#allocation60_spill] sm:$0xff] %v8383_v52 }
  0x61   :  { %802 = vsyncadd [#allocation12 + $0x4], 512  ;;  %v8388_v53 = vld [vmem:[%s10283_s16] sm:$0xff]  ;;  %v8393_v54 = vld [vmem:[%s10283_s16 + $0x8] sm:$0xff] }
  0x62   :  { %10381 = vst [vmem:[#allocation61_spill] sm:$0xff] %v8388_v53  ;;  %10382 = vst [vmem:[#allocation62_spill] sm:$0xff] %v8393_v54 }
  0x63   :  { %847 = vsyncadd [#allocation12 + $0x5], 256  ;;  %v866_v55 = vld [vmem:[%s10284_s17] sm:$0xf]  ;;  %v868_v56 = vld [vmem:[%s10284_s17 + $0x8] sm:$0xf] }
  0x64   :  { %867 = vst [vmem:[#allocation8] sm:$0xf] %v866_v55  ;;  %869 = vst [vmem:[#allocation8 + $0x4] sm:$0xf] %v868_v56  ;;  %v870_v57 = vld [vmem:[%s10284_s17 + $0x4] sm:$0xf] }
  0x65   :  { %v872_v58 = vld [vmem:[%s10284_s17 + $0xc] sm:$0xff]   ;;  %v876_v59 = vld [vmem:[%s10284_s17 + $0x18] sm:$0xf]  ;;  %871 = vst [vmem:[#allocation8 + $0x8] sm:$0xf] %v870_v57  ;;  %v880_v61 = vld [vmem:[%s10284_s17 + $0x1c] sm:$0xff]  }
  0x66   :  { %873 = vst [vmem:[#allocation8 + $0xc] sm:$0xff] %v872_v58   ;;  %877 = vst [vmem:[#allocation8 + $0x14] sm:$0xf] %v876_v59  ;;  %v878_v60 = vld [vmem:[%s10284_s17 + $0x14] sm:$0xf]  ;;  %v888_v0 = vld [vmem:[%s10284_s17 + $0x2c] sm:$0xff]  }
  0x67   :  { %v884_v62 = vld [vmem:[%s10284_s17 + $0x28] sm:$0xf]  ;;  %879 = vst [vmem:[#allocation8 + $0x18] sm:$0xf] %v878_v60  ;;  %881 = vst [vmem:[#allocation8 + $0x1c] sm:$0xff] %v880_v61  }
  0x68   :  { %885 = vst [vmem:[#allocation8 + $0x24] sm:$0xf] %v884_v62  ;;  %v886_v63 = vld [vmem:[%s10284_s17 + $0x24] sm:$0xf]  ;;  %v892_v1 = vld [vmem:[%s10284_s17 + $0x38] sm:$0xf] }
  0x69   :  { %887 = vst [vmem:[#allocation8 + $0x28] sm:$0xf] %v886_v63  ;;  %889 = vst [vmem:[#allocation8 + $0x2c] sm:$0xff] %v888_v0   ;;  %v894_v2 = vld [vmem:[%s10284_s17 + $0x34] sm:$0xf] }
  0x6a   :  { %893 = vst [vmem:[#allocation8 + $0x34] sm:$0xf] %v892_v1  ;;  %v896_v3 = vld [vmem:[%s10284_s17 + $0x3c] sm:$0xf]  ;;  %895 = vst [vmem:[#allocation8 + $0x38] sm:$0xf] %v894_v2 }
  0x6b   :  { %897 = vst [vmem:[#allocation8 + $0x3c] sm:$0xf] %v896_v3 }
  0x6c   :  { %960 = vsyncadd [#allocation12 + $0x6], 1024  ;;  %977 = sst [smem:[#allocation25]] %s7836_s5  ;;  %s7844_s16 = smov [#allocation9]  }
  0x6d   :  { %s973_s0 = sshll.u32 %s7844_s16, 4  ;;  %979 = sst [smem:[#allocation25 + $0x1]] %s7836_s5  ;;  %s974_s0 = int_to_ptr.vmem [resolvable:$true] %s973_s0 }
  0x6e   :  { %981 = sst [smem:[#allocation25 + $0x2]] %s7837_s22  ;;  %s10383_s1 = smov 64  }
  0x6f   :  { %983 = sst [smem:[#allocation25 + $0x3]] %s10383_s1  ;;  %s10384_s24 = smov 128  }
  0x70   :  { %985 = sst [smem:[#allocation25 + $0x4]] %s10384_s24  ;;  %s10385_s13 = smov 2  }
  0x71   :  { %987 = sst [smem:[#allocation25 + $0x5]] %s10385_s13  ;;  %s10386_s17 = smov 256  }
  0x72   :  { %989 = sst [smem:[#allocation25 + $0x6]] %s10386_s17  ;;  %s7845_s2 = smov [#allocation12 + $0x7]  }
  0x73   :  { %991 = sst [smem:[#allocation25 + $0x7]] %s10383_s1  ;;  %s7846_s14 = smov [#allocation24]  }
  0x74   :  { %993 = sst [smem:[#allocation25 + $0x8]] %s7837_s22  ;;  %s10387_s29 = smov 1024  }
  0x75   :  { %995 = dma.general %s10285_s18, 8192, %s974_s0, %s7845_s2, %s7846_s14, [#allocation25], %s7971_s4, 0  }
  0x76   :  { %1012 = sst [smem:[#allocation27]] %s10387_s29  ;;  %s7847_s11 = smov [#allocation10]  }
  0x77   :  { %1014 = sst [smem:[#allocation27 + $0x1]] %s10387_s29  ;;  %s1008_s26 = sshll.u32 %s7847_s11, 4  ;;  %s1009_s26 = int_to_ptr.vmem [resolvable:$true] %s1008_s26 }
  0x78   :  { %s10388_s27 = smov 8   ;;  %1018 = sst [smem:[#allocation27 + $0x3]] %s10383_s1 }
  0x79   :  { %1016 = sst [smem:[#allocation27 + $0x2]] %s10388_s27  ;;  %s7848_s18 = smov [#allocation12 + $0x8]  }
  0x7a   :  { %1020 = sst [smem:[#allocation27 + $0x4]] %s10384_s24  ;;  %s7849_s3 = smov [#allocation26]  }
  0x7b   :  { %1022 = sst [smem:[#allocation27 + $0x5]] %s10385_s13  ;;  %s7850_s23 = smov [#allocation11]  }
  0x7c   :  { %1024 = sst [smem:[#allocation27 + $0x6]] %s7836_s5  ;;  %s1043_s28 = sshll.u32 %s7850_s23, 4  ;;  %s1044_s28 = int_to_ptr.vmem [resolvable:$true] %s1043_s28 }
  0x7d   :  { %1026 = sst [smem:[#allocation27 + $0x7]] %s10383_s1  ;;  %s7852_s5 = smov [#allocation28]  }
  0x7e   :  { %1028 = sst [smem:[#allocation27 + $0x8]] %s7837_s22 }
  0x7f   :  { %1030 = dma.general %s10286_s19, 32768, %s1009_s26, %s7848_s18, %s7849_s3, [#allocation27], %s7971_s4, 0  }
  0x80   :  { %1047 = sst [smem:[#allocation29]] %s10386_s17  ;;  %s7851_s19 = smov [#allocation12 + $0x9]  }
  0x81   :  { %1049 = sst [smem:[#allocation29 + $0x1]] %s10386_s17 }
  0x82   :  { %1051 = sst [smem:[#allocation29 + $0x2]] %s10385_s13 }
  0x83   :  { %1053 = sst [smem:[#allocation29 + $0x3]] %s10383_s1 }
  0x84   :  { %1055 = sst [smem:[#allocation29 + $0x4]] %s10384_s24 }
  0x85   :  { %1057 = sst [smem:[#allocation29 + $0x5]] %s10385_s13 }
  0x86   :  { %1059 = sst [smem:[#allocation29 + $0x6]] %s10384_s24 }
  0x87   :  { %1061 = sst [smem:[#allocation29 + $0x7]] %s10383_s1 }
  0x88   :  { %1063 = sst [smem:[#allocation29 + $0x8]] %s7837_s22 }
  0x89   :  { %1065 = dma.general %s10287_s20, 16384, %s1044_s28, %s7851_s19, %s7852_s5, [#allocation29], %s7971_s4, 0  }
  0x8a   :  { %s10389_s25 = sld [smem:[#allocation84_spill]] }
  0x90   :  { %v8476_v4 = vld [vmem:[%s10389_s25] sm:$0xff]  ;;  %v8481_v5 = vld [vmem:[%s10389_s25 + $0x8] sm:$0xff]  ;;  %v8486_v6 = vld [vmem:[%s10389_s25 + $0x10] sm:$0xff] }
  0x91   :  { %v8491_v7 = vld [vmem:[%s10389_s25 + $0x18] sm:$0xff]  ;;  %v8496_v8 = vld [vmem:[%s10389_s25 + $0x20] sm:$0xff]  ;;  %v8501_v9 = vld [vmem:[%s10389_s25 + $0x28] sm:$0xff] }
  0x92   :  { %v8506_v10 = vld [vmem:[%s10389_s25 + $0x30] sm:$0xff]  ;;  %v8511_v11 = vld [vmem:[%s10389_s25 + $0x38] sm:$0xff]  ;;  %v8516_v12 = vld [vmem:[%s10389_s25 + $0x40] sm:$0xff] }
  0x93   :  { %v8521_v13 = vld [vmem:[%s10389_s25 + $0x48] sm:$0xff]  ;;  %v8526_v14 = vld [vmem:[%s10389_s25 + $0x50] sm:$0xff]  ;;  %v8531_v15 = vld [vmem:[%s10389_s25 + $0x58] sm:$0xff] }
  0x94   :  { %v8536_v16 = vld [vmem:[%s10389_s25 + $0x60] sm:$0xff]  ;;  %v8541_v17 = vld [vmem:[%s10389_s25 + $0x68] sm:$0xff]  ;;  %v8546_v18 = vld [vmem:[%s10389_s25 + $0x70] sm:$0xff] }
  0x95   :  { %v8551_v19 = vld [vmem:[%s10389_s25 + $0x78] sm:$0xff] }
  0x96   :  { %7808 = dma.done.wait [#allocation12], 16384 }
  0x97   :  { %7809 = vsyncadd [#allocation12], 4294950912  ;;  %v8555_v20 = vcombine.high %v8476_v4, %v8481_v5  ;;  %v1087_v21 = vld [vmem:[#allocation2 + $0x8] sm:$0xff]  ;;  %v1086_v22 = vld [vmem:[#allocation2] sm:$0xff]  ;;  %s10392_s11 = sld [smem:[#allocation85_spill]] }
  0x98   :  { %v1095_v23 = vld [vmem:[#allocation2 + $0x48] sm:$0xff]  ;;  %1336 = vmatprep.subr.bf16.mxu0 %v1087_v21  ;;  %v1094_v24 = vld [vmem:[#allocation2 + $0x40] sm:$0xff]  ;;  %v1093_v56 = vld [vmem:[#allocation2 + $0x38] sm:$0xff] }
  0x99   :  { %1368 = vmatprep.mubr.bf16.mxu0 %v8555_v20  ;;  %1707 = vmatprep.mubr.bf16.mxu1 %v8555_v20  ;;  %v1103_v25 = vld [vmem:[#allocation2 + $0x88] sm:$0xff]  ;;  %v1102_v26 = vld [vmem:[#allocation2 + $0x80] sm:$0xff]  ;;  %v1092_v57 = vld [vmem:[#allocation2 + $0x30] sm:$0xff] }
  0x9a   :  { %1337 = vmatpush1.bf16.msra.mxu0 %v1086_v22  ;;  %v1111_v27 = vld [vmem:[#allocation2 + $0xc8] sm:$0xff]  ;;  %v1110_v28 = vld [vmem:[#allocation2 + $0xc0] sm:$0xff]  ;;  %1675 = vmatprep.subr.bf16.mxu1 %v1093_v56  ;;  %v1101_v58 = vld [vmem:[#allocation2 + $0x78] sm:$0xff] }
  0x9b   :  { %1338 = vmatprep.subr.bf16.mxu0 %v1095_v23  ;;  %v1119_v29 = vld [vmem:[#allocation2 + $0x108] sm:$0xff]  ;;  %v1118_v30 = vld [vmem:[#allocation2 + $0x100] sm:$0xff]  ;;  %1676 = vmatpush1.bf16.msra.mxu1 %v1092_v57  ;;  %v1100_v61 = vld [vmem:[#allocation2 + $0x70] sm:$0xff] }
  0x9c   :  { %v1127_v31 = vld [vmem:[#allocation2 + $0x148] sm:$0xff]  ;;  %v1126_v32 = vld [vmem:[#allocation2 + $0x140] sm:$0xff]  ;;  %1677 = vmatprep.subr.bf16.mxu1 %v1101_v58  ;;  %v1109_v62 = vld [vmem:[#allocation2 + $0xb8] sm:$0xff] }
  0x9d   :  { %v1135_v55 = vld [vmem:[#allocation2 + $0x188] sm:$0xff]  ;;  %v1134_v59 = vld [vmem:[#allocation2 + $0x180] sm:$0xff]  ;;  %v1108_v1 = vld [vmem:[#allocation2 + $0xb0] sm:$0xff] }
  0x9e   :  { %1339 = vmatpush1.bf16.msra.mxu0 %v1094_v24  ;;  %v1143_v60 = vld [vmem:[#allocation2 + $0x1c8] sm:$0xff]  ;;  %v1142_v63 = vld [vmem:[#allocation2 + $0x1c0] sm:$0xff]  ;;  %v1117_v2 = vld [vmem:[#allocation2 + $0xf8] sm:$0xff] }
  0x9f   :  { %1340 = vmatprep.subr.bf16.mxu0 %v1103_v25  ;;  %1678 = vmatpush1.bf16.msra.mxu1 %v1100_v61  ;;  %v1151_v0 = vld [vmem:[#allocation2 + $0x208] sm:$0xff]  ;;  %v1150_v3 = vld [vmem:[#allocation2 + $0x200] sm:$0xff]  ;;  %v1116_v22 = vld [vmem:[#allocation2 + $0xf0] sm:$0xff] }
  0xa0   :  { %1679 = vmatprep.subr.bf16.mxu1 %v1109_v62  ;;  %v1159_v21 = vld [vmem:[#allocation2 + $0x248] sm:$0xff]  ;;  %v1125_v23 = vld [vmem:[#allocation2 + $0x138] sm:$0xff]  ;;  %v1158_v24 = vld [vmem:[#allocation2 + $0x240] sm:$0xff] }
  0xa1   :  { %v1167_v25 = vld [vmem:[#allocation2 + $0x288] sm:$0xff]  ;;  %v1140_v56 = vld [vmem:[#allocation2 + $0x1b0] sm:$0xff]  ;;  %v1149_v57 = vld [vmem:[#allocation2 + $0x1f8] sm:$0xff] }
  0xa2   :  { %1341 = vmatpush1.bf16.msra.mxu0 %v1102_v26  ;;  %v1124_v26 = vld [vmem:[#allocation2 + $0x130] sm:$0xff]  ;;  %v1182_v58 = vld [vmem:[#allocation2 + $0x300] sm:$0xff]  ;;  %v1157_v61 = vld [vmem:[#allocation2 + $0x238] sm:$0xff] }
  0xa3   :  { %1342 = vmatprep.subr.bf16.mxu0 %v1111_v27  ;;  %1680 = vmatpush1.bf16.msra.mxu1 %v1108_v1  ;;  %v1133_v27 = vld [vmem:[#allocation2 + $0x178] sm:$0xff]  ;;  %v1190_v62 = vld [vmem:[#allocation2 + $0x340] sm:$0xff] }
  0xa4   :  { %1681 = vmatprep.subr.bf16.mxu1 %v1117_v2  ;;  %v1165_v1 = vld [vmem:[#allocation2 + $0x278] sm:$0xff]  ;;  %v1198_v2 = vld [vmem:[#allocation2 + $0x380] sm:$0xff] }
  0xa6   :  { %1343 = vmatpush1.bf16.msra.mxu0 %v1110_v28  ;;  %v1166_v28 = vld [vmem:[#allocation2 + $0x280] sm:$0xff] }
  0xa7   :  { %1344 = vmatprep.subr.bf16.mxu0 %v1119_v29  ;;  %1682 = vmatpush1.bf16.msra.mxu1 %v1116_v22  ;;  %v1175_v29 = vld [vmem:[#allocation2 + $0x2c8] sm:$0xff]  ;;  %v1173_v22 = vld [vmem:[#allocation2 + $0x2b8] sm:$0xff] }
  0xa8   :  { %1683 = vmatprep.subr.bf16.mxu1 %v1125_v23  ;;  %v1206_v23 = vld [vmem:[#allocation2 + $0x3c0] sm:$0xff] }
  0xaa   :  { %1345 = vmatpush1.bf16.msra.mxu0 %v1118_v30  ;;  %v1132_v30 = vld [vmem:[#allocation2 + $0x170] sm:$0xff] }
  0xab   :  { %1346 = vmatprep.subr.bf16.mxu0 %v1127_v31  ;;  %1684 = vmatpush1.bf16.msra.mxu1 %v1124_v26  ;;  %v1141_v31 = vld [vmem:[#allocation2 + $0x1b8] sm:$0xff]  ;;  %v8561_v26 = vcombine.low %v8476_v4, %v8481_v5  ;;  %v1096_v4 = vld [vmem:[#allocation2 + $0x50] sm:$0xff] }
  0xac   :  { %1685 = vmatprep.subr.bf16.mxu1 %v1133_v27  ;;  %v1181_v27 = vld [vmem:[#allocation2 + $0x2f8] sm:$0xff] }
  0xad   :  { %v1105_v5 = vld [vmem:[#allocation2 + $0x98] sm:$0xff] }
  0xae   :  { %1347 = vmatpush1.bf16.msra.mxu0 %v1126_v32  ;;  %v1174_v32 = vld [vmem:[#allocation2 + $0x2c0] sm:$0xff] }
  0xaf   :  { %1348 = vmatprep.subr.bf16.mxu0 %v1135_v55  ;;  %1686 = vmatpush1.bf16.msra.mxu1 %v1132_v30  ;;  %v1183_v55 = vld [vmem:[#allocation2 + $0x308] sm:$0xff]  ;;  %v1097_v30 = vld [vmem:[#allocation2 + $0x58] sm:$0xff] }
  0xb0   :  { %1687 = vmatprep.subr.bf16.mxu1 %v1141_v31  ;;  %v1180_v31 = vld [vmem:[#allocation2 + $0x2f0] sm:$0xff] }
  0xb2   :  { %1349 = vmatpush1.bf16.msra.mxu0 %v1134_v59  ;;  %v1191_v59 = vld [vmem:[#allocation2 + $0x348] sm:$0xff] }
  0xb3   :  { %1350 = vmatprep.subr.bf16.mxu0 %v1143_v60  ;;  %1688 = vmatpush1.bf16.msra.mxu1 %v1140_v56  ;;  %v1148_v60 = vld [vmem:[#allocation2 + $0x1f0] sm:$0xff]  ;;  %v8571_v56 = vcombine.low %v8486_v6, %v8491_v7 }
  0xb4   :  { %1689 = vmatprep.subr.bf16.mxu1 %v1149_v57  ;;  %v1197_v57 = vld [vmem:[#allocation2 + $0x378] sm:$0xff] }
  0xb6   :  { %1351 = vmatpush1.bf16.msra.mxu0 %v1142_v63  ;;  %v1199_v63 = vld [vmem:[#allocation2 + $0x388] sm:$0xff] }
  0xb7   :  { %1352 = vmatprep.subr.bf16.mxu0 %v1151_v0  ;;  %1690 = vmatpush1.bf16.msra.mxu1 %v1148_v60  ;;  %v1156_v0 = vld [vmem:[#allocation2 + $0x230] sm:$0xff]  ;;  %v1113_v60 = vld [vmem:[#allocation2 + $0xd8] sm:$0xff] }
  0xb8   :  { %1691 = vmatprep.subr.bf16.mxu1 %v1157_v61  ;;  %v1196_v61 = vld [vmem:[#allocation2 + $0x370] sm:$0xff] }
  0xba   :  { %1353 = vmatpush1.bf16.msra.mxu0 %v1150_v3  ;;  %v1207_v3 = vld [vmem:[#allocation2 + $0x3c8] sm:$0xff] }
  0xbb   :  { %1354 = vmatprep.subr.bf16.mxu0 %v1159_v21  ;;  %1692 = vmatpush1.bf16.msra.mxu1 %v1156_v0  ;;  %v1164_v21 = vld [vmem:[#allocation2 + $0x270] sm:$0xff]  ;;  %v8581_v0 = vcombine.low %v8496_v8, %v8501_v9 }
  0xbc   :  { %1693 = vmatprep.subr.bf16.mxu1 %v1165_v1  ;;  %v1213_v1 = vld [vmem:[#allocation2 + $0x3f8] sm:$0xff] }
  0xbe   :  { %1355 = vmatpush1.bf16.msra.mxu0 %v1158_v24  ;;  %v1089_v24 = vld [vmem:[#allocation2 + $0x18] sm:$0xff] }
  0xbf   :  { %1356 = vmatprep.subr.bf16.mxu0 %v1167_v25  ;;  %1694 = vmatpush1.bf16.msra.mxu1 %v1164_v21  ;;  %v1172_v25 = vld [vmem:[#allocation2 + $0x2b0] sm:$0xff]  ;;  %v1129_v21 = vld [vmem:[#allocation2 + $0x158] sm:$0xff] }
  0xc0   :  { %1695 = vmatprep.subr.bf16.mxu1 %v1173_v22  ;;  %v1212_v22 = vld [vmem:[#allocation2 + $0x3f0] sm:$0xff] }
  0xc2   :  { %1357 = vmatpush1.bf16.msra.mxu0 %v1166_v28  ;;  %v8565_v28 = vcombine.high %v8486_v6, %v8491_v7  ;;  %v1112_v6 = vld [vmem:[#allocation2 + $0xd0] sm:$0xff]  ;;  %v1121_v7 = vld [vmem:[#allocation2 + $0x118] sm:$0xff] }
  0xc3   :  { %1358 = vmatprep.subr.bf16.mxu0 %v1175_v29  ;;  %v1088_v29 = vld [vmem:[#allocation2 + $0x10] sm:$0xff]  ;;  %1696 = vmatpush1.bf16.msra.mxu1 %v1172_v25 }
  0xc4   :  { %1697 = vmatprep.subr.bf16.mxu1 %v1181_v27  ;;  %v1136_v25 = vld [vmem:[#allocation2 + $0x190] sm:$0xff]  ;;  %v1145_v27 = vld [vmem:[#allocation2 + $0x1d8] sm:$0xff] }
  0xc6   :  { %1359 = vmatpush1.bf16.msra.mxu0 %v1174_v32  ;;  %v1189_v32 = vld [vmem:[#allocation2 + $0x338] sm:$0xff] }
  0xc7   :  { %1360 = vmatprep.subr.bf16.mxu0 %v1183_v55  ;;  %1698 = vmatpush1.bf16.msra.mxu1 %v1180_v31  ;;  %v1188_v55 = vld [vmem:[#allocation2 + $0x330] sm:$0xff] }
  0xc8   :  { %1699 = vmatprep.subr.bf16.mxu1 %v1189_v32  ;;  %v1152_v31 = vld [vmem:[#allocation2 + $0x210] sm:$0xff]  ;;  %v1161_v32 = vld [vmem:[#allocation2 + $0x258] sm:$0xff] }
  0xca   :  { %1361 = vmatpush1.bf16.msra.mxu0 %v1182_v58  ;;  %v8575_v58 = vcombine.high %v8496_v8, %v8501_v9  ;;  %v1128_v8 = vld [vmem:[#allocation2 + $0x150] sm:$0xff]  ;;  %v1137_v9 = vld [vmem:[#allocation2 + $0x198] sm:$0xff] }
  0xcb   :  { %1362 = vmatprep.subr.bf16.mxu0 %v1191_v59  ;;  %v1104_v59 = vld [vmem:[#allocation2 + $0x90] sm:$0xff]  ;;  %1700 = vmatpush1.bf16.msra.mxu1 %v1188_v55 }
  0xcc   :  { %1701 = vmatprep.subr.bf16.mxu1 %v1197_v57  ;;  %v1168_v55 = vld [vmem:[#allocation2 + $0x290] sm:$0xff]  ;;  %v1177_v57 = vld [vmem:[#allocation2 + $0x2d8] sm:$0xff] }
  0xce   :  { %1363 = vmatpush1.bf16.msra.mxu0 %v1190_v62  ;;  %v1205_v62 = vld [vmem:[#allocation2 + $0x3b8] sm:$0xff] }
  0xcf   :  { %1364 = vmatprep.subr.bf16.mxu0 %v1199_v63  ;;  %1702 = vmatpush1.bf16.msra.mxu1 %v1196_v61  ;;  %v1204_v63 = vld [vmem:[#allocation2 + $0x3b0] sm:$0xff] }
  0xd0   :  { %1703 = vmatprep.subr.bf16.mxu1 %v1205_v62  ;;  %v1184_v61 = vld [vmem:[#allocation2 + $0x310] sm:$0xff]  ;;  %v1193_v62 = vld [vmem:[#allocation2 + $0x358] sm:$0xff] }
  0xd2   :  { %1365 = vmatpush1.bf16.msra.mxu0 %v1198_v2  ;;  %v8585_v2 = vcombine.high %v8506_v10, %v8511_v11 }
  0xd3   :  { %1366 = vmatprep.subr.bf16.mxu0 %v1207_v3  ;;  %v1120_v3 = vld [vmem:[#allocation2 + $0x110] sm:$0xff]  ;;  %1704 = vmatpush1.bf16.msra.mxu1 %v1204_v63  ;;  %v1209_v63 = vld [vmem:[#allocation2 + $0x3d8] sm:$0xff] }
  0xd4   :  { %1705 = vmatprep.subr.bf16.mxu1 %v1213_v1  ;;  %v1208_v1 = vld [vmem:[#allocation2 + $0x3d0] sm:$0xff] }
  0xd6   :  { %1367 = vmatpush1.bf16.msra.mxu0 %v1206_v23  ;;  %v8591_v23 = vcombine.low %v8506_v10, %v8511_v11  ;;  %v1144_v10 = vld [vmem:[#allocation2 + $0x1d0] sm:$0xff]  ;;  %v1153_v11 = vld [vmem:[#allocation2 + $0x218] sm:$0xff] }
  0xd7   :  { %1449 = vmatprep.subr.bf16.mxu0 %v1089_v24  ;;  %1706 = vmatpush1.bf16.msra.mxu1 %v1212_v22  ;;  %v8595_v24 = vcombine.high %v8516_v12, %v8521_v13  ;;  %v1107_v22 = vld [vmem:[#allocation2 + $0xa8] sm:$0xff] }
  0xd9   :  { %1369 = vmatmul.mubr.bf16.vlgmr.msra.gmra.mrb[0].mxu0 %v8561_v26 }
  0xda   :  { %1450 = vmatpush1.bf16.msra.mxu0 %v1088_v29  ;;  %1378 = vmatprep.mubr.bf16.mxu0 %v8565_v28  ;;  %v8603_v29 = vcombine.low %v8516_v12, %v8521_v13  ;;  %v1160_v12 = vld [vmem:[#allocation2 + $0x250] sm:$0xff]  ;;  %v1169_v13 = vld [vmem:[#allocation2 + $0x298] sm:$0xff] }
  0xdb   :  { %1451 = vmatprep.subr.bf16.mxu0 %v1097_v30  ;;  %1708 = vmatmul.mubr.bf16.vlgmr.msra.gmra.mrb[0].mxu1 %v8561_v26  ;;  %v8607_v30 = vcombine.high %v8526_v14, %v8531_v15 }
  0xdc   :  { %1717 = vmatprep.mubr.bf16.mxu1 %v8565_v28 }
  0xde   :  { %1452 = vmatpush1.bf16.msra.mxu0 %v1096_v4  ;;  %v8615_v4 = vcombine.low %v8526_v14, %v8531_v15  ;;  %v1176_v14 = vld [vmem:[#allocation2 + $0x2d0] sm:$0xff]  ;;  %v1185_v15 = vld [vmem:[#allocation2 + $0x318] sm:$0xff] }
  0xdf   :  { %1453 = vmatprep.subr.bf16.mxu0 %v1105_v5  ;;  %v8619_v5 = vcombine.high %v8536_v16, %v8541_v17 }
  0xe1   :  { %1379 = vmatmul.mubr.bf16.gmra.mrb[4].mxu0 %v8571_v56 }
  0xe2   :  { %1454 = vmatpush1.bf16.msra.mxu0 %v1104_v59  ;;  %1388 = vmatprep.mubr.bf16.mxu0 %v8575_v58  ;;  %v8627_v59 = vcombine.low %v8536_v16, %v8541_v17  ;;  %v1192_v16 = vld [vmem:[#allocation2 + $0x350] sm:$0xff]  ;;  %v1201_v17 = vld [vmem:[#allocation2 + $0x398] sm:$0xff] }
  0xe3   :  { %1455 = vmatprep.subr.bf16.mxu0 %v1113_v60  ;;  %1718 = vmatmul.mubr.bf16.gmra.mrb[4].mxu1 %v8571_v56  ;;  %v8631_v60 = vcombine.high %v8546_v18, %v8551_v19 }
  0xe4   :  { %1727 = vmatprep.mubr.bf16.mxu1 %v8575_v58 }
  0xe6   :  { %1456 = vmatpush1.bf16.msra.mxu0 %v1112_v6  ;;  %v8639_v6 = vcombine.low %v8546_v18, %v8551_v19  ;;  %v1090_v18 = vld [vmem:[#allocation2 + $0x20] sm:$0xff]  ;;  %v1099_v19 = vld [vmem:[#allocation2 + $0x68] sm:$0xff] }
  0xe7   :  { %1457 = vmatprep.subr.bf16.mxu0 %v1121_v7  ;;  %v1200_v7 = vld [vmem:[#allocation2 + $0x390] sm:$0xff] }
  0xe9   :  { %1389 = vmatmul.mubr.bf16.gmra.mrb[8].mxu0 %v8581_v0 }
  0xea   :  { %1458 = vmatpush1.bf16.msra.mxu0 %v1120_v3  ;;  %1398 = vmatprep.mubr.bf16.mxu0 %v8585_v2  ;;  %v1091_v3 = vld [vmem:[#allocation2 + $0x28] sm:$0xff] }
  0xeb   :  { %1459 = vmatprep.subr.bf16.mxu0 %v1129_v21  ;;  %1728 = vmatmul.mubr.bf16.gmra.mrb[8].mxu1 %v8581_v0  ;;  %v1098_v21 = vld [vmem:[#allocation2 + $0x60] sm:$0xff] }
  0xec   :  { %1737 = vmatprep.mubr.bf16.mxu1 %v8585_v2 }
  0xee   :  { %1460 = vmatpush1.bf16.msra.mxu0 %v1128_v8  ;;  %v1106_v8 = vld [vmem:[#allocation2 + $0xa0] sm:$0xff] }
  0xef   :  { %1461 = vmatprep.subr.bf16.mxu0 %v1137_v9  ;;  %v1115_v9 = vld [vmem:[#allocation2 + $0xe8] sm:$0xff] }
  0xf1   :  { %1399 = vmatmul.mubr.bf16.gmra.mrb[12].mxu0 %v8591_v23 }
  0xf2   :  { %1462 = vmatpush1.bf16.msra.mxu0 %v1136_v25  ;;  %1408 = vmatprep.mubr.bf16.mxu0 %v8595_v24  ;;  %v1114_v25 = vld [vmem:[#allocation2 + $0xe0] sm:$0xff] }
  0xf3   :  { %1463 = vmatprep.subr.bf16.mxu0 %v1145_v27  ;;  %1738 = vmatmul.mubr.bf16.gmra.mrb[12].mxu1 %v8591_v23  ;;  %v1123_v27 = vld [vmem:[#allocation2 + $0x128] sm:$0xff] }
  0xf4   :  { %1747 = vmatprep.mubr.bf16.mxu1 %v8595_v24 }
  0xf6   :  { %1464 = vmatpush1.bf16.msra.mxu0 %v1144_v10  ;;  %v1122_v10 = vld [vmem:[#allocation2 + $0x120] sm:$0xff] }
  0xf7   :  { %1465 = vmatprep.subr.bf16.mxu0 %v1153_v11  ;;  %v1131_v11 = vld [vmem:[#allocation2 + $0x168] sm:$0xff] }
  0xf9   :  { %1409 = vmatmul.mubr.bf16.gmra.mrb[16].mxu0 %v8603_v29 }
  0xfa   :  { %1466 = vmatpush1.bf16.msra.mxu0 %v1152_v31  ;;  %1418 = vmatprep.mubr.bf16.mxu0 %v8607_v30  ;;  %v1130_v31 = vld [vmem:[#allocation2 + $0x160] sm:$0xff] }
  0xfb   :  { %1467 = vmatprep.subr.bf16.mxu0 %v1161_v32  ;;  %1748 = vmatmul.mubr.bf16.gmra.mrb[16].mxu1 %v8603_v29  ;;  %v1139_v32 = vld [vmem:[#allocation2 + $0x1a8] sm:$0xff] }
  0xfc   :  { %1757 = vmatprep.mubr.bf16.mxu1 %v8607_v30 }
  0xfe   :  { %1468 = vmatpush1.bf16.msra.mxu0 %v1160_v12  ;;  %v1138_v12 = vld [vmem:[#allocation2 + $0x1a0] sm:$0xff] }
  0xff   :  { %1469 = vmatprep.subr.bf16.mxu0 %v1169_v13  ;;  %v1147_v13 = vld [vmem:[#allocation2 + $0x1e8] sm:$0xff] }
 0x101   :  { %1419 = vmatmul.mubr.bf16.gmra.mrb[20].mxu0 %v8615_v4 }
 0x102   :  { %1470 = vmatpush1.bf16.msra.mxu0 %v1168_v55  ;;  %1428 = vmatprep.mubr.bf16.mxu0 %v8619_v5  ;;  %v1146_v55 = vld [vmem:[#allocation2 + $0x1e0] sm:$0xff] }
 0x103   :  { %1471 = vmatprep.subr.bf16.mxu0 %v1177_v57  ;;  %1758 = vmatmul.mubr.bf16.gmra.mrb[20].mxu1 %v8615_v4  ;;  %v1155_v57 = vld [vmem:[#allocation2 + $0x228] sm:$0xff] }
 0x104   :  { %1767 = vmatprep.mubr.bf16.mxu1 %v8619_v5 }
 0x106   :  { %1472 = vmatpush1.bf16.msra.mxu0 %v1176_v14  ;;  %v1154_v14 = vld [vmem:[#allocation2 + $0x220] sm:$0xff] }
 0x107   :  { %1473 = vmatprep.subr.bf16.mxu0 %v1185_v15  ;;  %v1163_v15 = vld [vmem:[#allocation2 + $0x268] sm:$0xff] }
 0x109   :  { %1429 = vmatmul.mubr.bf16.gmra.mrb[24].mxu0 %v8627_v59 }
 0x10a   :  { %1474 = vmatpush1.bf16.msra.mxu0 %v1184_v61  ;;  %1438 = vmatprep.mubr.bf16.mxu0 %v8631_v60  ;;  %v1162_v61 = vld [vmem:[#allocation2 + $0x260] sm:$0xff] }
 0x10b   :  { %1475 = vmatprep.subr.bf16.mxu0 %v1193_v62  ;;  %1768 = vmatmul.mubr.bf16.gmra.mrb[24].mxu1 %v8627_v59  ;;  %v1171_v62 = vld [vmem:[#allocation2 + $0x2a8] sm:$0xff] }
 0x10c   :  { %1777 = vmatprep.mubr.bf16.mxu1 %v8631_v60 }
 0x10e   :  { %1476 = vmatpush1.bf16.msra.mxu0 %v1192_v16  ;;  %v1170_v16 = vld [vmem:[#allocation2 + $0x2a0] sm:$0xff] }
 0x10f   :  { %1477 = vmatprep.subr.bf16.mxu0 %v1201_v17  ;;  %v1179_v17 = vld [vmem:[#allocation2 + $0x2e8] sm:$0xff] }
 0x111   :  { %1439 = vmatmul.mubr.bf16.gmra.mrb[28].mxu0 %v8639_v6 }
 0x112   :  { %1478 = vmatpush1.bf16.msra.mxu0 %v1200_v7  ;;  %1481 = vmatprep.mubr.bf16.mxu0 %v8555_v20  ;;  %v1178_v7 = vld [vmem:[#allocation2 + $0x2e0] sm:$0xff] }
 0x113   :  { %1479 = vmatprep.subr.bf16.mxu0 %v1209_v63  ;;  %1778 = vmatmul.mubr.bf16.gmra.mrb[28].mxu1 %v8639_v6  ;;  %v1187_v63 = vld [vmem:[#allocation2 + $0x328] sm:$0xff] }
 0x116   :  { %1480 = vmatpush1.bf16.msra.mxu0 %v1208_v1  ;;  %v1186_v1 = vld [vmem:[#allocation2 + $0x320] sm:$0xff] }
 0x117   :  { %1562 = vmatprep.subr.bf16.mxu0 %v1091_v3  ;;  %v1195_v3 = vld [vmem:[#allocation2 + $0x368] sm:$0xff] }
 0x119   :  { %1482 = vmatmul.mubr.bf16.vlgmr.msra.gmra.mrb[32].mxu0 %v8561_v26 }
 0x11a   :  { %1563 = vmatpush1.bf16.msra.mxu0 %v1090_v18  ;;  %1491 = vmatprep.mubr.bf16.mxu0 %v8565_v28  ;;  %v1194_v18 = vld [vmem:[#allocation2 + $0x360] sm:$0xff] }
 0x11b   :  { %1564 = vmatprep.subr.bf16.mxu0 %v1099_v19  ;;  %v1203_v19 = vld [vmem:[#allocation2 + $0x3a8] sm:$0xff] }
 0x11e   :  { %1565 = vmatpush1.bf16.msra.mxu0 %v1098_v21  ;;  %v1202_v21 = vld [vmem:[#allocation2 + $0x3a0] sm:$0xff] }
 0x11f   :  { %1566 = vmatprep.subr.bf16.mxu0 %v1107_v22  ;;  %v1211_v22 = vld [vmem:[#allocation2 + $0x3e8] sm:$0xff] }
 0x121   :  { %1492 = vmatmul.mubr.bf16.gmra.mrb[36].mxu0 %v8571_v56 }
 0x122   :  { %1567 = vmatpush1.bf16.msra.mxu0 %v1106_v8  ;;  %1501 = vmatprep.mubr.bf16.mxu0 %v8575_v58  ;;  %v1210_v8 = vld [vmem:[#allocation2 + $0x3e0] sm:$0xff] }
 0x123   :  { %1568 = vmatprep.subr.bf16.mxu0 %v1115_v9 }
 0x126   :  { %1569 = vmatpush1.bf16.msra.mxu0 %v1114_v25 }
 0x127   :  { %1570 = vmatprep.subr.bf16.mxu0 %v1123_v27 }
 0x129   :  { %1502 = vmatmul.mubr.bf16.gmra.mrb[40].mxu0 %v8581_v0 }
 0x12a   :  { %1571 = vmatpush1.bf16.msra.mxu0 %v1122_v10  ;;  %1511 = vmatprep.mubr.bf16.mxu0 %v8585_v2 }
 0x12b   :  { %1572 = vmatprep.subr.bf16.mxu0 %v1131_v11 }
 0x12e   :  { %1573 = vmatpush1.bf16.msra.mxu0 %v1130_v31 }
 0x12f   :  { %1574 = vmatprep.subr.bf16.mxu0 %v1139_v32 }
 0x131   :  { %1512 = vmatmul.mubr.bf16.gmra.mrb[44].mxu0 %v8591_v23 }
 0x132   :  { %1575 = vmatpush1.bf16.msra.mxu0 %v1138_v12  ;;  %1521 = vmatprep.mubr.bf16.mxu0 %v8595_v24 }
 0x133   :  { %1576 = vmatprep.subr.bf16.mxu0 %v1147_v13 }
 0x136   :  { %1577 = vmatpush1.bf16.msra.mxu0 %v1146_v55 }
 0x137   :  { %1578 = vmatprep.subr.bf16.mxu0 %v1155_v57 }
 0x139   :  { %1522 = vmatmul.mubr.bf16.gmra.mrb[48].mxu0 %v8603_v29 }
 0x13a   :  { %1579 = vmatpush1.bf16.msra.mxu0 %v1154_v14  ;;  %1531 = vmatprep.mubr.bf16.mxu0 %v8607_v30 }
 0x13b   :  { %1580 = vmatprep.subr.bf16.mxu0 %v1163_v15 }
 0x13e   :  { %1581 = vmatpush1.bf16.msra.mxu0 %v1162_v61 }
 0x13f   :  { %1582 = vmatprep.subr.bf16.mxu0 %v1171_v62 }
 0x141   :  { %1532 = vmatmul.mubr.bf16.gmra.mrb[52].mxu0 %v8615_v4 }
 0x142   :  { %1583 = vmatpush1.bf16.msra.mxu0 %v1170_v16  ;;  %1541 = vmatprep.mubr.bf16.mxu0 %v8619_v5 }
 0x143   :  { %1584 = vmatprep.subr.bf16.mxu0 %v1179_v17 }
 0x146   :  { %1585 = vmatpush1.bf16.msra.mxu0 %v1178_v7 }
 0x147   :  { %1586 = vmatprep.subr.bf16.mxu0 %v1187_v63 }
 0x149   :  { %1542 = vmatmul.mubr.bf16.gmra.mrb[56].mxu0 %v8627_v59 }
 0x14a   :  { %1587 = vmatpush1.bf16.msra.mxu0 %v1186_v1  ;;  %1551 = vmatprep.mubr.bf16.mxu0 %v8631_v60 }
 0x14b   :  { %1588 = vmatprep.subr.bf16.mxu0 %v1195_v3 }
 0x14e   :  { %1589 = vmatpush1.bf16.msra.mxu0 %v1194_v18 }
 0x14f   :  { %1590 = vmatprep.subr.bf16.mxu0 %v1203_v19 }
 0x151   :  { %1552 = vmatmul.mubr.bf16.gmra.mrb[60].mxu0 %v8639_v6 }
 0x152   :  { %1591 = vmatpush1.bf16.msra.mxu0 %v1202_v21  ;;  %1594 = vmatprep.mubr.bf16.mxu0 %v8555_v20  ;;  %v1216_v20 = vlaneseq }
 0x153   :  { %1592 = vmatprep.subr.bf16.mxu0 %v1211_v22 }
 0x156   :  { %1593 = vmatpush1.bf16.msra.mxu0 %v1210_v8 }
 0x159   :  { %1595 = vmatmul.mubr.bf16.vlgmr.msra.gmra.mrb[64].mxu0 %v8561_v26  ;;  %v8681_v26 = vshrl.u32 %v1216_v20, 7 }
 0x15a   :  { %1604 = vmatprep.mubr.bf16.mxu0 %v8565_v28 }
 0x15b   :  { %10390 = vst [vmem:[#allocation63_spill] sm:$0xff] %v8681_v26  ;;  %v8684_v28 = vsub.s32 0, %v8681_v26  ;;  %v10302_v7 = vsub.s32 6, %v8681_v26  ;;  %v10301_v1 = vsub.s32 7, %v8681_v26 }
 0x15d   :  { %10391 = vst [vmem:[#allocation64_spill] sm:$0xff] %v8684_v28 }
 0x161   :  { %1605 = vmatmul.mubr.bf16.gmra.mrb[68].mxu0 %v8571_v56  ;;  %v8689_v56 = vld [vmem:[%s10392_s11] sm:$0xff] }
 0x162   :  { %1614 = vmatprep.mubr.bf16.mxu0 %v8575_v58  ;;  %v8692_v58 = vsub.s32 1, %v8681_v26  ;;  %v8725_v20 = vrot.slane %v8689_v56, %v10302_v7 }
 0x164   :  { %10393 = vst [vmem:[#allocation65_spill] sm:$0xff] %v8692_v58 }
 0x169   :  { %1615 = vmatmul.mubr.bf16.gmra.mrb[72].mxu0 %v8581_v0  ;;  %v8696_v0 = vrot.slane %v8689_v56, %v8684_v28 }
 0x16a   :  { %1624 = vmatprep.mubr.bf16.mxu0 %v8585_v2  ;;  %v8700_v2 = vrot.slane %v8689_v56, %v8692_v58 }
 0x171   :  { %1625 = vmatmul.mubr.bf16.gmra.mrb[76].mxu0 %v8591_v23 }
 0x172   :  { %1634 = vmatprep.mubr.bf16.mxu0 %v8595_v24 }
 0x179   :  { %1635 = vmatmul.mubr.bf16.gmra.mrb[80].mxu0 %v8603_v29 }
 0x17a   :  { %1644 = vmatprep.mubr.bf16.mxu0 %v8607_v30 }
 0x181   :  { %1645 = vmatmul.mubr.bf16.gmra.mrb[84].mxu0 %v8615_v4 }
 0x182   :  { %1654 = vmatprep.mubr.bf16.mxu0 %v8619_v5 }
 0x189   :  { %1655 = vmatmul.mubr.bf16.gmra.mrb[88].mxu0 %v8627_v59 }
 0x18a   :  { %1664 = vmatprep.mubr.bf16.mxu0 %v8631_v60 }
 0x191   :  { %1665 = vmatmul.mubr.bf16.gmra.mrb[92].mxu0 %v8639_v6 }
 0x1ac   :  { %v1370_v23 = vpop.f32.mrb[0].mxu0 }
 0x1ad   :  { %v1371_v24 = vadd.f32 %v1370_v23, %v8696_v0  ;;  %v1372_v29 = vpop.f32.mrb[1].mxu0 }
 0x1ae   :  { %v1373_v30 = vadd.f32 %v1372_v29, %v8700_v2  ;;  %v1374_v4 = vpop.f32.mrb[2].mxu0  ;;  %v8731_v29 = vrot.slane %v8689_v56, %v10301_v1 }
 0x1af   :  { %v1375_v5 = vadd.f32 %v1374_v4, %v8696_v0  ;;  %v1376_v59 = vpop.f32.mrb[3].mxu0  ;;  %v1788_v6 = vmax.f32 %v1371_v24, 0.0 }
 0x1b0   :  { %v1377_v60 = vadd.f32 %v1376_v59, %v8700_v2  ;;  %v1789_v25 = vmax.f32 %v1373_v30, 0.0  ;;  %v1709_v59 = vpop.f32.mrb[0].mxu1 }
 0x1b1   :  { %v1796_v9 = vmax.f32 %v1375_v5, 0.0 }
 0x1b2   :  { %v1797_v27 = vmax.f32 %v1377_v60, 0.0 }
 0x1b3   :  { %v8706_v10 = vpack.c.bf16 %v1796_v9, %v1788_v6  ;;  %v1710_v9 = vadd.f32 %v1709_v59, %v8725_v20 }
 0x1b4   :  { %v8708_v11 = vpack.c.bf16 %v1797_v27, %v1789_v25  ;;  %v1380_v31 = vpop.f32.mrb[4].mxu0  ;;  %v1711_v25 = vpop.f32.mrb[1].mxu1 }
 0x1b5   :  { %v1381_v32 = vadd.f32 %v1380_v31, %v8696_v0  ;;  %v1382_v12 = vpop.f32.mrb[5].mxu0  ;;  %v1712_v31 = vadd.f32 %v1711_v25, %v8731_v29 }
 0x1b6   :  { %v1383_v13 = vadd.f32 %v1382_v12, %v8700_v2  ;;  %v1384_v55 = vpop.f32.mrb[6].mxu0 }
 0x1b7   :  { %v1385_v57 = vadd.f32 %v1384_v55, %v8696_v0  ;;  %v1386_v14 = vpop.f32.mrb[7].mxu0  ;;  %v1804_v61 = vmax.f32 %v1381_v32, 0.0  ;;  %v1713_v32 = vpop.f32.mrb[2].mxu1  ;;  %v1794_v55 = vmax.f32 %v1710_v9, 0.0 }
 0x1b8   :  { %v1387_v15 = vadd.f32 %v1386_v14, %v8700_v2  ;;  %v1805_v16 = vmax.f32 %v1383_v13, 0.0  ;;  %v1715_v14 = vpop.f32.mrb[3].mxu1 }
 0x1b9   :  { %v1812_v62 = vmax.f32 %v1385_v57, 0.0  ;;  %v1714_v57 = vadd.f32 %v1713_v32, %v8725_v20  ;;  %v1719_v59 = vpop.f32.mrb[4].mxu1 }
 0x1ba   :  { %v1813_v17 = vmax.f32 %v1387_v15, 0.0  ;;  %v1720_v9 = vadd.f32 %v1719_v59, %v8725_v20  ;;  %v1721_v25 = vpop.f32.mrb[5].mxu1 }
 0x1bb   :  { %v8715_v63 = vpack.c.bf16 %v1812_v62, %v1804_v61  ;;  %v1795_v62 = vmax.f32 %v1712_v31, 0.0  ;;  %v1722_v32 = vadd.f32 %v1721_v25, %v8731_v29 }
 0x1bc   :  { %v8718_v3 = vpack.c.bf16 %v1813_v17, %v1805_v16  ;;  %v1390_v18 = vpop.f32.mrb[8].mxu0  ;;  %v1716_v16 = vadd.f32 %v1715_v14, %v8731_v29 }
 0x1bd   :  { %v1391_v19 = vadd.f32 %v1390_v18, %v8696_v0  ;;  %v1392_v21 = vpop.f32.mrb[9].mxu0 }
 0x1be   :  { %v1393_v22 = vadd.f32 %v1392_v21, %v8700_v2  ;;  %v1394_v8 = vpop.f32.mrb[10].mxu0 }
 0x1bf   :  { %v1395_v23 = vadd.f32 %v1394_v8, %v8696_v0  ;;  %v1396_v24 = vpop.f32.mrb[11].mxu0  ;;  %v1820_v4 = vmax.f32 %v1391_v19, 0.0  ;;  %v1802_v19 = vmax.f32 %v1714_v57, 0.0  ;;  %v1803_v8 = vmax.f32 %v1716_v16, 0.0 }
 0x1c0   :  { %v1397_v30 = vadd.f32 %v1396_v24, %v8700_v2  ;;  %v1821_v60 = vmax.f32 %v1393_v22, 0.0 }
 0x1c1   :  { %v1828_v5 = vmax.f32 %v1395_v23, 0.0  ;;  %v8746_v24 = vpack.c.bf16 %v1802_v19, %v1794_v55  ;;  %v1810_v55 = vmax.f32 %v1720_v9, 0.0 }
 0x1c2   :  { %v1829_v6 = vmax.f32 %v1397_v30, 0.0 }
 0x1c3   :  { %v8735_v27 = vpack.c.bf16 %v1828_v5, %v1820_v4  ;;  %10394 = vst [vmem:[#allocation66_spill] sm:$0xff] %v8746_v24  ;;  %v8748_v5 = vpack.c.bf16 %v1803_v8, %v1795_v62 }
 0x1c4   :  { %v8738_v12 = vpack.c.bf16 %v1829_v6, %v1821_v60  ;;  %v1400_v13 = vpop.f32.mrb[12].mxu0 }
 0x1c5   :  { %v1401_v15 = vadd.f32 %v1400_v13, %v8696_v0  ;;  %v1402_v61 = vpop.f32.mrb[13].mxu0  ;;  %10395 = vst [vmem:[#allocation67_spill] sm:$0xff] %v8748_v5  ;;  %v1723_v13 = vpop.f32.mrb[6].mxu1 }
 0x1c6   :  { %v1403_v17 = vadd.f32 %v1402_v61, %v8700_v2  ;;  %v1404_v18 = vpop.f32.mrb[14].mxu0  ;;  %v1725_v61 = vpop.f32.mrb[7].mxu1 }
 0x1c7   :  { %v1405_v21 = vadd.f32 %v1404_v18, %v8696_v0  ;;  %v1406_v22 = vpop.f32.mrb[15].mxu0  ;;  %v1836_v30 = vmax.f32 %v1401_v15, 0.0  ;;  %v1724_v15 = vadd.f32 %v1723_v13, %v8725_v20  ;;  %v1726_v18 = vadd.f32 %v1725_v61, %v8731_v29  ;;  %v1729_v25 = vpop.f32.mrb[8].mxu1 }
 0x1c8   :  { %v1407_v23 = vadd.f32 %v1406_v22, %v8700_v2  ;;  %v1837_v60 = vmax.f32 %v1403_v17, 0.0  ;;  %v1811_v17 = vmax.f32 %v1722_v32, 0.0  ;;  %v1731_v61 = vpop.f32.mrb[9].mxu1 }
 0x1c9   :  { %v1844_v4 = vmax.f32 %v1405_v21, 0.0  ;;  %v1818_v22 = vmax.f32 %v1724_v15, 0.0  ;;  %v1732_v15 = vadd.f32 %v1731_v61, %v8731_v29 }
 0x1ca   :  { %v1845_v6 = vmax.f32 %v1407_v23, 0.0 }
 0x1cb   :  { %v8751_v31 = vpack.c.bf16 %v1844_v4, %v1836_v30  ;;  %v1819_v30 = vmax.f32 %v1726_v18, 0.0  ;;  %v8762_v59 = vpack.c.bf16 %v1818_v22, %v1810_v55 }
 0x1cc   :  { %v8754_v57 = vpack.c.bf16 %v1845_v6, %v1837_v60  ;;  %v1410_v14 = vpop.f32.mrb[16].mxu0 }
 0x1cd   :  { %v1411_v62 = vadd.f32 %v1410_v14, %v8696_v0  ;;  %v1412_v16 = vpop.f32.mrb[17].mxu0  ;;  %10396 = vst [vmem:[#allocation68_spill] sm:$0xff] %v8762_v59  ;;  %v8764_v9 = vpack.c.bf16 %v1819_v30, %v1811_v17  ;;  %v1730_v14 = vadd.f32 %v1729_v25, %v8725_v20 }
 0x1ce   :  { %v1413_v19 = vadd.f32 %v1412_v16, %v8700_v2  ;;  %v1414_v21 = vpop.f32.mrb[18].mxu0 }
 0x1cf   :  { %v1415_v8 = vadd.f32 %v1414_v21, %v8696_v0  ;;  %v1416_v23 = vpop.f32.mrb[19].mxu0  ;;  %v1852_v60 = vmax.f32 %v1411_v62, 0.0  ;;  %10397 = vst [vmem:[#allocation69_spill] sm:$0xff] %v8764_v9  ;;  %v1733_v21 = vpop.f32.mrb[10].mxu1  ;;  %v1826_v55 = vmax.f32 %v1730_v14, 0.0 }
 0x1d0   :  { %v1417_v4 = vadd.f32 %v1416_v23, %v8700_v2  ;;  %v1853_v32 = vmax.f32 %v1413_v19, 0.0  ;;  %v1734_v62 = vadd.f32 %v1733_v21, %v8725_v20  ;;  %v1735_v22 = vpop.f32.mrb[11].mxu1  ;;  %v1827_v19 = vmax.f32 %v1732_v15, 0.0 }
 0x1d1   :  { %v1860_v6 = vmax.f32 %v1415_v8, 0.0  ;;  %v1736_v30 = vadd.f32 %v1735_v22, %v8731_v29 }
 0x1d2   :  { %v1861_v13 = vmax.f32 %v1417_v4, 0.0 }
 0x1d3   :  { %v8767_v16 = vpack.c.bf16 %v1860_v6, %v1852_v60  ;;  %v1834_v6 = vmax.f32 %v1734_v62, 0.0 }
 0x1d4   :  { %v8770_v18 = vpack.c.bf16 %v1861_v13, %v1853_v32  ;;  %v1420_v23 = vpop.f32.mrb[20].mxu0  ;;  %v1835_v32 = vmax.f32 %v1736_v30, 0.0 }
 0x1d5   :  { %v1421_v17 = vadd.f32 %v1420_v23, %v8696_v0  ;;  %v1422_v8 = vpop.f32.mrb[21].mxu0  ;;  %v8778_v14 = vpack.c.bf16 %v1834_v6, %v1826_v55  ;;  %v1739_v23 = vpop.f32.mrb[12].mxu1 }
 0x1d6   :  { %v1423_v4 = vadd.f32 %v1422_v8, %v8700_v2  ;;  %v1424_v60 = vpop.f32.mrb[22].mxu0  ;;  %v8780_v7 = vpack.c.bf16 %v1835_v32, %v1827_v19  ;;  %v1740_v22 = vadd.f32 %v1739_v23, %v8725_v20  ;;  %v1741_v8 = vpop.f32.mrb[13].mxu1 }
 0x1d7   :  { %v1425_v25 = vadd.f32 %v1424_v60, %v8696_v0  ;;  %v1426_v61 = vpop.f32.mrb[23].mxu0  ;;  %10398 = vst [vmem:[#allocation70_spill] sm:$0xff] %v8778_v14  ;;  %v1868_v21 = vmax.f32 %v1421_v17, 0.0  ;;  %v1742_v62 = vadd.f32 %v1741_v8, %v8731_v29  ;;  %v1743_v60 = vpop.f32.mrb[14].mxu1 }
 0x1d8   :  { %v1427_v13 = vadd.f32 %v1426_v61, %v8700_v2  ;;  %10399 = vst [vmem:[#allocation71_spill] sm:$0xff] %v8780_v7  ;;  %v1869_v15 = vmax.f32 %v1423_v4, 0.0  ;;  %v1842_v55 = vmax.f32 %v1740_v22, 0.0  ;;  %v1744_v17 = vadd.f32 %v1743_v60, %v8725_v20  ;;  %v1745_v6 = vpop.f32.mrb[15].mxu1 }
 0x1d9   :  { %v1876_v1 = vmax.f32 %v1425_v25, 0.0  ;;  %v1843_v4 = vmax.f32 %v1742_v62, 0.0  ;;  %v1746_v32 = vadd.f32 %v1745_v6, %v8731_v29 }
 0x1da   :  { %v1877_v54 = vmax.f32 %v1427_v13, 0.0 }
 0x1db   :  { %v8783_v53 = vpack.c.bf16 %v1876_v1, %v1868_v21  ;;  %v1850_v21 = vmax.f32 %v1744_v17, 0.0 }
 0x1dc   :  { %v8786_v30 = vpack.c.bf16 %v1877_v54, %v1869_v15  ;;  %v1430_v61 = vpop.f32.mrb[24].mxu0  ;;  %v1851_v54 = vmax.f32 %v1746_v32, 0.0 }
 0x1dd   :  { %v1431_v19 = vadd.f32 %v1430_v61, %v8696_v0  ;;  %v1432_v25 = vpop.f32.mrb[25].mxu0  ;;  %v8794_v22 = vpack.c.bf16 %v1850_v21, %v1842_v55  ;;  %v1749_v61 = vpop.f32.mrb[16].mxu1 }
 0x1de   :  { %v1433_v13 = vadd.f32 %v1432_v25, %v8700_v2  ;;  %v1434_v1 = vpop.f32.mrb[26].mxu0  ;;  %v8796_v51 = vpack.c.bf16 %v1851_v54, %v1843_v4  ;;  %v1750_v6 = vadd.f32 %v1749_v61, %v8725_v20  ;;  %v1751_v25 = vpop.f32.mrb[17].mxu1 }
 0x1df   :  { %v1435_v23 = vadd.f32 %v1434_v1, %v8696_v0  ;;  %v1436_v8 = vpop.f32.mrb[27].mxu0  ;;  %10400 = vst [vmem:[#allocation72_spill] sm:$0xff] %v8794_v22  ;;  %v1884_v60 = vmax.f32 %v1431_v19, 0.0  ;;  %v1752_v17 = vadd.f32 %v1751_v25, %v8731_v29  ;;  %v1753_v1 = vpop.f32.mrb[18].mxu1 }
 0x1e0   :  { %v1437_v15 = vadd.f32 %v1436_v8, %v8700_v2  ;;  %10401 = vst [vmem:[#allocation73_spill] sm:$0xff] %v8796_v51  ;;  %v1885_v62 = vmax.f32 %v1433_v13, 0.0  ;;  %v1858_v55 = vmax.f32 %v1750_v6, 0.0  ;;  %v1754_v19 = vadd.f32 %v1753_v1, %v8725_v20  ;;  %v1755_v21 = vpop.f32.mrb[19].mxu1 }
 0x1e1   :  { %v1892_v52 = vmax.f32 %v1435_v23, 0.0  ;;  %v8807_v13 = vsub.s32 2, %v8681_v26  ;;  %v1859_v54 = vmax.f32 %v1752_v17, 0.0 }
 0x1e2   :  { %v1893_v50 = vmax.f32 %v1437_v15, 0.0  ;;  %v1866_v61 = vmax.f32 %v1754_v19, 0.0 }
 0x1e3   :  { %v8799_v49 = vpack.c.bf16 %v1892_v52, %v1884_v60  ;;  %10402 = vst [vmem:[#allocation74_spill] sm:$0xff] %v8807_v13  ;;  %v1756_v52 = vadd.f32 %v1755_v21, %v8731_v29  ;;  %v8820_v17 = vrot.slane %v8689_v56, %v8807_v13 }
 0x1e4   :  { %v8802_v32 = vpack.c.bf16 %v1893_v50, %v1885_v62  ;;  %v1440_v8 = vpop.f32.mrb[28].mxu0  ;;  %v8812_v50 = vsub.s32 3, %v8681_v26 }
 0x1e5   :  { %v1441_v4 = vadd.f32 %v1440_v8, %v8696_v0  ;;  %v1442_v23 = vpop.f32.mrb[29].mxu0  ;;  %v1867_v25 = vmax.f32 %v1756_v52, 0.0  ;;  %v8816_v8 = vpack.c.bf16 %v1866_v61, %v1858_v55 }
 0x1e6   :  { %v1443_v15 = vadd.f32 %v1442_v23, %v8700_v2  ;;  %v1444_v60 = vpop.f32.mrb[30].mxu0  ;;  %10403 = vst [vmem:[#allocation75_spill] sm:$0xff] %v8812_v50  ;;  %v1759_v23 = vpop.f32.mrb[20].mxu1 }
 0x1e7   :  { %v1445_v62 = vadd.f32 %v1444_v60, %v8696_v0  ;;  %v1446_v6 = vpop.f32.mrb[31].mxu0  ;;  %10404 = vst [vmem:[#allocation76_spill] sm:$0xff] %v8816_v8  ;;  %v1900_v40 = vmax.f32 %v1441_v4, 0.0  ;;  %v8822_v21 = vpack.c.bf16 %v1867_v25, %v1859_v54  ;;  %v8826_v0 = vrot.slane %v8689_v56, %v8812_v50 }
 0x1e8   :  { %v1447_v1 = vadd.f32 %v1446_v6, %v8700_v2  ;;  %v1901_v39 = vmax.f32 %v1443_v15, 0.0  ;;  %v1760_v19 = vadd.f32 %v1759_v23, %v8725_v20  ;;  %v1761_v2 = vpop.f32.mrb[21].mxu1 }
 0x1e9   :  { %v1908_v48 = vmax.f32 %v1445_v62, 0.0  ;;  %10405 = vst [vmem:[#allocation77_spill] sm:$0xff] %v8822_v21  ;;  %v1762_v4 = vadd.f32 %v1761_v2, %v8731_v29  ;;  %v1763_v52 = vpop.f32.mrb[22].mxu1 }
 0x1ea   :  { %v1909_v47 = vmax.f32 %v1447_v1, 0.0  ;;  %v1874_v54 = vmax.f32 %v1760_v19, 0.0  ;;  %v1764_v62 = vadd.f32 %v1763_v52, %v8725_v20  ;;  %v1765_v15 = vpop.f32.mrb[23].mxu1 }
 0x1eb   :  { %v8829_v55 = vpack.c.bf16 %v1908_v48, %v1900_v40  ;;  %v1875_v1 = vmax.f32 %v1762_v4, 0.0  ;;  %v1766_v38 = vadd.f32 %v1765_v15, %v8731_v29 }
 0x1ec   :  { %v8832_v60 = vpack.c.bf16 %v1909_v47, %v1901_v39  ;;  %v1483_v61 = vpop.f32.mrb[32].mxu0  ;;  %v1882_v48 = vmax.f32 %v1764_v62, 0.0 }
 0x1ed   :  { %v1484_v6 = vadd.f32 %v1483_v61, %v8820_v17  ;;  %v1485_v25 = vpop.f32.mrb[33].mxu0  ;;  %v1883_v39 = vmax.f32 %v1766_v38, 0.0  ;;  %v1769_v61 = vpop.f32.mrb[24].mxu1 }
 0x1ee   :  { %v1486_v23 = vadd.f32 %v1485_v25, %v8826_v0  ;;  %v1487_v40 = vpop.f32.mrb[34].mxu0  ;;  %v8840_v19 = vpack.c.bf16 %v1882_v48, %v1874_v54  ;;  %v1770_v15 = vadd.f32 %v1769_v61, %v8725_v20  ;;  %v1771_v25 = vpop.f32.mrb[25].mxu1 }
 0x1ef   :  { %v1488_v2 = vadd.f32 %v1487_v40, %v8820_v17  ;;  %v1489_v46 = vpop.f32.mrb[35].mxu0  ;;  %v1790_v52 = vmax.f32 %v1484_v6, 0.0  ;;  %v8842_v45 = vpack.c.bf16 %v1883_v39, %v1875_v1  ;;  %v1772_v62 = vadd.f32 %v1771_v25, %v8731_v29  ;;  %v1773_v40 = vpop.f32.mrb[26].mxu1 }
 0x1f0   :  { %v1490_v47 = vadd.f32 %v1489_v46, %v8826_v0  ;;  %10406 = vst [vmem:[#allocation78_spill] sm:$0xff] %v8840_v19  ;;  %v1791_v4 = vmax.f32 %v1486_v23, 0.0  ;;  %v1890_v54 = vmax.f32 %v1770_v15, 0.0  ;;  %v1774_v6 = vadd.f32 %v1773_v40, %v8725_v20  ;;  %v1775_v48 = vpop.f32.mrb[27].mxu1 }
 0x1f1   :  { %v1798_v37 = vmax.f32 %v1488_v2, 0.0  ;;  %10407 = vst [vmem:[#allocation79_spill] sm:$0xff] %v8842_v45  ;;  %v1891_v23 = vmax.f32 %v1772_v62, 0.0  ;;  %v1776_v39 = vadd.f32 %v1775_v48, %v8731_v29 }
 0x1f2   :  { %v1799_v36 = vmax.f32 %v1490_v47, 0.0 }
 0x1f3   :  { %v8845_v44 = vpack.c.bf16 %v1798_v37, %v1790_v52  ;;  %v1898_v52 = vmax.f32 %v1774_v6, 0.0 }
 0x1f4   :  { %v8848_v38 = vpack.c.bf16 %v1799_v36, %v1791_v4  ;;  %v1493_v46 = vpop.f32.mrb[36].mxu0  ;;  %v1899_v36 = vmax.f32 %v1776_v39, 0.0 }
 0x1f5   :  { %v1494_v1 = vadd.f32 %v1493_v46, %v8820_v17  ;;  %v1495_v2 = vpop.f32.mrb[37].mxu0  ;;  %v8856_v15 = vpack.c.bf16 %v1898_v52, %v1890_v54  ;;  %v1779_v46 = vpop.f32.mrb[28].mxu1 }
 0x1f6   :  { %v1496_v47 = vadd.f32 %v1495_v2, %v8826_v0  ;;  %v1497_v37 = vpop.f32.mrb[38].mxu0  ;;  %v8858_v43 = vpack.c.bf16 %v1899_v36, %v1891_v23  ;;  %v1780_v48 = vadd.f32 %v1779_v46, %v8725_v20  ;;  %v1781_v2 = vpop.f32.mrb[29].mxu1 }
 0x1f7   :  { %v1498_v61 = vadd.f32 %v1497_v37, %v8820_v17  ;;  %v1499_v25 = vpop.f32.mrb[39].mxu0  ;;  %10408 = vst [vmem:[#allocation80_spill] sm:$0xff] %v8856_v15  ;;  %v1806_v40 = vmax.f32 %v1494_v1, 0.0  ;;  %v1782_v6 = vadd.f32 %v1781_v2, %v8731_v29  ;;  %v1783_v37 = vpop.f32.mrb[30].mxu1 }
 0x1f8   :  { %v1500_v4 = vadd.f32 %v1499_v25, %v8826_v0  ;;  %10409 = vst [vmem:[#allocation81_spill] sm:$0xff] %v8858_v43  ;;  %v1807_v62 = vmax.f32 %v1496_v47, 0.0  ;;  %v1906_v54 = vmax.f32 %v1780_v48, 0.0  ;;  %v1784_v1 = vadd.f32 %v1783_v37, %v8725_v20  ;;  %v1785_v52 = vpop.f32.mrb[31].mxu1 }
 0x1f9   :  { %v1814_v35 = vmax.f32 %v1498_v61, 0.0  ;;  %v1907_v47 = vmax.f32 %v1782_v6, 0.0  ;;  %v1786_v36 = vadd.f32 %v1785_v52, %v8731_v29 }
 0x1fa   :  { %v1815_v34 = vmax.f32 %v1500_v4, 0.0 }
 0x1fb   :  { %v8861_v42 = vpack.c.bf16 %v1814_v35, %v1806_v40  ;;  %v1914_v40 = vmax.f32 %v1784_v1, 0.0 }
 0x1fc   :  { %v8864_v39 = vpack.c.bf16 %v1815_v34, %v1807_v62  ;;  %v1503_v25 = vpop.f32.mrb[40].mxu0  ;;  %v1915_v34 = vmax.f32 %v1786_v36, 0.0 }
 0x1fd   :  { %v1504_v23 = vadd.f32 %v1503_v25, %v8820_v17  ;;  %v1505_v61 = vpop.f32.mrb[41].mxu0  ;;  %v8872_v48 = vpack.c.bf16 %v1914_v40, %v1906_v54 }
 0x1fe   :  { %v1506_v4 = vadd.f32 %v1505_v61, %v8826_v0  ;;  %v1507_v35 = vpop.f32.mrb[42].mxu0  ;;  %v8874_v33 = vpack.c.bf16 %v1915_v34, %v1907_v47 }
 0x1ff   :  { %v1508_v46 = vadd.f32 %v1507_v35, %v8820_v17  ;;  %v1509_v2 = vpop.f32.mrb[43].mxu0  ;;  %10410 = vst [vmem:[#allocation82_spill] sm:$0xff] %v8872_v48  ;;  %v1822_v20 = vmax.f32 %v1504_v23, 0.0 }
 0x200   :  { %v1510_v62 = vadd.f32 %v1509_v2, %v8826_v0  ;;  %10411 = vst [vmem:[#allocation83_spill] sm:$0xff] %v8874_v33  ;;  %v1823_v25 = vmax.f32 %v1506_v4, 0.0  ;;  %v10338_v33 = vsub.s32 5, %v8681_v26 }
 0x201   :  { %v1830_v37 = vmax.f32 %v1508_v46, 0.0 }
 0x202   :  { %v1831_v6 = vmax.f32 %v1510_v62, 0.0 }
 0x203   :  { %v8876_v41 = vpack.c.bf16 %v1830_v37, %v1822_v20 }
 0x204   :  { %v8878_v29 = vpack.c.bf16 %v1831_v6, %v1823_v25  ;;  %v1513_v52 = vpop.f32.mrb[44].mxu0 }
 0x205   :  { %v1514_v1 = vadd.f32 %v1513_v52, %v8820_v17  ;;  %v1515_v61 = vpop.f32.mrb[45].mxu0 }
 0x206   :  { %v1516_v36 = vadd.f32 %v1515_v61, %v8826_v0  ;;  %v1517_v35 = vpop.f32.mrb[46].mxu0 }
 0x207   :  { %v1518_v54 = vadd.f32 %v1517_v35, %v8820_v17  ;;  %v1519_v40 = vpop.f32.mrb[47].mxu0  ;;  %v1838_v47 = vmax.f32 %v1514_v1, 0.0 }
 0x208   :  { %v1520_v23 = vadd.f32 %v1519_v40, %v8826_v0  ;;  %v1839_v4 = vmax.f32 %v1516_v36, 0.0 }
 0x209   :  { %v1846_v46 = vmax.f32 %v1518_v54, 0.0 }
 0x20a   :  { %v1847_v2 = vmax.f32 %v1520_v23, 0.0 }
 0x20b   :  { %v8884_v34 = vpack.c.bf16 %v1846_v46, %v1838_v47 }
 0x20c   :  { %v8886_v62 = vpack.c.bf16 %v1847_v2, %v1839_v4  ;;  %v1523_v20 = vpop.f32.mrb[48].mxu0 }
 0x20d   :  { %v1524_v37 = vadd.f32 %v1523_v20, %v8820_v17  ;;  %v1525_v25 = vpop.f32.mrb[49].mxu0 }
 0x20e   :  { %v1526_v6 = vadd.f32 %v1525_v25, %v8826_v0  ;;  %v1527_v52 = vpop.f32.mrb[50].mxu0 }
 0x20f   :  { %v1528_v61 = vadd.f32 %v1527_v52, %v8820_v17  ;;  %v1529_v35 = vpop.f32.mrb[51].mxu0  ;;  %v1854_v1 = vmax.f32 %v1524_v37, 0.0 }
 0x210   :  { %v1530_v40 = vadd.f32 %v1529_v35, %v8826_v0  ;;  %v1855_v36 = vmax.f32 %v1526_v6, 0.0 }
 0x211   :  { %v1862_v54 = vmax.f32 %v1528_v61, 0.0 }
 0x212   :  { %v1863_v23 = vmax.f32 %v1530_v40, 0.0 }
 0x213   :  { %v8892_v47 = vpack.c.bf16 %v1862_v54, %v1854_v1 }
 0x214   :  { %v8894_v46 = vpack.c.bf16 %v1863_v23, %v1855_v36  ;;  %v1533_v4 = vpop.f32.mrb[52].mxu0 }
 0x215   :  { %v1534_v2 = vadd.f32 %v1533_v4, %v8820_v17  ;;  %v1535_v20 = vpop.f32.mrb[53].mxu0 }
 0x216   :  { %v1536_v25 = vadd.f32 %v1535_v20, %v8826_v0  ;;  %v1537_v50 = vpop.f32.mrb[54].mxu0 }
 0x217   :  { %v1538_v52 = vadd.f32 %v1537_v50, %v8820_v17  ;;  %v1539_v58 = vpop.f32.mrb[55].mxu0  ;;  %v1870_v37 = vmax.f32 %v1534_v2, 0.0 }
 0x218   :  { %v1540_v35 = vadd.f32 %v1539_v58, %v8826_v0  ;;  %v1871_v6 = vmax.f32 %v1536_v25, 0.0 }
 0x219   :  { %v1878_v61 = vmax.f32 %v1538_v52, 0.0 }
 0x21a   :  { %v1879_v40 = vmax.f32 %v1540_v35, 0.0 }
 0x21b   :  { %v8900_v1 = vpack.c.bf16 %v1878_v61, %v1870_v37 }
 0x21c   :  { %v8902_v54 = vpack.c.bf16 %v1879_v40, %v1871_v6  ;;  %v1543_v36 = vpop.f32.mrb[56].mxu0 }
 0x21d   :  { %v1544_v23 = vadd.f32 %v1543_v36, %v8820_v17  ;;  %v1545_v4 = vpop.f32.mrb[57].mxu0 }
 0x21e   :  { %v1546_v20 = vadd.f32 %v1545_v4, %v8826_v0  ;;  %v1547_v13 = vpop.f32.mrb[58].mxu0  ;;  %v10335_v4 = vsub.s32 4, %v8681_v26 }
 0x21f   :  { %v1548_v50 = vadd.f32 %v1547_v13, %v8820_v17  ;;  %v1549_v28 = vpop.f32.mrb[59].mxu0  ;;  %v1886_v2 = vmax.f32 %v1544_v23, 0.0 }
 0x220   :  { %v1550_v58 = vadd.f32 %v1549_v28, %v8826_v0  ;;  %v1887_v25 = vmax.f32 %v1546_v20, 0.0 }
 0x221   :  { %v1894_v52 = vmax.f32 %v1548_v50, 0.0 }
 0x222   :  { %v1895_v35 = vmax.f32 %v1550_v58, 0.0 }
 0x223   :  { %v8908_v37 = vpack.c.bf16 %v1894_v52, %v1886_v2  ;;  %v8921_v2 = vrot.slane %v8689_v56, %v10335_v4 }
 0x224   :  { %v8910_v61 = vpack.c.bf16 %v1895_v35, %v1887_v25  ;;  %v1553_v6 = vpop.f32.mrb[60].mxu0  ;;  %v8926_v35 = vrot.slane %v8689_v56, %v10338_v33 }
 0x225   :  { %v1554_v40 = vadd.f32 %v1553_v6, %v8820_v17  ;;  %v1555_v36 = vpop.f32.mrb[61].mxu0 }
 0x226   :  { %v1556_v48 = vadd.f32 %v1555_v36, %v8826_v0  ;;  %v1557_v13 = vpop.f32.mrb[62].mxu0 }
 0x227   :  { %v1558_v28 = vadd.f32 %v1557_v13, %v8820_v17  ;;  %v1559_v23 = vpop.f32.mrb[63].mxu0  ;;  %v1902_v50 = vmax.f32 %v1554_v40, 0.0 }
 0x228   :  { %v1560_v20 = vadd.f32 %v1559_v23, %v8826_v0  ;;  %v1903_v52 = vmax.f32 %v1556_v48, 0.0 }
 0x229   :  { %v1910_v58 = vmax.f32 %v1558_v28, 0.0 }
 0x22a   :  { %v1911_v25 = vmax.f32 %v1560_v20, 0.0 }
 0x22b   :  { %v8928_v6 = vpack.c.bf16 %v1910_v58, %v1902_v50 }
 0x22c   :  { %v8930_v17 = vpack.c.bf16 %v1911_v25, %v1903_v52  ;;  %v1596_v36 = vpop.f32.mrb[64].mxu0 }
 0x22d   :  { %v1597_v0 = vadd.f32 %v1596_v36, %v8921_v2  ;;  %v1598_v40 = vpop.f32.mrb[65].mxu0 }
 0x22e   :  { %v1599_v13 = vadd.f32 %v1598_v40, %v8926_v35  ;;  %v1600_v28 = vpop.f32.mrb[66].mxu0 }
 0x22f   :  { %v1601_v23 = vadd.f32 %v1600_v28, %v8921_v2  ;;  %v1602_v48 = vpop.f32.mrb[67].mxu0  ;;  %v1792_v4 = vmax.f32 %v1597_v0, 0.0 }
 0x230   :  { %v1603_v20 = vadd.f32 %v1602_v48, %v8926_v35  ;;  %v1793_v56 = vmax.f32 %v1599_v13, 0.0 }
 0x231   :  { %v1800_v26 = vmax.f32 %v1601_v23, 0.0 }
 0x232   :  { %v1801_v33 = vmax.f32 %v1603_v20, 0.0 }
 0x233   :  { %v8936_v50 = vpack.c.bf16 %v1800_v26, %v1792_v4 }
 0x234   :  { %v8938_v58 = vpack.c.bf16 %v1801_v33, %v1793_v56  ;;  %v1606_v52 = vpop.f32.mrb[68].mxu0 }
 0x235   :  { %v1607_v25 = vadd.f32 %v1606_v52, %v8921_v2  ;;  %v1608_v36 = vpop.f32.mrb[69].mxu0 }
 0x236   :  { %v1609_v40 = vadd.f32 %v1608_v36, %v8926_v35  ;;  %v1610_v15 = vpop.f32.mrb[70].mxu0 }
 0x237   :  { %v1611_v28 = vadd.f32 %v1610_v15, %v8921_v2  ;;  %v1612_v43 = vpop.f32.mrb[71].mxu0  ;;  %v1808_v0 = vmax.f32 %v1607_v25, 0.0 }
 0x238   :  { %v1613_v48 = vadd.f32 %v1612_v43, %v8926_v35  ;;  %v1809_v13 = vmax.f32 %v1609_v40, 0.0 }
 0x239   :  { %v1816_v23 = vmax.f32 %v1611_v28, 0.0 }
 0x23a   :  { %v1817_v20 = vmax.f32 %v1613_v48, 0.0 }
 0x23b   :  { %v8944_v26 = vpack.c.bf16 %v1816_v23, %v1808_v0 }
 0x23c   :  { %v8946_v33 = vpack.c.bf16 %v1817_v20, %v1809_v13  ;;  %v1616_v4 = vpop.f32.mrb[72].mxu0 }
 0x23d   :  { %v1617_v56 = vadd.f32 %v1616_v4, %v8921_v2  ;;  %v1618_v52 = vpop.f32.mrb[73].mxu0 }
 0x23e   :  { %v1619_v36 = vadd.f32 %v1618_v52, %v8926_v35  ;;  %v1620_v19 = vpop.f32.mrb[74].mxu0 }
 0x23f   :  { %v1621_v15 = vadd.f32 %v1620_v19, %v8921_v2  ;;  %v1622_v45 = vpop.f32.mrb[75].mxu0  ;;  %v1824_v25 = vmax.f32 %v1617_v56, 0.0 }
 0x240   :  { %v1623_v43 = vadd.f32 %v1622_v45, %v8926_v35  ;;  %v1825_v40 = vmax.f32 %v1619_v36, 0.0 }
 0x241   :  { %v1832_v28 = vmax.f32 %v1621_v15, 0.0 }
 0x242   :  { %v1833_v48 = vmax.f32 %v1623_v43, 0.0 }
 0x243   :  { %v8952_v0 = vpack.c.bf16 %v1832_v28, %v1824_v25 }
 0x244   :  { %v8954_v23 = vpack.c.bf16 %v1833_v48, %v1825_v40  ;;  %v1626_v13 = vpop.f32.mrb[76].mxu0 }
 0x245   :  { %v1627_v20 = vadd.f32 %v1626_v13, %v8921_v2  ;;  %v1628_v4 = vpop.f32.mrb[77].mxu0 }
 0x246   :  { %v1629_v52 = vadd.f32 %v1628_v4, %v8926_v35  ;;  %v1630_v8 = vpop.f32.mrb[78].mxu0 }
 0x247   :  { %v1631_v19 = vadd.f32 %v1630_v8, %v8921_v2  ;;  %v1632_v21 = vpop.f32.mrb[79].mxu0  ;;  %v1840_v56 = vmax.f32 %v1627_v20, 0.0 }
 0x248   :  { %v1633_v45 = vadd.f32 %v1632_v21, %v8926_v35  ;;  %v1841_v36 = vmax.f32 %v1629_v52, 0.0 }
 0x249   :  { %v1848_v15 = vmax.f32 %v1631_v19, 0.0 }
 0x24a   :  { %v1849_v43 = vmax.f32 %v1633_v45, 0.0 }
 0x24b   :  { %v8960_v25 = vpack.c.bf16 %v1848_v15, %v1840_v56 }
 0x24c   :  { %v8962_v28 = vpack.c.bf16 %v1849_v43, %v1841_v36  ;;  %v1636_v40 = vpop.f32.mrb[80].mxu0 }
 0x24d   :  { %v1637_v48 = vadd.f32 %v1636_v40, %v8921_v2  ;;  %v1638_v13 = vpop.f32.mrb[81].mxu0 }
 0x24e   :  { %v1639_v4 = vadd.f32 %v1638_v13, %v8926_v35  ;;  %v1640_v22 = vpop.f32.mrb[82].mxu0 }
 0x24f   :  { %v1641_v8 = vadd.f32 %v1640_v22, %v8921_v2  ;;  %v1642_v51 = vpop.f32.mrb[83].mxu0  ;;  %v1856_v20 = vmax.f32 %v1637_v48, 0.0 }
 0x250   :  { %v1643_v21 = vadd.f32 %v1642_v51, %v8926_v35  ;;  %v1857_v52 = vmax.f32 %v1639_v4, 0.0 }
 0x251   :  { %v1864_v19 = vmax.f32 %v1641_v8, 0.0 }
 0x252   :  { %v1865_v45 = vmax.f32 %v1643_v21, 0.0 }
 0x253   :  { %v8968_v56 = vpack.c.bf16 %v1864_v19, %v1856_v20 }
 0x254   :  { %v8970_v15 = vpack.c.bf16 %v1865_v45, %v1857_v52  ;;  %v1646_v36 = vpop.f32.mrb[84].mxu0 }
 0x255   :  { %v1647_v43 = vadd.f32 %v1646_v36, %v8921_v2  ;;  %v1648_v40 = vpop.f32.mrb[85].mxu0 }
 0x256   :  { %v1649_v13 = vadd.f32 %v1648_v40, %v8926_v35  ;;  %v1650_v14 = vpop.f32.mrb[86].mxu0 }
 0x257   :  { %v1651_v22 = vadd.f32 %v1650_v14, %v8921_v2  ;;  %v1652_v7 = vpop.f32.mrb[87].mxu0  ;;  %v1872_v48 = vmax.f32 %v1647_v43, 0.0 }
 0x258   :  { %v1653_v51 = vadd.f32 %v1652_v7, %v8926_v35  ;;  %v1873_v4 = vmax.f32 %v1649_v13, 0.0 }
 0x259   :  { %v1880_v8 = vmax.f32 %v1651_v22, 0.0 }
 0x25a   :  { %v1881_v21 = vmax.f32 %v1653_v51, 0.0 }
 0x25b   :  { %v8976_v20 = vpack.c.bf16 %v1880_v8, %v1872_v48 }
 0x25c   :  { %v8978_v19 = vpack.c.bf16 %v1881_v21, %v1873_v4  ;;  %v1656_v52 = vpop.f32.mrb[88].mxu0 }
 0x25d   :  { %v1657_v45 = vadd.f32 %v1656_v52, %v8921_v2  ;;  %v1658_v36 = vpop.f32.mrb[89].mxu0 }
 0x25e   :  { %v1659_v40 = vadd.f32 %v1658_v36, %v8926_v35  ;;  %v1660_v59 = vpop.f32.mrb[90].mxu0 }
 0x25f   :  { %v1661_v14 = vadd.f32 %v1660_v59, %v8921_v2  ;;  %v1662_v9 = vpop.f32.mrb[91].mxu0  ;;  %v1888_v43 = vmax.f32 %v1657_v45, 0.0 }
 0x260   :  { %v1663_v7 = vadd.f32 %v1662_v9, %v8926_v35  ;;  %v1889_v13 = vmax.f32 %v1659_v40, 0.0 }
 0x261   :  { %v1896_v22 = vmax.f32 %v1661_v14, 0.0 }
 0x262   :  { %v1897_v51 = vmax.f32 %v1663_v7, 0.0 }
 0x263   :  { %v8984_v48 = vpack.c.bf16 %v1896_v22, %v1888_v43 }
 0x264   :  { %v8986_v8 = vpack.c.bf16 %v1897_v51, %v1889_v13  ;;  %v1666_v4 = vpop.f32.mrb[92].mxu0 }
 0x265   :  { %v1667_v21 = vadd.f32 %v1666_v4, %v8921_v2  ;;  %v1668_v52 = vpop.f32.mrb[93].mxu0 }
 0x266   :  { %v1669_v36 = vadd.f32 %v1668_v52, %v8926_v35  ;;  %v1670_v24 = vpop.f32.mrb[94].mxu0 }
 0x267   :  { %v1671_v59 = vadd.f32 %v1670_v24, %v8921_v2  ;;  %v1672_v5 = vpop.f32.mrb[95].mxu0  ;;  %v1904_v45 = vmax.f32 %v1667_v21, 0.0 }
 0x268   :  { %v1673_v9 = vadd.f32 %v1672_v5, %v8926_v35  ;;  %v1905_v40 = vmax.f32 %v1669_v36, 0.0 }
 0x269   :  { %v1912_v14 = vmax.f32 %v1671_v59, 0.0 }
 0x26a   :  { %v1913_v7 = vmax.f32 %v1673_v9, 0.0 }
 0x26b   :  { %v8992_v43 = vpack.c.bf16 %v1912_v14, %v1904_v45 }
 0x26c   :  { %v8994_v22 = vpack.c.bf16 %v1913_v7, %v1905_v40 }
 0x26d   :  { %7810 = dma.done.wait [#allocation12 + $0x1], 32768 }
 0x26e   :  { %7811 = vsyncadd [#allocation12 + $0x1], 4294934528  ;;  %2294 = vmatprep.mubr.bf16.mxu0 %v8708_v11  ;;  %2746 = vmatprep.mubr.bf16.mxu1 %v8708_v11  ;;  %v1985_v13 = vld [vmem:[#allocation3 + $0x8] sm:$0xff]  ;;  %v1987_v51 = vld [vmem:[#allocation3 + $0x18] sm:$0xff]  ;;  %s10428_s18 = sld [smem:[#allocation86_spill]] }
 0x26f   :  { %v1984_v24 = vld [vmem:[#allocation3] sm:$0xff]  ;;  %2262 = vmatprep.subr.bf16.mxu0 %v1985_v13  ;;  %2714 = vmatprep.subr.bf16.mxu1 %v1987_v51  ;;  %v1986_v5 = vld [vmem:[#allocation3 + $0x10] sm:$0xff]  ;;  %v1989_v2 = vld [vmem:[#allocation3 + $0x28] sm:$0xff] }
 0x270   :  { %v1991_v35 = vld [vmem:[#allocation3 + $0x38] sm:$0xff]  ;;  %2263 = vmatpush1.bf16.msra.mxu0 %v1984_v24  ;;  %2715 = vmatpush1.bf16.msra.mxu1 %v1986_v5  ;;  %v1988_v4 = vld [vmem:[#allocation3 + $0x20] sm:$0xff]  ;;  %v1990_v21 = vld [vmem:[#allocation3 + $0x30] sm:$0xff] }
 0x271   :  { %2264 = vmatprep.subr.bf16.mxu0 %v1989_v2  ;;  %2716 = vmatprep.subr.bf16.mxu1 %v1991_v35  ;;  %v1993_v52 = vld [vmem:[#allocation3 + $0x48] sm:$0xff]  ;;  %v1995_v36 = vld [vmem:[#allocation3 + $0x58] sm:$0xff]  ;;  %v1992_v11 = vld [vmem:[#allocation3 + $0x40] sm:$0xff] }
 0x272   :  { %v1994_v59 = vld [vmem:[#allocation3 + $0x50] sm:$0xff]  ;;  %v1997_v9 = vld [vmem:[#allocation3 + $0x68] sm:$0xff]  ;;  %v1999_v45 = vld [vmem:[#allocation3 + $0x78] sm:$0xff] }
 0x273   :  { %v1996_v14 = vld [vmem:[#allocation3 + $0x60] sm:$0xff]  ;;  %v1998_v40 = vld [vmem:[#allocation3 + $0x70] sm:$0xff]  ;;  %v2001_v7 = vld [vmem:[#allocation3 + $0x88] sm:$0xff] }
 0x274   :  { %2265 = vmatpush1.bf16.msra.mxu0 %v1988_v4  ;;  %2717 = vmatpush1.bf16.msra.mxu1 %v1990_v21  ;;  %v2003_v13 = vld [vmem:[#allocation3 + $0x98] sm:$0xff]  ;;  %v2000_v51 = vld [vmem:[#allocation3 + $0x80] sm:$0xff]  ;;  %v2002_v24 = vld [vmem:[#allocation3 + $0x90] sm:$0xff] }
 0x275   :  { %2266 = vmatprep.subr.bf16.mxu0 %v1993_v52  ;;  %2718 = vmatprep.subr.bf16.mxu1 %v1995_v36  ;;  %v2005_v5 = vld [vmem:[#allocation3 + $0xa8] sm:$0xff]  ;;  %v2007_v2 = vld [vmem:[#allocation3 + $0xb8] sm:$0xff]  ;;  %v2004_v35 = vld [vmem:[#allocation3 + $0xa0] sm:$0xff] }
 0x276   :  { %v2006_v4 = vld [vmem:[#allocation3 + $0xb0] sm:$0xff]  ;;  %v2009_v21 = vld [vmem:[#allocation3 + $0xc8] sm:$0xff]  ;;  %v2011_v52 = vld [vmem:[#allocation3 + $0xd8] sm:$0xff] }
 0x277   :  { %v2008_v36 = vld [vmem:[#allocation3 + $0xc0] sm:$0xff] }
 0x278   :  { %2267 = vmatpush1.bf16.msra.mxu0 %v1992_v11  ;;  %2719 = vmatpush1.bf16.msra.mxu1 %v1994_v59  ;;  %v2010_v11 = vld [vmem:[#allocation3 + $0xd0] sm:$0xff]  ;;  %v2013_v59 = vld [vmem:[#allocation3 + $0xe8] sm:$0xff] }
 0x279   :  { %2268 = vmatprep.subr.bf16.mxu0 %v1997_v9  ;;  %2720 = vmatprep.subr.bf16.mxu1 %v1999_v45  ;;  %v2015_v9 = vld [vmem:[#allocation3 + $0xf8] sm:$0xff]  ;;  %v2012_v45 = vld [vmem:[#allocation3 + $0xe0] sm:$0xff] }
 0x27c   :  { %2269 = vmatpush1.bf16.msra.mxu0 %v1996_v14  ;;  %2721 = vmatpush1.bf16.msra.mxu1 %v1998_v40  ;;  %v2014_v14 = vld [vmem:[#allocation3 + $0xf0] sm:$0xff]  ;;  %v2017_v40 = vld [vmem:[#allocation3 + $0x108] sm:$0xff] }
 0x27d   :  { %2270 = vmatprep.subr.bf16.mxu0 %v2001_v7  ;;  %2722 = vmatprep.subr.bf16.mxu1 %v2003_v13  ;;  %v2019_v7 = vld [vmem:[#allocation3 + $0x118] sm:$0xff]  ;;  %v2016_v13 = vld [vmem:[#allocation3 + $0x100] sm:$0xff] }
 0x280   :  { %2271 = vmatpush1.bf16.msra.mxu0 %v2000_v51  ;;  %2723 = vmatpush1.bf16.msra.mxu1 %v2002_v24  ;;  %v2018_v51 = vld [vmem:[#allocation3 + $0x110] sm:$0xff]  ;;  %v2021_v24 = vld [vmem:[#allocation3 + $0x128] sm:$0xff] }
 0x281   :  { %2272 = vmatprep.subr.bf16.mxu0 %v2005_v5  ;;  %2724 = vmatprep.subr.bf16.mxu1 %v2007_v2  ;;  %v2023_v5 = vld [vmem:[#allocation3 + $0x138] sm:$0xff]  ;;  %v2020_v2 = vld [vmem:[#allocation3 + $0x120] sm:$0xff] }
 0x284   :  { %2273 = vmatpush1.bf16.msra.mxu0 %v2004_v35  ;;  %2725 = vmatpush1.bf16.msra.mxu1 %v2006_v4  ;;  %v2022_v35 = vld [vmem:[#allocation3 + $0x130] sm:$0xff]  ;;  %v2025_v4 = vld [vmem:[#allocation3 + $0x148] sm:$0xff] }
 0x285   :  { %2274 = vmatprep.subr.bf16.mxu0 %v2009_v21  ;;  %2726 = vmatprep.subr.bf16.mxu1 %v2011_v52  ;;  %v2027_v21 = vld [vmem:[#allocation3 + $0x158] sm:$0xff]  ;;  %v2024_v52 = vld [vmem:[#allocation3 + $0x140] sm:$0xff] }
 0x288   :  { %2275 = vmatpush1.bf16.msra.mxu0 %v2008_v36  ;;  %2727 = vmatpush1.bf16.msra.mxu1 %v2010_v11  ;;  %v2026_v36 = vld [vmem:[#allocation3 + $0x150] sm:$0xff]  ;;  %v2029_v11 = vld [vmem:[#allocation3 + $0x168] sm:$0xff] }
 0x289   :  { %2276 = vmatprep.subr.bf16.mxu0 %v2013_v59  ;;  %2728 = vmatprep.subr.bf16.mxu1 %v2015_v9  ;;  %v2031_v59 = vld [vmem:[#allocation3 + $0x178] sm:$0xff]  ;;  %v2028_v9 = vld [vmem:[#allocation3 + $0x160] sm:$0xff] }
 0x28c   :  { %2277 = vmatpush1.bf16.msra.mxu0 %v2012_v45  ;;  %2729 = vmatpush1.bf16.msra.mxu1 %v2014_v14  ;;  %v2030_v45 = vld [vmem:[#allocation3 + $0x170] sm:$0xff]  ;;  %v2033_v14 = vld [vmem:[#allocation3 + $0x188] sm:$0xff] }
 0x28d   :  { %2278 = vmatprep.subr.bf16.mxu0 %v2017_v40  ;;  %2730 = vmatprep.subr.bf16.mxu1 %v2019_v7  ;;  %v2035_v40 = vld [vmem:[#allocation3 + $0x198] sm:$0xff]  ;;  %v2032_v7 = vld [vmem:[#allocation3 + $0x180] sm:$0xff] }
 0x290   :  { %2279 = vmatpush1.bf16.msra.mxu0 %v2016_v13  ;;  %2731 = vmatpush1.bf16.msra.mxu1 %v2018_v51  ;;  %v2034_v13 = vld [vmem:[#allocation3 + $0x190] sm:$0xff]  ;;  %v2037_v51 = vld [vmem:[#allocation3 + $0x1a8] sm:$0xff] }
 0x291   :  { %2280 = vmatprep.subr.bf16.mxu0 %v2021_v24  ;;  %2732 = vmatprep.subr.bf16.mxu1 %v2023_v5  ;;  %v2039_v24 = vld [vmem:[#allocation3 + $0x1b8] sm:$0xff]  ;;  %v2036_v5 = vld [vmem:[#allocation3 + $0x1a0] sm:$0xff] }
 0x294   :  { %2281 = vmatpush1.bf16.msra.mxu0 %v2020_v2  ;;  %2733 = vmatpush1.bf16.msra.mxu1 %v2022_v35  ;;  %v2038_v2 = vld [vmem:[#allocation3 + $0x1b0] sm:$0xff]  ;;  %v2041_v35 = vld [vmem:[#allocation3 + $0x1c8] sm:$0xff] }
 0x295   :  { %2282 = vmatprep.subr.bf16.mxu0 %v2025_v4  ;;  %2734 = vmatprep.subr.bf16.mxu1 %v2027_v21  ;;  %v2043_v4 = vld [vmem:[#allocation3 + $0x1d8] sm:$0xff]  ;;  %v2040_v21 = vld [vmem:[#allocation3 + $0x1c0] sm:$0xff] }
 0x298   :  { %2283 = vmatpush1.bf16.msra.mxu0 %v2024_v52  ;;  %2735 = vmatpush1.bf16.msra.mxu1 %v2026_v36  ;;  %v2042_v52 = vld [vmem:[#allocation3 + $0x1d0] sm:$0xff]  ;;  %v2045_v36 = vld [vmem:[#allocation3 + $0x1e8] sm:$0xff] }
 0x299   :  { %2284 = vmatprep.subr.bf16.mxu0 %v2029_v11  ;;  %2736 = vmatprep.subr.bf16.mxu1 %v2031_v59  ;;  %v2047_v11 = vld [vmem:[#allocation3 + $0x1f8] sm:$0xff]  ;;  %v2044_v59 = vld [vmem:[#allocation3 + $0x1e0] sm:$0xff] }
 0x29c   :  { %2285 = vmatpush1.bf16.msra.mxu0 %v2028_v9  ;;  %2737 = vmatpush1.bf16.msra.mxu1 %v2030_v45  ;;  %v2046_v9 = vld [vmem:[#allocation3 + $0x1f0] sm:$0xff]  ;;  %v2049_v45 = vld [vmem:[#allocation3 + $0x208] sm:$0xff] }
 0x29d   :  { %2286 = vmatprep.subr.bf16.mxu0 %v2033_v14  ;;  %2738 = vmatprep.subr.bf16.mxu1 %v2035_v40  ;;  %v2051_v14 = vld [vmem:[#allocation3 + $0x218] sm:$0xff]  ;;  %v2048_v40 = vld [vmem:[#allocation3 + $0x200] sm:$0xff] }
 0x2a0   :  { %2287 = vmatpush1.bf16.msra.mxu0 %v2032_v7  ;;  %2739 = vmatpush1.bf16.msra.mxu1 %v2034_v13  ;;  %v2050_v7 = vld [vmem:[#allocation3 + $0x210] sm:$0xff]  ;;  %v2053_v13 = vld [vmem:[#allocation3 + $0x228] sm:$0xff] }
 0x2a1   :  { %2288 = vmatprep.subr.bf16.mxu0 %v2037_v51  ;;  %2740 = vmatprep.subr.bf16.mxu1 %v2039_v24  ;;  %v2055_v51 = vld [vmem:[#allocation3 + $0x238] sm:$0xff]  ;;  %v2052_v24 = vld [vmem:[#allocation3 + $0x220] sm:$0xff] }
 0x2a4   :  { %2289 = vmatpush1.bf16.msra.mxu0 %v2036_v5  ;;  %2741 = vmatpush1.bf16.msra.mxu1 %v2038_v2  ;;  %v2054_v5 = vld [vmem:[#allocation3 + $0x230] sm:$0xff]  ;;  %v2057_v2 = vld [vmem:[#allocation3 + $0x248] sm:$0xff] }
 0x2a5   :  { %2290 = vmatprep.subr.bf16.mxu0 %v2041_v35  ;;  %2742 = vmatprep.subr.bf16.mxu1 %v2043_v4  ;;  %v2059_v35 = vld [vmem:[#allocation3 + $0x258] sm:$0xff]  ;;  %v2056_v4 = vld [vmem:[#allocation3 + $0x240] sm:$0xff] }
 0x2a8   :  { %2291 = vmatpush1.bf16.msra.mxu0 %v2040_v21  ;;  %2743 = vmatpush1.bf16.msra.mxu1 %v2042_v52  ;;  %v2058_v21 = vld [vmem:[#allocation3 + $0x250] sm:$0xff]  ;;  %v2061_v52 = vld [vmem:[#allocation3 + $0x268] sm:$0xff] }
 0x2a9   :  { %2292 = vmatprep.subr.bf16.mxu0 %v2045_v36  ;;  %2744 = vmatprep.subr.bf16.mxu1 %v2047_v11  ;;  %v2060_v36 = vld [vmem:[#allocation3 + $0x260] sm:$0xff]  ;;  %v2065_v11 = vld [vmem:[#allocation3 + $0x288] sm:$0xff] }
 0x2ac   :  { %2293 = vmatpush1.bf16.msra.mxu0 %v2044_v59  ;;  %2745 = vmatpush1.bf16.msra.mxu1 %v2046_v9  ;;  %v2067_v59 = vld [vmem:[#allocation3 + $0x298] sm:$0xff]  ;;  %v2064_v9 = vld [vmem:[#allocation3 + $0x280] sm:$0xff] }
 0x2ad   :  { %2375 = vmatprep.subr.bf16.mxu0 %v2049_v45  ;;  %2827 = vmatprep.subr.bf16.mxu1 %v2051_v14  ;;  %v2066_v45 = vld [vmem:[#allocation3 + $0x290] sm:$0xff]  ;;  %v2069_v14 = vld [vmem:[#allocation3 + $0x2a8] sm:$0xff] }
 0x2af   :  { %2295 = vmatmul.mubr.bf16.vlgmr.msra.gmra.mrb[96].mxu0 %v8706_v10  ;;  %2747 = vmatmul.mubr.bf16.vlgmr.msra.gmra.mrb[32].mxu1 %v8706_v10  ;;  %v2063_v10 = vld [vmem:[#allocation3 + $0x278] sm:$0xff] }
 0x2b0   :  { %2376 = vmatpush1.bf16.msra.mxu0 %v2048_v40  ;;  %2828 = vmatpush1.bf16.msra.mxu1 %v2050_v7  ;;  %v2068_v40 = vld [vmem:[#allocation3 + $0x2a0] sm:$0xff]  ;;  %v2073_v7 = vld [vmem:[#allocation3 + $0x2c8] sm:$0xff] }
 0x2b1   :  { %2377 = vmatprep.subr.bf16.mxu0 %v2053_v13  ;;  %2829 = vmatprep.subr.bf16.mxu1 %v2055_v51  ;;  %v2075_v13 = vld [vmem:[#allocation3 + $0x2d8] sm:$0xff]  ;;  %v2072_v51 = vld [vmem:[#allocation3 + $0x2c0] sm:$0xff] }
 0x2b2   :  { %2304 = vmatprep.mubr.bf16.mxu0 %v8718_v3  ;;  %2756 = vmatprep.mubr.bf16.mxu1 %v8718_v3  ;;  %v2062_v3 = vld [vmem:[#allocation3 + $0x270] sm:$0xff] }
 0x2b4   :  { %2378 = vmatpush1.bf16.msra.mxu0 %v2052_v24  ;;  %2830 = vmatpush1.bf16.msra.mxu1 %v2054_v5  ;;  %v2074_v24 = vld [vmem:[#allocation3 + $0x2d0] sm:$0xff]  ;;  %v2077_v5 = vld [vmem:[#allocation3 + $0x2e8] sm:$0xff] }
 0x2b5   :  { %2379 = vmatprep.subr.bf16.mxu0 %v2057_v2  ;;  %2831 = vmatprep.subr.bf16.mxu1 %v2059_v35  ;;  %v2076_v2 = vld [vmem:[#allocation3 + $0x2e0] sm:$0xff]  ;;  %v2081_v35 = vld [vmem:[#allocation3 + $0x308] sm:$0xff] }
 0x2b7   :  { %2305 = vmatmul.mubr.bf16.gmra.mrb[100].mxu0 %v8715_v63  ;;  %2757 = vmatmul.mubr.bf16.gmra.mrb[36].mxu1 %v8715_v63  ;;  %v2071_v63 = vld [vmem:[#allocation3 + $0x2b8] sm:$0xff] }
 0x2b8   :  { %2380 = vmatpush1.bf16.msra.mxu0 %v2056_v4  ;;  %2832 = vmatpush1.bf16.msra.mxu1 %v2058_v21  ;;  %v2083_v4 = vld [vmem:[#allocation3 + $0x318] sm:$0xff]  ;;  %v2080_v21 = vld [vmem:[#allocation3 + $0x300] sm:$0xff] }
 0x2b9   :  { %2381 = vmatprep.subr.bf16.mxu0 %v2061_v52  ;;  %2833 = vmatprep.subr.bf16.mxu1 %v2063_v10  ;;  %v2082_v52 = vld [vmem:[#allocation3 + $0x310] sm:$0xff]  ;;  %v2085_v10 = vld [vmem:[#allocation3 + $0x328] sm:$0xff] }
 0x2ba   :  { %2314 = vmatprep.mubr.bf16.mxu0 %v8738_v12  ;;  %2766 = vmatprep.mubr.bf16.mxu1 %v8738_v12  ;;  %v2070_v12 = vld [vmem:[#allocation3 + $0x2b0] sm:$0xff] }
 0x2bc   :  { %2382 = vmatpush1.bf16.msra.mxu0 %v2060_v36  ;;  %2834 = vmatpush1.bf16.msra.mxu1 %v2062_v3  ;;  %v2084_v36 = vld [vmem:[#allocation3 + $0x320] sm:$0xff]  ;;  %v2089_v3 = vld [vmem:[#allocation3 + $0x348] sm:$0xff] }
 0x2bd   :  { %2383 = vmatprep.subr.bf16.mxu0 %v2065_v11  ;;  %2835 = vmatprep.subr.bf16.mxu1 %v2067_v59  ;;  %v2091_v11 = vld [vmem:[#allocation3 + $0x358] sm:$0xff]  ;;  %v2088_v59 = vld [vmem:[#allocation3 + $0x340] sm:$0xff] }
 0x2bf   :  { %2315 = vmatmul.mubr.bf16.gmra.mrb[104].mxu0 %v8735_v27  ;;  %2767 = vmatmul.mubr.bf16.gmra.mrb[40].mxu1 %v8735_v27  ;;  %v2079_v27 = vld [vmem:[#allocation3 + $0x2f8] sm:$0xff] }
 0x2c0   :  { %2384 = vmatpush1.bf16.msra.mxu0 %v2064_v9  ;;  %2836 = vmatpush1.bf16.msra.mxu1 %v2066_v45  ;;  %v2090_v9 = vld [vmem:[#allocation3 + $0x350] sm:$0xff]  ;;  %v2093_v45 = vld [vmem:[#allocation3 + $0x368] sm:$0xff] }
 0x2c1   :  { %2385 = vmatprep.subr.bf16.mxu0 %v2069_v14  ;;  %2837 = vmatprep.subr.bf16.mxu1 %v2071_v63  ;;  %v2092_v14 = vld [vmem:[#allocation3 + $0x360] sm:$0xff]  ;;  %v2097_v63 = vld [vmem:[#allocation3 + $0x388] sm:$0xff] }
 0x2c2   :  { %2324 = vmatprep.mubr.bf16.mxu0 %v8754_v57  ;;  %2776 = vmatprep.mubr.bf16.mxu1 %v8754_v57  ;;  %v2078_v57 = vld [vmem:[#allocation3 + $0x2f0] sm:$0xff] }
 0x2c4   :  { %2386 = vmatpush1.bf16.msra.mxu0 %v2068_v40  ;;  %2838 = vmatpush1.bf16.msra.mxu1 %v2070_v12  ;;  %v2099_v40 = vld [vmem:[#allocation3 + $0x398] sm:$0xff]  ;;  %v2096_v12 = vld [vmem:[#allocation3 + $0x380] sm:$0xff] }
 0x2c5   :  { %2387 = vmatprep.subr.bf16.mxu0 %v2073_v7  ;;  %2839 = vmatprep.subr.bf16.mxu1 %v2075_v13  ;;  %v2098_v7 = vld [vmem:[#allocation3 + $0x390] sm:$0xff]  ;;  %v2101_v13 = vld [vmem:[#allocation3 + $0x3a8] sm:$0xff] }
 0x2c7   :  { %2325 = vmatmul.mubr.bf16.gmra.mrb[108].mxu0 %v8751_v31  ;;  %2777 = vmatmul.mubr.bf16.gmra.mrb[44].mxu1 %v8751_v31  ;;  %v2087_v31 = vld [vmem:[#allocation3 + $0x338] sm:$0xff] }
 0x2c8   :  { %2388 = vmatpush1.bf16.msra.mxu0 %v2072_v51  ;;  %2840 = vmatpush1.bf16.msra.mxu1 %v2074_v24  ;;  %v2100_v51 = vld [vmem:[#allocation3 + $0x3a0] sm:$0xff]  ;;  %v2105_v24 = vld [vmem:[#allocation3 + $0x3c8] sm:$0xff] }
 0x2c9   :  { %2389 = vmatprep.subr.bf16.mxu0 %v2077_v5  ;;  %2841 = vmatprep.subr.bf16.mxu1 %v2079_v27  ;;  %v2107_v5 = vld [vmem:[#allocation3 + $0x3d8] sm:$0xff]  ;;  %v2104_v27 = vld [vmem:[#allocation3 + $0x3c0] sm:$0xff] }
 0x2ca   :  { %2334 = vmatprep.mubr.bf16.mxu0 %v8770_v18  ;;  %2786 = vmatprep.mubr.bf16.mxu1 %v8770_v18  ;;  %v2086_v18 = vld [vmem:[#allocation3 + $0x330] sm:$0xff] }
 0x2cc   :  { %2390 = vmatpush1.bf16.msra.mxu0 %v2076_v2  ;;  %2842 = vmatpush1.bf16.msra.mxu1 %v2078_v57  ;;  %v2106_v2 = vld [vmem:[#allocation3 + $0x3d0] sm:$0xff]  ;;  %v2109_v57 = vld [vmem:[#allocation3 + $0x3e8] sm:$0xff] }
 0x2cd   :  { %2391 = vmatprep.subr.bf16.mxu0 %v2081_v35  ;;  %2843 = vmatprep.subr.bf16.mxu1 %v2083_v4  ;;  %v2108_v35 = vld [vmem:[#allocation3 + $0x3e0] sm:$0xff]  ;;  %v2113_v4 = vld [vmem:[#allocation3 + $0x408] sm:$0xff] }
 0x2cf   :  { %2335 = vmatmul.mubr.bf16.gmra.mrb[112].mxu0 %v8767_v16  ;;  %2787 = vmatmul.mubr.bf16.gmra.mrb[48].mxu1 %v8767_v16  ;;  %v2095_v16 = vld [vmem:[#allocation3 + $0x378] sm:$0xff] }
 0x2d0   :  { %2392 = vmatpush1.bf16.msra.mxu0 %v2080_v21  ;;  %2844 = vmatpush1.bf16.msra.mxu1 %v2082_v52  ;;  %v2115_v21 = vld [vmem:[#allocation3 + $0x418] sm:$0xff]  ;;  %v2112_v52 = vld [vmem:[#allocation3 + $0x400] sm:$0xff] }
 0x2d1   :  { %2393 = vmatprep.subr.bf16.mxu0 %v2085_v10  ;;  %2845 = vmatprep.subr.bf16.mxu1 %v2087_v31  ;;  %v2114_v10 = vld [vmem:[#allocation3 + $0x410] sm:$0xff]  ;;  %v2117_v31 = vld [vmem:[#allocation3 + $0x428] sm:$0xff] }
 0x2d2   :  { %2344 = vmatprep.mubr.bf16.mxu0 %v8786_v30  ;;  %2796 = vmatprep.mubr.bf16.mxu1 %v8786_v30  ;;  %v2094_v30 = vld [vmem:[#allocation3 + $0x370] sm:$0xff] }
 0x2d4   :  { %2394 = vmatpush1.bf16.msra.mxu0 %v2084_v36  ;;  %2846 = vmatpush1.bf16.msra.mxu1 %v2086_v18  ;;  %v2116_v36 = vld [vmem:[#allocation3 + $0x420] sm:$0xff]  ;;  %v2121_v18 = vld [vmem:[#allocation3 + $0x448] sm:$0xff] }
 0x2d5   :  { %2395 = vmatprep.subr.bf16.mxu0 %v2089_v3  ;;  %2847 = vmatprep.subr.bf16.mxu1 %v2091_v11  ;;  %v2123_v3 = vld [vmem:[#allocation3 + $0x458] sm:$0xff]  ;;  %v2120_v11 = vld [vmem:[#allocation3 + $0x440] sm:$0xff] }
 0x2d7   :  { %2345 = vmatmul.mubr.bf16.gmra.mrb[116].mxu0 %v8783_v53  ;;  %2797 = vmatmul.mubr.bf16.gmra.mrb[52].mxu1 %v8783_v53  ;;  %v2103_v53 = vld [vmem:[#allocation3 + $0x3b8] sm:$0xff] }
 0x2d8   :  { %2396 = vmatpush1.bf16.msra.mxu0 %v2088_v59  ;;  %2848 = vmatpush1.bf16.msra.mxu1 %v2090_v9  ;;  %v2122_v59 = vld [vmem:[#allocation3 + $0x450] sm:$0xff]  ;;  %v2125_v9 = vld [vmem:[#allocation3 + $0x468] sm:$0xff] }
 0x2d9   :  { %2397 = vmatprep.subr.bf16.mxu0 %v2093_v45  ;;  %2849 = vmatprep.subr.bf16.mxu1 %v2095_v16  ;;  %v2124_v45 = vld [vmem:[#allocation3 + $0x460] sm:$0xff]  ;;  %v2129_v16 = vld [vmem:[#allocation3 + $0x488] sm:$0xff] }
 0x2da   :  { %2354 = vmatprep.mubr.bf16.mxu0 %v8802_v32  ;;  %2806 = vmatprep.mubr.bf16.mxu1 %v8802_v32  ;;  %v2102_v32 = vld [vmem:[#allocation3 + $0x3b0] sm:$0xff] }
 0x2dc   :  { %2398 = vmatpush1.bf16.msra.mxu0 %v2092_v14  ;;  %2850 = vmatpush1.bf16.msra.mxu1 %v2094_v30  ;;  %v2131_v14 = vld [vmem:[#allocation3 + $0x498] sm:$0xff]  ;;  %v2128_v30 = vld [vmem:[#allocation3 + $0x480] sm:$0xff] }
 0x2dd   :  { %2399 = vmatprep.subr.bf16.mxu0 %v2097_v63  ;;  %2851 = vmatprep.subr.bf16.mxu1 %v2099_v40  ;;  %v2130_v63 = vld [vmem:[#allocation3 + $0x490] sm:$0xff]  ;;  %v2133_v40 = vld [vmem:[#allocation3 + $0x4a8] sm:$0xff] }
 0x2df   :  { %2355 = vmatmul.mubr.bf16.gmra.mrb[120].mxu0 %v8799_v49  ;;  %2807 = vmatmul.mubr.bf16.gmra.mrb[56].mxu1 %v8799_v49  ;;  %v2111_v49 = vld [vmem:[#allocation3 + $0x3f8] sm:$0xff] }
 0x2e0   :  { %2400 = vmatpush1.bf16.msra.mxu0 %v2096_v12  ;;  %2852 = vmatpush1.bf16.msra.mxu1 %v2098_v7  ;;  %v2132_v12 = vld [vmem:[#allocation3 + $0x4a0] sm:$0xff]  ;;  %v2137_v7 = vld [vmem:[#allocation3 + $0x4c8] sm:$0xff] }
 0x2e1   :  { %2401 = vmatprep.subr.bf16.mxu0 %v2101_v13  ;;  %2853 = vmatprep.subr.bf16.mxu1 %v2103_v53  ;;  %v2139_v13 = vld [vmem:[#allocation3 + $0x4d8] sm:$0xff]  ;;  %v2136_v53 = vld [vmem:[#allocation3 + $0x4c0] sm:$0xff] }
 0x2e2   :  { %2364 = vmatprep.mubr.bf16.mxu0 %v8832_v60  ;;  %2816 = vmatprep.mubr.bf16.mxu1 %v8832_v60  ;;  %v2110_v60 = vld [vmem:[#allocation3 + $0x3f0] sm:$0xff] }
 0x2e4   :  { %2402 = vmatpush1.bf16.msra.mxu0 %v2100_v51  ;;  %2854 = vmatpush1.bf16.msra.mxu1 %v2102_v32  ;;  %v2138_v51 = vld [vmem:[#allocation3 + $0x4d0] sm:$0xff]  ;;  %v2141_v32 = vld [vmem:[#allocation3 + $0x4e8] sm:$0xff] }
 0x2e5   :  { %2403 = vmatprep.subr.bf16.mxu0 %v2105_v24  ;;  %2855 = vmatprep.subr.bf16.mxu1 %v2107_v5  ;;  %v2140_v24 = vld [vmem:[#allocation3 + $0x4e0] sm:$0xff]  ;;  %v2145_v5 = vld [vmem:[#allocation3 + $0x508] sm:$0xff] }
 0x2e7   :  { %2365 = vmatmul.mubr.bf16.gmra.mrb[124].mxu0 %v8829_v55  ;;  %2817 = vmatmul.mubr.bf16.gmra.mrb[60].mxu1 %v8829_v55  ;;  %v2119_v55 = vld [vmem:[#allocation3 + $0x438] sm:$0xff] }
 0x2e8   :  { %2404 = vmatpush1.bf16.msra.mxu0 %v2104_v27  ;;  %2856 = vmatpush1.bf16.msra.mxu1 %v2106_v2  ;;  %v2147_v27 = vld [vmem:[#allocation3 + $0x518] sm:$0xff]  ;;  %v2144_v2 = vld [vmem:[#allocation3 + $0x500] sm:$0xff] }
 0x2e9   :  { %2405 = vmatprep.subr.bf16.mxu0 %v2109_v57  ;;  %2857 = vmatprep.subr.bf16.mxu1 %v2111_v49  ;;  %v2146_v57 = vld [vmem:[#allocation3 + $0x510] sm:$0xff]  ;;  %v2149_v49 = vld [vmem:[#allocation3 + $0x528] sm:$0xff] }
 0x2ea   :  { %2407 = vmatprep.mubr.bf16.mxu0 %v8848_v38  ;;  %2859 = vmatprep.mubr.bf16.mxu1 %v8848_v38  ;;  %v2118_v38 = vld [vmem:[#allocation3 + $0x430] sm:$0xff] }
 0x2ec   :  { %2406 = vmatpush1.bf16.msra.mxu0 %v2108_v35  ;;  %2858 = vmatpush1.bf16.msra.mxu1 %v2110_v60  ;;  %v2148_v35 = vld [vmem:[#allocation3 + $0x520] sm:$0xff]  ;;  %v2153_v60 = vld [vmem:[#allocation3 + $0x548] sm:$0xff] }
 0x2ed   :  { %2488 = vmatprep.subr.bf16.mxu0 %v2113_v4  ;;  %2940 = vmatprep.subr.bf16.mxu1 %v2115_v21  ;;  %v2155_v4 = vld [vmem:[#allocation3 + $0x558] sm:$0xff]  ;;  %v2152_v21 = vld [vmem:[#allocation3 + $0x540] sm:$0xff] }
 0x2ef   :  { %2408 = vmatmul.mubr.bf16.vlgmr.msra.gmra.mrb[96].mxu0 %v8845_v44  ;;  %2860 = vmatmul.mubr.bf16.vlgmr.msra.gmra.mrb[32].mxu1 %v8845_v44  ;;  %v2127_v44 = vld [vmem:[#allocation3 + $0x478] sm:$0xff] }
 0x2f0   :  { %2489 = vmatpush1.bf16.msra.mxu0 %v2112_v52  ;;  %2941 = vmatpush1.bf16.msra.mxu1 %v2114_v10  ;;  %v2154_v52 = vld [vmem:[#allocation3 + $0x550] sm:$0xff]  ;;  %v2157_v10 = vld [vmem:[#allocation3 + $0x568] sm:$0xff] }
 0x2f1   :  { %2490 = vmatprep.subr.bf16.mxu0 %v2117_v31  ;;  %2942 = vmatprep.subr.bf16.mxu1 %v2119_v55  ;;  %v2156_v31 = vld [vmem:[#allocation3 + $0x560] sm:$0xff]  ;;  %v2161_v55 = vld [vmem:[#allocation3 + $0x588] sm:$0xff] }
 0x2f2   :  { %2417 = vmatprep.mubr.bf16.mxu0 %v8864_v39  ;;  %2869 = vmatprep.mubr.bf16.mxu1 %v8864_v39  ;;  %v2126_v39 = vld [vmem:[#allocation3 + $0x470] sm:$0xff] }
 0x2f4   :  { %2491 = vmatpush1.bf16.msra.mxu0 %v2116_v36  ;;  %2943 = vmatpush1.bf16.msra.mxu1 %v2118_v38  ;;  %v2163_v36 = vld [vmem:[#allocation3 + $0x598] sm:$0xff]  ;;  %v2160_v38 = vld [vmem:[#allocation3 + $0x580] sm:$0xff] }
 0x2f5   :  { %2492 = vmatprep.subr.bf16.mxu0 %v2121_v18  ;;  %2944 = vmatprep.subr.bf16.mxu1 %v2123_v3  ;;  %v2162_v18 = vld [vmem:[#allocation3 + $0x590] sm:$0xff]  ;;  %v2165_v3 = vld [vmem:[#allocation3 + $0x5a8] sm:$0xff] }
 0x2f7   :  { %2418 = vmatmul.mubr.bf16.gmra.mrb[100].mxu0 %v8861_v42  ;;  %2870 = vmatmul.mubr.bf16.gmra.mrb[36].mxu1 %v8861_v42  ;;  %v2135_v42 = vld [vmem:[#allocation3 + $0x4b8] sm:$0xff] }
 0x2f8   :  { %2493 = vmatpush1.bf16.msra.mxu0 %v2120_v11  ;;  %2945 = vmatpush1.bf16.msra.mxu1 %v2122_v59  ;;  %v2164_v11 = vld [vmem:[#allocation3 + $0x5a0] sm:$0xff]  ;;  %v2169_v59 = vld [vmem:[#allocation3 + $0x5c8] sm:$0xff] }
 0x2f9   :  { %2494 = vmatprep.subr.bf16.mxu0 %v2125_v9  ;;  %2946 = vmatprep.subr.bf16.mxu1 %v2127_v44  ;;  %v2171_v9 = vld [vmem:[#allocation3 + $0x5d8] sm:$0xff]  ;;  %v2168_v44 = vld [vmem:[#allocation3 + $0x5c0] sm:$0xff] }
 0x2fa   :  { %2427 = vmatprep.mubr.bf16.mxu0 %v8878_v29  ;;  %2879 = vmatprep.mubr.bf16.mxu1 %v8878_v29  ;;  %v2134_v29 = vld [vmem:[#allocation3 + $0x4b0] sm:$0xff] }
 0x2fc   :  { %2495 = vmatpush1.bf16.msra.mxu0 %v2124_v45  ;;  %2947 = vmatpush1.bf16.msra.mxu1 %v2126_v39  ;;  %v2170_v45 = vld [vmem:[#allocation3 + $0x5d0] sm:$0xff]  ;;  %v2173_v39 = vld [vmem:[#allocation3 + $0x5e8] sm:$0xff] }
 0x2fd   :  { %2496 = vmatprep.subr.bf16.mxu0 %v2129_v16  ;;  %2948 = vmatprep.subr.bf16.mxu1 %v2131_v14  ;;  %v2172_v16 = vld [vmem:[#allocation3 + $0x5e0] sm:$0xff]  ;;  %v2177_v14 = vld [vmem:[#allocation3 + $0x608] sm:$0xff] }
 0x2ff   :  { %2428 = vmatmul.mubr.bf16.gmra.mrb[104].mxu0 %v8876_v41  ;;  %2880 = vmatmul.mubr.bf16.gmra.mrb[40].mxu1 %v8876_v41  ;;  %v2143_v41 = vld [vmem:[#allocation3 + $0x4f8] sm:$0xff] }
 0x300   :  { %2497 = vmatpush1.bf16.msra.mxu0 %v2128_v30  ;;  %2949 = vmatpush1.bf16.msra.mxu1 %v2130_v63  ;;  %v2179_v30 = vld [vmem:[#allocation3 + $0x618] sm:$0xff]  ;;  %v2176_v63 = vld [vmem:[#allocation3 + $0x600] sm:$0xff] }
 0x301   :  { %2498 = vmatprep.subr.bf16.mxu0 %v2133_v40  ;;  %2950 = vmatprep.subr.bf16.mxu1 %v2135_v42  ;;  %v2178_v40 = vld [vmem:[#allocation3 + $0x610] sm:$0xff]  ;;  %v2181_v42 = vld [vmem:[#allocation3 + $0x628] sm:$0xff] }
 0x302   :  { %2437 = vmatprep.mubr.bf16.mxu0 %v8886_v62  ;;  %2889 = vmatprep.mubr.bf16.mxu1 %v8886_v62  ;;  %v2142_v62 = vld [vmem:[#allocation3 + $0x4f0] sm:$0xff] }
 0x304   :  { %2499 = vmatpush1.bf16.msra.mxu0 %v2132_v12  ;;  %2951 = vmatpush1.bf16.msra.mxu1 %v2134_v29  ;;  %v2180_v12 = vld [vmem:[#allocation3 + $0x620] sm:$0xff]  ;;  %v2185_v29 = vld [vmem:[#allocation3 + $0x648] sm:$0xff] }
 0x305   :  { %2500 = vmatprep.subr.bf16.mxu0 %v2137_v7  ;;  %2952 = vmatprep.subr.bf16.mxu1 %v2139_v13  ;;  %v2187_v7 = vld [vmem:[#allocation3 + $0x658] sm:$0xff]  ;;  %v2184_v13 = vld [vmem:[#allocation3 + $0x640] sm:$0xff] }
 0x307   :  { %2438 = vmatmul.mubr.bf16.gmra.mrb[108].mxu0 %v8884_v34  ;;  %2890 = vmatmul.mubr.bf16.gmra.mrb[44].mxu1 %v8884_v34  ;;  %v2151_v34 = vld [vmem:[#allocation3 + $0x538] sm:$0xff] }
 0x308   :  { %2501 = vmatpush1.bf16.msra.mxu0 %v2136_v53  ;;  %2953 = vmatpush1.bf16.msra.mxu1 %v2138_v51  ;;  %v2186_v53 = vld [vmem:[#allocation3 + $0x650] sm:$0xff]  ;;  %v2189_v51 = vld [vmem:[#allocation3 + $0x668] sm:$0xff] }
 0x309   :  { %2502 = vmatprep.subr.bf16.mxu0 %v2141_v32  ;;  %2954 = vmatprep.subr.bf16.mxu1 %v2143_v41  ;;  %v2188_v32 = vld [vmem:[#allocation3 + $0x660] sm:$0xff]  ;;  %v2193_v41 = vld [vmem:[#allocation3 + $0x688] sm:$0xff] }
 0x30a   :  { %2447 = vmatprep.mubr.bf16.mxu0 %v8894_v46  ;;  %2899 = vmatprep.mubr.bf16.mxu1 %v8894_v46  ;;  %v2150_v46 = vld [vmem:[#allocation3 + $0x530] sm:$0xff] }
 0x30c   :  { %2503 = vmatpush1.bf16.msra.mxu0 %v2140_v24  ;;  %2955 = vmatpush1.bf16.msra.mxu1 %v2142_v62  ;;  %v2195_v24 = vld [vmem:[#allocation3 + $0x698] sm:$0xff]  ;;  %v2192_v62 = vld [vmem:[#allocation3 + $0x680] sm:$0xff] }
 0x30d   :  { %2504 = vmatprep.subr.bf16.mxu0 %v2145_v5  ;;  %2956 = vmatprep.subr.bf16.mxu1 %v2147_v27  ;;  %v2194_v5 = vld [vmem:[#allocation3 + $0x690] sm:$0xff]  ;;  %v2197_v27 = vld [vmem:[#allocation3 + $0x6a8] sm:$0xff] }
 0x30f   :  { %2448 = vmatmul.mubr.bf16.gmra.mrb[112].mxu0 %v8892_v47  ;;  %2900 = vmatmul.mubr.bf16.gmra.mrb[48].mxu1 %v8892_v47  ;;  %v2159_v47 = vld [vmem:[#allocation3 + $0x578] sm:$0xff] }
 0x310   :  { %2505 = vmatpush1.bf16.msra.mxu0 %v2144_v2  ;;  %2957 = vmatpush1.bf16.msra.mxu1 %v2146_v57  ;;  %v2196_v2 = vld [vmem:[#allocation3 + $0x6a0] sm:$0xff]  ;;  %v2201_v57 = vld [vmem:[#allocation3 + $0x6c8] sm:$0xff] }
 0x311   :  { %2506 = vmatprep.subr.bf16.mxu0 %v2149_v49  ;;  %2958 = vmatprep.subr.bf16.mxu1 %v2151_v34  ;;  %v2203_v49 = vld [vmem:[#allocation3 + $0x6d8] sm:$0xff]  ;;  %v2200_v34 = vld [vmem:[#allocation3 + $0x6c0] sm:$0xff] }
 0x312   :  { %2457 = vmatprep.mubr.bf16.mxu0 %v8902_v54  ;;  %2909 = vmatprep.mubr.bf16.mxu1 %v8902_v54  ;;  %v2158_v54 = vld [vmem:[#allocation3 + $0x570] sm:$0xff] }
 0x314   :  { %2507 = vmatpush1.bf16.msra.mxu0 %v2148_v35  ;;  %2959 = vmatpush1.bf16.msra.mxu1 %v2150_v46  ;;  %v2202_v35 = vld [vmem:[#allocation3 + $0x6d0] sm:$0xff]  ;;  %v2205_v46 = vld [vmem:[#allocation3 + $0x6e8] sm:$0xff] }
 0x315   :  { %2508 = vmatprep.subr.bf16.mxu0 %v2153_v60  ;;  %2960 = vmatprep.subr.bf16.mxu1 %v2155_v4  ;;  %v2204_v60 = vld [vmem:[#allocation3 + $0x6e0] sm:$0xff]  ;;  %v2209_v4 = vld [vmem:[#allocation3 + $0x708] sm:$0xff] }
 0x317   :  { %2458 = vmatmul.mubr.bf16.gmra.mrb[116].mxu0 %v8900_v1  ;;  %2910 = vmatmul.mubr.bf16.gmra.mrb[52].mxu1 %v8900_v1  ;;  %v2167_v1 = vld [vmem:[#allocation3 + $0x5b8] sm:$0xff] }
 0x318   :  { %2509 = vmatpush1.bf16.msra.mxu0 %v2152_v21  ;;  %2961 = vmatpush1.bf16.msra.mxu1 %v2154_v52  ;;  %v2211_v21 = vld [vmem:[#allocation3 + $0x718] sm:$0xff]  ;;  %v2208_v52 = vld [vmem:[#allocation3 + $0x700] sm:$0xff] }
 0x319   :  { %2510 = vmatprep.subr.bf16.mxu0 %v2157_v10  ;;  %2962 = vmatprep.subr.bf16.mxu1 %v2159_v47  ;;  %v2210_v10 = vld [vmem:[#allocation3 + $0x710] sm:$0xff]  ;;  %v2213_v47 = vld [vmem:[#allocation3 + $0x728] sm:$0xff] }
 0x31a   :  { %2467 = vmatprep.mubr.bf16.mxu0 %v8910_v61  ;;  %2919 = vmatprep.mubr.bf16.mxu1 %v8910_v61  ;;  %v2166_v61 = vld [vmem:[#allocation3 + $0x5b0] sm:$0xff] }
 0x31c   :  { %2511 = vmatpush1.bf16.msra.mxu0 %v2156_v31  ;;  %2963 = vmatpush1.bf16.msra.mxu1 %v2158_v54  ;;  %v2212_v31 = vld [vmem:[#allocation3 + $0x720] sm:$0xff]  ;;  %v2217_v54 = vld [vmem:[#allocation3 + $0x748] sm:$0xff] }
 0x31d   :  { %2512 = vmatprep.subr.bf16.mxu0 %v2161_v55  ;;  %2964 = vmatprep.subr.bf16.mxu1 %v2163_v36  ;;  %v2219_v55 = vld [vmem:[#allocation3 + $0x758] sm:$0xff]  ;;  %v2216_v36 = vld [vmem:[#allocation3 + $0x740] sm:$0xff] }
 0x31f   :  { %2468 = vmatmul.mubr.bf16.gmra.mrb[120].mxu0 %v8908_v37  ;;  %2920 = vmatmul.mubr.bf16.gmra.mrb[56].mxu1 %v8908_v37  ;;  %v2175_v37 = vld [vmem:[#allocation3 + $0x5f8] sm:$0xff] }
 0x320   :  { %2513 = vmatpush1.bf16.msra.mxu0 %v2160_v38  ;;  %2965 = vmatpush1.bf16.msra.mxu1 %v2162_v18  ;;  %v2218_v38 = vld [vmem:[#allocation3 + $0x750] sm:$0xff]  ;;  %v2221_v18 = vld [vmem:[#allocation3 + $0x768] sm:$0xff] }
 0x321   :  { %2514 = vmatprep.subr.bf16.mxu0 %v2165_v3  ;;  %2966 = vmatprep.subr.bf16.mxu1 %v2167_v1  ;;  %v2220_v3 = vld [vmem:[#allocation3 + $0x760] sm:$0xff]  ;;  %v2225_v1 = vld [vmem:[#allocation3 + $0x788] sm:$0xff] }
 0x322   :  { %2477 = vmatprep.mubr.bf16.mxu0 %v8930_v17  ;;  %2929 = vmatprep.mubr.bf16.mxu1 %v8930_v17  ;;  %v2174_v17 = vld [vmem:[#allocation3 + $0x5f0] sm:$0xff] }
 0x324   :  { %2515 = vmatpush1.bf16.msra.mxu0 %v2164_v11  ;;  %2967 = vmatpush1.bf16.msra.mxu1 %v2166_v61  ;;  %v2227_v11 = vld [vmem:[#allocation3 + $0x798] sm:$0xff]  ;;  %v2224_v61 = vld [vmem:[#allocation3 + $0x780] sm:$0xff] }
 0x325   :  { %2516 = vmatprep.subr.bf16.mxu0 %v2169_v59  ;;  %2968 = vmatprep.subr.bf16.mxu1 %v2171_v9  ;;  %v2226_v59 = vld [vmem:[#allocation3 + $0x790] sm:$0xff]  ;;  %v2229_v9 = vld [vmem:[#allocation3 + $0x7a8] sm:$0xff] }
 0x327   :  { %2478 = vmatmul.mubr.bf16.gmra.mrb[124].mxu0 %v8928_v6  ;;  %2930 = vmatmul.mubr.bf16.gmra.mrb[60].mxu1 %v8928_v6  ;;  %v2183_v6 = vld [vmem:[#allocation3 + $0x638] sm:$0xff] }
 0x328   :  { %2517 = vmatpush1.bf16.msra.mxu0 %v2168_v44  ;;  %2969 = vmatpush1.bf16.msra.mxu1 %v2170_v45  ;;  %v2228_v44 = vld [vmem:[#allocation3 + $0x7a0] sm:$0xff]  ;;  %v2233_v45 = vld [vmem:[#allocation3 + $0x7c8] sm:$0xff] }
 0x329   :  { %2518 = vmatprep.subr.bf16.mxu0 %v2173_v39  ;;  %2970 = vmatprep.subr.bf16.mxu1 %v2175_v37  ;;  %v2235_v39 = vld [vmem:[#allocation3 + $0x7d8] sm:$0xff]  ;;  %v2232_v37 = vld [vmem:[#allocation3 + $0x7c0] sm:$0xff] }
 0x32a   :  { %2520 = vmatprep.mubr.bf16.mxu0 %v8938_v58  ;;  %2972 = vmatprep.mubr.bf16.mxu1 %v8938_v58  ;;  %v2182_v58 = vld [vmem:[#allocation3 + $0x630] sm:$0xff] }
 0x32c   :  { %2519 = vmatpush1.bf16.msra.mxu0 %v2172_v16  ;;  %2971 = vmatpush1.bf16.msra.mxu1 %v2174_v17  ;;  %v2234_v16 = vld [vmem:[#allocation3 + $0x7d0] sm:$0xff]  ;;  %v2237_v17 = vld [vmem:[#allocation3 + $0x7e8] sm:$0xff] }
 0x32d   :  { %2601 = vmatprep.subr.bf16.mxu0 %v2177_v14  ;;  %3053 = vmatprep.subr.bf16.mxu1 %v2179_v30  ;;  %v2236_v14 = vld [vmem:[#allocation3 + $0x7e0] sm:$0xff]  ;;  %v10412_v30 = vld [vmem:[#allocation67_spill] sm:$0xff] }
 0x32f   :  { %2521 = vmatmul.mubr.bf16.vlgmr.msra.gmra.mrb[96].mxu0 %v8936_v50  ;;  %2973 = vmatmul.mubr.bf16.vlgmr.msra.gmra.mrb[32].mxu1 %v8936_v50  ;;  %v2191_v50 = vld [vmem:[#allocation3 + $0x678] sm:$0xff] }
 0x330   :  { %2602 = vmatpush1.bf16.msra.mxu0 %v2176_v63  ;;  %3054 = vmatpush1.bf16.msra.mxu1 %v2178_v40  ;;  %v10413_v63 = vld [vmem:[#allocation66_spill] sm:$0xff]  ;;  %v10414_v40 = vld [vmem:[#allocation69_spill] sm:$0xff] }
 0x331   :  { %2603 = vmatprep.subr.bf16.mxu0 %v2181_v42  ;;  %3055 = vmatprep.subr.bf16.mxu1 %v2183_v6  ;;  %v10416_v42 = vld [vmem:[#allocation71_spill] sm:$0xff]  ;;  %v10417_v6 = vld [vmem:[#allocation70_spill] sm:$0xff] }
 0x332   :  { %2530 = vmatprep.mubr.bf16.mxu0 %v8946_v33  ;;  %2982 = vmatprep.mubr.bf16.mxu1 %v8946_v33  ;;  %v2190_v33 = vld [vmem:[#allocation3 + $0x670] sm:$0xff] }
 0x334   :  { %2604 = vmatpush1.bf16.msra.mxu0 %v2180_v12  ;;  %3056 = vmatpush1.bf16.msra.mxu1 %v2182_v58  ;;  %v10418_v12 = vld [vmem:[#allocation73_spill] sm:$0xff]  ;;  %v10419_v58 = vld [vmem:[#allocation72_spill] sm:$0xff] }
 0x335   :  { %2605 = vmatprep.subr.bf16.mxu0 %v2185_v29  ;;  %3057 = vmatprep.subr.bf16.mxu1 %v2187_v7  ;;  %v10420_v29 = vld [vmem:[#allocation77_spill] sm:$0xff]  ;;  %v10421_v7 = vld [vmem:[#allocation76_spill] sm:$0xff] }
 0x337   :  { %2531 = vmatmul.mubr.bf16.gmra.mrb[100].mxu0 %v8944_v26  ;;  %2983 = vmatmul.mubr.bf16.gmra.mrb[36].mxu1 %v8944_v26  ;;  %v2199_v26 = vld [vmem:[#allocation3 + $0x6b8] sm:$0xff] }
 0x338   :  { %2606 = vmatpush1.bf16.msra.mxu0 %v2184_v13  ;;  %3058 = vmatpush1.bf16.msra.mxu1 %v2186_v53  ;;  %v10422_v13 = vld [vmem:[#allocation79_spill] sm:$0xff]  ;;  %v10423_v53 = vld [vmem:[#allocation78_spill] sm:$0xff] }
 0x339   :  { %2607 = vmatprep.subr.bf16.mxu0 %v2189_v51  ;;  %3059 = vmatprep.subr.bf16.mxu1 %v2191_v50  ;;  %v10424_v51 = vld [vmem:[#allocation81_spill] sm:$0xff]  ;;  %v10425_v50 = vld [vmem:[#allocation80_spill] sm:$0xff] }
 0x33a   :  { %2540 = vmatprep.mubr.bf16.mxu0 %v8954_v23  ;;  %2992 = vmatprep.mubr.bf16.mxu1 %v8954_v23  ;;  %v2198_v23 = vld [vmem:[#allocation3 + $0x6b0] sm:$0xff] }
 0x33c   :  { %2608 = vmatpush1.bf16.msra.mxu0 %v2188_v32  ;;  %3060 = vmatpush1.bf16.msra.mxu1 %v2190_v33  ;;  %v10426_v32 = vld [vmem:[#allocation83_spill] sm:$0xff]  ;;  %v10427_v33 = vld [vmem:[#allocation82_spill] sm:$0xff] }
 0x33d   :  { %2609 = vmatprep.subr.bf16.mxu0 %v2193_v41  ;;  %3061 = vmatprep.subr.bf16.mxu1 %v2195_v24  ;;  %v2240_v41 = vld [vmem:[%s10428_s18] sm:$0xf]  ;;  %v10429_v24 = vld [vmem:[#allocation64_spill] sm:$0xff] }
 0x33f   :  { %2541 = vmatmul.mubr.bf16.gmra.mrb[104].mxu0 %v8952_v0  ;;  %2993 = vmatmul.mubr.bf16.gmra.mrb[40].mxu1 %v8952_v0  ;;  %v2207_v0 = vld [vmem:[#allocation3 + $0x6f8] sm:$0xff] }
 0x340   :  { %2610 = vmatpush1.bf16.msra.mxu0 %v2192_v62  ;;  %3062 = vmatpush1.bf16.msra.mxu1 %v2194_v5  ;;  %v9128_v62 = vrot.slane %v2240_v41, %v10429_v24  ;;  %v10430_v5 = vld [vmem:[#allocation74_spill] sm:$0xff] }
 0x341   :  { %2611 = vmatprep.subr.bf16.mxu0 %v2197_v27  ;;  %3063 = vmatprep.subr.bf16.mxu1 %v2199_v26  ;;  %v9131_v27 = vrot.slane %v2240_v41, %v10430_v5  ;;  %v10431_v26 = vld [vmem:[#allocation65_spill] sm:$0xff] }
 0x342   :  { %2550 = vmatprep.mubr.bf16.mxu0 %v8962_v28  ;;  %3002 = vmatprep.mubr.bf16.mxu1 %v8962_v28  ;;  %v2206_v28 = vld [vmem:[#allocation3 + $0x6f0] sm:$0xff] }
 0x344   :  { %2612 = vmatpush1.bf16.msra.mxu0 %v2196_v2  ;;  %3064 = vmatpush1.bf16.msra.mxu1 %v2198_v23  ;;  %v9134_v2 = vrot.slane %v2240_v41, %v10431_v26  ;;  %v10432_v23 = vld [vmem:[#allocation75_spill] sm:$0xff] }
 0x345   :  { %2613 = vmatprep.subr.bf16.mxu0 %v2201_v57  ;;  %3065 = vmatprep.subr.bf16.mxu1 %v2203_v49  ;;  %v9137_v57 = vrot.slane %v2240_v41, %v10432_v23 }
 0x347   :  { %2551 = vmatmul.mubr.bf16.gmra.mrb[108].mxu0 %v8960_v25  ;;  %3003 = vmatmul.mubr.bf16.gmra.mrb[44].mxu1 %v8960_v25  ;;  %v2215_v25 = vld [vmem:[#allocation3 + $0x738] sm:$0xff] }
 0x348   :  { %2614 = vmatpush1.bf16.msra.mxu0 %v2200_v34  ;;  %3066 = vmatpush1.bf16.msra.mxu1 %v2202_v35 }
 0x349   :  { %2615 = vmatprep.subr.bf16.mxu0 %v2205_v46  ;;  %3067 = vmatprep.subr.bf16.mxu1 %v2207_v0 }
 0x34a   :  { %2560 = vmatprep.mubr.bf16.mxu0 %v8970_v15  ;;  %3012 = vmatprep.mubr.bf16.mxu1 %v8970_v15  ;;  %v2214_v15 = vld [vmem:[#allocation3 + $0x730] sm:$0xff] }
 0x34c   :  { %2616 = vmatpush1.bf16.msra.mxu0 %v2204_v60  ;;  %3068 = vmatpush1.bf16.msra.mxu1 %v2206_v28 }
 0x34d   :  { %2617 = vmatprep.subr.bf16.mxu0 %v2209_v4  ;;  %3069 = vmatprep.subr.bf16.mxu1 %v2211_v21 }
 0x34f   :  { %2561 = vmatmul.mubr.bf16.gmra.mrb[112].mxu0 %v8968_v56  ;;  %3013 = vmatmul.mubr.bf16.gmra.mrb[48].mxu1 %v8968_v56  ;;  %v2223_v56 = vld [vmem:[#allocation3 + $0x778] sm:$0xff] }
 0x350   :  { %2618 = vmatpush1.bf16.msra.mxu0 %v2208_v52  ;;  %3070 = vmatpush1.bf16.msra.mxu1 %v2210_v10 }
 0x351   :  { %2619 = vmatprep.subr.bf16.mxu0 %v2213_v47  ;;  %3071 = vmatprep.subr.bf16.mxu1 %v2215_v25 }
 0x352   :  { %2570 = vmatprep.mubr.bf16.mxu0 %v8978_v19  ;;  %3022 = vmatprep.mubr.bf16.mxu1 %v8978_v19  ;;  %v2222_v19 = vld [vmem:[#allocation3 + $0x770] sm:$0xff] }
 0x354   :  { %2620 = vmatpush1.bf16.msra.mxu0 %v2212_v31  ;;  %3072 = vmatpush1.bf16.msra.mxu1 %v2214_v15 }
 0x355   :  { %2621 = vmatprep.subr.bf16.mxu0 %v2217_v54  ;;  %3073 = vmatprep.subr.bf16.mxu1 %v2219_v55 }
 0x357   :  { %2571 = vmatmul.mubr.bf16.gmra.mrb[116].mxu0 %v8976_v20  ;;  %3023 = vmatmul.mubr.bf16.gmra.mrb[52].mxu1 %v8976_v20  ;;  %v2231_v20 = vld [vmem:[#allocation3 + $0x7b8] sm:$0xff] }
 0x358   :  { %2622 = vmatpush1.bf16.msra.mxu0 %v2216_v36  ;;  %3074 = vmatpush1.bf16.msra.mxu1 %v2218_v38 }
 0x359   :  { %2623 = vmatprep.subr.bf16.mxu0 %v2221_v18  ;;  %3075 = vmatprep.subr.bf16.mxu1 %v2223_v56 }
 0x35a   :  { %2580 = vmatprep.mubr.bf16.mxu0 %v8986_v8  ;;  %3032 = vmatprep.mubr.bf16.mxu1 %v8986_v8  ;;  %v2230_v8 = vld [vmem:[#allocation3 + $0x7b0] sm:$0xff] }
 0x35c   :  { %2624 = vmatpush1.bf16.msra.mxu0 %v2220_v3  ;;  %3076 = vmatpush1.bf16.msra.mxu1 %v2222_v19 }
 0x35d   :  { %2625 = vmatprep.subr.bf16.mxu0 %v2225_v1  ;;  %3077 = vmatprep.subr.bf16.mxu1 %v2227_v11 }
 0x35f   :  { %2581 = vmatmul.mubr.bf16.gmra.mrb[120].mxu0 %v8984_v48  ;;  %3033 = vmatmul.mubr.bf16.gmra.mrb[56].mxu1 %v8984_v48  ;;  %v2239_v48 = vld [vmem:[#allocation3 + $0x7f8] sm:$0xff] }
 0x360   :  { %2626 = vmatpush1.bf16.msra.mxu0 %v2224_v61  ;;  %3078 = vmatpush1.bf16.msra.mxu1 %v2226_v59 }
 0x361   :  { %2627 = vmatprep.subr.bf16.mxu0 %v2229_v9  ;;  %3079 = vmatprep.subr.bf16.mxu1 %v2231_v20 }
 0x362   :  { %2590 = vmatprep.mubr.bf16.mxu0 %v8994_v22  ;;  %3042 = vmatprep.mubr.bf16.mxu1 %v8994_v22  ;;  %v2238_v22 = vld [vmem:[#allocation3 + $0x7f0] sm:$0xff] }
 0x364   :  { %2628 = vmatpush1.bf16.msra.mxu0 %v2228_v44  ;;  %3080 = vmatpush1.bf16.msra.mxu1 %v2230_v8 }
 0x365   :  { %2629 = vmatprep.subr.bf16.mxu0 %v2233_v45  ;;  %3081 = vmatprep.subr.bf16.mxu1 %v2235_v39 }
 0x367   :  { %2591 = vmatmul.mubr.bf16.gmra.mrb[124].mxu0 %v8992_v43  ;;  %3043 = vmatmul.mubr.bf16.gmra.mrb[60].mxu1 %v8992_v43  ;;  %v10415_v43 = vld [vmem:[#allocation68_spill] sm:$0xff] }
 0x368   :  { %2630 = vmatpush1.bf16.msra.mxu0 %v2232_v37  ;;  %3082 = vmatpush1.bf16.msra.mxu1 %v2234_v16 }
 0x369   :  { %2631 = vmatprep.subr.bf16.mxu0 %v2237_v17  ;;  %3083 = vmatprep.subr.bf16.mxu1 %v2239_v48 }
 0x36a   :  { %2633 = vmatprep.mubr.bf16.mxu0 %v10412_v30  ;;  %3085 = vmatprep.mubr.bf16.mxu1 %v10412_v30 }
 0x36c   :  { %2632 = vmatpush1.bf16.msra.mxu0 %v2236_v14  ;;  %3084 = vmatpush1.bf16.msra.mxu1 %v2238_v22 }
 0x36f   :  { %2634 = vmatmul.mubr.bf16.vlgmr.msra.gmra.mrb[96].mxu0 %v10413_v63  ;;  %3086 = vmatmul.mubr.bf16.vlgmr.msra.gmra.mrb[32].mxu1 %v10413_v63 }
 0x370   :  { %2643 = vmatprep.mubr.bf16.mxu0 %v10414_v40  ;;  %3095 = vmatprep.mubr.bf16.mxu1 %v10414_v40 }
 0x377   :  { %2644 = vmatmul.mubr.bf16.gmra.mrb[100].mxu0 %v10415_v43  ;;  %3096 = vmatmul.mubr.bf16.gmra.mrb[36].mxu1 %v10415_v43 }
 0x378   :  { %2653 = vmatprep.mubr.bf16.mxu0 %v10416_v42  ;;  %3105 = vmatprep.mubr.bf16.mxu1 %v10416_v42 }
 0x37f   :  { %2654 = vmatmul.mubr.bf16.gmra.mrb[104].mxu0 %v10417_v6  ;;  %3106 = vmatmul.mubr.bf16.gmra.mrb[40].mxu1 %v10417_v6 }
 0x380   :  { %2663 = vmatprep.mubr.bf16.mxu0 %v10418_v12  ;;  %3115 = vmatprep.mubr.bf16.mxu1 %v10418_v12 }
 0x387   :  { %2664 = vmatmul.mubr.bf16.gmra.mrb[108].mxu0 %v10419_v58  ;;  %3116 = vmatmul.mubr.bf16.gmra.mrb[44].mxu1 %v10419_v58 }
 0x388   :  { %2673 = vmatprep.mubr.bf16.mxu0 %v10420_v29  ;;  %3125 = vmatprep.mubr.bf16.mxu1 %v10420_v29 }
 0x38f   :  { %2674 = vmatmul.mubr.bf16.gmra.mrb[112].mxu0 %v10421_v7  ;;  %3126 = vmatmul.mubr.bf16.gmra.mrb[48].mxu1 %v10421_v7 }
 0x390   :  { %2683 = vmatprep.mubr.bf16.mxu0 %v10422_v13  ;;  %3135 = vmatprep.mubr.bf16.mxu1 %v10422_v13 }
 0x397   :  { %2684 = vmatmul.mubr.bf16.gmra.mrb[116].mxu0 %v10423_v53  ;;  %3136 = vmatmul.mubr.bf16.gmra.mrb[52].mxu1 %v10423_v53 }
 0x398   :  { %2693 = vmatprep.mubr.bf16.mxu0 %v10424_v51  ;;  %3145 = vmatprep.mubr.bf16.mxu1 %v10424_v51 }
 0x39f   :  { %2694 = vmatmul.mubr.bf16.gmra.mrb[120].mxu0 %v10425_v50  ;;  %3146 = vmatmul.mubr.bf16.gmra.mrb[56].mxu1 %v10425_v50 }
 0x3a0   :  { %2703 = vmatprep.mubr.bf16.mxu0 %v10426_v32  ;;  %3155 = vmatprep.mubr.bf16.mxu1 %v10426_v32 }
 0x3a7   :  { %2704 = vmatmul.mubr.bf16.gmra.mrb[124].mxu0 %v10427_v33  ;;  %3156 = vmatmul.mubr.bf16.gmra.mrb[60].mxu1 %v10427_v33 }
 0x442   :  { %v2635_v49 = vpop.f32.mrb[96].mxu0  ;;  %v3087_v34 = vpop.f32.mrb[32].mxu1 }
 0x443   :  { %v7056_v35 = vadd.f32 %v2635_v49, %v9128_v62  ;;  %v7088_v46 = vadd.f32 %v3087_v34, %v9131_v27  ;;  %v2637_v0 = vpop.f32.mrb[97].mxu0  ;;  %v3089_v60 = vpop.f32.mrb[33].mxu1 }
 0x444   :  { %v7057_v28 = vadd.f32 %v2637_v0, %v9134_v2  ;;  %v7089_v4 = vadd.f32 %v3089_v60, %v9137_v57  ;;  %v2639_v21 = vpop.f32.mrb[98].mxu0  ;;  %v3091_v52 = vpop.f32.mrb[34].mxu1 }
 0x445   :  { %v7058_v10 = vadd.f32 %v2639_v21, %v9128_v62  ;;  %v7090_v47 = vadd.f32 %v3091_v52, %v9131_v27  ;;  %v2641_v25 = vpop.f32.mrb[99].mxu0  ;;  %v3093_v31 = vpop.f32.mrb[35].mxu1  ;;  %v3166_v55 = vmax.f32 %v7056_v35, 0.0  ;;  %v3168_v36 = vmax.f32 %v7088_v46, 0.0 }
 0x446   :  { %v7059_v15 = vadd.f32 %v2641_v25, %v9134_v2  ;;  %v7091_v54 = vadd.f32 %v3093_v31, %v9137_v57  ;;  %v3167_v56 = vmax.f32 %v7057_v28, 0.0  ;;  %v3169_v3 = vmax.f32 %v7089_v4, 0.0 }
 0x447   :  { %v3170_v38 = vmax.f32 %v7058_v10, 0.0  ;;  %v3172_v18 = vmax.f32 %v7090_v47, 0.0 }
 0x448   :  { %v3171_v19 = vmax.f32 %v7059_v15, 0.0  ;;  %v3173_v1 = vmax.f32 %v7091_v54, 0.0 }
 0x449   :  { %v9147_v11 = vpack.c.bf16 %v3170_v38, %v3166_v55  ;;  %v9149_v61 = vpack.c.bf16 %v3172_v18, %v3168_v36 }
 0x44a   :  { %v9151_v59 = vpack.c.bf16 %v3171_v19, %v3167_v56  ;;  %v9153_v9 = vpack.c.bf16 %v3173_v1, %v3169_v3  ;;  %v2645_v20 = vpop.f32.mrb[100].mxu0  ;;  %v3097_v44 = vpop.f32.mrb[36].mxu1 }
 0x44b   :  { %v7060_v8 = vadd.f32 %v2645_v20, %v9128_v62  ;;  %v7092_v45 = vadd.f32 %v3097_v44, %v9131_v27  ;;  %v2647_v39 = vpop.f32.mrb[101].mxu0  ;;  %v3099_v37 = vpop.f32.mrb[37].mxu1 }
 0x44c   :  { %v7061_v16 = vadd.f32 %v2647_v39, %v9134_v2  ;;  %v7093_v17 = vadd.f32 %v3099_v37, %v9137_v57  ;;  %v2649_v48 = vpop.f32.mrb[102].mxu0  ;;  %v3101_v14 = vpop.f32.mrb[38].mxu1 }
 0x44d   :  { %v7062_v22 = vadd.f32 %v2649_v48, %v9128_v62  ;;  %v7094_v30 = vadd.f32 %v3101_v14, %v9131_v27  ;;  %v2651_v63 = vpop.f32.mrb[103].mxu0  ;;  %v3103_v40 = vpop.f32.mrb[39].mxu1  ;;  %v3174_v6 = vmax.f32 %v7060_v8, 0.0  ;;  %v3176_v12 = vmax.f32 %v7092_v45, 0.0 }
 0x44e   :  { %v7063_v43 = vadd.f32 %v2651_v63, %v9134_v2  ;;  %v7095_v42 = vadd.f32 %v3103_v40, %v9137_v57  ;;  %v3175_v7 = vmax.f32 %v7061_v16, 0.0  ;;  %v3177_v13 = vmax.f32 %v7093_v17, 0.0 }
 0x44f   :  { %v3178_v58 = vmax.f32 %v7062_v22, 0.0  ;;  %v3180_v29 = vmax.f32 %v7094_v30, 0.0 }
 0x450   :  { %v3179_v53 = vmax.f32 %v7063_v43, 0.0  ;;  %v3181_v51 = vmax.f32 %v7095_v42, 0.0 }
 0x451   :  { %v9163_v50 = vpack.c.bf16 %v3178_v58, %v3174_v6  ;;  %v9165_v32 = vpack.c.bf16 %v3180_v29, %v3176_v12 }
 0x452   :  { %v9167_v33 = vpack.c.bf16 %v3179_v53, %v3175_v7  ;;  %v9169_v41 = vpack.c.bf16 %v3181_v51, %v3177_v13  ;;  %v2655_v49 = vpop.f32.mrb[104].mxu0  ;;  %v3107_v34 = vpop.f32.mrb[40].mxu1 }
 0x453   :  { %v7064_v35 = vadd.f32 %v2655_v49, %v9128_v62  ;;  %v7096_v46 = vadd.f32 %v3107_v34, %v9131_v27  ;;  %v2657_v0 = vpop.f32.mrb[105].mxu0  ;;  %v3109_v60 = vpop.f32.mrb[41].mxu1 }
 0x454   :  { %v7065_v28 = vadd.f32 %v2657_v0, %v9134_v2  ;;  %v7097_v4 = vadd.f32 %v3109_v60, %v9137_v57  ;;  %v2659_v21 = vpop.f32.mrb[106].mxu0  ;;  %v3111_v52 = vpop.f32.mrb[42].mxu1 }
 0x455   :  { %v7066_v10 = vadd.f32 %v2659_v21, %v9128_v62  ;;  %v7098_v47 = vadd.f32 %v3111_v52, %v9131_v27  ;;  %v2661_v25 = vpop.f32.mrb[107].mxu0  ;;  %v3113_v31 = vpop.f32.mrb[43].mxu1  ;;  %v3182_v55 = vmax.f32 %v7064_v35, 0.0  ;;  %v3184_v36 = vmax.f32 %v7096_v46, 0.0 }
 0x456   :  { %v7067_v15 = vadd.f32 %v2661_v25, %v9134_v2  ;;  %v7099_v54 = vadd.f32 %v3113_v31, %v9137_v57  ;;  %v3183_v56 = vmax.f32 %v7065_v28, 0.0  ;;  %v3185_v3 = vmax.f32 %v7097_v4, 0.0 }
 0x457   :  { %v3186_v38 = vmax.f32 %v7066_v10, 0.0  ;;  %v3188_v18 = vmax.f32 %v7098_v47, 0.0 }
 0x458   :  { %v3187_v19 = vmax.f32 %v7067_v15, 0.0  ;;  %v3189_v1 = vmax.f32 %v7099_v54, 0.0 }
 0x459   :  { %v9179_v20 = vpack.c.bf16 %v3186_v38, %v3182_v55  ;;  %v9181_v44 = vpack.c.bf16 %v3188_v18, %v3184_v36 }
 0x45a   :  { %v9183_v8 = vpack.c.bf16 %v3187_v19, %v3183_v56  ;;  %v9185_v45 = vpack.c.bf16 %v3189_v1, %v3185_v3  ;;  %v2665_v39 = vpop.f32.mrb[108].mxu0  ;;  %v3117_v37 = vpop.f32.mrb[44].mxu1 }
 0x45b   :  { %v7068_v16 = vadd.f32 %v2665_v39, %v9128_v62  ;;  %v7100_v17 = vadd.f32 %v3117_v37, %v9131_v27  ;;  %v2667_v48 = vpop.f32.mrb[109].mxu0  ;;  %v3119_v14 = vpop.f32.mrb[45].mxu1 }
 0x45c   :  { %v7069_v22 = vadd.f32 %v2667_v48, %v9134_v2  ;;  %v7101_v30 = vadd.f32 %v3119_v14, %v9137_v57  ;;  %v2669_v63 = vpop.f32.mrb[110].mxu0  ;;  %v3121_v40 = vpop.f32.mrb[46].mxu1 }
 0x45d   :  { %v7070_v43 = vadd.f32 %v2669_v63, %v9128_v62  ;;  %v7102_v42 = vadd.f32 %v3121_v40, %v9131_v27  ;;  %v2671_v6 = vpop.f32.mrb[111].mxu0  ;;  %v3123_v12 = vpop.f32.mrb[47].mxu1  ;;  %v3190_v7 = vmax.f32 %v7068_v16, 0.0  ;;  %v3192_v13 = vmax.f32 %v7100_v17, 0.0 }
 0x45e   :  { %v7071_v58 = vadd.f32 %v2671_v6, %v9134_v2  ;;  %v7103_v29 = vadd.f32 %v3123_v12, %v9137_v57  ;;  %v3191_v49 = vmax.f32 %v7069_v22, 0.0  ;;  %v3193_v34 = vmax.f32 %v7101_v30, 0.0 }
 0x45f   :  { %v3194_v53 = vmax.f32 %v7070_v43, 0.0  ;;  %v3196_v51 = vmax.f32 %v7102_v42, 0.0 }
 0x460   :  { %v3195_v35 = vmax.f32 %v7071_v58, 0.0  ;;  %v3197_v46 = vmax.f32 %v7103_v29, 0.0 }
 0x461   :  { %v9195_v0 = vpack.c.bf16 %v3194_v53, %v3190_v7  ;;  %v9197_v60 = vpack.c.bf16 %v3196_v51, %v3192_v13 }
 0x462   :  { %v9199_v28 = vpack.c.bf16 %v3195_v35, %v3191_v49  ;;  %v9201_v4 = vpack.c.bf16 %v3197_v46, %v3193_v34  ;;  %v2675_v21 = vpop.f32.mrb[112].mxu0  ;;  %v3127_v52 = vpop.f32.mrb[48].mxu1 }
 0x463   :  { %v7072_v10 = vadd.f32 %v2675_v21, %v9128_v62  ;;  %v7104_v47 = vadd.f32 %v3127_v52, %v9131_v27  ;;  %v2677_v25 = vpop.f32.mrb[113].mxu0  ;;  %v3129_v31 = vpop.f32.mrb[49].mxu1 }
 0x464   :  { %v7073_v15 = vadd.f32 %v2677_v25, %v9134_v2  ;;  %v7105_v54 = vadd.f32 %v3129_v31, %v9137_v57  ;;  %v2679_v55 = vpop.f32.mrb[114].mxu0  ;;  %v3131_v36 = vpop.f32.mrb[50].mxu1 }
 0x465   :  { %v7074_v38 = vadd.f32 %v2679_v55, %v9128_v62  ;;  %v7106_v18 = vadd.f32 %v3131_v36, %v9131_v27  ;;  %v2681_v56 = vpop.f32.mrb[115].mxu0  ;;  %v3133_v3 = vpop.f32.mrb[51].mxu1  ;;  %v3198_v39 = vmax.f32 %v7072_v10, 0.0  ;;  %v3200_v37 = vmax.f32 %v7104_v47, 0.0 }
 0x466   :  { %v7075_v19 = vadd.f32 %v2681_v56, %v9134_v2  ;;  %v7107_v1 = vadd.f32 %v3133_v3, %v9137_v57  ;;  %v3199_v48 = vmax.f32 %v7073_v15, 0.0  ;;  %v3201_v14 = vmax.f32 %v7105_v54, 0.0 }
 0x467   :  { %v3202_v16 = vmax.f32 %v7074_v38, 0.0  ;;  %v3204_v17 = vmax.f32 %v7106_v18, 0.0 }
 0x468   :  { %v3203_v22 = vmax.f32 %v7075_v19, 0.0  ;;  %v3205_v30 = vmax.f32 %v7107_v1, 0.0 }
 0x469   :  { %v9211_v63 = vpack.c.bf16 %v3202_v16, %v3198_v39  ;;  %v9213_v40 = vpack.c.bf16 %v3204_v17, %v3200_v37 }
 0x46a   :  { %v9215_v43 = vpack.c.bf16 %v3203_v22, %v3199_v48  ;;  %v9217_v42 = vpack.c.bf16 %v3205_v30, %v3201_v14  ;;  %v2685_v6 = vpop.f32.mrb[116].mxu0  ;;  %v3137_v12 = vpop.f32.mrb[52].mxu1 }
 0x46b   :  { %v7076_v58 = vadd.f32 %v2685_v6, %v9128_v62  ;;  %v7108_v29 = vadd.f32 %v3137_v12, %v9131_v27  ;;  %v2687_v7 = vpop.f32.mrb[117].mxu0  ;;  %v3139_v13 = vpop.f32.mrb[53].mxu1 }
 0x46c   :  { %v7077_v53 = vadd.f32 %v2687_v7, %v9134_v2  ;;  %v7109_v51 = vadd.f32 %v3139_v13, %v9137_v57  ;;  %v2689_v49 = vpop.f32.mrb[118].mxu0  ;;  %v3141_v34 = vpop.f32.mrb[54].mxu1 }
 0x46d   :  { %v7078_v35 = vadd.f32 %v2689_v49, %v9128_v62  ;;  %v7110_v46 = vadd.f32 %v3141_v34, %v9131_v27  ;;  %v2691_v21 = vpop.f32.mrb[119].mxu0  ;;  %v3143_v52 = vpop.f32.mrb[55].mxu1  ;;  %v3206_v25 = vmax.f32 %v7076_v58, 0.0  ;;  %v3208_v31 = vmax.f32 %v7108_v29, 0.0 }
 0x46e   :  { %v7079_v10 = vadd.f32 %v2691_v21, %v9134_v2  ;;  %v7111_v47 = vadd.f32 %v3143_v52, %v9137_v57  ;;  %v3207_v55 = vmax.f32 %v7077_v53, 0.0  ;;  %v3209_v36 = vmax.f32 %v7109_v51, 0.0 }
 0x46f   :  { %v3210_v15 = vmax.f32 %v7078_v35, 0.0  ;;  %v3212_v54 = vmax.f32 %v7110_v46, 0.0 }
 0x470   :  { %v3211_v38 = vmax.f32 %v7079_v10, 0.0  ;;  %v3213_v18 = vmax.f32 %v7111_v47, 0.0 }
 0x471   :  { %v9227_v56 = vpack.c.bf16 %v3210_v15, %v3206_v25  ;;  %v9229_v3 = vpack.c.bf16 %v3212_v54, %v3208_v31 }
 0x472   :  { %v9231_v19 = vpack.c.bf16 %v3211_v38, %v3207_v55  ;;  %v9233_v1 = vpack.c.bf16 %v3213_v18, %v3209_v36  ;;  %v2695_v39 = vpop.f32.mrb[120].mxu0  ;;  %v3147_v37 = vpop.f32.mrb[56].mxu1 }
 0x473   :  { %v7080_v16 = vadd.f32 %v2695_v39, %v9128_v62  ;;  %v7112_v17 = vadd.f32 %v3147_v37, %v9131_v27  ;;  %v2697_v48 = vpop.f32.mrb[121].mxu0  ;;  %v3149_v14 = vpop.f32.mrb[57].mxu1 }
 0x474   :  { %v7081_v22 = vadd.f32 %v2697_v48, %v9134_v2  ;;  %v7113_v30 = vadd.f32 %v3149_v14, %v9137_v57  ;;  %v2699_v6 = vpop.f32.mrb[122].mxu0  ;;  %v3151_v12 = vpop.f32.mrb[58].mxu1 }
 0x475   :  { %v7082_v58 = vadd.f32 %v2699_v6, %v9128_v62  ;;  %v7114_v29 = vadd.f32 %v3151_v12, %v9131_v27  ;;  %v2701_v7 = vpop.f32.mrb[123].mxu0  ;;  %v3153_v13 = vpop.f32.mrb[59].mxu1  ;;  %v3214_v49 = vmax.f32 %v7080_v16, 0.0  ;;  %v3216_v34 = vmax.f32 %v7112_v17, 0.0 }
 0x476   :  { %v7083_v53 = vadd.f32 %v2701_v7, %v9134_v2  ;;  %v7115_v51 = vadd.f32 %v3153_v13, %v9137_v57  ;;  %v3215_v21 = vmax.f32 %v7081_v22, 0.0  ;;  %v3217_v52 = vmax.f32 %v7113_v30, 0.0 }
 0x477   :  { %v3218_v35 = vmax.f32 %v7082_v58, 0.0  ;;  %v3220_v46 = vmax.f32 %v7114_v29, 0.0 }
 0x478   :  { %v3219_v10 = vmax.f32 %v7083_v53, 0.0  ;;  %v3221_v47 = vmax.f32 %v7115_v51, 0.0 }
 0x479   :  { %v9243_v25 = vpack.c.bf16 %v3218_v35, %v3214_v49  ;;  %v9245_v31 = vpack.c.bf16 %v3220_v46, %v3216_v34 }
 0x47a   :  { %v9247_v15 = vpack.c.bf16 %v3219_v10, %v3215_v21  ;;  %v9249_v54 = vpack.c.bf16 %v3221_v47, %v3217_v52  ;;  %v2705_v55 = vpop.f32.mrb[124].mxu0  ;;  %v3157_v36 = vpop.f32.mrb[60].mxu1 }
 0x47b   :  { %v7084_v38 = vadd.f32 %v2705_v55, %v9128_v62  ;;  %v7116_v18 = vadd.f32 %v3157_v36, %v9131_v27  ;;  %v2707_v39 = vpop.f32.mrb[125].mxu0  ;;  %v3159_v37 = vpop.f32.mrb[61].mxu1 }
 0x47c   :  { %v7085_v16 = vadd.f32 %v2707_v39, %v9134_v2  ;;  %v7117_v17 = vadd.f32 %v3159_v37, %v9137_v57  ;;  %v2709_v48 = vpop.f32.mrb[126].mxu0  ;;  %v3161_v14 = vpop.f32.mrb[62].mxu1 }
 0x47d   :  { %v7086_v22 = vadd.f32 %v2709_v48, %v9128_v62  ;;  %v7118_v30 = vadd.f32 %v3161_v14, %v9131_v27  ;;  %v2711_v6 = vpop.f32.mrb[127].mxu0  ;;  %v3163_v12 = vpop.f32.mrb[63].mxu1  ;;  %v3222_v7 = vmax.f32 %v7084_v38, 0.0  ;;  %v3224_v13 = vmax.f32 %v7116_v18, 0.0 }
 0x47e   :  { %v7087_v58 = vadd.f32 %v2711_v6, %v9134_v2  ;;  %v7119_v29 = vadd.f32 %v3163_v12, %v9137_v57  ;;  %v3223_v49 = vmax.f32 %v7085_v16, 0.0  ;;  %v3225_v34 = vmax.f32 %v7117_v17, 0.0 }
 0x47f   :  { %v3226_v53 = vmax.f32 %v7086_v22, 0.0  ;;  %v3228_v51 = vmax.f32 %v7118_v30, 0.0 }
 0x480   :  { %v3227_v35 = vmax.f32 %v7087_v58, 0.0  ;;  %v3229_v46 = vmax.f32 %v7119_v29, 0.0 }
 0x481   :  { %v9259_v21 = vpack.c.bf16 %v3226_v53, %v3222_v7  ;;  %v9261_v52 = vpack.c.bf16 %v3228_v51, %v3224_v13 }
 0x482   :  { %v9263_v62 = vpack.c.bf16 %v3227_v35, %v3223_v49  ;;  %v9265_v27 = vpack.c.bf16 %v3229_v46, %v3225_v34 }
 0x483   :  { %7812 = dma.done.wait [#allocation12 + $0x2], 8192 }
 0x484   :  { %7813 = vsyncadd [#allocation12 + $0x2], 4294959104  ;;  %3374 = vmatprep.mubr.bf16.mxu0 %v9151_v59  ;;  %v3267_v2 = vld [vmem:[#allocation4 + $0x8] sm:$0xff]  ;;  %v3266_v57 = vld [vmem:[#allocation4] sm:$0xff]  ;;  %s10433_s30 = sld [smem:[#allocation87_spill]] }
 0x485   :  { %v3269_v10 = vld [vmem:[#allocation4 + $0x18] sm:$0xff]  ;;  %3342 = vmatprep.subr.bf16.mxu0 %v3267_v2  ;;  %v3268_v47 = vld [vmem:[#allocation4 + $0x10] sm:$0xff]  ;;  %v3271_v55 = vld [vmem:[#allocation4 + $0x28] sm:$0xff] }
 0x486   :  { %3343 = vmatpush1.bf16.msra.mxu0 %v3266_v57  ;;  %v3270_v36 = vld [vmem:[#allocation4 + $0x20] sm:$0xff]  ;;  %v3273_v38 = vld [vmem:[#allocation4 + $0x38] sm:$0xff]  ;;  %v3272_v18 = vld [vmem:[#allocation4 + $0x30] sm:$0xff] }
 0x487   :  { %3344 = vmatprep.subr.bf16.mxu0 %v3269_v10  ;;  %v3275_v39 = vld [vmem:[#allocation4 + $0x48] sm:$0xff]  ;;  %v3274_v37 = vld [vmem:[#allocation4 + $0x40] sm:$0xff]  ;;  %v3277_v59 = vld [vmem:[#allocation4 + $0x58] sm:$0xff] }
 0x488   :  { %v3276_v16 = vld [vmem:[#allocation4 + $0x50] sm:$0xff]  ;;  %v3279_v17 = vld [vmem:[#allocation4 + $0x68] sm:$0xff]  ;;  %v3278_v48 = vld [vmem:[#allocation4 + $0x60] sm:$0xff] }
 0x489   :  { %v3281_v14 = vld [vmem:[#allocation4 + $0x78] sm:$0xff]  ;;  %v3280_v22 = vld [vmem:[#allocation4 + $0x70] sm:$0xff]  ;;  %v3283_v30 = vld [vmem:[#allocation4 + $0x88] sm:$0xff] }
 0x48a   :  { %3345 = vmatpush1.bf16.msra.mxu0 %v3268_v47  ;;  %v3282_v6 = vld [vmem:[#allocation4 + $0x80] sm:$0xff]  ;;  %v3285_v12 = vld [vmem:[#allocation4 + $0x98] sm:$0xff]  ;;  %v3284_v58 = vld [vmem:[#allocation4 + $0x90] sm:$0xff] }
 0x48b   :  { %3346 = vmatprep.subr.bf16.mxu0 %v3271_v55  ;;  %v3287_v29 = vld [vmem:[#allocation4 + $0xa8] sm:$0xff]  ;;  %v3286_v7 = vld [vmem:[#allocation4 + $0xa0] sm:$0xff]  ;;  %v3289_v13 = vld [vmem:[#allocation4 + $0xb8] sm:$0xff] }
 0x48c   :  { %v3288_v53 = vld [vmem:[#allocation4 + $0xb0] sm:$0xff]  ;;  %v3291_v51 = vld [vmem:[#allocation4 + $0xc8] sm:$0xff]  ;;  %v3290_v49 = vld [vmem:[#allocation4 + $0xc0] sm:$0xff] }
 0x48d   :  { %v3293_v34 = vld [vmem:[#allocation4 + $0xd8] sm:$0xff]  ;;  %v3292_v35 = vld [vmem:[#allocation4 + $0xd0] sm:$0xff]  ;;  %v3295_v46 = vld [vmem:[#allocation4 + $0xe8] sm:$0xff] }
 0x48e   :  { %3347 = vmatpush1.bf16.msra.mxu0 %v3270_v36  ;;  %v3294_v2 = vld [vmem:[#allocation4 + $0xe0] sm:$0xff]  ;;  %v3297_v57 = vld [vmem:[#allocation4 + $0xf8] sm:$0xff]  ;;  %v3296_v10 = vld [vmem:[#allocation4 + $0xf0] sm:$0xff] }
 0x48f   :  { %3348 = vmatprep.subr.bf16.mxu0 %v3273_v38  ;;  %v3299_v47 = vld [vmem:[#allocation4 + $0x108] sm:$0xff]  ;;  %v3298_v55 = vld [vmem:[#allocation4 + $0x100] sm:$0xff]  ;;  %v3301_v36 = vld [vmem:[#allocation4 + $0x118] sm:$0xff] }
 0x490   :  { %v3300_v38 = vld [vmem:[#allocation4 + $0x110] sm:$0xff] }
 0x492   :  { %3349 = vmatpush1.bf16.msra.mxu0 %v3272_v18  ;;  %v3303_v18 = vld [vmem:[#allocation4 + $0x128] sm:$0xff] }
 0x493   :  { %3350 = vmatprep.subr.bf16.mxu0 %v3275_v39  ;;  %v3302_v39 = vld [vmem:[#allocation4 + $0x120] sm:$0xff] }
 0x496   :  { %3351 = vmatpush1.bf16.msra.mxu0 %v3274_v37  ;;  %v3305_v37 = vld [vmem:[#allocation4 + $0x138] sm:$0xff] }
 0x497   :  { %3352 = vmatprep.subr.bf16.mxu0 %v3277_v59  ;;  %v3304_v59 = vld [vmem:[#allocation4 + $0x130] sm:$0xff] }
 0x49a   :  { %3353 = vmatpush1.bf16.msra.mxu0 %v3276_v16  ;;  %v3307_v16 = vld [vmem:[#allocation4 + $0x148] sm:$0xff] }
 0x49b   :  { %3354 = vmatprep.subr.bf16.mxu0 %v3279_v17  ;;  %v3309_v17 = vld [vmem:[#allocation4 + $0x158] sm:$0xff] }
 0x49e   :  { %3355 = vmatpush1.bf16.msra.mxu0 %v3278_v48  ;;  %v3311_v48 = vld [vmem:[#allocation4 + $0x168] sm:$0xff] }
 0x49f   :  { %3356 = vmatprep.subr.bf16.mxu0 %v3281_v14  ;;  %v3313_v14 = vld [vmem:[#allocation4 + $0x178] sm:$0xff] }
 0x4a2   :  { %3357 = vmatpush1.bf16.msra.mxu0 %v3280_v22  ;;  %v3315_v22 = vld [vmem:[#allocation4 + $0x188] sm:$0xff] }
 0x4a3   :  { %3358 = vmatprep.subr.bf16.mxu0 %v3283_v30  ;;  %v3317_v30 = vld [vmem:[#allocation4 + $0x198] sm:$0xff] }
 0x4a6   :  { %3359 = vmatpush1.bf16.msra.mxu0 %v3282_v6  ;;  %v3319_v6 = vld [vmem:[#allocation4 + $0x1a8] sm:$0xff] }
 0x4a7   :  { %3360 = vmatprep.subr.bf16.mxu0 %v3285_v12  ;;  %v3321_v12 = vld [vmem:[#allocation4 + $0x1b8] sm:$0xff] }
 0x4aa   :  { %3361 = vmatpush1.bf16.msra.mxu0 %v3284_v58  ;;  %v3323_v58 = vld [vmem:[#allocation4 + $0x1c8] sm:$0xff] }
 0x4ab   :  { %3362 = vmatprep.subr.bf16.mxu0 %v3287_v29  ;;  %v3325_v29 = vld [vmem:[#allocation4 + $0x1d8] sm:$0xff] }
 0x4ae   :  { %3363 = vmatpush1.bf16.msra.mxu0 %v3286_v7  ;;  %v3327_v7 = vld [vmem:[#allocation4 + $0x1e8] sm:$0xff] }
 0x4af   :  { %3364 = vmatprep.subr.bf16.mxu0 %v3289_v13  ;;  %v3329_v13 = vld [vmem:[#allocation4 + $0x1f8] sm:$0xff] }
 0x4b2   :  { %3365 = vmatpush1.bf16.msra.mxu0 %v3288_v53 }
 0x4b3   :  { %3366 = vmatprep.subr.bf16.mxu0 %v3291_v51 }
 0x4b6   :  { %3367 = vmatpush1.bf16.msra.mxu0 %v3290_v49 }
 0x4b7   :  { %3368 = vmatprep.subr.bf16.mxu0 %v3293_v34 }
 0x4ba   :  { %3369 = vmatpush1.bf16.msra.mxu0 %v3292_v35 }
 0x4bb   :  { %3370 = vmatprep.subr.bf16.mxu0 %v3295_v46 }
 0x4be   :  { %3371 = vmatpush1.bf16.msra.mxu0 %v3294_v2 }
 0x4bf   :  { %3372 = vmatprep.subr.bf16.mxu0 %v3297_v57 }
 0x4c2   :  { %3373 = vmatpush1.bf16.msra.mxu0 %v3296_v10 }
 0x4c3   :  { %3455 = vmatprep.subr.bf16.mxu0 %v3299_v47 }
 0x4c5   :  { %3375 = vmatmul.mubr.bf16.vlgmr.msra.gmra.mrb[128].mxu0 %v9147_v11  ;;  %v3306_v11 = vld [vmem:[#allocation4 + $0x140] sm:$0xff] }
 0x4c6   :  { %3456 = vmatpush1.bf16.msra.mxu0 %v3298_v55  ;;  %3384 = vmatprep.mubr.bf16.mxu0 %v9167_v33  ;;  %v3308_v33 = vld [vmem:[#allocation4 + $0x150] sm:$0xff] }
 0x4c7   :  { %3457 = vmatprep.subr.bf16.mxu0 %v3301_v36 }
 0x4ca   :  { %3458 = vmatpush1.bf16.msra.mxu0 %v3300_v38 }
 0x4cb   :  { %3459 = vmatprep.subr.bf16.mxu0 %v3303_v18 }
 0x4cd   :  { %3385 = vmatmul.mubr.bf16.gmra.mrb[132].mxu0 %v9163_v50  ;;  %v3310_v50 = vld [vmem:[#allocation4 + $0x160] sm:$0xff] }
 0x4ce   :  { %3460 = vmatpush1.bf16.msra.mxu0 %v3302_v39  ;;  %3394 = vmatprep.mubr.bf16.mxu0 %v9183_v8  ;;  %v3312_v8 = vld [vmem:[#allocation4 + $0x170] sm:$0xff] }
 0x4cf   :  { %3461 = vmatprep.subr.bf16.mxu0 %v3305_v37 }
 0x4d2   :  { %3462 = vmatpush1.bf16.msra.mxu0 %v3304_v59 }
 0x4d3   :  { %3463 = vmatprep.subr.bf16.mxu0 %v3307_v16 }
 0x4d5   :  { %3395 = vmatmul.mubr.bf16.gmra.mrb[136].mxu0 %v9179_v20  ;;  %v3314_v20 = vld [vmem:[#allocation4 + $0x180] sm:$0xff] }
 0x4d6   :  { %3464 = vmatpush1.bf16.msra.mxu0 %v3306_v11  ;;  %3404 = vmatprep.mubr.bf16.mxu0 %v9199_v28  ;;  %v3316_v28 = vld [vmem:[#allocation4 + $0x190] sm:$0xff] }
 0x4d7   :  { %3465 = vmatprep.subr.bf16.mxu0 %v3309_v17 }
 0x4da   :  { %3466 = vmatpush1.bf16.msra.mxu0 %v3308_v33 }
 0x4db   :  { %3467 = vmatprep.subr.bf16.mxu0 %v3311_v48 }
 0x4dd   :  { %3405 = vmatmul.mubr.bf16.gmra.mrb[140].mxu0 %v9195_v0  ;;  %v3318_v0 = vld [vmem:[#allocation4 + $0x1a0] sm:$0xff] }
 0x4de   :  { %3468 = vmatpush1.bf16.msra.mxu0 %v3310_v50  ;;  %3414 = vmatprep.mubr.bf16.mxu0 %v9215_v43  ;;  %v3320_v43 = vld [vmem:[#allocation4 + $0x1b0] sm:$0xff] }
 0x4df   :  { %3469 = vmatprep.subr.bf16.mxu0 %v3313_v14 }
 0x4e2   :  { %3470 = vmatpush1.bf16.msra.mxu0 %v3312_v8 }
 0x4e3   :  { %3471 = vmatprep.subr.bf16.mxu0 %v3315_v22 }
 0x4e5   :  { %3415 = vmatmul.mubr.bf16.gmra.mrb[144].mxu0 %v9211_v63  ;;  %v3322_v63 = vld [vmem:[#allocation4 + $0x1c0] sm:$0xff] }
 0x4e6   :  { %3472 = vmatpush1.bf16.msra.mxu0 %v3314_v20  ;;  %3424 = vmatprep.mubr.bf16.mxu0 %v9231_v19  ;;  %v3324_v19 = vld [vmem:[#allocation4 + $0x1d0] sm:$0xff] }
 0x4e7   :  { %3473 = vmatprep.subr.bf16.mxu0 %v3317_v30 }
 0x4ea   :  { %3474 = vmatpush1.bf16.msra.mxu0 %v3316_v28 }
 0x4eb   :  { %3475 = vmatprep.subr.bf16.mxu0 %v3319_v6 }
 0x4ed   :  { %3425 = vmatmul.mubr.bf16.gmra.mrb[148].mxu0 %v9227_v56  ;;  %v3326_v56 = vld [vmem:[#allocation4 + $0x1e0] sm:$0xff] }
 0x4ee   :  { %3476 = vmatpush1.bf16.msra.mxu0 %v3318_v0  ;;  %3434 = vmatprep.mubr.bf16.mxu0 %v9247_v15  ;;  %v3328_v15 = vld [vmem:[#allocation4 + $0x1f0] sm:$0xff] }
 0x4ef   :  { %3477 = vmatprep.subr.bf16.mxu0 %v3321_v12 }
 0x4f2   :  { %3478 = vmatpush1.bf16.msra.mxu0 %v3320_v43 }
 0x4f3   :  { %3479 = vmatprep.subr.bf16.mxu0 %v3323_v58 }
 0x4f5   :  { %3435 = vmatmul.mubr.bf16.gmra.mrb[152].mxu0 %v9243_v25 }
 0x4f6   :  { %3480 = vmatpush1.bf16.msra.mxu0 %v3322_v63  ;;  %3444 = vmatprep.mubr.bf16.mxu0 %v9263_v62 }
 0x4f7   :  { %3481 = vmatprep.subr.bf16.mxu0 %v3325_v29 }
 0x4fa   :  { %3482 = vmatpush1.bf16.msra.mxu0 %v3324_v19 }
 0x4fb   :  { %3483 = vmatprep.subr.bf16.mxu0 %v3327_v7 }
 0x4fd   :  { %3445 = vmatmul.mubr.bf16.gmra.mrb[156].mxu0 %v9259_v21 }
 0x4fe   :  { %3484 = vmatpush1.bf16.msra.mxu0 %v3326_v56  ;;  %3487 = vmatprep.mubr.bf16.mxu0 %v9153_v9 }
 0x4ff   :  { %3485 = vmatprep.subr.bf16.mxu0 %v3329_v13 }
 0x502   :  { %3486 = vmatpush1.bf16.msra.mxu0 %v3328_v15 }
 0x505   :  { %3488 = vmatmul.mubr.bf16.vlgmr.msra.gmra.mrb[128].mxu0 %v9149_v61  ;;  %v3330_v61 = vld [vmem:[%s10433_s30] sm:$0x3] }
 0x506   :  { %3497 = vmatprep.mubr.bf16.mxu0 %v9169_v41  ;;  %v9303_v9 = vrot.slane %v3330_v61, %v10429_v24 }
 0x50d   :  { %3498 = vmatmul.mubr.bf16.gmra.mrb[132].mxu0 %v9165_v32  ;;  %v9306_v32 = vrot.slane %v3330_v61, %v10431_v26 }
 0x50e   :  { %3507 = vmatprep.mubr.bf16.mxu0 %v9185_v45 }
 0x515   :  { %3508 = vmatmul.mubr.bf16.gmra.mrb[136].mxu0 %v9181_v44 }
 0x516   :  { %3517 = vmatprep.mubr.bf16.mxu0 %v9201_v4 }
 0x51d   :  { %3518 = vmatmul.mubr.bf16.gmra.mrb[140].mxu0 %v9197_v60 }
 0x51e   :  { %3527 = vmatprep.mubr.bf16.mxu0 %v9217_v42 }
 0x525   :  { %3528 = vmatmul.mubr.bf16.gmra.mrb[144].mxu0 %v9213_v40 }
 0x526   :  { %3537 = vmatprep.mubr.bf16.mxu0 %v9233_v1 }
 0x52d   :  { %3538 = vmatmul.mubr.bf16.gmra.mrb[148].mxu0 %v9229_v3 }
 0x52e   :  { %3547 = vmatprep.mubr.bf16.mxu0 %v9249_v54 }
 0x535   :  { %3548 = vmatmul.mubr.bf16.gmra.mrb[152].mxu0 %v9245_v31 }
 0x536   :  { %3557 = vmatprep.mubr.bf16.mxu0 %v9265_v27 }
 0x53d   :  { %3558 = vmatmul.mubr.bf16.gmra.mrb[156].mxu0 %v9261_v52 }
 0x5d8   :  { %v3489_v41 = vpop.f32.mrb[128].mxu0 }
 0x5d9   :  { %v7120_v44 = vadd.f32 %v3489_v41, %v9303_v9  ;;  %v3491_v45 = vpop.f32.mrb[129].mxu0 }
 0x5da   :  { %v7121_v60 = vadd.f32 %v3491_v45, %v9306_v32  ;;  %v3493_v4 = vpop.f32.mrb[130].mxu0 }
 0x5db   :  { %v7122_v40 = vadd.f32 %v3493_v4, %v9303_v9  ;;  %v3495_v42 = vpop.f32.mrb[131].mxu0  ;;  %v3568_v1 = vmax.f32 %v7120_v44, 0.0 }
 0x5dc   :  { %v7123_v3 = vadd.f32 %v3495_v42, %v9306_v32  ;;  %v3569_v31 = vmax.f32 %v7121_v60, 0.0 }
 0x5dd   :  { %v3570_v25 = vmax.f32 %v7122_v40, 0.0 }
 0x5de   :  { %v3571_v54 = vmax.f32 %v7123_v3, 0.0 }
 0x5df   :  { %v9312_v21 = vpack.c.bf16 %v3570_v25, %v3568_v1 }
 0x5e0   :  { %v9314_v52 = vpack.c.bf16 %v3571_v54, %v3569_v31  ;;  %v3499_v62 = vpop.f32.mrb[132].mxu0 }
 0x5e1   :  { %v7124_v27 = vadd.f32 %v3499_v62, %v9303_v9  ;;  %v3501_v53 = vpop.f32.mrb[133].mxu0 }
 0x5e2   :  { %v7125_v51 = vadd.f32 %v3501_v53, %v9306_v32  ;;  %v3503_v49 = vpop.f32.mrb[134].mxu0 }
 0x5e3   :  { %v7126_v34 = vadd.f32 %v3503_v49, %v9303_v9  ;;  %v3505_v35 = vpop.f32.mrb[135].mxu0  ;;  %v3572_v2 = vmax.f32 %v7124_v27, 0.0 }
 0x5e4   :  { %v7127_v46 = vadd.f32 %v3505_v35, %v9306_v32  ;;  %v3573_v10 = vmax.f32 %v7125_v51, 0.0 }
 0x5e5   :  { %v3574_v57 = vmax.f32 %v7126_v34, 0.0 }
 0x5e6   :  { %v3575_v47 = vmax.f32 %v7127_v46, 0.0 }
 0x5e7   :  { %v9320_v55 = vpack.c.bf16 %v3574_v57, %v3572_v2 }
 0x5e8   :  { %v9322_v36 = vpack.c.bf16 %v3575_v47, %v3573_v10  ;;  %v3509_v38 = vpop.f32.mrb[136].mxu0 }
 0x5e9   :  { %v7128_v18 = vadd.f32 %v3509_v38, %v9303_v9  ;;  %v3511_v39 = vpop.f32.mrb[137].mxu0 }
 0x5ea   :  { %v7129_v37 = vadd.f32 %v3511_v39, %v9306_v32  ;;  %v3513_v59 = vpop.f32.mrb[138].mxu0 }
 0x5eb   :  { %v7130_v16 = vadd.f32 %v3513_v59, %v9303_v9  ;;  %v3515_v11 = vpop.f32.mrb[139].mxu0  ;;  %v3576_v33 = vmax.f32 %v7128_v18, 0.0 }
 0x5ec   :  { %v7131_v17 = vadd.f32 %v3515_v11, %v9306_v32  ;;  %v3577_v50 = vmax.f32 %v7129_v37, 0.0 }
 0x5ed   :  { %v3578_v48 = vmax.f32 %v7130_v16, 0.0 }
 0x5ee   :  { %v3579_v14 = vmax.f32 %v7131_v17, 0.0 }
 0x5ef   :  { %v9328_v8 = vpack.c.bf16 %v3578_v48, %v3576_v33 }
 0x5f0   :  { %v9330_v22 = vpack.c.bf16 %v3579_v14, %v3577_v50  ;;  %v3519_v20 = vpop.f32.mrb[140].mxu0 }
 0x5f1   :  { %v7132_v30 = vadd.f32 %v3519_v20, %v9303_v9  ;;  %v3521_v28 = vpop.f32.mrb[141].mxu0 }
 0x5f2   :  { %v7133_v6 = vadd.f32 %v3521_v28, %v9306_v32  ;;  %v3523_v0 = vpop.f32.mrb[142].mxu0 }
 0x5f3   :  { %v7134_v12 = vadd.f32 %v3523_v0, %v9303_v9  ;;  %v3525_v43 = vpop.f32.mrb[143].mxu0  ;;  %v3580_v63 = vmax.f32 %v7132_v30, 0.0 }
 0x5f4   :  { %v7135_v58 = vadd.f32 %v3525_v43, %v9306_v32  ;;  %v3581_v19 = vmax.f32 %v7133_v6, 0.0 }
 0x5f5   :  { %v3582_v29 = vmax.f32 %v7134_v12, 0.0 }
 0x5f6   :  { %v3583_v7 = vmax.f32 %v7135_v58, 0.0 }
 0x5f7   :  { %v9336_v56 = vpack.c.bf16 %v3582_v29, %v3580_v63 }
 0x5f8   :  { %v9338_v13 = vpack.c.bf16 %v3583_v7, %v3581_v19  ;;  %v3529_v15 = vpop.f32.mrb[144].mxu0 }
 0x5f9   :  { %v7136_v61 = vadd.f32 %v3529_v15, %v9303_v9  ;;  %v3531_v41 = vpop.f32.mrb[145].mxu0 }
 0x5fa   :  { %v7137_v44 = vadd.f32 %v3531_v41, %v9306_v32  ;;  %v3533_v45 = vpop.f32.mrb[146].mxu0 }
 0x5fb   :  { %v7138_v60 = vadd.f32 %v3533_v45, %v9303_v9  ;;  %v3535_v4 = vpop.f32.mrb[147].mxu0  ;;  %v3584_v42 = vmax.f32 %v7136_v61, 0.0 }
 0x5fc   :  { %v7139_v40 = vadd.f32 %v3535_v4, %v9306_v32  ;;  %v3585_v1 = vmax.f32 %v7137_v44, 0.0  ;;  %v10434_v4 = vld [vmem:[#allocation49_spill] sm:$0xff] }
 0x5fd   :  { %v3586_v3 = vmax.f32 %v7138_v60, 0.0  ;;  %6910 = vmatprep.subr.bf16.mxu0 %v10434_v4  ;;  %7040 = vmatprep.subr.bf16.mxu1 %v10434_v4 }
 0x5fe   :  { %v3587_v25 = vmax.f32 %v7139_v40, 0.0 }
 0x5ff   :  { %v9344_v31 = vpack.c.bf16 %v3586_v3, %v3584_v42 }
 0x600   :  { %v9346_v54 = vpack.c.bf16 %v3587_v25, %v3585_v1  ;;  %v3539_v62 = vpop.f32.mrb[148].mxu0 }
 0x601   :  { %v7140_v27 = vadd.f32 %v3539_v62, %v9303_v9  ;;  %v3541_v53 = vpop.f32.mrb[149].mxu0 }
 0x602   :  { %v7141_v51 = vadd.f32 %v3541_v53, %v9306_v32  ;;  %v3543_v49 = vpop.f32.mrb[150].mxu0 }
 0x603   :  { %v7142_v34 = vadd.f32 %v3543_v49, %v9303_v9  ;;  %v3545_v35 = vpop.f32.mrb[151].mxu0  ;;  %v3588_v2 = vmax.f32 %v7140_v27, 0.0 }
 0x604   :  { %v7143_v46 = vadd.f32 %v3545_v35, %v9306_v32  ;;  %v3589_v10 = vmax.f32 %v7141_v51, 0.0 }
 0x605   :  { %v3590_v57 = vmax.f32 %v7142_v34, 0.0 }
 0x606   :  { %v3591_v47 = vmax.f32 %v7143_v46, 0.0 }
 0x607   :  { %v9352_v38 = vpack.c.bf16 %v3590_v57, %v3588_v2 }
 0x608   :  { %v9354_v18 = vpack.c.bf16 %v3591_v47, %v3589_v10  ;;  %v3549_v39 = vpop.f32.mrb[152].mxu0 }
 0x609   :  { %v7144_v37 = vadd.f32 %v3549_v39, %v9303_v9  ;;  %v3551_v59 = vpop.f32.mrb[153].mxu0 }
 0x60a   :  { %v7145_v16 = vadd.f32 %v3551_v59, %v9306_v32  ;;  %v3553_v11 = vpop.f32.mrb[154].mxu0 }
 0x60b   :  { %v7146_v17 = vadd.f32 %v3553_v11, %v9303_v9  ;;  %v3555_v33 = vpop.f32.mrb[155].mxu0  ;;  %v3592_v50 = vmax.f32 %v7144_v37, 0.0 }
 0x60c   :  { %v7147_v48 = vadd.f32 %v3555_v33, %v9306_v32  ;;  %v3593_v20 = vmax.f32 %v7145_v16, 0.0 }
 0x60d   :  { %v3594_v14 = vmax.f32 %v7146_v17, 0.0 }
 0x60e   :  { %v3595_v30 = vmax.f32 %v7147_v48, 0.0 }
 0x60f   :  { %v3612_v28 = vpack.c.bf16 %v3594_v14, %v3592_v50 }
 0x610   :  { %v3613_v6 = vpack.c.bf16 %v3595_v30, %v3593_v20  ;;  %v3559_v0 = vpop.f32.mrb[156].mxu0 }
 0x611   :  { %v7148_v12 = vadd.f32 %v3559_v0, %v9303_v9  ;;  %v3561_v43 = vpop.f32.mrb[157].mxu0 }
 0x612   :  { %v7149_v58 = vadd.f32 %v3561_v43, %v9306_v32  ;;  %v3563_v63 = vpop.f32.mrb[158].mxu0 }
 0x613   :  { %v7150_v29 = vadd.f32 %v3563_v63, %v9303_v9  ;;  %v3565_v19 = vpop.f32.mrb[159].mxu0  ;;  %v3596_v15 = vmax.f32 %v7148_v12, 0.0 }
 0x614   :  { %v7151_v7 = vadd.f32 %v3565_v19, %v9306_v32  ;;  %v3597_v41 = vmax.f32 %v7149_v58, 0.0 }
 0x615   :  { %v3598_v61 = vmax.f32 %v7150_v29, 0.0 }
 0x616   :  { %v3599_v44 = vmax.f32 %v7151_v7, 0.0 }
 0x617   :  { %v3614_v45 = vpack.c.bf16 %v3598_v61, %v3596_v15 }
 0x618   :  { %v3615_v60 = vpack.c.bf16 %v3599_v44, %v3597_v41 }
 0x619   :  { %7814 = dma.done.wait [#allocation12 + $0x3], 2048 }
 0x61a   :  { %7815 = vsyncadd [#allocation12 + $0x3], 4294965248  ;;  %v10435_v40 = vld [vmem:[#allocation41_spill] sm:$0xff]  ;;  %v10436_v9 = vld [vmem:[#allocation50_spill] sm:$0xff]  ;;  %3674 = vmatprep.mubr.bf16.mxu0 %v9314_v52  ;;  %3722 = vmatprep.mubr.bf16.mxu1 %v3613_v6  ;;  %s10450_s19 = sld [smem:[#allocation88_spill]]  ;;  %vm3778_vm0 = vcmask 523264  }
 0x61b   :  { %6911 = vmatpush3.bf16.msra.mxu0 %v10435_v40  ;;  %7048 = vmatpush3.bf16.msra.mxu1 %v10435_v40  ;;  %v10437_v32 = vld [vmem:[#allocation42_spill] sm:$0xff]  ;;  %v10438_v42 = vld [vmem:[#allocation51_spill] sm:$0xff]  ;;  %v10440_v1 = vld [vmem:[#allocation52_spill] sm:$0xff] }
 0x61c   :  { %6912 = vmatprep.subr.bf16.mxu0 %v10436_v9  ;;  %7041 = vmatprep.subr.bf16.mxu1 %v10436_v9  ;;  %v10439_v3 = vld [vmem:[#allocation43_spill] sm:$0xff]  ;;  %v10441_v52 = vld [vmem:[#allocation44_spill] sm:$0xff]  ;;  %v10442_v25 = vld [vmem:[#allocation53_spill] sm:$0xff] }
 0x61d   :  { %v10443_v62 = vld [vmem:[#allocation45_spill] sm:$0xff]  ;;  %v10444_v27 = vld [vmem:[#allocation54_spill] sm:$0xff]  ;;  %v10446_v51 = vld [vmem:[#allocation55_spill] sm:$0xff] }
 0x61e   :  { %v10445_v53 = vld [vmem:[#allocation46_spill] sm:$0xff]  ;;  %v10447_v49 = vld [vmem:[#allocation47_spill] sm:$0xff]  ;;  %v10448_v34 = vld [vmem:[#allocation56_spill] sm:$0xff] }
 0x61f   :  { %6913 = vmatpush3.bf16.msra.mxu0 %v10437_v32  ;;  %7049 = vmatpush3.bf16.msra.mxu1 %v10437_v32  ;;  %v10449_v35 = vld [vmem:[#allocation48_spill] sm:$0xff] }
 0x620   :  { %6914 = vmatprep.subr.bf16.mxu0 %v10438_v42  ;;  %7042 = vmatprep.subr.bf16.mxu1 %v10438_v42 }
 0x623   :  { %6915 = vmatpush3.bf16.msra.mxu0 %v10439_v3  ;;  %7050 = vmatpush3.bf16.msra.mxu1 %v10439_v3 }
 0x624   :  { %6916 = vmatprep.subr.bf16.mxu0 %v10440_v1  ;;  %7043 = vmatprep.subr.bf16.mxu1 %v10440_v1 }
 0x627   :  { %6917 = vmatpush3.bf16.msra.mxu0 %v10441_v52  ;;  %7051 = vmatpush3.bf16.msra.mxu1 %v10441_v52 }
 0x628   :  { %6918 = vmatprep.subr.bf16.mxu0 %v10442_v25  ;;  %7044 = vmatprep.subr.bf16.mxu1 %v10442_v25 }
 0x62b   :  { %6919 = vmatpush3.bf16.msra.mxu0 %v10443_v62  ;;  %7052 = vmatpush3.bf16.msra.mxu1 %v10443_v62 }
 0x62c   :  { %6920 = vmatprep.subr.bf16.mxu0 %v10444_v27  ;;  %7045 = vmatprep.subr.bf16.mxu1 %v10444_v27 }
 0x62f   :  { %6921 = vmatpush3.bf16.msra.mxu0 %v10445_v53  ;;  %7053 = vmatpush3.bf16.msra.mxu1 %v10445_v53 }
 0x630   :  { %6922 = vmatprep.subr.bf16.mxu0 %v10446_v51  ;;  %7046 = vmatprep.subr.bf16.mxu1 %v10446_v51 }
 0x633   :  { %6923 = vmatpush3.bf16.msra.mxu0 %v10447_v49  ;;  %7054 = vmatpush3.bf16.msra.mxu1 %v10447_v49 }
 0x634   :  { %6924 = vmatprep.subr.bf16.mxu0 %v10448_v34  ;;  %7047 = vmatprep.subr.bf16.mxu1 %v10448_v34 }
 0x637   :  { %6925 = vmatpush3.bf16.msra.mxu0 %v10449_v35  ;;  %7055 = vmatpush3.bf16.msra.mxu1 %v10449_v35 }
 0x63a   :  { %3675 = vmatmul.mubr.bf16.vlgmr.msra.gmra.mrb[160].mxu0 %v9312_v21  ;;  %3723 = vmatmul.mubr.bf16.vlgmr.msra.gmra.mrb[64].mxu1 %v3612_v28 }
 0x63b   :  { %3682 = vmatprep.mubr.bf16.mxu0 %v9322_v36  ;;  %3730 = vmatprep.mubr.bf16.mxu1 %v3615_v60 }
 0x642   :  { %3683 = vmatmul.mubr.bf16.gmra.mrb[164].mxu0 %v9320_v55  ;;  %3731 = vmatmul.mubr.bf16.gmra.mrb[68].mxu1 %v3614_v45  ;;  %v9411_v55 = vld [vmem:[%s10450_s19] ss:$0 sm:$0xff] }
 0x643   :  { %3690 = vmatprep.mubr.bf16.mxu0 %v9330_v22 }
 0x64a   :  { %3691 = vmatmul.mubr.bf16.gmra.mrb[168].mxu0 %v9328_v8 }
 0x64b   :  { %3698 = vmatprep.mubr.bf16.mxu0 %v9338_v13 }
 0x652   :  { %3699 = vmatmul.mubr.bf16.gmra.mrb[172].mxu0 %v9336_v56 }
 0x653   :  { %3706 = vmatprep.mubr.bf16.mxu0 %v9346_v54 }
 0x65a   :  { %3707 = vmatmul.mubr.bf16.gmra.mrb[176].mxu0 %v9344_v31 }
 0x65b   :  { %3714 = vmatprep.mubr.bf16.mxu0 %v9354_v18 }
 0x662   :  { %3715 = vmatmul.mubr.bf16.gmra.mrb[180].mxu0 %v9352_v38 }
 0x70d   :  { %v6926_v21 = vpop.f32.mrb[160].mxu0  ;;  %v6962_v36 = vpop.f32.mrb[64].mxu1 }
 0x70e   :  { %v6927_v8 = vpop.f32.mrb[161].mxu0  ;;  %v6963_v22 = vpop.f32.mrb[65].mxu1 }
 0x70f   :  { %v6928_v13 = vadd.f32 %v6927_v8, %v6926_v21  ;;  %v6929_v46 = vpop.f32.mrb[162].mxu0  ;;  %v6964_v56 = vadd.f32 %v6963_v22, %v6962_v36  ;;  %v6965_v2 = vpop.f32.mrb[66].mxu1 }
 0x710   :  { %v6930_v54 = vpop.f32.mrb[163].mxu0  ;;  %v6966_v57 = vpop.f32.mrb[67].mxu1 }
 0x711   :  { %v3677_v31 = vadd.f32 %v6928_v13, %v9411_v55  ;;  %v6931_v10 = vadd.f32 %v6930_v54, %v6929_v46  ;;  %v3725_v47 = vadd.f32 %v6964_v56, %v9411_v55  ;;  %v6967_v38 = vadd.f32 %v6966_v57, %v6965_v2 }
 0x713   :  { %v3680_v18 = vadd.f32 %v6931_v10, %v9411_v55  ;;  %v3751_v39 = vmax.f32 %v3725_v47, 0.0  ;;  %v3728_v37 = vadd.f32 %v6967_v38, %v9411_v55  ;;  %v3739_v59 = vmax.f32 %v3677_v31, 0.0 }
 0x715   :  { %v3740_v16 = vmax.f32 %v3680_v18, 0.0  ;;  %v6932_v11 = vpop.f32.mrb[164].mxu0  ;;  %v3752_v17 = vmax.f32 %v3728_v37, 0.0  ;;  %v6968_v33 = vpop.f32.mrb[68].mxu1 }
 0x716   :  { %v6933_v48 = vpop.f32.mrb[165].mxu0  ;;  %v6969_v50 = vpop.f32.mrb[69].mxu1 }
 0x717   :  { %v9417_v14 = vpack.c.bf16 %v3740_v16, %v3739_v59  ;;  %v6934_v20 = vadd.f32 %v6933_v48, %v6932_v11  ;;  %v6935_v30 = vpop.f32.mrb[166].mxu0  ;;  %v9419_v28 = vpack.c.bf16 %v3752_v17, %v3751_v39  ;;  %v6970_v6 = vadd.f32 %v6969_v50, %v6968_v33  ;;  %v6971_v0 = vpop.f32.mrb[70].mxu1 }
 0x718   :  { %v6936_v12 = vpop.f32.mrb[167].mxu0  ;;  %v6972_v43 = vpop.f32.mrb[71].mxu1 }
 0x719   :  { %v3685_v58 = vadd.f32 %v6934_v20, %v9411_v55  ;;  %v6937_v63 = vadd.f32 %v6936_v12, %v6935_v30  ;;  %v3733_v29 = vadd.f32 %v6970_v6, %v9411_v55  ;;  %v6973_v19 = vadd.f32 %v6972_v43, %v6971_v0  ;;  %v10451_v43 = vld [vmem:[#allocation57_spill] sm:$0xff] }
 0x71a   :  { %6996 = vmatprep.subr.bf16.mxu1 %v10451_v43 }
 0x71b   :  { %v3688_v7 = vadd.f32 %v6937_v63, %v9411_v55  ;;  %v3753_v15 = vmax.f32 %v3733_v29, 0.0  ;;  %v3736_v61 = vadd.f32 %v6973_v19, %v9411_v55  ;;  %v3741_v41 = vmax.f32 %v3685_v58, 0.0 }
 0x71d   :  { %v3742_v44 = vmax.f32 %v3688_v7, 0.0  ;;  %v6938_v45 = vpop.f32.mrb[168].mxu0  ;;  %v3754_v60 = vmax.f32 %v3736_v61, 0.0 }
 0x71e   :  { %v6939_v4 = vpop.f32.mrb[169].mxu0 }
 0x71f   :  { %v3756_v40 = vpack.c.bf16 %v3742_v44, %v3741_v41  ;;  %v6940_v9 = vadd.f32 %v6939_v4, %v6938_v45  ;;  %v6941_v32 = vpop.f32.mrb[170].mxu0  ;;  %v3762_v42 = vpack.c.bf16 %v3754_v60, %v3753_v15 }
 0x720   :  { %v6942_v3 = vpop.f32.mrb[171].mxu0 }
 0x721   :  { %v3693_v1 = vadd.f32 %v6940_v9, %v9411_v55  ;;  %v6943_v52 = vadd.f32 %v6942_v3, %v6941_v32 }
 0x723   :  { %v3696_v25 = vadd.f32 %v6943_v52, %v9411_v55  ;;  %v3743_v62 = vmax.f32 %v3693_v1, 0.0 }
 0x725   :  { %v3744_v27 = vmax.f32 %v3696_v25, 0.0  ;;  %v6944_v53 = vpop.f32.mrb[172].mxu0 }
 0x726   :  { %v6945_v51 = vpop.f32.mrb[173].mxu0 }
 0x727   :  { %v3757_v49 = vpack.c.bf16 %v3744_v27, %v3743_v62  ;;  %v6946_v34 = vadd.f32 %v6945_v51, %v6944_v53  ;;  %v6947_v35 = vpop.f32.mrb[174].mxu0 }
 0x728   :  { %v6948_v21 = vpop.f32.mrb[175].mxu0 }
 0x729   :  { %v3701_v36 = vadd.f32 %v6946_v34, %v9411_v55  ;;  %v6949_v8 = vadd.f32 %v6948_v21, %v6947_v35 }
 0x72b   :  { %v3704_v22 = vadd.f32 %v6949_v8, %v9411_v55  ;;  %v3745_v13 = vmax.f32 %v3701_v36, 0.0 }
 0x72d   :  { %v3746_v46 = vmax.f32 %v3704_v22, 0.0  ;;  %v6950_v56 = vpop.f32.mrb[176].mxu0 }
 0x72e   :  { %v6951_v2 = vpop.f32.mrb[177].mxu0 }
 0x72f   :  { %v3758_v54 = vpack.c.bf16 %v3746_v46, %v3745_v13  ;;  %v6952_v57 = vadd.f32 %v6951_v2, %v6950_v56  ;;  %v6953_v31 = vpop.f32.mrb[178].mxu0 }
 0x730   :  { %v6954_v10 = vpop.f32.mrb[179].mxu0 }
 0x731   :  { %v3709_v47 = vadd.f32 %v6952_v57, %v9411_v55  ;;  %v6955_v38 = vadd.f32 %v6954_v10, %v6953_v31 }
 0x733   :  { %v3712_v18 = vadd.f32 %v6955_v38, %v9411_v55  ;;  %v3747_v39 = vmax.f32 %v3709_v47, 0.0 }
 0x735   :  { %v3748_v37 = vmax.f32 %v3712_v18, 0.0  ;;  %v6956_v59 = vpop.f32.mrb[180].mxu0 }
 0x736   :  { %v6957_v16 = vpop.f32.mrb[181].mxu0 }
 0x737   :  { %v3759_v11 = vpack.c.bf16 %v3748_v37, %v3747_v39  ;;  %v6958_v17 = vadd.f32 %v6957_v16, %v6956_v59  ;;  %v6959_v33 = vpop.f32.mrb[182].mxu0 }
 0x738   :  { %v6960_v48 = vpop.f32.mrb[183].mxu0 }
 0x739   :  { %v3717_v50 = vadd.f32 %v6958_v17, %v9411_v55  ;;  %v6961_v20 = vadd.f32 %v6960_v48, %v6959_v33 }
 0x73b   :  { %v3720_v30 = vadd.f32 %v6961_v20, %v9411_v55  ;;  %v3749_v6 = vmax.f32 %v3717_v50, 0.0 }
 0x73d   :  { %v3750_v0 = vmax.f32 %v3720_v30, 0.0 }
 0x73f   :  { %v3760_v12 = vpack.c.bf16 %v3750_v0, %v3749_v6 }
 0x740   :  { %7816 = dma.done.wait [#allocation12 + $0x4], 512 }
 0x741   :  { %7817 = vsyncadd [#allocation12 + $0x4], 4294966784  ;;  %6997 = vmatpush3.bf16.msra.mxu1 %v10451_v43  ;;  %7004 = vmatprep.mubr.msk.bf16.mxu1 %vm3778_vm0, %v9417_v14  ;;  %v10452_v58 = vld [vmem:[#allocation58_spill] sm:$0xff]  ;;  %v10453_v63 = vld [vmem:[#allocation59_spill] sm:$0xff]  ;;  %s10455_s0 = sld [smem:[#allocation89_spill]]  ;;  %vm3921_vm1 = vcmask 261120  }
 0x742   :  { %6998 = vmatprep.subr.bf16.mxu1 %v10452_v58  ;;  %v10454_v55 = vld [vmem:[#allocation60_spill] sm:$0xff]  ;;  %v10456_v18 = vld [vmem:[#allocation61_spill] sm:$0xff] }
 0x745   :  { %6999 = vmatpush3.bf16.msra.mxu1 %v10452_v58 }
 0x746   :  { %7000 = vmatprep.subr.bf16.mxu1 %v10453_v63 }
 0x747   :  { %v6874_v14 = vld [vmem:[%s10455_s0] ss:$0 sm:$0xff] }
 0x749   :  { %7001 = vmatpush3.bf16.msra.mxu1 %v10453_v63 }
 0x74a   :  { %7002 = vmatprep.subr.bf16.mxu1 %v10454_v55 }
 0x74d   :  { %7003 = vmatpush3.bf16.msra.mxu1 %v10454_v55 }
 0x74e   :  { %7020 = vmatprep.subr.bf16.mxu1 %v10456_v18 }
 0x750   :  { %7005 = vmatmul.mubr.msk.bf16.vlgmr.msra.gmra.mrb[72].mxu1 %vm3778_vm0, %v3756_v40 }
 0x751   :  { %7008 = vmatprep.mubr.msk.bf16.mxu1 %vm3778_vm0, %v3757_v49 }
 0x758   :  { %7009 = vmatmul.mubr.msk.bf16.gmra.mrb[76].mxu1 %vm3778_vm0, %v3758_v54 }
 0x759   :  { %7012 = vmatprep.mubr.msk.bf16.mxu1 %vm3778_vm0, %v3759_v11 }
 0x760   :  { %7013 = vmatmul.mubr.msk.bf16.gmra.mrb[80].mxu1 %vm3778_vm0, %v3760_v12 }
 0x761   :  { %7016 = vmatprep.mubr.msk.bf16.mxu1 %vm3778_vm0, %v9419_v28 }
 0x768   :  { %7017 = vmatmul.mubr.msk.bf16.gmra.mrb[84].mxu1 %vm3778_vm0, %v3762_v42 }
 0x823   :  { %v7006_v29 = vpop.f32.mrb[72].mxu1 }
 0x824   :  { %v3837_v19 = vpop.f32.mrb[73].mxu1  ;;  %v3846_v15 = vadd.f32 %v7006_v29, %v6874_v14 }
 0x825   :  { %v7007_v7 = vpop.f32.mrb[74].mxu1  ;;  %v3838_v44 = vadd.f32 %v6874_v14, %v3837_v19 }
 0x826   :  { %v3849_v61 = vadd.f32 %v7007_v7, %v6874_v14  ;;  %v3840_v41 = vpop.f32.mrb[75].mxu1 }
 0x827   :  { %v3841_v45 = vadd.f32 %v6874_v14, %v3840_v41 }
 0x828   :  { %v3901_v60 = vpack.c.bf16 %v3849_v61, %v3846_v15 }
 0x829   :  { %v3900_v4 = vpack.c.bf16 %v3841_v45, %v3838_v44 }
 0x82b   :  { %v7010_v40 = vpop.f32.mrb[76].mxu1 }
 0x82c   :  { %v3853_v9 = vpop.f32.mrb[77].mxu1  ;;  %v3862_v28 = vadd.f32 %v7010_v40, %v6874_v14 }
 0x82d   :  { %v7011_v32 = vpop.f32.mrb[78].mxu1  ;;  %v3854_v1 = vadd.f32 %v6874_v14, %v3853_v9 }
 0x82e   :  { %v3865_v3 = vadd.f32 %v7011_v32, %v6874_v14  ;;  %v3856_v42 = vpop.f32.mrb[79].mxu1 }
 0x82f   :  { %v3857_v52 = vadd.f32 %v6874_v14, %v3856_v42 }
 0x830   :  { %v3903_v25 = vpack.c.bf16 %v3865_v3, %v3862_v28 }
 0x831   :  { %v3902_v62 = vpack.c.bf16 %v3857_v52, %v3854_v1 }
 0x833   :  { %v7014_v27 = vpop.f32.mrb[80].mxu1 }
 0x834   :  { %v3869_v53 = vpop.f32.mrb[81].mxu1  ;;  %v3878_v49 = vadd.f32 %v7014_v27, %v6874_v14 }
 0x835   :  { %v7015_v51 = vpop.f32.mrb[82].mxu1  ;;  %v3870_v21 = vadd.f32 %v6874_v14, %v3869_v53 }
 0x836   :  { %v3881_v34 = vadd.f32 %v7015_v51, %v6874_v14  ;;  %v3872_v35 = vpop.f32.mrb[83].mxu1 }
 0x837   :  { %v3873_v36 = vadd.f32 %v6874_v14, %v3872_v35 }
 0x838   :  { %v3905_v8 = vpack.c.bf16 %v3881_v34, %v3878_v49 }
 0x839   :  { %v3904_v22 = vpack.c.bf16 %v3873_v36, %v3870_v21 }
 0x83b   :  { %v7018_v13 = vpop.f32.mrb[84].mxu1 }
 0x83c   :  { %v3885_v46 = vpop.f32.mrb[85].mxu1  ;;  %v3894_v2 = vadd.f32 %v7018_v13, %v6874_v14 }
 0x83d   :  { %v7019_v56 = vpop.f32.mrb[86].mxu1  ;;  %v3886_v31 = vadd.f32 %v6874_v14, %v3885_v46 }
 0x83e   :  { %v3897_v54 = vadd.f32 %v7019_v56, %v6874_v14  ;;  %v3888_v57 = vpop.f32.mrb[87].mxu1 }
 0x83f   :  { %v3889_v10 = vadd.f32 %v6874_v14, %v3888_v57 }
 0x840   :  { %v3907_v47 = vpack.c.bf16 %v3897_v54, %v3894_v2 }
 0x841   :  { %v3906_v38 = vpack.c.bf16 %v3889_v10, %v3886_v31 }
 0x842   :  { %7818 = dma.done.wait [#allocation12 + $0x5], 256 }
 0x843   :  { %7819 = vsyncadd [#allocation12 + $0x5], 4294967040  ;;  %7021 = vmatpush3.bf16.msra.mxu1 %v10456_v18  ;;  %7024 = vmatprep.mubr.msk.bf16.mxu1 %vm3921_vm1, %v3900_v4  ;;  %v10457_v39 = vld [vmem:[#allocation62_spill] sm:$0xff]  ;;  %v6883_v37 = vld [vmem:[%s10273_s6] ss:$0 sm:$0xff] }
 0x844   :  { %7022 = vmatprep.subr.bf16.mxu1 %v10457_v39 }
 0x847   :  { %7023 = vmatpush3.bf16.msra.mxu1 %v10457_v39 }
 0x84a   :  { %7025 = vmatmul.mubr.msk.bf16.vlgmr.msra.gmra.mrb[88].mxu1 %vm3921_vm1, %v3901_v60 }
 0x84b   :  { %7028 = vmatprep.mubr.msk.bf16.mxu1 %vm3921_vm1, %v3902_v62 }
 0x852   :  { %7029 = vmatmul.mubr.msk.bf16.gmra.mrb[92].mxu1 %vm3921_vm1, %v3903_v25 }
 0x853   :  { %7032 = vmatprep.mubr.msk.bf16.mxu1 %vm3921_vm1, %v3904_v22 }
 0x85a   :  { %7033 = vmatmul.mubr.msk.bf16.gmra.mrb[96].mxu1 %vm3921_vm1, %v3905_v8 }
 0x85b   :  { %7036 = vmatprep.mubr.msk.bf16.mxu1 %vm3921_vm1, %v3906_v38 }
 0x862   :  { %7037 = vmatmul.mubr.msk.bf16.gmra.mrb[100].mxu1 %vm3921_vm1, %v3907_v47 }
 0x91d   :  { %v7026_v59 = vpop.f32.mrb[88].mxu1 }
 0x91e   :  { %v3989_v16 = vadd.f32 %v7026_v59, %v6883_v37  ;;  %v3980_v11 = vpop.f32.mrb[89].mxu1 }
 0x91f   :  { %v3981_v17 = vadd.f32 %v6883_v37, %v3980_v11  ;;  %v7027_v33 = vpop.f32.mrb[90].mxu1 }
 0x920   :  { %v3992_v48 = vadd.f32 %v7027_v33, %v6883_v37  ;;  %v3983_v50 = vpop.f32.mrb[91].mxu1  ;;  %v4045_v30 = vmax.f32 %v3989_v16, 0.0 }
 0x921   :  { %v3984_v20 = vadd.f32 %v6883_v37, %v3983_v50  ;;  %v4043_v0 = vmax.f32 %v3981_v17, 0.0 }
 0x922   :  { %v4046_v6 = vmax.f32 %v3992_v48, 0.0 }
 0x923   :  { %v4044_v12 = vmax.f32 %v3984_v20, 0.0 }
 0x924   :  { %v9461_v43 = vpack.c.bf16 %v4046_v6, %v4045_v30 }
 0x925   :  { %v9463_v58 = vpack.c.bf16 %v4044_v12, %v4043_v0  ;;  %v7030_v63 = vpop.f32.mrb[92].mxu1 }
 0x926   :  { %v4005_v55 = vadd.f32 %v7030_v63, %v6883_v37  ;;  %v3996_v14 = vpop.f32.mrb[93].mxu1 }
 0x927   :  { %v3997_v29 = vadd.f32 %v6883_v37, %v3996_v14  ;;  %v7031_v19 = vpop.f32.mrb[94].mxu1 }
 0x928   :  { %v4008_v7 = vadd.f32 %v7031_v19, %v6883_v37  ;;  %v3999_v15 = vpop.f32.mrb[95].mxu1  ;;  %v4049_v41 = vmax.f32 %v4005_v55, 0.0 }
 0x929   :  { %v4000_v61 = vadd.f32 %v6883_v37, %v3999_v15  ;;  %v4047_v45 = vmax.f32 %v3997_v29, 0.0 }
 0x92a   :  { %v4050_v44 = vmax.f32 %v4008_v7, 0.0 }
 0x92b   :  { %v4048_v60 = vmax.f32 %v4000_v61, 0.0 }
 0x92c   :  { %v4062_v4 = vpack.c.bf16 %v4050_v44, %v4049_v41 }
 0x92d   :  { %v4061_v40 = vpack.c.bf16 %v4048_v60, %v4047_v45  ;;  %v7034_v9 = vpop.f32.mrb[96].mxu1 }
 0x92e   :  { %v4021_v32 = vadd.f32 %v7034_v9, %v6883_v37  ;;  %v4012_v28 = vpop.f32.mrb[97].mxu1 }
 0x92f   :  { %v4013_v3 = vadd.f32 %v6883_v37, %v4012_v28  ;;  %v7035_v42 = vpop.f32.mrb[98].mxu1 }
 0x930   :  { %v4024_v1 = vadd.f32 %v7035_v42, %v6883_v37  ;;  %v4015_v52 = vpop.f32.mrb[99].mxu1  ;;  %v4053_v62 = vmax.f32 %v4021_v32, 0.0 }
 0x931   :  { %v4016_v25 = vadd.f32 %v6883_v37, %v4015_v52  ;;  %v4051_v53 = vmax.f32 %v4013_v3, 0.0 }
 0x932   :  { %v4054_v27 = vmax.f32 %v4024_v1, 0.0 }
 0x933   :  { %v4052_v51 = vmax.f32 %v4016_v25, 0.0 }
 0x934   :  { %v4064_v49 = vpack.c.bf16 %v4054_v27, %v4053_v62 }
 0x935   :  { %v4063_v34 = vpack.c.bf16 %v4052_v51, %v4051_v53  ;;  %v7038_v35 = vpop.f32.mrb[100].mxu1 }
 0x936   :  { %v4037_v21 = vadd.f32 %v7038_v35, %v6883_v37  ;;  %v4028_v36 = vpop.f32.mrb[101].mxu1 }
 0x937   :  { %v4029_v8 = vadd.f32 %v6883_v37, %v4028_v36  ;;  %v7039_v22 = vpop.f32.mrb[102].mxu1 }
 0x938   :  { %v4040_v13 = vadd.f32 %v7039_v22, %v6883_v37  ;;  %v4031_v46 = vpop.f32.mrb[103].mxu1  ;;  %v4057_v2 = vmax.f32 %v4037_v21, 0.0 }
 0x939   :  { %v4032_v56 = vadd.f32 %v6883_v37, %v4031_v46  ;;  %v4055_v57 = vmax.f32 %v4029_v8, 0.0 }
 0x93a   :  { %v4058_v54 = vmax.f32 %v4040_v13, 0.0 }
 0x93b   :  { %v4056_v31 = vmax.f32 %v4032_v56, 0.0 }
 0x93c   :  { %v4066_v10 = vpack.c.bf16 %v4058_v54, %v4057_v2 }
 0x93d   :  { %v4065_v47 = vpack.c.bf16 %v4056_v31, %v4055_v57 }
 0x93e   :  { %7820 = dma.done.wait [#allocation12 + $0x6], 1024 }
 0x93f   :  { %7821 = vsyncadd [#allocation12 + $0x6], 4294966272  ;;  %v7853_v38 = vmov 0   ;;  %v4071_v18 = vld [vmem:[#allocation8 + $0x8] sm:$0xff]  ;;  %v4070_v39 = vld [vmem:[#allocation8] sm:$0xff] }
 0x940   :  { %4146 = vmatprep.mubr.bf16.mxu0 %v7853_v38  ;;  %v4073_v59 = vld [vmem:[#allocation8 + $0x18] sm:$0xff]  ;;  %4114 = vmatprep.subr.bf16.mxu0 %v4071_v18  ;;  %v4072_v16 = vld [vmem:[#allocation8 + $0x10] sm:$0xff]  ;;  %v4075_v11 = vld [vmem:[#allocation8 + $0x28] sm:$0xff] }
 0x941   :  { %4115 = vmatpush1.bf16.msra.mxu0 %v4070_v39  ;;  %v4074_v37 = vld [vmem:[#allocation8 + $0x20] sm:$0xff]  ;;  %v4077_v17 = vld [vmem:[#allocation8 + $0x38] sm:$0xff]  ;;  %v4076_v33 = vld [vmem:[#allocation8 + $0x30] sm:$0xff] }
 0x942   :  { %4116 = vmatprep.subr.bf16.mxu0 %v4073_v59  ;;  %v4078_v48 = vld [vmem:[%s10274_s7] sm:$0x3] }
 0x943   :  { %v9479_v50 = vrot.slane %v4078_v48, %v10429_v24  ;;  %v9482_v20 = vrot.slane %v4078_v48, %v10431_v26 }
 0x945   :  { %4117 = vmatpush1.bf16.msra.mxu0 %v4072_v16 }
 0x946   :  { %4118 = vmatprep.subr.bf16.mxu0 %v4075_v11 }
 0x949   :  { %4119 = vmatpush1.bf16.msra.mxu0 %v4074_v37 }
 0x94a   :  { %4120 = vmatprep.subr.bf16.mxu0 %v4077_v17 }
 0x94d   :  { %4121 = vmatpush1.bf16.msra.mxu0 %v4076_v33 }
 0x950   :  { %6892 = vmatmul.mubr.msk.bf16.vlgmr.msra.gmra.mrb[184].mxu0 %vm3778_vm0, %v9463_v58 }
 0x951   :  { %4156 = vmatprep.mubr.bf16.mxu0 %v7853_v38 }
 0x958   :  { %6893 = vmatmul.mubr.msk.bf16.gmra.mrb[188].mxu0 %vm3778_vm0, %v9461_v43 }
 0x959   :  { %4166 = vmatprep.mubr.bf16.mxu0 %v7853_v38 }
 0x960   :  { %6894 = vmatmul.mubr.msk.bf16.gmra.mrb[192].mxu0 %vm3778_vm0, %v4061_v40 }
 0x961   :  { %4176 = vmatprep.mubr.bf16.mxu0 %v7853_v38 }
 0x968   :  { %6895 = vmatmul.mubr.msk.bf16.gmra.mrb[196].mxu0 %vm3778_vm0, %v4062_v4 }
 0x969   :  { %4186 = vmatprep.mubr.bf16.mxu0 %v7853_v38 }
 0x970   :  { %6896 = vmatmul.mubr.msk.bf16.gmra.mrb[200].mxu0 %vm3778_vm0, %v4063_v34 }
 0x971   :  { %4196 = vmatprep.mubr.bf16.mxu0 %v7853_v38 }
 0x978   :  { %6897 = vmatmul.mubr.msk.bf16.gmra.mrb[204].mxu0 %vm3778_vm0, %v4064_v49 }
 0x979   :  { %4206 = vmatprep.mubr.bf16.mxu0 %v7853_v38 }
 0x980   :  { %6898 = vmatmul.mubr.msk.bf16.gmra.mrb[208].mxu0 %vm3778_vm0, %v4065_v47 }
 0x981   :  { %4216 = vmatprep.mubr.bf16.mxu0 %v7853_v38 }
 0x988   :  { %6899 = vmatmul.mubr.msk.bf16.gmra.mrb[212].mxu0 %vm3778_vm0, %v4066_v10 }
 0xa23   :  { %v4148_v30 = vpop.f32.mrb[184].mxu0 }
 0xa24   :  { %v4149_v6 = vadd.f32 %v4148_v30, %v9479_v50  ;;  %v4150_v0 = vpop.f32.mrb[185].mxu0 }
 0xa25   :  { %v4151_v12 = vadd.f32 %v4150_v0, %v9482_v20  ;;  %v4152_v43 = vpop.f32.mrb[186].mxu0 }
 0xa26   :  { %v4153_v58 = vadd.f32 %v4152_v43, %v9479_v50  ;;  %v4154_v63 = vpop.f32.mrb[187].mxu0  ;;  %v4227_v14 = vmax.f32 %v4149_v6, 0.0 }
 0xa27   :  { %v4155_v55 = vadd.f32 %v4154_v63, %v9482_v20  ;;  %v4228_v19 = vmax.f32 %v4151_v12, 0.0 }
 0xa28   :  { %v4229_v29 = vmax.f32 %v4153_v58, 0.0 }
 0xa29   :  { %v4230_v7 = vmax.f32 %v4155_v55, 0.0 }
 0xa2a   :  { %v9488_v15 = vpack.c.bf16 %v4229_v29, %v4227_v14 }
 0xa2b   :  { %v9490_v61 = vpack.c.bf16 %v4230_v7, %v4228_v19  ;;  %v4158_v41 = vpop.f32.mrb[188].mxu0 }
 0xa2c   :  { %v4159_v44 = vadd.f32 %v4158_v41, %v9479_v50  ;;  %v4160_v45 = vpop.f32.mrb[189].mxu0 }
 0xa2d   :  { %v4161_v60 = vadd.f32 %v4160_v45, %v9482_v20  ;;  %v4162_v4 = vpop.f32.mrb[190].mxu0 }
 0xa2e   :  { %v4163_v40 = vadd.f32 %v4162_v4, %v9479_v50  ;;  %v4164_v9 = vpop.f32.mrb[191].mxu0  ;;  %v4231_v28 = vmax.f32 %v4159_v44, 0.0 }
 0xa2f   :  { %v4165_v32 = vadd.f32 %v4164_v9, %v9482_v20  ;;  %v4232_v42 = vmax.f32 %v4161_v60, 0.0 }
 0xa30   :  { %v4233_v3 = vmax.f32 %v4163_v40, 0.0 }
 0xa31   :  { %v4234_v1 = vmax.f32 %v4165_v32, 0.0 }
 0xa32   :  { %v9496_v52 = vpack.c.bf16 %v4233_v3, %v4231_v28 }
 0xa33   :  { %v9498_v25 = vpack.c.bf16 %v4234_v1, %v4232_v42  ;;  %v4168_v62 = vpop.f32.mrb[192].mxu0 }
 0xa34   :  { %v4169_v27 = vadd.f32 %v4168_v62, %v9479_v50  ;;  %v4170_v53 = vpop.f32.mrb[193].mxu0 }
 0xa35   :  { %v4171_v51 = vadd.f32 %v4170_v53, %v9482_v20  ;;  %v4172_v49 = vpop.f32.mrb[194].mxu0 }
 0xa36   :  { %v4173_v34 = vadd.f32 %v4172_v49, %v9479_v50  ;;  %v4174_v35 = vpop.f32.mrb[195].mxu0  ;;  %v4235_v36 = vmax.f32 %v4169_v27, 0.0 }
 0xa37   :  { %v4175_v21 = vadd.f32 %v4174_v35, %v9482_v20  ;;  %v4236_v22 = vmax.f32 %v4171_v51, 0.0 }
 0xa38   :  { %v4237_v8 = vmax.f32 %v4173_v34, 0.0 }
 0xa39   :  { %v4238_v13 = vmax.f32 %v4175_v21, 0.0 }
 0xa3a   :  { %v9504_v46 = vpack.c.bf16 %v4237_v8, %v4235_v36 }
 0xa3b   :  { %v9506_v56 = vpack.c.bf16 %v4238_v13, %v4236_v22  ;;  %v4178_v2 = vpop.f32.mrb[196].mxu0 }
 0xa3c   :  { %v4179_v54 = vadd.f32 %v4178_v2, %v9479_v50  ;;  %v4180_v57 = vpop.f32.mrb[197].mxu0 }
 0xa3d   :  { %v4181_v31 = vadd.f32 %v4180_v57, %v9482_v20  ;;  %v4182_v10 = vpop.f32.mrb[198].mxu0 }
 0xa3e   :  { %v4183_v47 = vadd.f32 %v4182_v10, %v9479_v50  ;;  %v4184_v38 = vpop.f32.mrb[199].mxu0  ;;  %v4239_v39 = vmax.f32 %v4179_v54, 0.0 }
 0xa3f   :  { %v4185_v18 = vadd.f32 %v4184_v38, %v9482_v20  ;;  %v4240_v16 = vmax.f32 %v4181_v31, 0.0 }
 0xa40   :  { %v4241_v59 = vmax.f32 %v4183_v47, 0.0 }
 0xa41   :  { %v4242_v11 = vmax.f32 %v4185_v18, 0.0 }
 0xa42   :  { %v9512_v37 = vpack.c.bf16 %v4241_v59, %v4239_v39 }
 0xa43   :  { %v9514_v17 = vpack.c.bf16 %v4242_v11, %v4240_v16  ;;  %v4188_v33 = vpop.f32.mrb[200].mxu0 }
 0xa44   :  { %v4189_v48 = vadd.f32 %v4188_v33, %v9479_v50  ;;  %v4190_v30 = vpop.f32.mrb[201].mxu0 }
 0xa45   :  { %v4191_v6 = vadd.f32 %v4190_v30, %v9482_v20  ;;  %v4192_v0 = vpop.f32.mrb[202].mxu0 }
 0xa46   :  { %v4193_v12 = vadd.f32 %v4192_v0, %v9479_v50  ;;  %v4194_v43 = vpop.f32.mrb[203].mxu0  ;;  %v4243_v63 = vmax.f32 %v4189_v48, 0.0 }
 0xa47   :  { %v4195_v58 = vadd.f32 %v4194_v43, %v9482_v20  ;;  %v4244_v14 = vmax.f32 %v4191_v6, 0.0 }
 0xa48   :  { %v4245_v55 = vmax.f32 %v4193_v12, 0.0 }
 0xa49   :  { %v4246_v29 = vmax.f32 %v4195_v58, 0.0 }
 0xa4a   :  { %v9520_v19 = vpack.c.bf16 %v4245_v55, %v4243_v63 }
 0xa4b   :  { %v9522_v7 = vpack.c.bf16 %v4246_v29, %v4244_v14  ;;  %v4198_v41 = vpop.f32.mrb[204].mxu0 }
 0xa4c   :  { %v4199_v44 = vadd.f32 %v4198_v41, %v9479_v50  ;;  %v4200_v45 = vpop.f32.mrb[205].mxu0 }
 0xa4d   :  { %v4201_v60 = vadd.f32 %v4200_v45, %v9482_v20  ;;  %v4202_v4 = vpop.f32.mrb[206].mxu0 }
 0xa4e   :  { %v4203_v40 = vadd.f32 %v4202_v4, %v9479_v50  ;;  %v4204_v9 = vpop.f32.mrb[207].mxu0  ;;  %v4247_v28 = vmax.f32 %v4199_v44, 0.0 }
 0xa4f   :  { %v4205_v32 = vadd.f32 %v4204_v9, %v9482_v20  ;;  %v4248_v42 = vmax.f32 %v4201_v60, 0.0 }
 0xa50   :  { %v4249_v3 = vmax.f32 %v4203_v40, 0.0 }
 0xa51   :  { %v4250_v1 = vmax.f32 %v4205_v32, 0.0 }
 0xa52   :  { %v9528_v62 = vpack.c.bf16 %v4249_v3, %v4247_v28 }
 0xa53   :  { %v9530_v27 = vpack.c.bf16 %v4250_v1, %v4248_v42  ;;  %v4208_v53 = vpop.f32.mrb[208].mxu0 }
 0xa54   :  { %v4209_v51 = vadd.f32 %v4208_v53, %v9479_v50  ;;  %v4210_v49 = vpop.f32.mrb[209].mxu0 }
 0xa55   :  { %v4211_v34 = vadd.f32 %v4210_v49, %v9482_v20  ;;  %v4212_v35 = vpop.f32.mrb[210].mxu0 }
 0xa56   :  { %v4213_v21 = vadd.f32 %v4212_v35, %v9479_v50  ;;  %v4214_v36 = vpop.f32.mrb[211].mxu0  ;;  %v4251_v22 = vmax.f32 %v4209_v51, 0.0 }
 0xa57   :  { %v4215_v8 = vadd.f32 %v4214_v36, %v9482_v20  ;;  %v4252_v2 = vmax.f32 %v4211_v34, 0.0 }
 0xa58   :  { %v4253_v13 = vmax.f32 %v4213_v21, 0.0 }
 0xa59   :  { %v4254_v54 = vmax.f32 %v4215_v8, 0.0 }
 0xa5a   :  { %v9536_v57 = vpack.c.bf16 %v4253_v13, %v4251_v22 }
 0xa5b   :  { %v9538_v31 = vpack.c.bf16 %v4254_v54, %v4252_v2  ;;  %v4218_v10 = vpop.f32.mrb[212].mxu0 }
 0xa5c   :  { %v4219_v47 = vadd.f32 %v4218_v10, %v9479_v50  ;;  %v4220_v38 = vpop.f32.mrb[213].mxu0 }
 0xa5d   :  { %v4221_v18 = vadd.f32 %v4220_v38, %v9482_v20  ;;  %v4222_v39 = vpop.f32.mrb[214].mxu0 }
 0xa5e   :  { %v4223_v59 = vadd.f32 %v4222_v39, %v9479_v50  ;;  %v4224_v16 = vpop.f32.mrb[215].mxu0  ;;  %v4255_v33 = vmax.f32 %v4219_v47, 0.0 }
 0xa5f   :  { %v4225_v11 = vadd.f32 %v4224_v16, %v9482_v20  ;;  %v4256_v30 = vmax.f32 %v4221_v18, 0.0 }
 0xa60   :  { %v4257_v48 = vmax.f32 %v4223_v59, 0.0 }
 0xa61   :  { %v4258_v6 = vmax.f32 %v4225_v11, 0.0 }
 0xa62   :  { %v9544_v0 = vpack.c.bf16 %v4257_v48, %v4255_v33 }
 0xa63   :  { %v9546_v12 = vpack.c.bf16 %v4258_v6, %v4256_v30 }
 0xa64   :  { %7822 = dma.done.wait [#allocation12 + $0x7], 8192 }
 0xa65   :  { %7823 = vsyncadd [#allocation12 + $0x7], 4294959104  ;;  %4396 = vmatprep.mubr.bf16.mxu1 %v9490_v61  ;;  %4509 = vmatprep.mubr.bf16.mxu0 %v9490_v61  ;;  %v4279_v43 = vld [vmem:[#allocation9 + $0x8] sm:$0xff]  ;;  %v4281_v58 = vld [vmem:[#allocation9 + $0x18] sm:$0xff] }
 0xa66   :  { %v4278_v50 = vld [vmem:[#allocation9] sm:$0xff]  ;;  %4364 = vmatprep.subr.bf16.mxu1 %v4279_v43  ;;  %4477 = vmatprep.subr.bf16.mxu0 %v4281_v58  ;;  %v4280_v20 = vld [vmem:[#allocation9 + $0x10] sm:$0xff]  ;;  %v4283_v63 = vld [vmem:[#allocation9 + $0x28] sm:$0xff] }
 0xa67   :  { %v4285_v55 = vld [vmem:[#allocation9 + $0x38] sm:$0xff]  ;;  %4365 = vmatpush1.bf16.msra.mxu1 %v4278_v50  ;;  %4478 = vmatpush1.bf16.msra.mxu0 %v4280_v20  ;;  %v4282_v14 = vld [vmem:[#allocation9 + $0x20] sm:$0xff]  ;;  %v4284_v29 = vld [vmem:[#allocation9 + $0x30] sm:$0xff] }
 0xa68   :  { %4366 = vmatprep.subr.bf16.mxu1 %v4283_v63  ;;  %4479 = vmatprep.subr.bf16.mxu0 %v4285_v55  ;;  %v4287_v41 = vld [vmem:[#allocation9 + $0x48] sm:$0xff]  ;;  %v4289_v44 = vld [vmem:[#allocation9 + $0x58] sm:$0xff]  ;;  %v4286_v61 = vld [vmem:[#allocation9 + $0x40] sm:$0xff] }
 0xa69   :  { %v4288_v45 = vld [vmem:[#allocation9 + $0x50] sm:$0xff]  ;;  %v4291_v60 = vld [vmem:[#allocation9 + $0x68] sm:$0xff]  ;;  %v4293_v4 = vld [vmem:[#allocation9 + $0x78] sm:$0xff] }
 0xa6a   :  { %v4290_v40 = vld [vmem:[#allocation9 + $0x60] sm:$0xff]  ;;  %v4292_v9 = vld [vmem:[#allocation9 + $0x70] sm:$0xff]  ;;  %v4295_v32 = vld [vmem:[#allocation9 + $0x88] sm:$0xff] }
 0xa6b   :  { %4367 = vmatpush1.bf16.msra.mxu1 %v4282_v14  ;;  %4480 = vmatpush1.bf16.msra.mxu0 %v4284_v29  ;;  %v4297_v28 = vld [vmem:[#allocation9 + $0x98] sm:$0xff]  ;;  %v4294_v3 = vld [vmem:[#allocation9 + $0x80] sm:$0xff]  ;;  %v4296_v42 = vld [vmem:[#allocation9 + $0x90] sm:$0xff] }
 0xa6c   :  { %4368 = vmatprep.subr.bf16.mxu1 %v4287_v41  ;;  %4481 = vmatprep.subr.bf16.mxu0 %v4289_v44  ;;  %v4299_v1 = vld [vmem:[#allocation9 + $0xa8] sm:$0xff]  ;;  %v4301_v53 = vld [vmem:[#allocation9 + $0xb8] sm:$0xff]  ;;  %v4298_v51 = vld [vmem:[#allocation9 + $0xa0] sm:$0xff] }
 0xa6d   :  { %v4300_v49 = vld [vmem:[#allocation9 + $0xb0] sm:$0xff]  ;;  %v4303_v34 = vld [vmem:[#allocation9 + $0xc8] sm:$0xff]  ;;  %v4305_v35 = vld [vmem:[#allocation9 + $0xd8] sm:$0xff] }
 0xa6e   :  { %v4302_v21 = vld [vmem:[#allocation9 + $0xc0] sm:$0xff]  ;;  %v4304_v36 = vld [vmem:[#allocation9 + $0xd0] sm:$0xff]  ;;  %v4307_v8 = vld [vmem:[#allocation9 + $0xe8] sm:$0xff] }
 0xa6f   :  { %4369 = vmatpush1.bf16.msra.mxu1 %v4286_v61  ;;  %4482 = vmatpush1.bf16.msra.mxu0 %v4288_v45  ;;  %v4309_v22 = vld [vmem:[#allocation9 + $0xf8] sm:$0xff]  ;;  %v4306_v13 = vld [vmem:[#allocation9 + $0xe0] sm:$0xff]  ;;  %v4308_v2 = vld [vmem:[#allocation9 + $0xf0] sm:$0xff] }
 0xa70   :  { %4370 = vmatprep.subr.bf16.mxu1 %v4291_v60  ;;  %4483 = vmatprep.subr.bf16.mxu0 %v4293_v4  ;;  %v4311_v54 = vld [vmem:[#allocation9 + $0x108] sm:$0xff]  ;;  %v4313_v10 = vld [vmem:[#allocation9 + $0x118] sm:$0xff]  ;;  %v4310_v47 = vld [vmem:[#allocation9 + $0x100] sm:$0xff] }
 0xa71   :  { %v4312_v38 = vld [vmem:[#allocation9 + $0x110] sm:$0xff]  ;;  %v4315_v18 = vld [vmem:[#allocation9 + $0x128] sm:$0xff]  ;;  %v4317_v39 = vld [vmem:[#allocation9 + $0x138] sm:$0xff] }
 0xa72   :  { %v4314_v59 = vld [vmem:[#allocation9 + $0x120] sm:$0xff]  ;;  %v4316_v16 = vld [vmem:[#allocation9 + $0x130] sm:$0xff]  ;;  %v4319_v11 = vld [vmem:[#allocation9 + $0x148] sm:$0xff] }
 0xa73   :  { %4371 = vmatpush1.bf16.msra.mxu1 %v4290_v40  ;;  %4484 = vmatpush1.bf16.msra.mxu0 %v4292_v9  ;;  %v4321_v33 = vld [vmem:[#allocation9 + $0x158] sm:$0xff]  ;;  %v4318_v48 = vld [vmem:[#allocation9 + $0x140] sm:$0xff]  ;;  %v4320_v30 = vld [vmem:[#allocation9 + $0x150] sm:$0xff] }
 0xa74   :  { %4372 = vmatprep.subr.bf16.mxu1 %v4295_v32  ;;  %4485 = vmatprep.subr.bf16.mxu0 %v4297_v28  ;;  %v4323_v6 = vld [vmem:[#allocation9 + $0x168] sm:$0xff]  ;;  %v4325_v43 = vld [vmem:[#allocation9 + $0x178] sm:$0xff]  ;;  %v4322_v58 = vld [vmem:[#allocation9 + $0x160] sm:$0xff] }
 0xa75   :  { %v4324_v50 = vld [vmem:[#allocation9 + $0x170] sm:$0xff]  ;;  %v4327_v20 = vld [vmem:[#allocation9 + $0x188] sm:$0xff]  ;;  %v4329_v63 = vld [vmem:[#allocation9 + $0x198] sm:$0xff] }
 0xa76   :  { %v4326_v55 = vld [vmem:[#allocation9 + $0x180] sm:$0xff]  ;;  %v4328_v14 = vld [vmem:[#allocation9 + $0x190] sm:$0xff]  ;;  %v4331_v29 = vld [vmem:[#allocation9 + $0x1a8] sm:$0xff] }
 0xa77   :  { %4373 = vmatpush1.bf16.msra.mxu1 %v4294_v3  ;;  %4486 = vmatpush1.bf16.msra.mxu0 %v4296_v42  ;;  %v4333_v41 = vld [vmem:[#allocation9 + $0x1b8] sm:$0xff]  ;;  %v4330_v44 = vld [vmem:[#allocation9 + $0x1a0] sm:$0xff]  ;;  %v4332_v61 = vld [vmem:[#allocation9 + $0x1b0] sm:$0xff] }
 0xa78   :  { %4374 = vmatprep.subr.bf16.mxu1 %v4299_v1  ;;  %4487 = vmatprep.subr.bf16.mxu0 %v4301_v53  ;;  %v4335_v45 = vld [vmem:[#allocation9 + $0x1c8] sm:$0xff]  ;;  %v4337_v60 = vld [vmem:[#allocation9 + $0x1d8] sm:$0xff]  ;;  %v4334_v4 = vld [vmem:[#allocation9 + $0x1c0] sm:$0xff] }
 0xa79   :  { %v4336_v40 = vld [vmem:[#allocation9 + $0x1d0] sm:$0xff]  ;;  %v4339_v9 = vld [vmem:[#allocation9 + $0x1e8] sm:$0xff]  ;;  %v4341_v32 = vld [vmem:[#allocation9 + $0x1f8] sm:$0xff] }
 0xa7a   :  { %v4338_v28 = vld [vmem:[#allocation9 + $0x1e0] sm:$0xff]  ;;  %v4340_v3 = vld [vmem:[#allocation9 + $0x1f0] sm:$0xff] }
 0xa7b   :  { %4375 = vmatpush1.bf16.msra.mxu1 %v4298_v51  ;;  %4488 = vmatpush1.bf16.msra.mxu0 %v4300_v49 }
 0xa7c   :  { %4376 = vmatprep.subr.bf16.mxu1 %v4303_v34  ;;  %4489 = vmatprep.subr.bf16.mxu0 %v4305_v35 }
 0xa7f   :  { %4377 = vmatpush1.bf16.msra.mxu1 %v4302_v21  ;;  %4490 = vmatpush1.bf16.msra.mxu0 %v4304_v36 }
 0xa80   :  { %4378 = vmatprep.subr.bf16.mxu1 %v4307_v8  ;;  %4491 = vmatprep.subr.bf16.mxu0 %v4309_v22 }
 0xa83   :  { %4379 = vmatpush1.bf16.msra.mxu1 %v4306_v13  ;;  %4492 = vmatpush1.bf16.msra.mxu0 %v4308_v2 }
 0xa84   :  { %4380 = vmatprep.subr.bf16.mxu1 %v4311_v54  ;;  %4493 = vmatprep.subr.bf16.mxu0 %v4313_v10 }
 0xa87   :  { %4381 = vmatpush1.bf16.msra.mxu1 %v4310_v47  ;;  %4494 = vmatpush1.bf16.msra.mxu0 %v4312_v38 }
 0xa88   :  { %4382 = vmatprep.subr.bf16.mxu1 %v4315_v18  ;;  %4495 = vmatprep.subr.bf16.mxu0 %v4317_v39 }
 0xa8b   :  { %4383 = vmatpush1.bf16.msra.mxu1 %v4314_v59  ;;  %4496 = vmatpush1.bf16.msra.mxu0 %v4316_v16 }
 0xa8c   :  { %4384 = vmatprep.subr.bf16.mxu1 %v4319_v11  ;;  %4497 = vmatprep.subr.bf16.mxu0 %v4321_v33 }
 0xa8f   :  { %4385 = vmatpush1.bf16.msra.mxu1 %v4318_v48  ;;  %4498 = vmatpush1.bf16.msra.mxu0 %v4320_v30 }
 0xa90   :  { %4386 = vmatprep.subr.bf16.mxu1 %v4323_v6  ;;  %4499 = vmatprep.subr.bf16.mxu0 %v4325_v43 }
 0xa93   :  { %4387 = vmatpush1.bf16.msra.mxu1 %v4322_v58  ;;  %4500 = vmatpush1.bf16.msra.mxu0 %v4324_v50 }
 0xa94   :  { %4388 = vmatprep.subr.bf16.mxu1 %v4327_v20  ;;  %4501 = vmatprep.subr.bf16.mxu0 %v4329_v63 }
 0xa97   :  { %4389 = vmatpush1.bf16.msra.mxu1 %v4326_v55  ;;  %4502 = vmatpush1.bf16.msra.mxu0 %v4328_v14 }
 0xa98   :  { %4390 = vmatprep.subr.bf16.mxu1 %v4331_v29  ;;  %4503 = vmatprep.subr.bf16.mxu0 %v4333_v41 }
 0xa9b   :  { %4391 = vmatpush1.bf16.msra.mxu1 %v4330_v44  ;;  %4504 = vmatpush1.bf16.msra.mxu0 %v4332_v61 }
 0xa9c   :  { %4392 = vmatprep.subr.bf16.mxu1 %v4335_v45  ;;  %4505 = vmatprep.subr.bf16.mxu0 %v4337_v60 }
 0xa9f   :  { %4393 = vmatpush1.bf16.msra.mxu1 %v4334_v4  ;;  %4506 = vmatpush1.bf16.msra.mxu0 %v4336_v40 }
 0xaa0   :  { %4394 = vmatprep.subr.bf16.mxu1 %v4339_v9  ;;  %4507 = vmatprep.subr.bf16.mxu0 %v4341_v32 }
 0xaa3   :  { %4395 = vmatpush1.bf16.msra.mxu1 %v4338_v28  ;;  %4508 = vmatpush1.bf16.msra.mxu0 %v4340_v3 }
 0xaa6   :  { %4397 = vmatmul.mubr.bf16.vlgmr.msra.gmra.mrb[104].mxu1 %v9488_v15  ;;  %4510 = vmatmul.mubr.bf16.vlgmr.msra.gmra.mrb[216].mxu0 %v9488_v15  ;;  %v4342_v15 = vld [vmem:[%s10275_s8] sm:$0xf] }
 0xaa7   :  { %4406 = vmatprep.mubr.bf16.mxu1 %v9498_v25  ;;  %4519 = vmatprep.mubr.bf16.mxu0 %v9498_v25  ;;  %v9587_v25 = vrot.slane %v4342_v15, %v10430_v5 }
 0xaae   :  { %4407 = vmatmul.mubr.bf16.gmra.mrb[108].mxu1 %v9496_v52  ;;  %4520 = vmatmul.mubr.bf16.gmra.mrb[220].mxu0 %v9496_v52  ;;  %v9584_v52 = vrot.slane %v4342_v15, %v10429_v24 }
 0xaaf   :  { %4416 = vmatprep.mubr.bf16.mxu1 %v9506_v56  ;;  %4529 = vmatprep.mubr.bf16.mxu0 %v9506_v56  ;;  %v9593_v56 = vrot.slane %v4342_v15, %v10432_v23 }
 0xab6   :  { %4417 = vmatmul.mubr.bf16.gmra.mrb[112].mxu1 %v9504_v46  ;;  %4530 = vmatmul.mubr.bf16.gmra.mrb[224].mxu0 %v9504_v46  ;;  %v9590_v46 = vrot.slane %v4342_v15, %v10431_v26 }
 0xab7   :  { %4426 = vmatprep.mubr.bf16.mxu1 %v9514_v17  ;;  %4539 = vmatprep.mubr.bf16.mxu0 %v9514_v17 }
 0xabe   :  { %4427 = vmatmul.mubr.bf16.gmra.mrb[116].mxu1 %v9512_v37  ;;  %4540 = vmatmul.mubr.bf16.gmra.mrb[228].mxu0 %v9512_v37 }
 0xabf   :  { %4436 = vmatprep.mubr.bf16.mxu1 %v9522_v7  ;;  %4549 = vmatprep.mubr.bf16.mxu0 %v9522_v7 }
 0xac6   :  { %4437 = vmatmul.mubr.bf16.gmra.mrb[120].mxu1 %v9520_v19  ;;  %4550 = vmatmul.mubr.bf16.gmra.mrb[232].mxu0 %v9520_v19 }
 0xac7   :  { %4446 = vmatprep.mubr.bf16.mxu1 %v9530_v27  ;;  %4559 = vmatprep.mubr.bf16.mxu0 %v9530_v27 }
 0xace   :  { %4447 = vmatmul.mubr.bf16.gmra.mrb[124].mxu1 %v9528_v62  ;;  %4560 = vmatmul.mubr.bf16.gmra.mrb[236].mxu0 %v9528_v62 }
 0xacf   :  { %4456 = vmatprep.mubr.bf16.mxu1 %v9538_v31  ;;  %4569 = vmatprep.mubr.bf16.mxu0 %v9538_v31 }
 0xad6   :  { %4457 = vmatmul.mubr.bf16.gmra.mrb[128].mxu1 %v9536_v57  ;;  %4570 = vmatmul.mubr.bf16.gmra.mrb[240].mxu0 %v9536_v57 }
 0xad7   :  { %4466 = vmatprep.mubr.bf16.mxu1 %v9546_v12  ;;  %4579 = vmatprep.mubr.bf16.mxu0 %v9546_v12 }
 0xade   :  { %4467 = vmatmul.mubr.bf16.gmra.mrb[132].mxu1 %v9544_v0  ;;  %4580 = vmatmul.mubr.bf16.gmra.mrb[244].mxu0 %v9544_v0 }
 0xb79   :  { %v4398_v37 = vpop.f32.mrb[104].mxu1  ;;  %v4511_v17 = vpop.f32.mrb[216].mxu0 }
 0xb7a   :  { %v4399_v19 = vadd.f32 %v4398_v37, %v9584_v52  ;;  %v4512_v7 = vadd.f32 %v4511_v17, %v9587_v25  ;;  %v4400_v62 = vpop.f32.mrb[105].mxu1  ;;  %v4513_v27 = vpop.f32.mrb[217].mxu0 }
 0xb7b   :  { %v4401_v57 = vadd.f32 %v4400_v62, %v9590_v46  ;;  %v4514_v31 = vadd.f32 %v4513_v27, %v9593_v56  ;;  %v4402_v0 = vpop.f32.mrb[106].mxu1  ;;  %v4515_v12 = vpop.f32.mrb[218].mxu0 }
 0xb7c   :  { %v4403_v42 = vadd.f32 %v4402_v0, %v9584_v52  ;;  %v4516_v1 = vadd.f32 %v4515_v12, %v9587_v25  ;;  %v4404_v53 = vpop.f32.mrb[107].mxu1  ;;  %v4517_v51 = vpop.f32.mrb[219].mxu0  ;;  %v4590_v35 = vmax.f32 %v4399_v19, 0.0  ;;  %v4592_v21 = vmax.f32 %v4512_v7, 0.0 }
 0xb7d   :  { %v4405_v49 = vadd.f32 %v4404_v53, %v9590_v46  ;;  %v4518_v34 = vadd.f32 %v4517_v51, %v9593_v56  ;;  %v4591_v22 = vmax.f32 %v4401_v57, 0.0  ;;  %v4593_v13 = vmax.f32 %v4514_v31, 0.0 }
 0xb7e   :  { %v4594_v36 = vmax.f32 %v4403_v42, 0.0  ;;  %v4596_v8 = vmax.f32 %v4516_v1, 0.0 }
 0xb7f   :  { %v4595_v2 = vmax.f32 %v4405_v49, 0.0  ;;  %v4597_v54 = vmax.f32 %v4518_v34, 0.0 }
 0xb80   :  { %v9603_v10 = vpack.c.bf16 %v4594_v36, %v4590_v35  ;;  %v9605_v47 = vpack.c.bf16 %v4596_v8, %v4592_v21 }
 0xb81   :  { %v9607_v38 = vpack.c.bf16 %v4595_v2, %v4591_v22  ;;  %v9609_v18 = vpack.c.bf16 %v4597_v54, %v4593_v13  ;;  %v4408_v39 = vpop.f32.mrb[108].mxu1  ;;  %v4521_v59 = vpop.f32.mrb[220].mxu0 }
 0xb82   :  { %v4409_v16 = vadd.f32 %v4408_v39, %v9584_v52  ;;  %v4522_v11 = vadd.f32 %v4521_v59, %v9587_v25  ;;  %v4410_v33 = vpop.f32.mrb[109].mxu1  ;;  %v4523_v48 = vpop.f32.mrb[221].mxu0 }
 0xb83   :  { %v4411_v30 = vadd.f32 %v4410_v33, %v9590_v46  ;;  %v4524_v6 = vadd.f32 %v4523_v48, %v9593_v56  ;;  %v4412_v43 = vpop.f32.mrb[110].mxu1  ;;  %v4525_v58 = vpop.f32.mrb[222].mxu0 }
 0xb84   :  { %v4413_v50 = vadd.f32 %v4412_v43, %v9584_v52  ;;  %v4526_v20 = vadd.f32 %v4525_v58, %v9587_v25  ;;  %v4414_v63 = vpop.f32.mrb[111].mxu1  ;;  %v4527_v55 = vpop.f32.mrb[223].mxu0  ;;  %v4598_v41 = vmax.f32 %v4409_v16, 0.0  ;;  %v4600_v44 = vmax.f32 %v4522_v11, 0.0 }
 0xb85   :  { %v4415_v14 = vadd.f32 %v4414_v63, %v9590_v46  ;;  %v4528_v29 = vadd.f32 %v4527_v55, %v9593_v56  ;;  %v4599_v60 = vmax.f32 %v4411_v30, 0.0  ;;  %v4601_v4 = vmax.f32 %v4524_v6, 0.0 }
 0xb86   :  { %v4602_v61 = vmax.f32 %v4413_v50, 0.0  ;;  %v4604_v45 = vmax.f32 %v4526_v20, 0.0 }
 0xb87   :  { %v4603_v40 = vmax.f32 %v4415_v14, 0.0  ;;  %v4605_v9 = vmax.f32 %v4528_v29, 0.0 }
 0xb88   :  { %v9619_v32 = vpack.c.bf16 %v4602_v61, %v4598_v41  ;;  %v9621_v28 = vpack.c.bf16 %v4604_v45, %v4600_v44 }
 0xb89   :  { %v9623_v3 = vpack.c.bf16 %v4603_v40, %v4599_v60  ;;  %v9625_v15 = vpack.c.bf16 %v4605_v9, %v4601_v4  ;;  %v4418_v37 = vpop.f32.mrb[112].mxu1  ;;  %v4531_v17 = vpop.f32.mrb[224].mxu0 }
 0xb8a   :  { %v4419_v19 = vadd.f32 %v4418_v37, %v9584_v52  ;;  %v4532_v7 = vadd.f32 %v4531_v17, %v9587_v25  ;;  %v4420_v62 = vpop.f32.mrb[113].mxu1  ;;  %v4533_v27 = vpop.f32.mrb[225].mxu0 }
 0xb8b   :  { %v4421_v57 = vadd.f32 %v4420_v62, %v9590_v46  ;;  %v4534_v31 = vadd.f32 %v4533_v27, %v9593_v56  ;;  %v4422_v0 = vpop.f32.mrb[114].mxu1  ;;  %v4535_v12 = vpop.f32.mrb[226].mxu0 }
 0xb8c   :  { %v4423_v42 = vadd.f32 %v4422_v0, %v9584_v52  ;;  %v4536_v1 = vadd.f32 %v4535_v12, %v9587_v25  ;;  %v4424_v53 = vpop.f32.mrb[115].mxu1  ;;  %v4537_v51 = vpop.f32.mrb[227].mxu0  ;;  %v4606_v35 = vmax.f32 %v4419_v19, 0.0  ;;  %v4608_v21 = vmax.f32 %v4532_v7, 0.0 }
 0xb8d   :  { %v4425_v49 = vadd.f32 %v4424_v53, %v9590_v46  ;;  %v4538_v34 = vadd.f32 %v4537_v51, %v9593_v56  ;;  %v4607_v22 = vmax.f32 %v4421_v57, 0.0  ;;  %v4609_v13 = vmax.f32 %v4534_v31, 0.0 }
 0xb8e   :  { %v4610_v36 = vmax.f32 %v4423_v42, 0.0  ;;  %v4612_v8 = vmax.f32 %v4536_v1, 0.0 }
 0xb8f   :  { %v4611_v2 = vmax.f32 %v4425_v49, 0.0  ;;  %v4613_v54 = vmax.f32 %v4538_v34, 0.0 }
 0xb90   :  { %v9635_v39 = vpack.c.bf16 %v4610_v36, %v4606_v35  ;;  %v9637_v59 = vpack.c.bf16 %v4612_v8, %v4608_v21 }
 0xb91   :  { %v9639_v16 = vpack.c.bf16 %v4611_v2, %v4607_v22  ;;  %v9641_v11 = vpack.c.bf16 %v4613_v54, %v4609_v13  ;;  %v4428_v33 = vpop.f32.mrb[116].mxu1  ;;  %v4541_v48 = vpop.f32.mrb[228].mxu0 }
 0xb92   :  { %v4429_v30 = vadd.f32 %v4428_v33, %v9584_v52  ;;  %v4542_v6 = vadd.f32 %v4541_v48, %v9587_v25  ;;  %v4430_v43 = vpop.f32.mrb[117].mxu1  ;;  %v4543_v58 = vpop.f32.mrb[229].mxu0 }
 0xb93   :  { %v4431_v50 = vadd.f32 %v4430_v43, %v9590_v46  ;;  %v4544_v20 = vadd.f32 %v4543_v58, %v9593_v56  ;;  %v4432_v63 = vpop.f32.mrb[118].mxu1  ;;  %v4545_v55 = vpop.f32.mrb[230].mxu0 }
 0xb94   :  { %v4433_v14 = vadd.f32 %v4432_v63, %v9584_v52  ;;  %v4546_v29 = vadd.f32 %v4545_v55, %v9587_v25  ;;  %v4434_v41 = vpop.f32.mrb[119].mxu1  ;;  %v4547_v44 = vpop.f32.mrb[231].mxu0  ;;  %v4614_v60 = vmax.f32 %v4429_v30, 0.0  ;;  %v4616_v4 = vmax.f32 %v4542_v6, 0.0 }
 0xb95   :  { %v4435_v61 = vadd.f32 %v4434_v41, %v9590_v46  ;;  %v4548_v45 = vadd.f32 %v4547_v44, %v9593_v56  ;;  %v4615_v37 = vmax.f32 %v4431_v50, 0.0  ;;  %v4617_v17 = vmax.f32 %v4544_v20, 0.0 }
 0xb96   :  { %v4618_v40 = vmax.f32 %v4433_v14, 0.0  ;;  %v4620_v9 = vmax.f32 %v4546_v29, 0.0 }
 0xb97   :  { %v4619_v19 = vmax.f32 %v4435_v61, 0.0  ;;  %v4621_v7 = vmax.f32 %v4548_v45, 0.0 }
 0xb98   :  { %v9651_v62 = vpack.c.bf16 %v4618_v40, %v4614_v60  ;;  %v9653_v27 = vpack.c.bf16 %v4620_v9, %v4616_v4 }
 0xb99   :  { %v9655_v57 = vpack.c.bf16 %v4619_v19, %v4615_v37  ;;  %v9657_v31 = vpack.c.bf16 %v4621_v7, %v4617_v17  ;;  %v4438_v0 = vpop.f32.mrb[120].mxu1  ;;  %v4551_v12 = vpop.f32.mrb[232].mxu0 }
 0xb9a   :  { %v4439_v42 = vadd.f32 %v4438_v0, %v9584_v52  ;;  %v4552_v1 = vadd.f32 %v4551_v12, %v9587_v25  ;;  %v4440_v53 = vpop.f32.mrb[121].mxu1  ;;  %v4553_v51 = vpop.f32.mrb[233].mxu0 }
 0xb9b   :  { %v4441_v49 = vadd.f32 %v4440_v53, %v9590_v46  ;;  %v4554_v34 = vadd.f32 %v4553_v51, %v9593_v56  ;;  %v4442_v35 = vpop.f32.mrb[122].mxu1  ;;  %v4555_v21 = vpop.f32.mrb[234].mxu0 }
 0xb9c   :  { %v4443_v36 = vadd.f32 %v4442_v35, %v9584_v52  ;;  %v4556_v8 = vadd.f32 %v4555_v21, %v9587_v25  ;;  %v4444_v22 = vpop.f32.mrb[123].mxu1  ;;  %v4557_v13 = vpop.f32.mrb[235].mxu0  ;;  %v4622_v33 = vmax.f32 %v4439_v42, 0.0  ;;  %v4624_v48 = vmax.f32 %v4552_v1, 0.0 }
 0xb9d   :  { %v4445_v2 = vadd.f32 %v4444_v22, %v9590_v46  ;;  %v4558_v54 = vadd.f32 %v4557_v13, %v9593_v56  ;;  %v4623_v43 = vmax.f32 %v4441_v49, 0.0  ;;  %v4625_v58 = vmax.f32 %v4554_v34, 0.0 }
 0xb9e   :  { %v4626_v30 = vmax.f32 %v4443_v36, 0.0  ;;  %v4628_v6 = vmax.f32 %v4556_v8, 0.0 }
 0xb9f   :  { %v4627_v50 = vmax.f32 %v4445_v2, 0.0  ;;  %v4629_v20 = vmax.f32 %v4558_v54, 0.0 }
 0xba0   :  { %v9667_v63 = vpack.c.bf16 %v4626_v30, %v4622_v33  ;;  %v9669_v55 = vpack.c.bf16 %v4628_v6, %v4624_v48 }
 0xba1   :  { %v9671_v14 = vpack.c.bf16 %v4627_v50, %v4623_v43  ;;  %v9673_v29 = vpack.c.bf16 %v4629_v20, %v4625_v58  ;;  %v4448_v41 = vpop.f32.mrb[124].mxu1  ;;  %v4561_v44 = vpop.f32.mrb[236].mxu0 }
 0xba2   :  { %v4449_v61 = vadd.f32 %v4448_v41, %v9584_v52  ;;  %v4562_v45 = vadd.f32 %v4561_v44, %v9587_v25  ;;  %v4450_v60 = vpop.f32.mrb[125].mxu1  ;;  %v4563_v4 = vpop.f32.mrb[237].mxu0 }
 0xba3   :  { %v4451_v40 = vadd.f32 %v4450_v60, %v9590_v46  ;;  %v4564_v9 = vadd.f32 %v4563_v4, %v9593_v56  ;;  %v4452_v37 = vpop.f32.mrb[126].mxu1  ;;  %v4565_v17 = vpop.f32.mrb[238].mxu0 }
 0xba4   :  { %v4453_v19 = vadd.f32 %v4452_v37, %v9584_v52  ;;  %v4566_v7 = vadd.f32 %v4565_v17, %v9587_v25  ;;  %v4454_v0 = vpop.f32.mrb[127].mxu1  ;;  %v4567_v12 = vpop.f32.mrb[239].mxu0  ;;  %v4630_v53 = vmax.f32 %v4449_v61, 0.0  ;;  %v4632_v51 = vmax.f32 %v4562_v45, 0.0 }
 0xba5   :  { %v4455_v42 = vadd.f32 %v4454_v0, %v9590_v46  ;;  %v4568_v1 = vadd.f32 %v4567_v12, %v9593_v56  ;;  %v4631_v35 = vmax.f32 %v4451_v40, 0.0  ;;  %v4633_v21 = vmax.f32 %v4564_v9, 0.0 }
 0xba6   :  { %v4634_v49 = vmax.f32 %v4453_v19, 0.0  ;;  %v4636_v34 = vmax.f32 %v4566_v7, 0.0 }
 0xba7   :  { %v4635_v36 = vmax.f32 %v4455_v42, 0.0  ;;  %v4637_v8 = vmax.f32 %v4568_v1, 0.0 }
 0xba8   :  { %v9683_v22 = vpack.c.bf16 %v4634_v49, %v4630_v53  ;;  %v9685_v13 = vpack.c.bf16 %v4636_v34, %v4632_v51 }
 0xba9   :  { %v9687_v2 = vpack.c.bf16 %v4635_v36, %v4631_v35  ;;  %v9689_v54 = vpack.c.bf16 %v4637_v8, %v4633_v21  ;;  %v4458_v33 = vpop.f32.mrb[128].mxu1  ;;  %v4571_v48 = vpop.f32.mrb[240].mxu0 }
 0xbaa   :  { %v4459_v30 = vadd.f32 %v4458_v33, %v9584_v52  ;;  %v4572_v6 = vadd.f32 %v4571_v48, %v9587_v25  ;;  %v4460_v43 = vpop.f32.mrb[129].mxu1  ;;  %v4573_v58 = vpop.f32.mrb[241].mxu0 }
 0xbab   :  { %v4461_v50 = vadd.f32 %v4460_v43, %v9590_v46  ;;  %v4574_v20 = vadd.f32 %v4573_v58, %v9593_v56  ;;  %v4462_v41 = vpop.f32.mrb[130].mxu1  ;;  %v4575_v44 = vpop.f32.mrb[242].mxu0 }
 0xbac   :  { %v4463_v61 = vadd.f32 %v4462_v41, %v9584_v52  ;;  %v4576_v45 = vadd.f32 %v4575_v44, %v9587_v25  ;;  %v4464_v60 = vpop.f32.mrb[131].mxu1  ;;  %v4577_v4 = vpop.f32.mrb[243].mxu0  ;;  %v4638_v37 = vmax.f32 %v4459_v30, 0.0  ;;  %v4640_v17 = vmax.f32 %v4572_v6, 0.0 }
 0xbad   :  { %v4465_v40 = vadd.f32 %v4464_v60, %v9590_v46  ;;  %v4578_v9 = vadd.f32 %v4577_v4, %v9593_v56  ;;  %v4639_v0 = vmax.f32 %v4461_v50, 0.0  ;;  %v4641_v12 = vmax.f32 %v4574_v20, 0.0 }
 0xbae   :  { %v4642_v19 = vmax.f32 %v4463_v61, 0.0  ;;  %v4644_v7 = vmax.f32 %v4576_v45, 0.0 }
 0xbaf   :  { %v4643_v42 = vmax.f32 %v4465_v40, 0.0  ;;  %v4645_v1 = vmax.f32 %v4578_v9, 0.0 }
 0xbb0   :  { %v9699_v53 = vpack.c.bf16 %v4642_v19, %v4638_v37  ;;  %v9701_v51 = vpack.c.bf16 %v4644_v7, %v4640_v17 }
 0xbb1   :  { %v9703_v49 = vpack.c.bf16 %v4643_v42, %v4639_v0  ;;  %v9705_v34 = vpack.c.bf16 %v4645_v1, %v4641_v12  ;;  %v4468_v35 = vpop.f32.mrb[132].mxu1  ;;  %v4581_v21 = vpop.f32.mrb[244].mxu0 }
 0xbb2   :  { %v4469_v36 = vadd.f32 %v4468_v35, %v9584_v52  ;;  %v4582_v8 = vadd.f32 %v4581_v21, %v9587_v25  ;;  %v4470_v33 = vpop.f32.mrb[133].mxu1  ;;  %v4583_v48 = vpop.f32.mrb[245].mxu0 }
 0xbb3   :  { %v4471_v30 = vadd.f32 %v4470_v33, %v9590_v46  ;;  %v4584_v6 = vadd.f32 %v4583_v48, %v9593_v56  ;;  %v4472_v43 = vpop.f32.mrb[134].mxu1  ;;  %v4585_v58 = vpop.f32.mrb[246].mxu0 }
 0xbb4   :  { %v4473_v50 = vadd.f32 %v4472_v43, %v9584_v52  ;;  %v4586_v20 = vadd.f32 %v4585_v58, %v9587_v25  ;;  %v4474_v41 = vpop.f32.mrb[135].mxu1  ;;  %v4587_v44 = vpop.f32.mrb[247].mxu0  ;;  %v4646_v60 = vmax.f32 %v4469_v36, 0.0  ;;  %v4648_v4 = vmax.f32 %v4582_v8, 0.0 }
 0xbb5   :  { %v4475_v61 = vadd.f32 %v4474_v41, %v9590_v46  ;;  %v4588_v45 = vadd.f32 %v4587_v44, %v9593_v56  ;;  %v4647_v37 = vmax.f32 %v4471_v30, 0.0  ;;  %v4649_v17 = vmax.f32 %v4584_v6, 0.0 }
 0xbb6   :  { %v4650_v40 = vmax.f32 %v4473_v50, 0.0  ;;  %v4652_v9 = vmax.f32 %v4586_v20, 0.0 }
 0xbb7   :  { %v4651_v19 = vmax.f32 %v4475_v61, 0.0  ;;  %v4653_v7 = vmax.f32 %v4588_v45, 0.0 }
 0xbb8   :  { %v9715_v0 = vpack.c.bf16 %v4650_v40, %v4646_v60  ;;  %v9717_v12 = vpack.c.bf16 %v4652_v9, %v4648_v4 }
 0xbb9   :  { %v9719_v52 = vpack.c.bf16 %v4651_v19, %v4647_v37  ;;  %v9721_v25 = vpack.c.bf16 %v4653_v7, %v4649_v17 }
 0xbba   :  { %7824 = dma.done.wait [#allocation12 + $0x8], 32768 }
 0xbbb   :  { %7825 = vsyncadd [#allocation12 + $0x8], 4294934528  ;;  %5019 = vmatprep.mubr.bf16.mxu1 %v9607_v38  ;;  %5245 = vmatprep.mubr.bf16.mxu0 %v9607_v38  ;;  %v4690_v46 = vld [vmem:[#allocation10 + $0x8] sm:$0xff]  ;;  %v4692_v56 = vld [vmem:[#allocation10 + $0x18] sm:$0xff] }
 0xbbc   :  { %v4689_v42 = vld [vmem:[#allocation10] sm:$0xff]  ;;  %4987 = vmatprep.subr.bf16.mxu1 %v4690_v46  ;;  %5213 = vmatprep.subr.bf16.mxu0 %v4692_v56  ;;  %v4691_v1 = vld [vmem:[#allocation10 + $0x10] sm:$0xff]  ;;  %v4698_v35 = vld [vmem:[#allocation10 + $0x48] sm:$0xff] }
 0xbbd   :  { %v4700_v21 = vld [vmem:[#allocation10 + $0x58] sm:$0xff]  ;;  %4988 = vmatpush1.bf16.msra.mxu1 %v4689_v42  ;;  %5214 = vmatpush1.bf16.msra.mxu0 %v4691_v1  ;;  %v4697_v36 = vld [vmem:[#allocation10 + $0x40] sm:$0xff]  ;;  %v4699_v8 = vld [vmem:[#allocation10 + $0x50] sm:$0xff] }
 0xbbe   :  { %4989 = vmatprep.subr.bf16.mxu1 %v4698_v35  ;;  %5215 = vmatprep.subr.bf16.mxu0 %v4700_v21  ;;  %v4706_v33 = vld [vmem:[#allocation10 + $0x88] sm:$0xff]  ;;  %v4708_v48 = vld [vmem:[#allocation10 + $0x98] sm:$0xff]  ;;  %v4705_v30 = vld [vmem:[#allocation10 + $0x80] sm:$0xff] }
 0xbbf   :  { %v4707_v6 = vld [vmem:[#allocation10 + $0x90] sm:$0xff]  ;;  %v4714_v43 = vld [vmem:[#allocation10 + $0xc8] sm:$0xff]  ;;  %v4716_v58 = vld [vmem:[#allocation10 + $0xd8] sm:$0xff] }
 0xbc0   :  { %v4713_v50 = vld [vmem:[#allocation10 + $0xc0] sm:$0xff]  ;;  %v4715_v20 = vld [vmem:[#allocation10 + $0xd0] sm:$0xff]  ;;  %v4722_v41 = vld [vmem:[#allocation10 + $0x108] sm:$0xff] }
 0xbc1   :  { %4990 = vmatpush1.bf16.msra.mxu1 %v4697_v36  ;;  %5216 = vmatpush1.bf16.msra.mxu0 %v4699_v8  ;;  %v4724_v44 = vld [vmem:[#allocation10 + $0x118] sm:$0xff]  ;;  %v4721_v61 = vld [vmem:[#allocation10 + $0x100] sm:$0xff]  ;;  %v4723_v45 = vld [vmem:[#allocation10 + $0x110] sm:$0xff] }
 0xbc2   :  { %4991 = vmatprep.subr.bf16.mxu1 %v4706_v33  ;;  %5217 = vmatprep.subr.bf16.mxu0 %v4708_v48  ;;  %v4730_v60 = vld [vmem:[#allocation10 + $0x148] sm:$0xff]  ;;  %v4732_v4 = vld [vmem:[#allocation10 + $0x158] sm:$0xff]  ;;  %v4729_v40 = vld [vmem:[#allocation10 + $0x140] sm:$0xff] }
 0xbc3   :  { %v4731_v9 = vld [vmem:[#allocation10 + $0x150] sm:$0xff]  ;;  %v4738_v37 = vld [vmem:[#allocation10 + $0x188] sm:$0xff]  ;;  %v4740_v17 = vld [vmem:[#allocation10 + $0x198] sm:$0xff] }
 0xbc4   :  { %v4737_v19 = vld [vmem:[#allocation10 + $0x180] sm:$0xff]  ;;  %v4739_v7 = vld [vmem:[#allocation10 + $0x190] sm:$0xff]  ;;  %v4746_v46 = vld [vmem:[#allocation10 + $0x1c8] sm:$0xff] }
 0xbc5   :  { %4992 = vmatpush1.bf16.msra.mxu1 %v4705_v30  ;;  %5218 = vmatpush1.bf16.msra.mxu0 %v4707_v6  ;;  %v4748_v56 = vld [vmem:[#allocation10 + $0x1d8] sm:$0xff]  ;;  %v4745_v42 = vld [vmem:[#allocation10 + $0x1c0] sm:$0xff]  ;;  %v4747_v1 = vld [vmem:[#allocation10 + $0x1d0] sm:$0xff] }
 0xbc6   :  { %4993 = vmatprep.subr.bf16.mxu1 %v4714_v43  ;;  %5219 = vmatprep.subr.bf16.mxu0 %v4716_v58  ;;  %v4754_v35 = vld [vmem:[#allocation10 + $0x208] sm:$0xff]  ;;  %v4756_v21 = vld [vmem:[#allocation10 + $0x218] sm:$0xff]  ;;  %v4753_v36 = vld [vmem:[#allocation10 + $0x200] sm:$0xff] }
 0xbc7   :  { %v4755_v8 = vld [vmem:[#allocation10 + $0x210] sm:$0xff]  ;;  %v4762_v33 = vld [vmem:[#allocation10 + $0x248] sm:$0xff]  ;;  %v4764_v48 = vld [vmem:[#allocation10 + $0x258] sm:$0xff] }
 0xbc8   :  { %v4761_v30 = vld [vmem:[#allocation10 + $0x240] sm:$0xff]  ;;  %v4763_v6 = vld [vmem:[#allocation10 + $0x250] sm:$0xff]  ;;  %v4770_v43 = vld [vmem:[#allocation10 + $0x288] sm:$0xff] }
 0xbc9   :  { %4994 = vmatpush1.bf16.msra.mxu1 %v4713_v50  ;;  %5220 = vmatpush1.bf16.msra.mxu0 %v4715_v20  ;;  %v4772_v58 = vld [vmem:[#allocation10 + $0x298] sm:$0xff]  ;;  %v4769_v50 = vld [vmem:[#allocation10 + $0x280] sm:$0xff]  ;;  %v4771_v20 = vld [vmem:[#allocation10 + $0x290] sm:$0xff] }
 0xbca   :  { %4995 = vmatprep.subr.bf16.mxu1 %v4722_v41  ;;  %5221 = vmatprep.subr.bf16.mxu0 %v4724_v44  ;;  %v4778_v41 = vld [vmem:[#allocation10 + $0x2c8] sm:$0xff]  ;;  %v4780_v44 = vld [vmem:[#allocation10 + $0x2d8] sm:$0xff] }
 0xbcd   :  { %4996 = vmatpush1.bf16.msra.mxu1 %v4721_v61  ;;  %5222 = vmatpush1.bf16.msra.mxu0 %v4723_v45  ;;  %v4777_v61 = vld [vmem:[#allocation10 + $0x2c0] sm:$0xff]  ;;  %v4779_v45 = vld [vmem:[#allocation10 + $0x2d0] sm:$0xff] }
 0xbce   :  { %4997 = vmatprep.subr.bf16.mxu1 %v4730_v60  ;;  %5223 = vmatprep.subr.bf16.mxu0 %v4732_v4  ;;  %v4786_v60 = vld [vmem:[#allocation10 + $0x308] sm:$0xff]  ;;  %v4788_v4 = vld [vmem:[#allocation10 + $0x318] sm:$0xff] }
 0xbd1   :  { %4998 = vmatpush1.bf16.msra.mxu1 %v4729_v40  ;;  %5224 = vmatpush1.bf16.msra.mxu0 %v4731_v9  ;;  %v4785_v40 = vld [vmem:[#allocation10 + $0x300] sm:$0xff]  ;;  %v4787_v9 = vld [vmem:[#allocation10 + $0x310] sm:$0xff] }
 0xbd2   :  { %4999 = vmatprep.subr.bf16.mxu1 %v4738_v37  ;;  %5225 = vmatprep.subr.bf16.mxu0 %v4740_v17  ;;  %v4794_v37 = vld [vmem:[#allocation10 + $0x348] sm:$0xff]  ;;  %v4796_v17 = vld [vmem:[#allocation10 + $0x358] sm:$0xff] }
 0xbd5   :  { %5000 = vmatpush1.bf16.msra.mxu1 %v4737_v19  ;;  %5226 = vmatpush1.bf16.msra.mxu0 %v4739_v7  ;;  %v4793_v19 = vld [vmem:[#allocation10 + $0x340] sm:$0xff]  ;;  %v4795_v7 = vld [vmem:[#allocation10 + $0x350] sm:$0xff] }
 0xbd6   :  { %5001 = vmatprep.subr.bf16.mxu1 %v4746_v46  ;;  %5227 = vmatprep.subr.bf16.mxu0 %v4748_v56  ;;  %v4802_v46 = vld [vmem:[#allocation10 + $0x388] sm:$0xff]  ;;  %v4804_v56 = vld [vmem:[#allocation10 + $0x398] sm:$0xff] }
 0xbd9   :  { %5002 = vmatpush1.bf16.msra.mxu1 %v4745_v42  ;;  %5228 = vmatpush1.bf16.msra.mxu0 %v4747_v1  ;;  %v4801_v42 = vld [vmem:[#allocation10 + $0x380] sm:$0xff]  ;;  %v4803_v1 = vld [vmem:[#allocation10 + $0x390] sm:$0xff] }
 0xbda   :  { %5003 = vmatprep.subr.bf16.mxu1 %v4754_v35  ;;  %5229 = vmatprep.subr.bf16.mxu0 %v4756_v21  ;;  %v4810_v35 = vld [vmem:[#allocation10 + $0x3c8] sm:$0xff]  ;;  %v4812_v21 = vld [vmem:[#allocation10 + $0x3d8] sm:$0xff] }
 0xbdd   :  { %5004 = vmatpush1.bf16.msra.mxu1 %v4753_v36  ;;  %5230 = vmatpush1.bf16.msra.mxu0 %v4755_v8  ;;  %v4809_v36 = vld [vmem:[#allocation10 + $0x3c0] sm:$0xff]  ;;  %v4811_v8 = vld [vmem:[#allocation10 + $0x3d0] sm:$0xff] }
 0xbde   :  { %5005 = vmatprep.subr.bf16.mxu1 %v4762_v33  ;;  %5231 = vmatprep.subr.bf16.mxu0 %v4764_v48  ;;  %v4818_v33 = vld [vmem:[#allocation10 + $0x408] sm:$0xff]  ;;  %v4820_v48 = vld [vmem:[#allocation10 + $0x418] sm:$0xff] }
 0xbe1   :  { %5006 = vmatpush1.bf16.msra.mxu1 %v4761_v30  ;;  %5232 = vmatpush1.bf16.msra.mxu0 %v4763_v6  ;;  %v4817_v30 = vld [vmem:[#allocation10 + $0x400] sm:$0xff]  ;;  %v4819_v6 = vld [vmem:[#allocation10 + $0x410] sm:$0xff] }
 0xbe2   :  { %5007 = vmatprep.subr.bf16.mxu1 %v4770_v43  ;;  %5233 = vmatprep.subr.bf16.mxu0 %v4772_v58  ;;  %v4826_v43 = vld [vmem:[#allocation10 + $0x448] sm:$0xff]  ;;  %v4828_v58 = vld [vmem:[#allocation10 + $0x458] sm:$0xff] }
 0xbe5   :  { %5008 = vmatpush1.bf16.msra.mxu1 %v4769_v50  ;;  %5234 = vmatpush1.bf16.msra.mxu0 %v4771_v20  ;;  %v4825_v50 = vld [vmem:[#allocation10 + $0x440] sm:$0xff]  ;;  %v4827_v20 = vld [vmem:[#allocation10 + $0x450] sm:$0xff] }
 0xbe6   :  { %5009 = vmatprep.subr.bf16.mxu1 %v4778_v41  ;;  %5235 = vmatprep.subr.bf16.mxu0 %v4780_v44  ;;  %v4834_v41 = vld [vmem:[#allocation10 + $0x488] sm:$0xff]  ;;  %v4836_v44 = vld [vmem:[#allocation10 + $0x498] sm:$0xff] }
 0xbe9   :  { %5010 = vmatpush1.bf16.msra.mxu1 %v4777_v61  ;;  %5236 = vmatpush1.bf16.msra.mxu0 %v4779_v45  ;;  %v4833_v61 = vld [vmem:[#allocation10 + $0x480] sm:$0xff]  ;;  %v4835_v45 = vld [vmem:[#allocation10 + $0x490] sm:$0xff] }
 0xbea   :  { %5011 = vmatprep.subr.bf16.mxu1 %v4786_v60  ;;  %5237 = vmatprep.subr.bf16.mxu0 %v4788_v4  ;;  %v4842_v60 = vld [vmem:[#allocation10 + $0x4c8] sm:$0xff]  ;;  %v4844_v4 = vld [vmem:[#allocation10 + $0x4d8] sm:$0xff] }
 0xbed   :  { %5012 = vmatpush1.bf16.msra.mxu1 %v4785_v40  ;;  %5238 = vmatpush1.bf16.msra.mxu0 %v4787_v9  ;;  %v4841_v40 = vld [vmem:[#allocation10 + $0x4c0] sm:$0xff]  ;;  %v4843_v9 = vld [vmem:[#allocation10 + $0x4d0] sm:$0xff] }
 0xbee   :  { %5013 = vmatprep.subr.bf16.mxu1 %v4794_v37  ;;  %5239 = vmatprep.subr.bf16.mxu0 %v4796_v17  ;;  %v4850_v37 = vld [vmem:[#allocation10 + $0x508] sm:$0xff]  ;;  %v4852_v17 = vld [vmem:[#allocation10 + $0x518] sm:$0xff] }
 0xbf1   :  { %5014 = vmatpush1.bf16.msra.mxu1 %v4793_v19  ;;  %5240 = vmatpush1.bf16.msra.mxu0 %v4795_v7  ;;  %v4849_v19 = vld [vmem:[#allocation10 + $0x500] sm:$0xff]  ;;  %v4851_v7 = vld [vmem:[#allocation10 + $0x510] sm:$0xff] }
 0xbf2   :  { %5015 = vmatprep.subr.bf16.mxu1 %v4802_v46  ;;  %5241 = vmatprep.subr.bf16.mxu0 %v4804_v56  ;;  %v4858_v46 = vld [vmem:[#allocation10 + $0x548] sm:$0xff]  ;;  %v4860_v56 = vld [vmem:[#allocation10 + $0x558] sm:$0xff] }
 0xbf5   :  { %5016 = vmatpush1.bf16.msra.mxu1 %v4801_v42  ;;  %5242 = vmatpush1.bf16.msra.mxu0 %v4803_v1  ;;  %v4857_v42 = vld [vmem:[#allocation10 + $0x540] sm:$0xff]  ;;  %v4859_v1 = vld [vmem:[#allocation10 + $0x550] sm:$0xff] }
 0xbf6   :  { %5017 = vmatprep.subr.bf16.mxu1 %v4810_v35  ;;  %5243 = vmatprep.subr.bf16.mxu0 %v4812_v21  ;;  %v4866_v35 = vld [vmem:[#allocation10 + $0x588] sm:$0xff]  ;;  %v4868_v21 = vld [vmem:[#allocation10 + $0x598] sm:$0xff] }
 0xbf9   :  { %5018 = vmatpush1.bf16.msra.mxu1 %v4809_v36  ;;  %5244 = vmatpush1.bf16.msra.mxu0 %v4811_v8  ;;  %v4865_v36 = vld [vmem:[#allocation10 + $0x580] sm:$0xff]  ;;  %v4867_v8 = vld [vmem:[#allocation10 + $0x590] sm:$0xff] }
 0xbfa   :  { %5100 = vmatprep.subr.bf16.mxu1 %v4818_v33  ;;  %5326 = vmatprep.subr.bf16.mxu0 %v4820_v48  ;;  %v4874_v33 = vld [vmem:[#allocation10 + $0x5c8] sm:$0xff]  ;;  %v4876_v48 = vld [vmem:[#allocation10 + $0x5d8] sm:$0xff] }
 0xbfc   :  { %5020 = vmatmul.mubr.bf16.vlgmr.msra.gmra.mrb[136].mxu1 %v9603_v10  ;;  %5246 = vmatmul.mubr.bf16.vlgmr.msra.gmra.mrb[248].mxu0 %v9603_v10 }
 0xbfd   :  { %5101 = vmatpush1.bf16.msra.mxu1 %v4817_v30  ;;  %5327 = vmatpush1.bf16.msra.mxu0 %v4819_v6  ;;  %v4873_v30 = vld [vmem:[#allocation10 + $0x5c0] sm:$0xff]  ;;  %v4875_v6 = vld [vmem:[#allocation10 + $0x5d0] sm:$0xff] }
 0xbfe   :  { %5102 = vmatprep.subr.bf16.mxu1 %v4826_v43  ;;  %5328 = vmatprep.subr.bf16.mxu0 %v4828_v58  ;;  %v4882_v43 = vld [vmem:[#allocation10 + $0x608] sm:$0xff]  ;;  %v4884_v58 = vld [vmem:[#allocation10 + $0x618] sm:$0xff] }
 0xbff   :  { %5029 = vmatprep.mubr.bf16.mxu1 %v9623_v3  ;;  %5255 = vmatprep.mubr.bf16.mxu0 %v9623_v3 }
 0xc01   :  { %5103 = vmatpush1.bf16.msra.mxu1 %v4825_v50  ;;  %5329 = vmatpush1.bf16.msra.mxu0 %v4827_v20  ;;  %v4881_v50 = vld [vmem:[#allocation10 + $0x600] sm:$0xff]  ;;  %v4883_v20 = vld [vmem:[#allocation10 + $0x610] sm:$0xff] }
 0xc02   :  { %5104 = vmatprep.subr.bf16.mxu1 %v4834_v41  ;;  %5330 = vmatprep.subr.bf16.mxu0 %v4836_v44  ;;  %v4890_v41 = vld [vmem:[#allocation10 + $0x648] sm:$0xff]  ;;  %v4892_v44 = vld [vmem:[#allocation10 + $0x658] sm:$0xff] }
 0xc04   :  { %5030 = vmatmul.mubr.bf16.gmra.mrb[140].mxu1 %v9619_v32  ;;  %5256 = vmatmul.mubr.bf16.gmra.mrb[252].mxu0 %v9619_v32 }
 0xc05   :  { %5105 = vmatpush1.bf16.msra.mxu1 %v4833_v61  ;;  %5331 = vmatpush1.bf16.msra.mxu0 %v4835_v45  ;;  %v4889_v61 = vld [vmem:[#allocation10 + $0x640] sm:$0xff]  ;;  %v4891_v45 = vld [vmem:[#allocation10 + $0x650] sm:$0xff] }
 0xc06   :  { %5106 = vmatprep.subr.bf16.mxu1 %v4842_v60  ;;  %5332 = vmatprep.subr.bf16.mxu0 %v4844_v4  ;;  %v4898_v60 = vld [vmem:[#allocation10 + $0x688] sm:$0xff]  ;;  %v4900_v4 = vld [vmem:[#allocation10 + $0x698] sm:$0xff] }
 0xc07   :  { %5039 = vmatprep.mubr.bf16.mxu1 %v9639_v16  ;;  %5265 = vmatprep.mubr.bf16.mxu0 %v9639_v16 }
 0xc09   :  { %5107 = vmatpush1.bf16.msra.mxu1 %v4841_v40  ;;  %5333 = vmatpush1.bf16.msra.mxu0 %v4843_v9  ;;  %v4897_v40 = vld [vmem:[#allocation10 + $0x680] sm:$0xff]  ;;  %v4899_v9 = vld [vmem:[#allocation10 + $0x690] sm:$0xff] }
 0xc0a   :  { %5108 = vmatprep.subr.bf16.mxu1 %v4850_v37  ;;  %5334 = vmatprep.subr.bf16.mxu0 %v4852_v17  ;;  %v4906_v37 = vld [vmem:[#allocation10 + $0x6c8] sm:$0xff]  ;;  %v4908_v17 = vld [vmem:[#allocation10 + $0x6d8] sm:$0xff] }
 0xc0c   :  { %5040 = vmatmul.mubr.bf16.gmra.mrb[144].mxu1 %v9635_v39  ;;  %5266 = vmatmul.mubr.bf16.gmra.mrb[0].mxu0 %v9635_v39 }
 0xc0d   :  { %5109 = vmatpush1.bf16.msra.mxu1 %v4849_v19  ;;  %5335 = vmatpush1.bf16.msra.mxu0 %v4851_v7  ;;  %v4905_v19 = vld [vmem:[#allocation10 + $0x6c0] sm:$0xff]  ;;  %v4907_v7 = vld [vmem:[#allocation10 + $0x6d0] sm:$0xff] }
 0xc0e   :  { %5110 = vmatprep.subr.bf16.mxu1 %v4858_v46  ;;  %5336 = vmatprep.subr.bf16.mxu0 %v4860_v56  ;;  %v4914_v46 = vld [vmem:[#allocation10 + $0x708] sm:$0xff]  ;;  %v4916_v56 = vld [vmem:[#allocation10 + $0x718] sm:$0xff] }
 0xc0f   :  { %5049 = vmatprep.mubr.bf16.mxu1 %v9655_v57  ;;  %5275 = vmatprep.mubr.bf16.mxu0 %v9655_v57 }
 0xc11   :  { %5111 = vmatpush1.bf16.msra.mxu1 %v4857_v42  ;;  %5337 = vmatpush1.bf16.msra.mxu0 %v4859_v1  ;;  %v4913_v42 = vld [vmem:[#allocation10 + $0x700] sm:$0xff]  ;;  %v4915_v1 = vld [vmem:[#allocation10 + $0x710] sm:$0xff] }
 0xc12   :  { %5112 = vmatprep.subr.bf16.mxu1 %v4866_v35  ;;  %5338 = vmatprep.subr.bf16.mxu0 %v4868_v21  ;;  %v4922_v35 = vld [vmem:[#allocation10 + $0x748] sm:$0xff]  ;;  %v4924_v21 = vld [vmem:[#allocation10 + $0x758] sm:$0xff] }
 0xc14   :  { %5050 = vmatmul.mubr.bf16.gmra.mrb[148].mxu1 %v9651_v62  ;;  %5276 = vmatmul.mubr.bf16.gmra.mrb[4].mxu0 %v9651_v62 }
 0xc15   :  { %5113 = vmatpush1.bf16.msra.mxu1 %v4865_v36  ;;  %5339 = vmatpush1.bf16.msra.mxu0 %v4867_v8  ;;  %v4921_v36 = vld [vmem:[#allocation10 + $0x740] sm:$0xff]  ;;  %v4923_v8 = vld [vmem:[#allocation10 + $0x750] sm:$0xff] }
 0xc16   :  { %5114 = vmatprep.subr.bf16.mxu1 %v4874_v33  ;;  %5340 = vmatprep.subr.bf16.mxu0 %v4876_v48  ;;  %v4930_v33 = vld [vmem:[#allocation10 + $0x788] sm:$0xff]  ;;  %v4932_v48 = vld [vmem:[#allocation10 + $0x798] sm:$0xff] }
 0xc17   :  { %5059 = vmatprep.mubr.bf16.mxu1 %v9671_v14  ;;  %5285 = vmatprep.mubr.bf16.mxu0 %v9671_v14 }
 0xc19   :  { %5115 = vmatpush1.bf16.msra.mxu1 %v4873_v30  ;;  %5341 = vmatpush1.bf16.msra.mxu0 %v4875_v6  ;;  %v4929_v30 = vld [vmem:[#allocation10 + $0x780] sm:$0xff]  ;;  %v4931_v6 = vld [vmem:[#allocation10 + $0x790] sm:$0xff] }
 0xc1a   :  { %5116 = vmatprep.subr.bf16.mxu1 %v4882_v43  ;;  %5342 = vmatprep.subr.bf16.mxu0 %v4884_v58  ;;  %v4938_v43 = vld [vmem:[#allocation10 + $0x7c8] sm:$0xff]  ;;  %v4940_v58 = vld [vmem:[#allocation10 + $0x7d8] sm:$0xff] }
 0xc1c   :  { %5060 = vmatmul.mubr.bf16.gmra.mrb[152].mxu1 %v9667_v63  ;;  %5286 = vmatmul.mubr.bf16.gmra.mrb[8].mxu0 %v9667_v63 }
 0xc1d   :  { %5117 = vmatpush1.bf16.msra.mxu1 %v4881_v50  ;;  %5343 = vmatpush1.bf16.msra.mxu0 %v4883_v20  ;;  %v4937_v50 = vld [vmem:[#allocation10 + $0x7c0] sm:$0xff]  ;;  %v4939_v20 = vld [vmem:[#allocation10 + $0x7d0] sm:$0xff] }
 0xc1e   :  { %5118 = vmatprep.subr.bf16.mxu1 %v4890_v41  ;;  %5344 = vmatprep.subr.bf16.mxu0 %v4892_v44  ;;  %v4694_v41 = vld [vmem:[#allocation10 + $0x28] sm:$0xff]  ;;  %v4696_v44 = vld [vmem:[#allocation10 + $0x38] sm:$0xff] }
 0xc1f   :  { %5069 = vmatprep.mubr.bf16.mxu1 %v9687_v2  ;;  %5295 = vmatprep.mubr.bf16.mxu0 %v9687_v2 }
 0xc21   :  { %5119 = vmatpush1.bf16.msra.mxu1 %v4889_v61  ;;  %5345 = vmatpush1.bf16.msra.mxu0 %v4891_v45  ;;  %v4693_v61 = vld [vmem:[#allocation10 + $0x20] sm:$0xff]  ;;  %v4695_v45 = vld [vmem:[#allocation10 + $0x30] sm:$0xff] }
 0xc22   :  { %5120 = vmatprep.subr.bf16.mxu1 %v4898_v60  ;;  %5346 = vmatprep.subr.bf16.mxu0 %v4900_v4  ;;  %v4702_v60 = vld [vmem:[#allocation10 + $0x68] sm:$0xff]  ;;  %v4704_v4 = vld [vmem:[#allocation10 + $0x78] sm:$0xff] }
 0xc24   :  { %5070 = vmatmul.mubr.bf16.gmra.mrb[156].mxu1 %v9683_v22  ;;  %5296 = vmatmul.mubr.bf16.gmra.mrb[12].mxu0 %v9683_v22 }
 0xc25   :  { %5121 = vmatpush1.bf16.msra.mxu1 %v4897_v40  ;;  %5347 = vmatpush1.bf16.msra.mxu0 %v4899_v9  ;;  %v4701_v40 = vld [vmem:[#allocation10 + $0x60] sm:$0xff]  ;;  %v4703_v9 = vld [vmem:[#allocation10 + $0x70] sm:$0xff] }
 0xc26   :  { %5122 = vmatprep.subr.bf16.mxu1 %v4906_v37  ;;  %5348 = vmatprep.subr.bf16.mxu0 %v4908_v17  ;;  %v4710_v37 = vld [vmem:[#allocation10 + $0xa8] sm:$0xff]  ;;  %v4712_v17 = vld [vmem:[#allocation10 + $0xb8] sm:$0xff] }
 0xc27   :  { %5079 = vmatprep.mubr.bf16.mxu1 %v9703_v49  ;;  %5305 = vmatprep.mubr.bf16.mxu0 %v9703_v49 }
 0xc29   :  { %5123 = vmatpush1.bf16.msra.mxu1 %v4905_v19  ;;  %5349 = vmatpush1.bf16.msra.mxu0 %v4907_v7  ;;  %v4709_v19 = vld [vmem:[#allocation10 + $0xa0] sm:$0xff]  ;;  %v4711_v7 = vld [vmem:[#allocation10 + $0xb0] sm:$0xff] }
 0xc2a   :  { %5124 = vmatprep.subr.bf16.mxu1 %v4914_v46  ;;  %5350 = vmatprep.subr.bf16.mxu0 %v4916_v56  ;;  %v4718_v46 = vld [vmem:[#allocation10 + $0xe8] sm:$0xff]  ;;  %v4720_v56 = vld [vmem:[#allocation10 + $0xf8] sm:$0xff] }
 0xc2c   :  { %5080 = vmatmul.mubr.bf16.gmra.mrb[160].mxu1 %v9699_v53  ;;  %5306 = vmatmul.mubr.bf16.gmra.mrb[16].mxu0 %v9699_v53 }
 0xc2d   :  { %5125 = vmatpush1.bf16.msra.mxu1 %v4913_v42  ;;  %5351 = vmatpush1.bf16.msra.mxu0 %v4915_v1  ;;  %v4717_v42 = vld [vmem:[#allocation10 + $0xe0] sm:$0xff]  ;;  %v4719_v1 = vld [vmem:[#allocation10 + $0xf0] sm:$0xff] }
 0xc2e   :  { %5126 = vmatprep.subr.bf16.mxu1 %v4922_v35  ;;  %5352 = vmatprep.subr.bf16.mxu0 %v4924_v21  ;;  %v4726_v35 = vld [vmem:[#allocation10 + $0x128] sm:$0xff]  ;;  %v4728_v21 = vld [vmem:[#allocation10 + $0x138] sm:$0xff] }
 0xc2f   :  { %5089 = vmatprep.mubr.bf16.mxu1 %v9719_v52  ;;  %5315 = vmatprep.mubr.bf16.mxu0 %v9719_v52 }
 0xc31   :  { %5127 = vmatpush1.bf16.msra.mxu1 %v4921_v36  ;;  %5353 = vmatpush1.bf16.msra.mxu0 %v4923_v8  ;;  %v4725_v36 = vld [vmem:[#allocation10 + $0x120] sm:$0xff]  ;;  %v4727_v8 = vld [vmem:[#allocation10 + $0x130] sm:$0xff] }
 0xc32   :  { %5128 = vmatprep.subr.bf16.mxu1 %v4930_v33  ;;  %5354 = vmatprep.subr.bf16.mxu0 %v4932_v48  ;;  %v4734_v33 = vld [vmem:[#allocation10 + $0x168] sm:$0xff]  ;;  %v4736_v48 = vld [vmem:[#allocation10 + $0x178] sm:$0xff] }
 0xc34   :  { %5090 = vmatmul.mubr.bf16.gmra.mrb[164].mxu1 %v9715_v0  ;;  %5316 = vmatmul.mubr.bf16.gmra.mrb[20].mxu0 %v9715_v0 }
 0xc35   :  { %5129 = vmatpush1.bf16.msra.mxu1 %v4929_v30  ;;  %5355 = vmatpush1.bf16.msra.mxu0 %v4931_v6  ;;  %v4733_v30 = vld [vmem:[#allocation10 + $0x160] sm:$0xff]  ;;  %v4735_v6 = vld [vmem:[#allocation10 + $0x170] sm:$0xff] }
 0xc36   :  { %5130 = vmatprep.subr.bf16.mxu1 %v4938_v43  ;;  %5356 = vmatprep.subr.bf16.mxu0 %v4940_v58  ;;  %v4742_v43 = vld [vmem:[#allocation10 + $0x1a8] sm:$0xff]  ;;  %v4744_v58 = vld [vmem:[#allocation10 + $0x1b8] sm:$0xff] }
 0xc37   :  { %5132 = vmatprep.mubr.bf16.mxu1 %v9609_v18  ;;  %5358 = vmatprep.mubr.bf16.mxu0 %v9609_v18 }
 0xc39   :  { %5131 = vmatpush1.bf16.msra.mxu1 %v4937_v50  ;;  %5357 = vmatpush1.bf16.msra.mxu0 %v4939_v20  ;;  %v4741_v50 = vld [vmem:[#allocation10 + $0x1a0] sm:$0xff]  ;;  %v4743_v20 = vld [vmem:[#allocation10 + $0x1b0] sm:$0xff] }
 0xc3a   :  { %5439 = vmatprep.subr.bf16.mxu1 %v4694_v41  ;;  %5665 = vmatprep.subr.bf16.mxu0 %v4696_v44  ;;  %v4750_v41 = vld [vmem:[#allocation10 + $0x1e8] sm:$0xff]  ;;  %v4752_v44 = vld [vmem:[#allocation10 + $0x1f8] sm:$0xff] }
 0xc3c   :  { %5133 = vmatmul.mubr.bf16.vlgmr.msra.gmra.mrb[136].mxu1 %v9605_v47  ;;  %5359 = vmatmul.mubr.bf16.vlgmr.msra.gmra.mrb[248].mxu0 %v9605_v47 }
 0xc3d   :  { %5440 = vmatpush1.bf16.msra.mxu1 %v4693_v61  ;;  %5666 = vmatpush1.bf16.msra.mxu0 %v4695_v45  ;;  %v4749_v61 = vld [vmem:[#allocation10 + $0x1e0] sm:$0xff]  ;;  %v4751_v45 = vld [vmem:[#allocation10 + $0x1f0] sm:$0xff] }
 0xc3e   :  { %5441 = vmatprep.subr.bf16.mxu1 %v4702_v60  ;;  %5667 = vmatprep.subr.bf16.mxu0 %v4704_v4  ;;  %v4758_v60 = vld [vmem:[#allocation10 + $0x228] sm:$0xff]  ;;  %v4760_v4 = vld [vmem:[#allocation10 + $0x238] sm:$0xff] }
 0xc3f   :  { %5142 = vmatprep.mubr.bf16.mxu1 %v9625_v15  ;;  %5368 = vmatprep.mubr.bf16.mxu0 %v9625_v15 }
 0xc41   :  { %5442 = vmatpush1.bf16.msra.mxu1 %v4701_v40  ;;  %5668 = vmatpush1.bf16.msra.mxu0 %v4703_v9  ;;  %v4757_v40 = vld [vmem:[#allocation10 + $0x220] sm:$0xff]  ;;  %v4759_v9 = vld [vmem:[#allocation10 + $0x230] sm:$0xff] }
 0xc42   :  { %5443 = vmatprep.subr.bf16.mxu1 %v4710_v37  ;;  %5669 = vmatprep.subr.bf16.mxu0 %v4712_v17  ;;  %v4766_v37 = vld [vmem:[#allocation10 + $0x268] sm:$0xff]  ;;  %v4768_v17 = vld [vmem:[#allocation10 + $0x278] sm:$0xff] }
 0xc44   :  { %5143 = vmatmul.mubr.bf16.gmra.mrb[140].mxu1 %v9621_v28  ;;  %5369 = vmatmul.mubr.bf16.gmra.mrb[252].mxu0 %v9621_v28 }
 0xc45   :  { %5444 = vmatpush1.bf16.msra.mxu1 %v4709_v19  ;;  %5670 = vmatpush1.bf16.msra.mxu0 %v4711_v7  ;;  %v4765_v19 = vld [vmem:[#allocation10 + $0x260] sm:$0xff]  ;;  %v4767_v7 = vld [vmem:[#allocation10 + $0x270] sm:$0xff] }
 0xc46   :  { %5445 = vmatprep.subr.bf16.mxu1 %v4718_v46  ;;  %5671 = vmatprep.subr.bf16.mxu0 %v4720_v56  ;;  %v4774_v46 = vld [vmem:[#allocation10 + $0x2a8] sm:$0xff]  ;;  %v4776_v56 = vld [vmem:[#allocation10 + $0x2b8] sm:$0xff] }
 0xc47   :  { %5152 = vmatprep.mubr.bf16.mxu1 %v9641_v11  ;;  %5378 = vmatprep.mubr.bf16.mxu0 %v9641_v11 }
 0xc49   :  { %5446 = vmatpush1.bf16.msra.mxu1 %v4717_v42  ;;  %5672 = vmatpush1.bf16.msra.mxu0 %v4719_v1  ;;  %v4773_v42 = vld [vmem:[#allocation10 + $0x2a0] sm:$0xff]  ;;  %v4775_v1 = vld [vmem:[#allocation10 + $0x2b0] sm:$0xff] }
 0xc4a   :  { %5447 = vmatprep.subr.bf16.mxu1 %v4726_v35  ;;  %5673 = vmatprep.subr.bf16.mxu0 %v4728_v21  ;;  %v4782_v35 = vld [vmem:[#allocation10 + $0x2e8] sm:$0xff]  ;;  %v4784_v21 = vld [vmem:[#allocation10 + $0x2f8] sm:$0xff] }
 0xc4c   :  { %5153 = vmatmul.mubr.bf16.gmra.mrb[144].mxu1 %v9637_v59  ;;  %5379 = vmatmul.mubr.bf16.gmra.mrb[0].mxu0 %v9637_v59 }
 0xc4d   :  { %5448 = vmatpush1.bf16.msra.mxu1 %v4725_v36  ;;  %5674 = vmatpush1.bf16.msra.mxu0 %v4727_v8  ;;  %v4781_v36 = vld [vmem:[#allocation10 + $0x2e0] sm:$0xff]  ;;  %v4783_v8 = vld [vmem:[#allocation10 + $0x2f0] sm:$0xff] }
 0xc4e   :  { %5449 = vmatprep.subr.bf16.mxu1 %v4734_v33  ;;  %5675 = vmatprep.subr.bf16.mxu0 %v4736_v48  ;;  %v4790_v33 = vld [vmem:[#allocation10 + $0x328] sm:$0xff]  ;;  %v4792_v48 = vld [vmem:[#allocation10 + $0x338] sm:$0xff] }
 0xc4f   :  { %5162 = vmatprep.mubr.bf16.mxu1 %v9657_v31  ;;  %5388 = vmatprep.mubr.bf16.mxu0 %v9657_v31 }
 0xc51   :  { %5450 = vmatpush1.bf16.msra.mxu1 %v4733_v30  ;;  %5676 = vmatpush1.bf16.msra.mxu0 %v4735_v6  ;;  %v4789_v30 = vld [vmem:[#allocation10 + $0x320] sm:$0xff]  ;;  %v4791_v6 = vld [vmem:[#allocation10 + $0x330] sm:$0xff] }
 0xc52   :  { %5451 = vmatprep.subr.bf16.mxu1 %v4742_v43  ;;  %5677 = vmatprep.subr.bf16.mxu0 %v4744_v58  ;;  %v4798_v43 = vld [vmem:[#allocation10 + $0x368] sm:$0xff]  ;;  %v4800_v58 = vld [vmem:[#allocation10 + $0x378] sm:$0xff] }
 0xc54   :  { %5163 = vmatmul.mubr.bf16.gmra.mrb[148].mxu1 %v9653_v27  ;;  %5389 = vmatmul.mubr.bf16.gmra.mrb[4].mxu0 %v9653_v27 }
 0xc55   :  { %5452 = vmatpush1.bf16.msra.mxu1 %v4741_v50  ;;  %5678 = vmatpush1.bf16.msra.mxu0 %v4743_v20  ;;  %v4797_v50 = vld [vmem:[#allocation10 + $0x360] sm:$0xff]  ;;  %v4799_v20 = vld [vmem:[#allocation10 + $0x370] sm:$0xff] }
 0xc56   :  { %5453 = vmatprep.subr.bf16.mxu1 %v4750_v41  ;;  %5679 = vmatprep.subr.bf16.mxu0 %v4752_v44  ;;  %v4806_v41 = vld [vmem:[#allocation10 + $0x3a8] sm:$0xff]  ;;  %v4808_v44 = vld [vmem:[#allocation10 + $0x3b8] sm:$0xff] }
 0xc57   :  { %5172 = vmatprep.mubr.bf16.mxu1 %v9673_v29  ;;  %5398 = vmatprep.mubr.bf16.mxu0 %v9673_v29 }
 0xc59   :  { %5454 = vmatpush1.bf16.msra.mxu1 %v4749_v61  ;;  %5680 = vmatpush1.bf16.msra.mxu0 %v4751_v45  ;;  %v4805_v61 = vld [vmem:[#allocation10 + $0x3a0] sm:$0xff]  ;;  %v4807_v45 = vld [vmem:[#allocation10 + $0x3b0] sm:$0xff] }
 0xc5a   :  { %5455 = vmatprep.subr.bf16.mxu1 %v4758_v60  ;;  %5681 = vmatprep.subr.bf16.mxu0 %v4760_v4  ;;  %v4814_v60 = vld [vmem:[#allocation10 + $0x3e8] sm:$0xff]  ;;  %v4816_v4 = vld [vmem:[#allocation10 + $0x3f8] sm:$0xff] }
 0xc5c   :  { %5173 = vmatmul.mubr.bf16.gmra.mrb[152].mxu1 %v9669_v55  ;;  %5399 = vmatmul.mubr.bf16.gmra.mrb[8].mxu0 %v9669_v55 }
 0xc5d   :  { %5456 = vmatpush1.bf16.msra.mxu1 %v4757_v40  ;;  %5682 = vmatpush1.bf16.msra.mxu0 %v4759_v9  ;;  %v4813_v40 = vld [vmem:[#allocation10 + $0x3e0] sm:$0xff]  ;;  %v4815_v9 = vld [vmem:[#allocation10 + $0x3f0] sm:$0xff] }
 0xc5e   :  { %5457 = vmatprep.subr.bf16.mxu1 %v4766_v37  ;;  %5683 = vmatprep.subr.bf16.mxu0 %v4768_v17  ;;  %v4822_v37 = vld [vmem:[#allocation10 + $0x428] sm:$0xff]  ;;  %v4824_v17 = vld [vmem:[#allocation10 + $0x438] sm:$0xff] }
 0xc5f   :  { %5182 = vmatprep.mubr.bf16.mxu1 %v9689_v54  ;;  %5408 = vmatprep.mubr.bf16.mxu0 %v9689_v54 }
 0xc61   :  { %5458 = vmatpush1.bf16.msra.mxu1 %v4765_v19  ;;  %5684 = vmatpush1.bf16.msra.mxu0 %v4767_v7  ;;  %v4821_v19 = vld [vmem:[#allocation10 + $0x420] sm:$0xff]  ;;  %v4823_v7 = vld [vmem:[#allocation10 + $0x430] sm:$0xff] }
 0xc62   :  { %5459 = vmatprep.subr.bf16.mxu1 %v4774_v46  ;;  %5685 = vmatprep.subr.bf16.mxu0 %v4776_v56  ;;  %v4830_v46 = vld [vmem:[#allocation10 + $0x468] sm:$0xff]  ;;  %v4832_v56 = vld [vmem:[#allocation10 + $0x478] sm:$0xff] }
 0xc64   :  { %5183 = vmatmul.mubr.bf16.gmra.mrb[156].mxu1 %v9685_v13  ;;  %5409 = vmatmul.mubr.bf16.gmra.mrb[12].mxu0 %v9685_v13 }
 0xc65   :  { %5460 = vmatpush1.bf16.msra.mxu1 %v4773_v42  ;;  %5686 = vmatpush1.bf16.msra.mxu0 %v4775_v1  ;;  %v4829_v42 = vld [vmem:[#allocation10 + $0x460] sm:$0xff]  ;;  %v4838_v1 = vld [vmem:[#allocation10 + $0x4a8] sm:$0xff] }
 0xc66   :  { %5461 = vmatprep.subr.bf16.mxu1 %v4782_v35  ;;  %5687 = vmatprep.subr.bf16.mxu0 %v4784_v21  ;;  %v4840_v35 = vld [vmem:[#allocation10 + $0x4b8] sm:$0xff]  ;;  %v4837_v21 = vld [vmem:[#allocation10 + $0x4a0] sm:$0xff] }
 0xc67   :  { %5192 = vmatprep.mubr.bf16.mxu1 %v9705_v34  ;;  %5418 = vmatprep.mubr.bf16.mxu0 %v9705_v34 }
 0xc69   :  { %5462 = vmatpush1.bf16.msra.mxu1 %v4781_v36  ;;  %5688 = vmatpush1.bf16.msra.mxu0 %v4783_v8  ;;  %v4839_v36 = vld [vmem:[#allocation10 + $0x4b0] sm:$0xff]  ;;  %v4846_v8 = vld [vmem:[#allocation10 + $0x4e8] sm:$0xff] }
 0xc6a   :  { %5463 = vmatprep.subr.bf16.mxu1 %v4790_v33  ;;  %5689 = vmatprep.subr.bf16.mxu0 %v4792_v48  ;;  %v4845_v33 = vld [vmem:[#allocation10 + $0x4e0] sm:$0xff]  ;;  %v4854_v48 = vld [vmem:[#allocation10 + $0x528] sm:$0xff] }
 0xc6c   :  { %5193 = vmatmul.mubr.bf16.gmra.mrb[160].mxu1 %v9701_v51  ;;  %5419 = vmatmul.mubr.bf16.gmra.mrb[16].mxu0 %v9701_v51 }
 0xc6d   :  { %5464 = vmatpush1.bf16.msra.mxu1 %v4789_v30  ;;  %5690 = vmatpush1.bf16.msra.mxu0 %v4791_v6  ;;  %v4856_v30 = vld [vmem:[#allocation10 + $0x538] sm:$0xff]  ;;  %v4853_v6 = vld [vmem:[#allocation10 + $0x520] sm:$0xff] }
 0xc6e   :  { %5465 = vmatprep.subr.bf16.mxu1 %v4798_v43  ;;  %5691 = vmatprep.subr.bf16.mxu0 %v4800_v58  ;;  %v4855_v43 = vld [vmem:[#allocation10 + $0x530] sm:$0xff]  ;;  %v4862_v58 = vld [vmem:[#allocation10 + $0x568] sm:$0xff] }
 0xc6f   :  { %5202 = vmatprep.mubr.bf16.mxu1 %v9721_v25  ;;  %5428 = vmatprep.mubr.bf16.mxu0 %v9721_v25 }
 0xc71   :  { %5466 = vmatpush1.bf16.msra.mxu1 %v4797_v50  ;;  %5692 = vmatpush1.bf16.msra.mxu0 %v4799_v20  ;;  %v4861_v50 = vld [vmem:[#allocation10 + $0x560] sm:$0xff]  ;;  %v4870_v20 = vld [vmem:[#allocation10 + $0x5a8] sm:$0xff] }
 0xc72   :  { %5467 = vmatprep.subr.bf16.mxu1 %v4806_v41  ;;  %5693 = vmatprep.subr.bf16.mxu0 %v4808_v44  ;;  %v4872_v41 = vld [vmem:[#allocation10 + $0x5b8] sm:$0xff]  ;;  %v4869_v44 = vld [vmem:[#allocation10 + $0x5a0] sm:$0xff] }
 0xc74   :  { %5203 = vmatmul.mubr.bf16.gmra.mrb[164].mxu1 %v9717_v12  ;;  %5429 = vmatmul.mubr.bf16.gmra.mrb[20].mxu0 %v9717_v12 }
 0xc75   :  { %5468 = vmatpush1.bf16.msra.mxu1 %v4805_v61  ;;  %5694 = vmatpush1.bf16.msra.mxu0 %v4807_v45  ;;  %v4871_v61 = vld [vmem:[#allocation10 + $0x5b0] sm:$0xff]  ;;  %v4878_v45 = vld [vmem:[#allocation10 + $0x5e8] sm:$0xff] }
 0xc76   :  { %5469 = vmatprep.subr.bf16.mxu1 %v4814_v60  ;;  %5695 = vmatprep.subr.bf16.mxu0 %v4816_v4  ;;  %v4877_v60 = vld [vmem:[#allocation10 + $0x5e0] sm:$0xff]  ;;  %v4886_v4 = vld [vmem:[#allocation10 + $0x628] sm:$0xff] }
 0xc77   :  { %5471 = vmatprep.mubr.bf16.mxu1 %v9607_v38  ;;  %5697 = vmatprep.mubr.bf16.mxu0 %v9607_v38  ;;  %v4831_v38 = vld [vmem:[#allocation10 + $0x470] sm:$0xff] }
 0xc79   :  { %5470 = vmatpush1.bf16.msra.mxu1 %v4813_v40  ;;  %5696 = vmatpush1.bf16.msra.mxu0 %v4815_v9  ;;  %v4888_v40 = vld [vmem:[#allocation10 + $0x638] sm:$0xff]  ;;  %v4885_v9 = vld [vmem:[#allocation10 + $0x620] sm:$0xff] }
 0xc7a   :  { %5552 = vmatprep.subr.bf16.mxu1 %v4822_v37  ;;  %5778 = vmatprep.subr.bf16.mxu0 %v4824_v17  ;;  %v4887_v37 = vld [vmem:[#allocation10 + $0x630] sm:$0xff]  ;;  %v4894_v17 = vld [vmem:[#allocation10 + $0x668] sm:$0xff] }
 0xc7c   :  { %5472 = vmatmul.mubr.bf16.vlgmr.msra.gmra.mrb[168].mxu1 %v9603_v10  ;;  %5698 = vmatmul.mubr.bf16.vlgmr.msra.gmra.mrb[24].mxu0 %v9603_v10  ;;  %v4848_v10 = vld [vmem:[#allocation10 + $0x4f8] sm:$0xff] }
 0xc7d   :  { %5553 = vmatpush1.bf16.msra.mxu1 %v4821_v19  ;;  %5779 = vmatpush1.bf16.msra.mxu0 %v4823_v7  ;;  %v4893_v19 = vld [vmem:[#allocation10 + $0x660] sm:$0xff]  ;;  %v4902_v7 = vld [vmem:[#allocation10 + $0x6a8] sm:$0xff] }
 0xc7e   :  { %5554 = vmatprep.subr.bf16.mxu1 %v4830_v46  ;;  %5780 = vmatprep.subr.bf16.mxu0 %v4832_v56  ;;  %v4904_v46 = vld [vmem:[#allocation10 + $0x6b8] sm:$0xff]  ;;  %v4901_v56 = vld [vmem:[#allocation10 + $0x6a0] sm:$0xff] }
 0xc7f   :  { %5481 = vmatprep.mubr.bf16.mxu1 %v9623_v3  ;;  %5707 = vmatprep.mubr.bf16.mxu0 %v9623_v3  ;;  %v4847_v3 = vld [vmem:[#allocation10 + $0x4f0] sm:$0xff] }
 0xc81   :  { %5555 = vmatpush1.bf16.msra.mxu1 %v4829_v42  ;;  %5781 = vmatpush1.bf16.msra.mxu0 %v4831_v38  ;;  %v4903_v42 = vld [vmem:[#allocation10 + $0x6b0] sm:$0xff]  ;;  %v4910_v38 = vld [vmem:[#allocation10 + $0x6e8] sm:$0xff] }
 0xc82   :  { %5556 = vmatprep.subr.bf16.mxu1 %v4838_v1  ;;  %5782 = vmatprep.subr.bf16.mxu0 %v4840_v35  ;;  %v4909_v1 = vld [vmem:[#allocation10 + $0x6e0] sm:$0xff]  ;;  %v4918_v35 = vld [vmem:[#allocation10 + $0x728] sm:$0xff] }
 0xc84   :  { %5482 = vmatmul.mubr.bf16.gmra.mrb[172].mxu1 %v9619_v32  ;;  %5708 = vmatmul.mubr.bf16.gmra.mrb[28].mxu0 %v9619_v32  ;;  %v4864_v32 = vld [vmem:[#allocation10 + $0x578] sm:$0xff] }
 0xc85   :  { %5557 = vmatpush1.bf16.msra.mxu1 %v4837_v21  ;;  %5783 = vmatpush1.bf16.msra.mxu0 %v4839_v36  ;;  %v4920_v21 = vld [vmem:[#allocation10 + $0x738] sm:$0xff]  ;;  %v4917_v36 = vld [vmem:[#allocation10 + $0x720] sm:$0xff] }
 0xc86   :  { %5558 = vmatprep.subr.bf16.mxu1 %v4846_v8  ;;  %5784 = vmatprep.subr.bf16.mxu0 %v4848_v10  ;;  %v4919_v8 = vld [vmem:[#allocation10 + $0x730] sm:$0xff]  ;;  %v4926_v10 = vld [vmem:[#allocation10 + $0x768] sm:$0xff] }
 0xc87   :  { %5491 = vmatprep.mubr.bf16.mxu1 %v9639_v16  ;;  %5717 = vmatprep.mubr.bf16.mxu0 %v9639_v16  ;;  %v4863_v16 = vld [vmem:[#allocation10 + $0x570] sm:$0xff] }
 0xc89   :  { %5559 = vmatpush1.bf16.msra.mxu1 %v4845_v33  ;;  %5785 = vmatpush1.bf16.msra.mxu0 %v4847_v3  ;;  %v4925_v33 = vld [vmem:[#allocation10 + $0x760] sm:$0xff]  ;;  %v4934_v3 = vld [vmem:[#allocation10 + $0x7a8] sm:$0xff] }
 0xc8a   :  { %5560 = vmatprep.subr.bf16.mxu1 %v4854_v48  ;;  %5786 = vmatprep.subr.bf16.mxu0 %v4856_v30  ;;  %v4936_v48 = vld [vmem:[#allocation10 + $0x7b8] sm:$0xff]  ;;  %v4933_v30 = vld [vmem:[#allocation10 + $0x7a0] sm:$0xff] }
 0xc8c   :  { %5492 = vmatmul.mubr.bf16.gmra.mrb[176].mxu1 %v9635_v39  ;;  %5718 = vmatmul.mubr.bf16.gmra.mrb[32].mxu0 %v9635_v39  ;;  %v4880_v39 = vld [vmem:[#allocation10 + $0x5f8] sm:$0xff] }
 0xc8d   :  { %5561 = vmatpush1.bf16.msra.mxu1 %v4853_v6  ;;  %5787 = vmatpush1.bf16.msra.mxu0 %v4855_v43  ;;  %v4935_v6 = vld [vmem:[#allocation10 + $0x7b0] sm:$0xff]  ;;  %v4942_v43 = vld [vmem:[#allocation10 + $0x7e8] sm:$0xff] }
 0xc8e   :  { %5562 = vmatprep.subr.bf16.mxu1 %v4862_v58  ;;  %5788 = vmatprep.subr.bf16.mxu0 %v4864_v32  ;;  %v4941_v58 = vld [vmem:[#allocation10 + $0x7e0] sm:$0xff] }
 0xc8f   :  { %5501 = vmatprep.mubr.bf16.mxu1 %v9655_v57  ;;  %5727 = vmatprep.mubr.bf16.mxu0 %v9655_v57  ;;  %v4879_v57 = vld [vmem:[#allocation10 + $0x5f0] sm:$0xff] }
 0xc91   :  { %5563 = vmatpush1.bf16.msra.mxu1 %v4861_v50  ;;  %5789 = vmatpush1.bf16.msra.mxu0 %v4863_v16 }
 0xc92   :  { %5564 = vmatprep.subr.bf16.mxu1 %v4870_v20  ;;  %5790 = vmatprep.subr.bf16.mxu0 %v4872_v41 }
 0xc94   :  { %5502 = vmatmul.mubr.bf16.gmra.mrb[180].mxu1 %v9651_v62  ;;  %5728 = vmatmul.mubr.bf16.gmra.mrb[36].mxu0 %v9651_v62  ;;  %v4896_v62 = vld [vmem:[#allocation10 + $0x678] sm:$0xff] }
 0xc95   :  { %5565 = vmatpush1.bf16.msra.mxu1 %v4869_v44  ;;  %5791 = vmatpush1.bf16.msra.mxu0 %v4871_v61 }
 0xc96   :  { %5566 = vmatprep.subr.bf16.mxu1 %v4878_v45  ;;  %5792 = vmatprep.subr.bf16.mxu0 %v4880_v39 }
 0xc97   :  { %5511 = vmatprep.mubr.bf16.mxu1 %v9671_v14  ;;  %5737 = vmatprep.mubr.bf16.mxu0 %v9671_v14  ;;  %v4895_v14 = vld [vmem:[#allocation10 + $0x670] sm:$0xff] }
 0xc99   :  { %5567 = vmatpush1.bf16.msra.mxu1 %v4877_v60  ;;  %5793 = vmatpush1.bf16.msra.mxu0 %v4879_v57 }
 0xc9a   :  { %5568 = vmatprep.subr.bf16.mxu1 %v4886_v4  ;;  %5794 = vmatprep.subr.bf16.mxu0 %v4888_v40 }
 0xc9c   :  { %5512 = vmatmul.mubr.bf16.gmra.mrb[184].mxu1 %v9667_v63  ;;  %5738 = vmatmul.mubr.bf16.gmra.mrb[40].mxu0 %v9667_v63  ;;  %v4912_v63 = vld [vmem:[#allocation10 + $0x6f8] sm:$0xff] }
 0xc9d   :  { %5569 = vmatpush1.bf16.msra.mxu1 %v4885_v9  ;;  %5795 = vmatpush1.bf16.msra.mxu0 %v4887_v37 }
 0xc9e   :  { %5570 = vmatprep.subr.bf16.mxu1 %v4894_v17  ;;  %5796 = vmatprep.subr.bf16.mxu0 %v4896_v62 }
 0xc9f   :  { %5521 = vmatprep.mubr.bf16.mxu1 %v9687_v2  ;;  %5747 = vmatprep.mubr.bf16.mxu0 %v9687_v2  ;;  %v4911_v2 = vld [vmem:[#allocation10 + $0x6f0] sm:$0xff] }
 0xca1   :  { %5571 = vmatpush1.bf16.msra.mxu1 %v4893_v19  ;;  %5797 = vmatpush1.bf16.msra.mxu0 %v4895_v14 }
 0xca2   :  { %5572 = vmatprep.subr.bf16.mxu1 %v4902_v7  ;;  %5798 = vmatprep.subr.bf16.mxu0 %v4904_v46 }
 0xca4   :  { %5522 = vmatmul.mubr.bf16.gmra.mrb[188].mxu1 %v9683_v22  ;;  %5748 = vmatmul.mubr.bf16.gmra.mrb[44].mxu0 %v9683_v22  ;;  %v4928_v22 = vld [vmem:[#allocation10 + $0x778] sm:$0xff] }
 0xca5   :  { %5573 = vmatpush1.bf16.msra.mxu1 %v4901_v56  ;;  %5799 = vmatpush1.bf16.msra.mxu0 %v4903_v42 }
 0xca6   :  { %5574 = vmatprep.subr.bf16.mxu1 %v4910_v38  ;;  %5800 = vmatprep.subr.bf16.mxu0 %v4912_v63 }
 0xca7   :  { %5531 = vmatprep.mubr.bf16.mxu1 %v9703_v49  ;;  %5757 = vmatprep.mubr.bf16.mxu0 %v9703_v49  ;;  %v4927_v49 = vld [vmem:[#allocation10 + $0x770] sm:$0xff] }
 0xca9   :  { %5575 = vmatpush1.bf16.msra.mxu1 %v4909_v1  ;;  %5801 = vmatpush1.bf16.msra.mxu0 %v4911_v2 }
 0xcaa   :  { %5576 = vmatprep.subr.bf16.mxu1 %v4918_v35  ;;  %5802 = vmatprep.subr.bf16.mxu0 %v4920_v21 }
 0xcac   :  { %5532 = vmatmul.mubr.bf16.gmra.mrb[192].mxu1 %v9699_v53  ;;  %5758 = vmatmul.mubr.bf16.gmra.mrb[48].mxu0 %v9699_v53  ;;  %v4944_v53 = vld [vmem:[#allocation10 + $0x7f8] sm:$0xff] }
 0xcad   :  { %5577 = vmatpush1.bf16.msra.mxu1 %v4917_v36  ;;  %5803 = vmatpush1.bf16.msra.mxu0 %v4919_v8 }
 0xcae   :  { %5578 = vmatprep.subr.bf16.mxu1 %v4926_v10  ;;  %5804 = vmatprep.subr.bf16.mxu0 %v4928_v22 }
 0xcaf   :  { %5541 = vmatprep.mubr.bf16.mxu1 %v9719_v52  ;;  %5767 = vmatprep.mubr.bf16.mxu0 %v9719_v52  ;;  %v4943_v52 = vld [vmem:[#allocation10 + $0x7f0] sm:$0xff] }
 0xcb1   :  { %5579 = vmatpush1.bf16.msra.mxu1 %v4925_v33  ;;  %5805 = vmatpush1.bf16.msra.mxu0 %v4927_v49 }
 0xcb2   :  { %5580 = vmatprep.subr.bf16.mxu1 %v4934_v3  ;;  %5806 = vmatprep.subr.bf16.mxu0 %v4936_v48 }
 0xcb4   :  { %5542 = vmatmul.mubr.bf16.gmra.mrb[196].mxu1 %v9715_v0  ;;  %5768 = vmatmul.mubr.bf16.gmra.mrb[52].mxu0 %v9715_v0 }
 0xcb5   :  { %5581 = vmatpush1.bf16.msra.mxu1 %v4933_v30  ;;  %5807 = vmatpush1.bf16.msra.mxu0 %v4935_v6 }
 0xcb6   :  { %5582 = vmatprep.subr.bf16.mxu1 %v4942_v43  ;;  %5808 = vmatprep.subr.bf16.mxu0 %v4944_v53 }
 0xcb7   :  { %5584 = vmatprep.mubr.bf16.mxu1 %v9609_v18  ;;  %5810 = vmatprep.mubr.bf16.mxu0 %v9609_v18 }
 0xcb9   :  { %5583 = vmatpush1.bf16.msra.mxu1 %v4941_v58  ;;  %5809 = vmatpush1.bf16.msra.mxu0 %v4943_v52 }
 0xcbc   :  { %5585 = vmatmul.mubr.bf16.vlgmr.msra.gmra.mrb[168].mxu1 %v9605_v47  ;;  %5811 = vmatmul.mubr.bf16.vlgmr.msra.gmra.mrb[24].mxu0 %v9605_v47  ;;  %v9854_v47 = vld [vmem:[%s10276_s9] sm:$0xff] }
 0xcbd   :  { %5594 = vmatprep.mubr.bf16.mxu1 %v9625_v15  ;;  %5820 = vmatprep.mubr.bf16.mxu0 %v9625_v15  ;;  %v9858_v18 = vrot.slane %v9854_v47, %v10429_v24  ;;  %v9866_v15 = vrot.slane %v9854_v47, %v10431_v26 }
 0xcc4   :  { %5595 = vmatmul.mubr.bf16.gmra.mrb[172].mxu1 %v9621_v28  ;;  %5821 = vmatmul.mubr.bf16.gmra.mrb[28].mxu0 %v9621_v28  ;;  %v9862_v28 = vrot.slane %v9854_v47, %v10430_v5 }
 0xcc5   :  { %5604 = vmatprep.mubr.bf16.mxu1 %v9641_v11  ;;  %5830 = vmatprep.mubr.bf16.mxu0 %v9641_v11 }
 0xccc   :  { %5605 = vmatmul.mubr.bf16.gmra.mrb[176].mxu1 %v9637_v59  ;;  %5831 = vmatmul.mubr.bf16.gmra.mrb[32].mxu0 %v9637_v59  ;;  %v9870_v59 = vrot.slane %v9854_v47, %v10432_v23 }
 0xccd   :  { %5614 = vmatprep.mubr.bf16.mxu1 %v9657_v31  ;;  %5840 = vmatprep.mubr.bf16.mxu0 %v9657_v31 }
 0xcd4   :  { %5615 = vmatmul.mubr.bf16.gmra.mrb[180].mxu1 %v9653_v27  ;;  %5841 = vmatmul.mubr.bf16.gmra.mrb[36].mxu0 %v9653_v27 }
 0xcd5   :  { %5624 = vmatprep.mubr.bf16.mxu1 %v9673_v29  ;;  %5850 = vmatprep.mubr.bf16.mxu0 %v9673_v29 }
 0xcdc   :  { %5625 = vmatmul.mubr.bf16.gmra.mrb[184].mxu1 %v9669_v55  ;;  %5851 = vmatmul.mubr.bf16.gmra.mrb[40].mxu0 %v9669_v55 }
 0xcdd   :  { %5634 = vmatprep.mubr.bf16.mxu1 %v9689_v54  ;;  %5860 = vmatprep.mubr.bf16.mxu0 %v9689_v54 }
 0xce4   :  { %5635 = vmatmul.mubr.bf16.gmra.mrb[188].mxu1 %v9685_v13  ;;  %5861 = vmatmul.mubr.bf16.gmra.mrb[44].mxu0 %v9685_v13 }
 0xce5   :  { %5644 = vmatprep.mubr.bf16.mxu1 %v9705_v34  ;;  %5870 = vmatprep.mubr.bf16.mxu0 %v9705_v34 }
 0xcec   :  { %5645 = vmatmul.mubr.bf16.gmra.mrb[192].mxu1 %v9701_v51  ;;  %5871 = vmatmul.mubr.bf16.gmra.mrb[48].mxu0 %v9701_v51 }
 0xced   :  { %5654 = vmatprep.mubr.bf16.mxu1 %v9721_v25  ;;  %5880 = vmatprep.mubr.bf16.mxu0 %v9721_v25 }
 0xcf4   :  { %5655 = vmatmul.mubr.bf16.gmra.mrb[196].mxu1 %v9717_v12  ;;  %5881 = vmatmul.mubr.bf16.gmra.mrb[52].mxu0 %v9717_v12 }
 0xd0f   :  { %v5134_v11 = vpop.f32.mrb[136].mxu1  ;;  %v5360_v27 = vpop.f32.mrb[248].mxu0 }
 0xd10   :  { %v7152_v31 = vadd.f32 %v5134_v11, %v9858_v18  ;;  %v7184_v55 = vadd.f32 %v5360_v27, %v9862_v28  ;;  %v5136_v29 = vpop.f32.mrb[137].mxu1  ;;  %v5362_v13 = vpop.f32.mrb[249].mxu0 }
 0xd11   :  { %v7153_v54 = vadd.f32 %v5136_v29, %v9866_v15  ;;  %v7185_v5 = vadd.f32 %v5362_v13, %v9870_v59  ;;  %v5138_v51 = vpop.f32.mrb[138].mxu1  ;;  %v5364_v34 = vpop.f32.mrb[250].mxu0 }
 0xd12   :  { %v7154_v0 = vadd.f32 %v5138_v51, %v9858_v18  ;;  %v7186_v12 = vadd.f32 %v5364_v34, %v9862_v28  ;;  %v5140_v23 = vpop.f32.mrb[139].mxu1  ;;  %v5366_v25 = vpop.f32.mrb[251].mxu0  ;;  %v5891_v16 = vmax.f32 %v7152_v31, 0.0  ;;  %v5893_v20 = vmax.f32 %v7184_v55, 0.0 }
 0xd13   :  { %v7155_v32 = vadd.f32 %v5140_v23, %v9866_v15  ;;  %v7187_v50 = vadd.f32 %v5366_v25, %v9870_v59  ;;  %v5892_v61 = vmax.f32 %v7153_v54, 0.0  ;;  %v5894_v45 = vmax.f32 %v7185_v5, 0.0 }
 0xd14   :  { %v5899_v41 = vmax.f32 %v7154_v0, 0.0  ;;  %v5901_v44 = vmax.f32 %v7186_v12, 0.0 }
 0xd15   :  { %v5900_v39 = vmax.f32 %v7155_v32, 0.0  ;;  %v5902_v60 = vmax.f32 %v7187_v50, 0.0 }
 0xd16   :  { %v9880_v57 = vpack.c.bf16 %v5899_v41, %v5891_v16  ;;  %v9882_v4 = vpack.c.bf16 %v5901_v44, %v5893_v20 }
 0xd17   :  { %v9884_v40 = vpack.c.bf16 %v5900_v39, %v5892_v61  ;;  %v9886_v9 = vpack.c.bf16 %v5902_v60, %v5894_v45  ;;  %v5144_v37 = vpop.f32.mrb[140].mxu1  ;;  %v5370_v17 = vpop.f32.mrb[252].mxu0 }
 0xd18   :  { %v7156_v62 = vadd.f32 %v5144_v37, %v9858_v18  ;;  %v7188_v19 = vadd.f32 %v5370_v17, %v9862_v28  ;;  %v5146_v14 = vpop.f32.mrb[141].mxu1  ;;  %v5372_v7 = vpop.f32.mrb[253].mxu0 }
 0xd19   :  { %v7157_v46 = vadd.f32 %v5146_v14, %v9866_v15  ;;  %v7189_v56 = vadd.f32 %v5372_v7, %v9870_v59  ;;  %v5148_v42 = vpop.f32.mrb[142].mxu1  ;;  %v5374_v38 = vpop.f32.mrb[254].mxu0 }
 0xd1a   :  { %v7158_v63 = vadd.f32 %v5148_v42, %v9858_v18  ;;  %v7190_v1 = vadd.f32 %v5374_v38, %v9862_v28  ;;  %v5150_v2 = vpop.f32.mrb[143].mxu1  ;;  %v5376_v35 = vpop.f32.mrb[255].mxu0  ;;  %v5907_v8 = vmax.f32 %v7156_v62, 0.0  ;;  %v5909_v10 = vmax.f32 %v7188_v19, 0.0 }
 0xd1b   :  { %v7159_v21 = vadd.f32 %v5150_v2, %v9866_v15  ;;  %v7191_v36 = vadd.f32 %v5376_v35, %v9870_v59  ;;  %v5908_v49 = vmax.f32 %v7157_v46, 0.0  ;;  %v5910_v3 = vmax.f32 %v7189_v56, 0.0 }
 0xd1c   :  { %v5915_v22 = vmax.f32 %v7158_v63, 0.0  ;;  %v5917_v33 = vmax.f32 %v7190_v1, 0.0 }
 0xd1d   :  { %v5916_v48 = vmax.f32 %v7159_v21, 0.0  ;;  %v5918_v30 = vmax.f32 %v7191_v36, 0.0 }
 0xd1e   :  { %v9896_v6 = vpack.c.bf16 %v5915_v22, %v5907_v8  ;;  %v9898_v43 = vpack.c.bf16 %v5917_v33, %v5909_v10 }
 0xd1f   :  { %v9900_v53 = vpack.c.bf16 %v5916_v48, %v5908_v49  ;;  %v9902_v58 = vpack.c.bf16 %v5918_v30, %v5910_v3  ;;  %v5154_v52 = vpop.f32.mrb[144].mxu1  ;;  %v5380_v11 = vpop.f32.mrb[0].mxu0 }
 0xd20   :  { %v7160_v27 = vadd.f32 %v5154_v52, %v9858_v18  ;;  %v7192_v31 = vadd.f32 %v5380_v11, %v9862_v28  ;;  %v5156_v55 = vpop.f32.mrb[145].mxu1  ;;  %v5382_v29 = vpop.f32.mrb[1].mxu0 }
 0xd21   :  { %v7161_v13 = vadd.f32 %v5156_v55, %v9866_v15  ;;  %v7193_v54 = vadd.f32 %v5382_v29, %v9870_v59  ;;  %v5158_v5 = vpop.f32.mrb[146].mxu1  ;;  %v5384_v51 = vpop.f32.mrb[2].mxu0 }
 0xd22   :  { %v7162_v34 = vadd.f32 %v5158_v5, %v9858_v18  ;;  %v7194_v0 = vadd.f32 %v5384_v51, %v9862_v28  ;;  %v5160_v12 = vpop.f32.mrb[147].mxu1  ;;  %v5386_v23 = vpop.f32.mrb[3].mxu0  ;;  %v5923_v50 = vmax.f32 %v7160_v27, 0.0  ;;  %v5925_v16 = vmax.f32 %v7192_v31, 0.0 }
 0xd23   :  { %v7163_v25 = vadd.f32 %v5160_v12, %v9866_v15  ;;  %v7195_v32 = vadd.f32 %v5386_v23, %v9870_v59  ;;  %v5924_v44 = vmax.f32 %v7161_v13, 0.0  ;;  %v5926_v61 = vmax.f32 %v7193_v54, 0.0 }
 0xd24   :  { %v5931_v20 = vmax.f32 %v7162_v34, 0.0  ;;  %v5933_v41 = vmax.f32 %v7194_v0, 0.0 }
 0xd25   :  { %v5932_v45 = vmax.f32 %v7163_v25, 0.0  ;;  %v5934_v39 = vmax.f32 %v7195_v32, 0.0 }
 0xd26   :  { %v9912_v60 = vpack.c.bf16 %v5931_v20, %v5923_v50  ;;  %v9914_v37 = vpack.c.bf16 %v5933_v41, %v5925_v16 }
 0xd27   :  { %v9916_v17 = vpack.c.bf16 %v5932_v45, %v5924_v44  ;;  %v9918_v62 = vpack.c.bf16 %v5934_v39, %v5926_v61  ;;  %v5164_v19 = vpop.f32.mrb[148].mxu1  ;;  %v5390_v14 = vpop.f32.mrb[4].mxu0 }
 0xd28   :  { %v7164_v7 = vadd.f32 %v5164_v19, %v9858_v18  ;;  %v7196_v46 = vadd.f32 %v5390_v14, %v9862_v28  ;;  %v5166_v56 = vpop.f32.mrb[149].mxu1  ;;  %v5392_v42 = vpop.f32.mrb[5].mxu0 }
 0xd29   :  { %v7165_v38 = vadd.f32 %v5166_v56, %v9866_v15  ;;  %v7197_v63 = vadd.f32 %v5392_v42, %v9870_v59  ;;  %v5168_v1 = vpop.f32.mrb[150].mxu1  ;;  %v5394_v2 = vpop.f32.mrb[6].mxu0 }
 0xd2a   :  { %v7166_v35 = vadd.f32 %v5168_v1, %v9858_v18  ;;  %v7198_v21 = vadd.f32 %v5394_v2, %v9862_v28  ;;  %v5170_v36 = vpop.f32.mrb[151].mxu1  ;;  %v5396_v8 = vpop.f32.mrb[7].mxu0  ;;  %v5939_v33 = vmax.f32 %v7164_v7, 0.0  ;;  %v5941_v49 = vmax.f32 %v7196_v46, 0.0 }
 0xd2b   :  { %v7167_v10 = vadd.f32 %v5170_v36, %v9866_v15  ;;  %v7199_v22 = vadd.f32 %v5396_v8, %v9870_v59  ;;  %v5940_v30 = vmax.f32 %v7165_v38, 0.0  ;;  %v5942_v52 = vmax.f32 %v7197_v63, 0.0 }
 0xd2c   :  { %v5947_v3 = vmax.f32 %v7166_v35, 0.0  ;;  %v5949_v48 = vmax.f32 %v7198_v21, 0.0 }
 0xd2d   :  { %v5948_v11 = vmax.f32 %v7167_v10, 0.0  ;;  %v5950_v27 = vmax.f32 %v7199_v22, 0.0 }
 0xd2e   :  { %v9928_v31 = vpack.c.bf16 %v5947_v3, %v5939_v33  ;;  %v9930_v55 = vpack.c.bf16 %v5949_v48, %v5941_v49 }
 0xd2f   :  { %v9932_v29 = vpack.c.bf16 %v5948_v11, %v5940_v30  ;;  %v9934_v13 = vpack.c.bf16 %v5950_v27, %v5942_v52  ;;  %v5174_v54 = vpop.f32.mrb[152].mxu1  ;;  %v5400_v5 = vpop.f32.mrb[8].mxu0 }
 0xd30   :  { %v7168_v51 = vadd.f32 %v5174_v54, %v9858_v18  ;;  %v7200_v34 = vadd.f32 %v5400_v5, %v9862_v28  ;;  %v5176_v0 = vpop.f32.mrb[153].mxu1  ;;  %v5402_v12 = vpop.f32.mrb[9].mxu0 }
 0xd31   :  { %v7169_v23 = vadd.f32 %v5176_v0, %v9866_v15  ;;  %v7201_v25 = vadd.f32 %v5402_v12, %v9870_v59  ;;  %v5178_v32 = vpop.f32.mrb[154].mxu1  ;;  %v5404_v50 = vpop.f32.mrb[10].mxu0 }
 0xd32   :  { %v7170_v16 = vadd.f32 %v5178_v32, %v9858_v18  ;;  %v7202_v20 = vadd.f32 %v5404_v50, %v9862_v28  ;;  %v5180_v41 = vpop.f32.mrb[155].mxu1  ;;  %v5406_v44 = vpop.f32.mrb[11].mxu0  ;;  %v5955_v39 = vmax.f32 %v7168_v51, 0.0  ;;  %v5957_v19 = vmax.f32 %v7200_v34, 0.0 }
 0xd33   :  { %v7171_v61 = vadd.f32 %v5180_v41, %v9866_v15  ;;  %v7203_v45 = vadd.f32 %v5406_v44, %v9870_v59  ;;  %v5956_v46 = vmax.f32 %v7169_v23, 0.0  ;;  %v5958_v56 = vmax.f32 %v7201_v25, 0.0 }
 0xd34   :  { %v5963_v14 = vmax.f32 %v7170_v16, 0.0  ;;  %v5965_v7 = vmax.f32 %v7202_v20, 0.0 }
 0xd35   :  { %v5964_v42 = vmax.f32 %v7171_v61, 0.0  ;;  %v5966_v38 = vmax.f32 %v7203_v45, 0.0 }
 0xd36   :  { %v9944_v63 = vpack.c.bf16 %v5963_v14, %v5955_v39  ;;  %v9946_v1 = vpack.c.bf16 %v5965_v7, %v5957_v19 }
 0xd37   :  { %v9948_v2 = vpack.c.bf16 %v5964_v42, %v5956_v46  ;;  %v9950_v35 = vpack.c.bf16 %v5966_v38, %v5958_v56  ;;  %v5184_v21 = vpop.f32.mrb[156].mxu1  ;;  %v5410_v36 = vpop.f32.mrb[12].mxu0 }
 0xd38   :  { %v7172_v8 = vadd.f32 %v5184_v21, %v9858_v18  ;;  %v7204_v10 = vadd.f32 %v5410_v36, %v9862_v28  ;;  %v5186_v22 = vpop.f32.mrb[157].mxu1  ;;  %v5412_v33 = vpop.f32.mrb[13].mxu0 }
 0xd39   :  { %v7173_v49 = vadd.f32 %v5186_v22, %v9866_v15  ;;  %v7205_v3 = vadd.f32 %v5412_v33, %v9870_v59  ;;  %v5188_v48 = vpop.f32.mrb[158].mxu1  ;;  %v5414_v30 = vpop.f32.mrb[14].mxu0 }
 0xd3a   :  { %v7174_v52 = vadd.f32 %v5188_v48, %v9858_v18  ;;  %v7206_v11 = vadd.f32 %v5414_v30, %v9862_v28  ;;  %v5190_v27 = vpop.f32.mrb[159].mxu1  ;;  %v5416_v54 = vpop.f32.mrb[15].mxu0  ;;  %v5971_v34 = vmax.f32 %v7172_v8, 0.0  ;;  %v5973_v0 = vmax.f32 %v7204_v10, 0.0 }
 0xd3b   :  { %v7175_v5 = vadd.f32 %v5190_v27, %v9866_v15  ;;  %v7207_v51 = vadd.f32 %v5416_v54, %v9870_v59  ;;  %v5972_v25 = vmax.f32 %v7173_v49, 0.0  ;;  %v5974_v32 = vmax.f32 %v7205_v3, 0.0 }
 0xd3c   :  { %v5979_v12 = vmax.f32 %v7174_v52, 0.0  ;;  %v5981_v23 = vmax.f32 %v7206_v11, 0.0 }
 0xd3d   :  { %v5980_v50 = vmax.f32 %v7175_v5, 0.0  ;;  %v5982_v16 = vmax.f32 %v7207_v51, 0.0 }
 0xd3e   :  { %v9960_v20 = vpack.c.bf16 %v5979_v12, %v5971_v34  ;;  %v9962_v41 = vpack.c.bf16 %v5981_v23, %v5973_v0 }
 0xd3f   :  { %v9964_v44 = vpack.c.bf16 %v5980_v50, %v5972_v25  ;;  %v9966_v61 = vpack.c.bf16 %v5982_v16, %v5974_v32  ;;  %v5194_v45 = vpop.f32.mrb[160].mxu1  ;;  %v5420_v39 = vpop.f32.mrb[16].mxu0 }
 0xd40   :  { %v7176_v19 = vadd.f32 %v5194_v45, %v9858_v18  ;;  %v7208_v14 = vadd.f32 %v5420_v39, %v9862_v28  ;;  %v5196_v7 = vpop.f32.mrb[161].mxu1  ;;  %v5422_v46 = vpop.f32.mrb[17].mxu0 }
 0xd41   :  { %v7177_v56 = vadd.f32 %v5196_v7, %v9866_v15  ;;  %v7209_v42 = vadd.f32 %v5422_v46, %v9870_v59  ;;  %v5198_v38 = vpop.f32.mrb[162].mxu1  ;;  %v5424_v21 = vpop.f32.mrb[18].mxu0 }
 0xd42   :  { %v7178_v36 = vadd.f32 %v5198_v38, %v9858_v18  ;;  %v7210_v8 = vadd.f32 %v5424_v21, %v9862_v28  ;;  %v5200_v10 = vpop.f32.mrb[163].mxu1  ;;  %v5426_v22 = vpop.f32.mrb[19].mxu0  ;;  %v5987_v3 = vmax.f32 %v7176_v19, 0.0  ;;  %v5989_v48 = vmax.f32 %v7208_v14, 0.0 }
 0xd43   :  { %v7179_v33 = vadd.f32 %v5200_v10, %v9866_v15  ;;  %v7211_v49 = vadd.f32 %v5426_v22, %v9870_v59  ;;  %v5988_v11 = vmax.f32 %v7177_v56, 0.0  ;;  %v5990_v27 = vmax.f32 %v7209_v42, 0.0 }
 0xd44   :  { %v5995_v30 = vmax.f32 %v7178_v36, 0.0  ;;  %v5997_v52 = vmax.f32 %v7210_v8, 0.0 }
 0xd45   :  { %v5996_v54 = vmax.f32 %v7179_v33, 0.0  ;;  %v5998_v5 = vmax.f32 %v7211_v49, 0.0 }
 0xd46   :  { %v9976_v51 = vpack.c.bf16 %v5995_v30, %v5987_v3  ;;  %v9978_v34 = vpack.c.bf16 %v5997_v52, %v5989_v48 }
 0xd47   :  { %v9980_v0 = vpack.c.bf16 %v5996_v54, %v5988_v11  ;;  %v9982_v12 = vpack.c.bf16 %v5998_v5, %v5990_v27  ;;  %v5204_v23 = vpop.f32.mrb[164].mxu1  ;;  %v5430_v25 = vpop.f32.mrb[20].mxu0  ;;  %v10458_v27 = vld [vmem:[#allocation63_spill] sm:$0xff] }
 0xd48   :  { %v7180_v32 = vadd.f32 %v5204_v23, %v9858_v18  ;;  %v7212_v50 = vadd.f32 %v5430_v25, %v9862_v28  ;;  %v5206_v16 = vpop.f32.mrb[165].mxu1  ;;  %v5432_v45 = vpop.f32.mrb[21].mxu0  ;;  %v10460_v54 = vsub.s32 6, %v10458_v27  ;;  %v10461_v23 = vsub.s32 5, %v10458_v27 }
 0xd49   :  { %v7181_v39 = vadd.f32 %v5206_v16, %v9866_v15  ;;  %v7213_v19 = vadd.f32 %v5432_v45, %v9870_v59  ;;  %v5208_v14 = vpop.f32.mrb[166].mxu1  ;;  %v5434_v7 = vpop.f32.mrb[22].mxu0 }
 0xd4a   :  { %v7182_v46 = vadd.f32 %v5208_v14, %v9858_v18  ;;  %v7214_v56 = vadd.f32 %v5434_v7, %v9862_v28  ;;  %v5210_v42 = vpop.f32.mrb[167].mxu1  ;;  %v5436_v38 = vpop.f32.mrb[23].mxu0  ;;  %v6003_v8 = vmax.f32 %v7180_v32, 0.0  ;;  %v6005_v10 = vmax.f32 %v7212_v50, 0.0 }
 0xd4b   :  { %v7183_v21 = vadd.f32 %v5210_v42, %v9866_v15  ;;  %v7215_v36 = vadd.f32 %v5436_v38, %v9870_v59  ;;  %v6004_v49 = vmax.f32 %v7181_v39, 0.0  ;;  %v6006_v3 = vmax.f32 %v7213_v19, 0.0 }
 0xd4c   :  { %v6011_v22 = vmax.f32 %v7182_v46, 0.0  ;;  %v6013_v33 = vmax.f32 %v7214_v56, 0.0  ;;  %v10459_v15 = vsub.s32 4, %v10458_v27  ;;  %v10008_v5 = vrot.slane %v9854_v47, %v10460_v54 }
 0xd4d   :  { %v6012_v48 = vmax.f32 %v7183_v21, 0.0  ;;  %v6014_v30 = vmax.f32 %v7215_v36, 0.0  ;;  %v10013_v25 = vrot.slane %v9854_v47, %v10461_v23  ;;  %v10462_v32 = vsub.s32 7, %v10458_v27 }
 0xd4e   :  { %v9992_v52 = vpack.c.bf16 %v6011_v22, %v6003_v8  ;;  %v9994_v11 = vpack.c.bf16 %v6013_v33, %v6005_v10  ;;  %v10003_v59 = vrot.slane %v9854_v47, %v10459_v15 }
 0xd4f   :  { %v9996_v18 = vpack.c.bf16 %v6012_v48, %v6004_v49  ;;  %v9998_v28 = vpack.c.bf16 %v6014_v30, %v6006_v3  ;;  %v10018_v50 = vrot.slane %v9854_v47, %v10462_v32 }
 0xd8f   :  { %v5586_v16 = vpop.f32.mrb[168].mxu1  ;;  %v5812_v45 = vpop.f32.mrb[24].mxu0 }
 0xd90   :  { %v7216_v39 = vadd.f32 %v5586_v16, %v10003_v59  ;;  %v7248_v19 = vadd.f32 %v5812_v45, %v10008_v5  ;;  %v5588_v14 = vpop.f32.mrb[169].mxu1  ;;  %v5814_v7 = vpop.f32.mrb[25].mxu0 }
 0xd91   :  { %v7217_v46 = vadd.f32 %v5588_v14, %v10013_v25  ;;  %v7249_v56 = vadd.f32 %v5814_v7, %v10018_v50  ;;  %v5590_v42 = vpop.f32.mrb[170].mxu1  ;;  %v5816_v38 = vpop.f32.mrb[26].mxu0 }
 0xd92   :  { %v7218_v21 = vadd.f32 %v5590_v42, %v10003_v59  ;;  %v7250_v36 = vadd.f32 %v5816_v38, %v10008_v5  ;;  %v5592_v47 = vpop.f32.mrb[171].mxu1  ;;  %v5818_v8 = vpop.f32.mrb[27].mxu0  ;;  %v5895_v33 = vmax.f32 %v7216_v39, 0.0  ;;  %v5897_v49 = vmax.f32 %v7248_v19, 0.0 }
 0xd93   :  { %v7219_v10 = vadd.f32 %v5592_v47, %v10013_v25  ;;  %v7251_v22 = vadd.f32 %v5818_v8, %v10018_v50  ;;  %v5896_v30 = vmax.f32 %v7217_v46, 0.0  ;;  %v5898_v27 = vmax.f32 %v7249_v56, 0.0 }
 0xd94   :  { %v5903_v3 = vmax.f32 %v7218_v21, 0.0  ;;  %v5905_v48 = vmax.f32 %v7250_v36, 0.0 }
 0xd95   :  { %v5904_v15 = vmax.f32 %v7219_v10, 0.0  ;;  %v5906_v54 = vmax.f32 %v7251_v22, 0.0 }
 0xd96   :  { %v10028_v23 = vpack.c.bf16 %v5903_v3, %v5895_v33  ;;  %v10030_v32 = vpack.c.bf16 %v5905_v48, %v5897_v49 }
 0xd97   :  { %v10032_v16 = vpack.c.bf16 %v5904_v15, %v5896_v30  ;;  %v10034_v45 = vpack.c.bf16 %v5906_v54, %v5898_v27  ;;  %v5596_v14 = vpop.f32.mrb[172].mxu1  ;;  %v5822_v7 = vpop.f32.mrb[28].mxu0 }
 0xd98   :  { %10463 = vst [vmem:[#allocation67_spill] sm:$0xff] %v10030_v32  ;;  %v7220_v42 = vadd.f32 %v5596_v14, %v10003_v59  ;;  %v7252_v39 = vadd.f32 %v5822_v7, %v10008_v5  ;;  %v5598_v19 = vpop.f32.mrb[173].mxu1  ;;  %v5824_v38 = vpop.f32.mrb[29].mxu0 }
 0xd99   :  { %10464 = vst [vmem:[#allocation66_spill] sm:$0xff] %v10034_v45  ;;  %v7221_v46 = vadd.f32 %v5598_v19, %v10013_v25  ;;  %v7253_v56 = vadd.f32 %v5824_v38, %v10018_v50  ;;  %v5600_v21 = vpop.f32.mrb[174].mxu1  ;;  %v5826_v36 = vpop.f32.mrb[30].mxu0 }
 0xd9a   :  { %v7222_v47 = vadd.f32 %v5600_v21, %v10003_v59  ;;  %v7254_v8 = vadd.f32 %v5826_v36, %v10008_v5  ;;  %v5602_v10 = vpop.f32.mrb[175].mxu1  ;;  %v5828_v22 = vpop.f32.mrb[31].mxu0  ;;  %v5911_v3 = vmax.f32 %v7220_v42, 0.0  ;;  %v5913_v48 = vmax.f32 %v7252_v39, 0.0 }
 0xd9b   :  { %v7223_v33 = vadd.f32 %v5602_v10, %v10013_v25  ;;  %v7255_v49 = vadd.f32 %v5828_v22, %v10018_v50  ;;  %v5912_v15 = vmax.f32 %v7221_v46, 0.0  ;;  %v5914_v54 = vmax.f32 %v7253_v56, 0.0 }
 0xd9c   :  { %v5919_v30 = vmax.f32 %v7222_v47, 0.0  ;;  %v5921_v27 = vmax.f32 %v7254_v8, 0.0 }
 0xd9d   :  { %v5920_v14 = vmax.f32 %v7223_v33, 0.0  ;;  %v5922_v7 = vmax.f32 %v7255_v49, 0.0 }
 0xd9e   :  { %v10044_v19 = vpack.c.bf16 %v5919_v30, %v5911_v3  ;;  %v10046_v38 = vpack.c.bf16 %v5921_v27, %v5913_v48 }
 0xd9f   :  { %v10048_v21 = vpack.c.bf16 %v5920_v14, %v5912_v15  ;;  %v10050_v36 = vpack.c.bf16 %v5922_v7, %v5914_v54  ;;  %v5606_v26 = vpop.f32.mrb[176].mxu1  ;;  %v5832_v10 = vpop.f32.mrb[32].mxu0 }
 0xda0   :  { %10465 = vst [vmem:[#allocation69_spill] sm:$0xff] %v10046_v38  ;;  %v7224_v22 = vadd.f32 %v5606_v26, %v10003_v59  ;;  %v7256_v42 = vadd.f32 %v5832_v10, %v10008_v5  ;;  %v5608_v39 = vpop.f32.mrb[177].mxu1  ;;  %v5834_v47 = vpop.f32.mrb[33].mxu0 }
 0xda1   :  { %10466 = vst [vmem:[#allocation68_spill] sm:$0xff] %v10050_v36  ;;  %v7225_v46 = vadd.f32 %v5608_v39, %v10013_v25  ;;  %v7257_v56 = vadd.f32 %v5834_v47, %v10018_v50  ;;  %v5610_v8 = vpop.f32.mrb[178].mxu1  ;;  %v5836_v33 = vpop.f32.mrb[34].mxu0 }
 0xda2   :  { %v7226_v49 = vadd.f32 %v5610_v8, %v10003_v59  ;;  %v7258_v3 = vadd.f32 %v5836_v33, %v10008_v5  ;;  %v5612_v48 = vpop.f32.mrb[179].mxu1  ;;  %v5838_v30 = vpop.f32.mrb[35].mxu0  ;;  %v5927_v15 = vmax.f32 %v7224_v22, 0.0  ;;  %v5929_v54 = vmax.f32 %v7256_v42, 0.0 }
 0xda3   :  { %v7227_v27 = vadd.f32 %v5612_v48, %v10013_v25  ;;  %v7259_v26 = vadd.f32 %v5838_v30, %v10018_v50  ;;  %v5928_v10 = vmax.f32 %v7225_v46, 0.0  ;;  %v5930_v39 = vmax.f32 %v7257_v56, 0.0 }
 0xda4   :  { %v5935_v14 = vmax.f32 %v7226_v49, 0.0  ;;  %v5937_v7 = vmax.f32 %v7258_v3, 0.0 }
 0xda5   :  { %v5936_v24 = vmax.f32 %v7227_v27, 0.0  ;;  %v5938_v47 = vmax.f32 %v7259_v26, 0.0 }
 0xda6   :  { %v10060_v38 = vpack.c.bf16 %v5935_v14, %v5927_v15  ;;  %v10062_v36 = vpack.c.bf16 %v5937_v7, %v5929_v54 }
 0xda7   :  { %v10064_v8 = vpack.c.bf16 %v5936_v24, %v5928_v10  ;;  %v10066_v33 = vpack.c.bf16 %v5938_v47, %v5930_v39  ;;  %v5616_v32 = vpop.f32.mrb[180].mxu1  ;;  %v5842_v48 = vpop.f32.mrb[36].mxu0 }
 0xda8   :  { %10467 = vst [vmem:[#allocation71_spill] sm:$0xff] %v10060_v38  ;;  %10468 = vst [vmem:[#allocation70_spill] sm:$0xff] %v10062_v36  ;;  %v7228_v30 = vadd.f32 %v5616_v32, %v10003_v59  ;;  %v7260_v22 = vadd.f32 %v5842_v48, %v10008_v5  ;;  %v5618_v42 = vpop.f32.mrb[181].mxu1  ;;  %v5844_v49 = vpop.f32.mrb[37].mxu0 }
 0xda9   :  { %10469 = vst [vmem:[#allocation73_spill] sm:$0xff] %v10066_v33  ;;  %v7229_v46 = vadd.f32 %v5618_v42, %v10013_v25  ;;  %v7261_v56 = vadd.f32 %v5844_v49, %v10018_v50  ;;  %v5620_v3 = vpop.f32.mrb[182].mxu1  ;;  %v5846_v27 = vpop.f32.mrb[38].mxu0 }
 0xdaa   :  { %v7230_v26 = vadd.f32 %v5620_v3, %v10003_v59  ;;  %v7262_v24 = vadd.f32 %v5846_v27, %v10008_v5  ;;  %v5622_v15 = vpop.f32.mrb[183].mxu1  ;;  %v5848_v54 = vpop.f32.mrb[39].mxu0  ;;  %v5943_v7 = vmax.f32 %v7228_v30, 0.0  ;;  %v5945_v10 = vmax.f32 %v7260_v22, 0.0 }
 0xdab   :  { %v7231_v14 = vadd.f32 %v5622_v15, %v10013_v25  ;;  %v7263_v32 = vadd.f32 %v5848_v54, %v10018_v50  ;;  %v5944_v48 = vmax.f32 %v7229_v46, 0.0  ;;  %v5946_v42 = vmax.f32 %v7261_v56, 0.0 }
 0xdac   :  { %v5951_v39 = vmax.f32 %v7230_v26, 0.0  ;;  %v5953_v47 = vmax.f32 %v7262_v24, 0.0 }
 0xdad   :  { %v5952_v36 = vmax.f32 %v7231_v14, 0.0  ;;  %v5954_v49 = vmax.f32 %v7263_v32, 0.0 }
 0xdae   :  { %v10076_v33 = vpack.c.bf16 %v5951_v39, %v5943_v7  ;;  %v10078_v45 = vpack.c.bf16 %v5953_v47, %v5945_v10 }
 0xdaf   :  { %v10080_v3 = vpack.c.bf16 %v5952_v36, %v5944_v48  ;;  %v10082_v27 = vpack.c.bf16 %v5954_v49, %v5946_v42  ;;  %v5626_v38 = vpop.f32.mrb[184].mxu1  ;;  %v5852_v15 = vpop.f32.mrb[40].mxu0 }
 0xdb0   :  { %10470 = vst [vmem:[#allocation72_spill] sm:$0xff] %v10076_v33  ;;  %10471 = vst [vmem:[#allocation77_spill] sm:$0xff] %v10078_v45  ;;  %v7232_v54 = vadd.f32 %v5626_v38, %v10003_v59  ;;  %v7264_v30 = vadd.f32 %v5852_v15, %v10008_v5  ;;  %v5628_v22 = vpop.f32.mrb[185].mxu1  ;;  %v5854_v26 = vpop.f32.mrb[41].mxu0 }
 0xdb1   :  { %10472 = vst [vmem:[#allocation76_spill] sm:$0xff] %v10080_v3  ;;  %10473 = vst [vmem:[#allocation79_spill] sm:$0xff] %v10082_v27  ;;  %v7233_v46 = vadd.f32 %v5628_v22, %v10013_v25  ;;  %v7265_v56 = vadd.f32 %v5854_v26, %v10018_v50  ;;  %v5630_v24 = vpop.f32.mrb[186].mxu1  ;;  %v5856_v14 = vpop.f32.mrb[42].mxu0 }
 0xdb2   :  { %v7234_v32 = vadd.f32 %v5630_v24, %v10003_v59  ;;  %v7266_v36 = vadd.f32 %v5856_v14, %v10008_v5  ;;  %v5632_v7 = vpop.f32.mrb[187].mxu1  ;;  %v5858_v10 = vpop.f32.mrb[43].mxu0  ;;  %v5959_v47 = vmax.f32 %v7232_v54, 0.0  ;;  %v5961_v48 = vmax.f32 %v7264_v30, 0.0 }
 0xdb3   :  { %v7235_v39 = vadd.f32 %v5632_v7, %v10013_v25  ;;  %v7267_v38 = vadd.f32 %v5858_v10, %v10018_v50  ;;  %v5960_v15 = vmax.f32 %v7233_v46, 0.0  ;;  %v5962_v22 = vmax.f32 %v7265_v56, 0.0 }
 0xdb4   :  { %v5967_v42 = vmax.f32 %v7234_v32, 0.0  ;;  %v5969_v49 = vmax.f32 %v7266_v36, 0.0 }
 0xdb5   :  { %v5968_v45 = vmax.f32 %v7235_v39, 0.0  ;;  %v5970_v26 = vmax.f32 %v7267_v38, 0.0 }
 0xdb6   :  { %v10092_v27 = vpack.c.bf16 %v5967_v42, %v5959_v47  ;;  %v10094_v33 = vpack.c.bf16 %v5969_v49, %v5961_v48 }
 0xdb7   :  { %v10096_v24 = vpack.c.bf16 %v5968_v45, %v5960_v15  ;;  %v10098_v14 = vpack.c.bf16 %v5970_v26, %v5962_v22  ;;  %v5636_v3 = vpop.f32.mrb[188].mxu1  ;;  %v5862_v7 = vpop.f32.mrb[44].mxu0 }
 0xdb8   :  { %10474 = vst [vmem:[#allocation78_spill] sm:$0xff] %v10092_v27  ;;  %10475 = vst [vmem:[#allocation81_spill] sm:$0xff] %v10094_v33  ;;  %v7236_v10 = vadd.f32 %v5636_v3, %v10003_v59  ;;  %v7268_v54 = vadd.f32 %v5862_v7, %v10008_v5  ;;  %v5638_v30 = vpop.f32.mrb[189].mxu1  ;;  %v5864_v32 = vpop.f32.mrb[45].mxu0 }
 0xdb9   :  { %10476 = vst [vmem:[#allocation80_spill] sm:$0xff] %v10096_v24  ;;  %10477 = vst [vmem:[#allocation83_spill] sm:$0xff] %v10098_v14  ;;  %v7237_v46 = vadd.f32 %v5638_v30, %v10013_v25  ;;  %v7269_v56 = vadd.f32 %v5864_v32, %v10018_v50  ;;  %v5640_v36 = vpop.f32.mrb[190].mxu1  ;;  %v5866_v39 = vpop.f32.mrb[46].mxu0 }
 0xdba   :  { %v7238_v38 = vadd.f32 %v5640_v36, %v10003_v59  ;;  %v7270_v45 = vadd.f32 %v5866_v39, %v10008_v5  ;;  %v5642_v47 = vpop.f32.mrb[191].mxu1  ;;  %v5868_v48 = vpop.f32.mrb[47].mxu0  ;;  %v5975_v49 = vmax.f32 %v7236_v10, 0.0  ;;  %v5977_v15 = vmax.f32 %v7268_v54, 0.0 }
 0xdbb   :  { %v7239_v42 = vadd.f32 %v5642_v47, %v10013_v25  ;;  %v7271_v3 = vadd.f32 %v5868_v48, %v10018_v50  ;;  %v5976_v7 = vmax.f32 %v7237_v46, 0.0  ;;  %v5978_v30 = vmax.f32 %v7269_v56, 0.0 }
 0xdbc   :  { %v5983_v22 = vmax.f32 %v7238_v38, 0.0  ;;  %v5985_v26 = vmax.f32 %v7270_v45, 0.0 }
 0xdbd   :  { %v5984_v33 = vmax.f32 %v7239_v42, 0.0  ;;  %v5986_v32 = vmax.f32 %v7271_v3, 0.0 }
 0xdbe   :  { %v10108_v14 = vpack.c.bf16 %v5983_v22, %v5975_v49  ;;  %v10110_v27 = vpack.c.bf16 %v5985_v26, %v5977_v15 }
 0xdbf   :  { %v10112_v36 = vpack.c.bf16 %v5984_v33, %v5976_v7  ;;  %v10114_v39 = vpack.c.bf16 %v5986_v32, %v5978_v30  ;;  %v5646_v24 = vpop.f32.mrb[192].mxu1  ;;  %v5872_v47 = vpop.f32.mrb[48].mxu0 }
 0xdc0   :  { %10478 = vst [vmem:[#allocation82_spill] sm:$0xff] %v10108_v14  ;;  %10479 = vst [vmem:[#allocation74_spill] sm:$0xff] %v10110_v27  ;;  %v7240_v48 = vadd.f32 %v5646_v24, %v10003_v59  ;;  %v7272_v10 = vadd.f32 %v5872_v47, %v10008_v5  ;;  %v5648_v54 = vpop.f32.mrb[193].mxu1  ;;  %v5874_v38 = vpop.f32.mrb[49].mxu0 }
 0xdc1   :  { %10480 = vst [vmem:[#allocation75_spill] sm:$0xff] %v10112_v36  ;;  %10481 = vst [vmem:[#allocation49_spill] sm:$0xff] %v10114_v39  ;;  %v7241_v46 = vadd.f32 %v5648_v54, %v10013_v25  ;;  %v7273_v56 = vadd.f32 %v5874_v38, %v10018_v50  ;;  %v5650_v45 = vpop.f32.mrb[194].mxu1  ;;  %v5876_v42 = vpop.f32.mrb[50].mxu0 }
 0xdc2   :  { %v7242_v3 = vadd.f32 %v5650_v45, %v10003_v59  ;;  %v7274_v33 = vadd.f32 %v5876_v42, %v10008_v5  ;;  %v5652_v49 = vpop.f32.mrb[195].mxu1  ;;  %v5878_v15 = vpop.f32.mrb[51].mxu0  ;;  %v5991_v26 = vmax.f32 %v7240_v48, 0.0  ;;  %v5993_v7 = vmax.f32 %v7272_v10, 0.0 }
 0xdc3   :  { %v7243_v22 = vadd.f32 %v5652_v49, %v10013_v25  ;;  %v7275_v24 = vadd.f32 %v5878_v15, %v10018_v50  ;;  %v5992_v47 = vmax.f32 %v7241_v46, 0.0  ;;  %v5994_v54 = vmax.f32 %v7273_v56, 0.0 }
 0xdc4   :  { %v5999_v30 = vmax.f32 %v7242_v3, 0.0  ;;  %v6001_v32 = vmax.f32 %v7274_v33, 0.0 }
 0xdc5   :  { %v6000_v27 = vmax.f32 %v7243_v22, 0.0  ;;  %v6002_v38 = vmax.f32 %v7275_v24, 0.0 }
 0xdc6   :  { %v10124_v39 = vpack.c.bf16 %v5999_v30, %v5991_v26  ;;  %v10126_v14 = vpack.c.bf16 %v6001_v32, %v5993_v7 }
 0xdc7   :  { %v10128_v45 = vpack.c.bf16 %v6000_v27, %v5992_v47  ;;  %v10130_v42 = vpack.c.bf16 %v6002_v38, %v5994_v54  ;;  %v5656_v36 = vpop.f32.mrb[196].mxu1  ;;  %v5882_v49 = vpop.f32.mrb[52].mxu0 }
 0xdc8   :  { %10482 = vst [vmem:[#allocation41_spill] sm:$0xff] %v10124_v39  ;;  %10483 = vst [vmem:[#allocation50_spill] sm:$0xff] %v10126_v14  ;;  %v7244_v15 = vadd.f32 %v5656_v36, %v10003_v59  ;;  %v7276_v48 = vadd.f32 %v5882_v49, %v10008_v5  ;;  %v5658_v10 = vpop.f32.mrb[197].mxu1  ;;  %v5884_v3 = vpop.f32.mrb[53].mxu0 }
 0xdc9   :  { %10484 = vst [vmem:[#allocation42_spill] sm:$0xff] %v10130_v42  ;;  %v7245_v46 = vadd.f32 %v5658_v10, %v10013_v25  ;;  %v7277_v56 = vadd.f32 %v5884_v3, %v10018_v50  ;;  %v5660_v33 = vpop.f32.mrb[198].mxu1  ;;  %v5886_v22 = vpop.f32.mrb[54].mxu0 }
 0xdca   :  { %v7246_v24 = vadd.f32 %v5660_v33, %v10003_v59  ;;  %v7278_v27 = vadd.f32 %v5886_v22, %v10008_v5  ;;  %v5662_v26 = vpop.f32.mrb[199].mxu1  ;;  %v5888_v7 = vpop.f32.mrb[55].mxu0  ;;  %v6007_v32 = vmax.f32 %v7244_v15, 0.0  ;;  %v6009_v47 = vmax.f32 %v7276_v48, 0.0 }
 0xdcb   :  { %v7247_v30 = vadd.f32 %v5662_v26, %v10013_v25  ;;  %v7279_v36 = vadd.f32 %v5888_v7, %v10018_v50  ;;  %v6008_v49 = vmax.f32 %v7245_v46, 0.0  ;;  %v6010_v10 = vmax.f32 %v7277_v56, 0.0 }
 0xdcc   :  { %v6015_v54 = vmax.f32 %v7246_v24, 0.0  ;;  %v6017_v38 = vmax.f32 %v7278_v27, 0.0 }
 0xdcd   :  { %v6016_v14 = vmax.f32 %v7247_v30, 0.0  ;;  %v6018_v3 = vmax.f32 %v7279_v36, 0.0 }
 0xdce   :  { %v10140_v42 = vpack.c.bf16 %v6015_v54, %v6007_v32  ;;  %v10142_v39 = vpack.c.bf16 %v6017_v38, %v6009_v47 }
 0xdcf   :  { %v10144_v59 = vpack.c.bf16 %v6016_v14, %v6008_v49  ;;  %v10146_v5 = vpack.c.bf16 %v6018_v3, %v6010_v10 }
 0xdd0   :  { %7826 = dma.done.wait [#allocation12 + $0x9], 16384 }
 0xdd1   :  { %7827 = vsyncadd [#allocation12 + $0x9], 4294950912  ;;  %6258 = vmatprep.mubr.bf16.mxu1 %v9884_v40  ;;  %v6087_v25 = vld [vmem:[#allocation11 + $0x8] sm:$0xff]  ;;  %v6086_v50 = vld [vmem:[#allocation11] sm:$0xff] }
 0xdd2   :  { %v6089_v15 = vld [vmem:[#allocation11 + $0x18] sm:$0xff]  ;;  %6226 = vmatprep.subr.bf16.mxu1 %v6087_v25  ;;  %v6088_v48 = vld [vmem:[#allocation11 + $0x10] sm:$0xff]  ;;  %v6091_v46 = vld [vmem:[#allocation11 + $0x28] sm:$0xff] }
 0xdd3   :  { %6227 = vmatpush1.bf16.msra.mxu1 %v6086_v50  ;;  %v6090_v56 = vld [vmem:[#allocation11 + $0x20] sm:$0xff]  ;;  %v6093_v33 = vld [vmem:[#allocation11 + $0x38] sm:$0xff]  ;;  %v6092_v14 = vld [vmem:[#allocation11 + $0x30] sm:$0xff] }
 0xdd4   :  { %6228 = vmatprep.subr.bf16.mxu1 %v6089_v15  ;;  %v6095_v22 = vld [vmem:[#allocation11 + $0x48] sm:$0xff]  ;;  %v6094_v24 = vld [vmem:[#allocation11 + $0x40] sm:$0xff]  ;;  %v6097_v40 = vld [vmem:[#allocation11 + $0x58] sm:$0xff] }
 0xdd5   :  { %v6096_v27 = vld [vmem:[#allocation11 + $0x50] sm:$0xff]  ;;  %v6099_v26 = vld [vmem:[#allocation11 + $0x68] sm:$0xff]  ;;  %v6098_v7 = vld [vmem:[#allocation11 + $0x60] sm:$0xff] }
 0xdd6   :  { %v6101_v30 = vld [vmem:[#allocation11 + $0x78] sm:$0xff]  ;;  %v6100_v36 = vld [vmem:[#allocation11 + $0x70] sm:$0xff]  ;;  %v6103_v32 = vld [vmem:[#allocation11 + $0x88] sm:$0xff] }
 0xdd7   :  { %6229 = vmatpush1.bf16.msra.mxu1 %v6088_v48  ;;  %v6102_v47 = vld [vmem:[#allocation11 + $0x80] sm:$0xff]  ;;  %v6105_v54 = vld [vmem:[#allocation11 + $0x98] sm:$0xff]  ;;  %v6104_v38 = vld [vmem:[#allocation11 + $0x90] sm:$0xff] }
 0xdd8   :  { %6230 = vmatprep.subr.bf16.mxu1 %v6091_v46  ;;  %v6107_v49 = vld [vmem:[#allocation11 + $0xa8] sm:$0xff]  ;;  %v6106_v10 = vld [vmem:[#allocation11 + $0xa0] sm:$0xff]  ;;  %v6109_v3 = vld [vmem:[#allocation11 + $0xb8] sm:$0xff] }
 0xdd9   :  { %v6108_v25 = vld [vmem:[#allocation11 + $0xb0] sm:$0xff]  ;;  %v6111_v50 = vld [vmem:[#allocation11 + $0xc8] sm:$0xff]  ;;  %v6110_v15 = vld [vmem:[#allocation11 + $0xc0] sm:$0xff] }
 0xdda   :  { %v6113_v48 = vld [vmem:[#allocation11 + $0xd8] sm:$0xff]  ;;  %v6112_v46 = vld [vmem:[#allocation11 + $0xd0] sm:$0xff] }
 0xddb   :  { %6231 = vmatpush1.bf16.msra.mxu1 %v6090_v56  ;;  %v6115_v56 = vld [vmem:[#allocation11 + $0xe8] sm:$0xff] }
 0xddc   :  { %6232 = vmatprep.subr.bf16.mxu1 %v6093_v33  ;;  %v6114_v33 = vld [vmem:[#allocation11 + $0xe0] sm:$0xff] }
 0xddf   :  { %6233 = vmatpush1.bf16.msra.mxu1 %v6092_v14  ;;  %v6117_v14 = vld [vmem:[#allocation11 + $0xf8] sm:$0xff] }
 0xde0   :  { %6234 = vmatprep.subr.bf16.mxu1 %v6095_v22  ;;  %v6116_v22 = vld [vmem:[#allocation11 + $0xf0] sm:$0xff] }
 0xde3   :  { %6235 = vmatpush1.bf16.msra.mxu1 %v6094_v24  ;;  %v6119_v24 = vld [vmem:[#allocation11 + $0x108] sm:$0xff] }
 0xde4   :  { %6236 = vmatprep.subr.bf16.mxu1 %v6097_v40  ;;  %v6118_v40 = vld [vmem:[#allocation11 + $0x100] sm:$0xff] }
 0xde7   :  { %6237 = vmatpush1.bf16.msra.mxu1 %v6096_v27  ;;  %v6121_v27 = vld [vmem:[#allocation11 + $0x118] sm:$0xff] }
 0xde8   :  { %6238 = vmatprep.subr.bf16.mxu1 %v6099_v26  ;;  %v6120_v26 = vld [vmem:[#allocation11 + $0x110] sm:$0xff] }
 0xdeb   :  { %6239 = vmatpush1.bf16.msra.mxu1 %v6098_v7  ;;  %v6123_v7 = vld [vmem:[#allocation11 + $0x128] sm:$0xff] }
 0xdec   :  { %6240 = vmatprep.subr.bf16.mxu1 %v6101_v30  ;;  %v6122_v30 = vld [vmem:[#allocation11 + $0x120] sm:$0xff] }
 0xdef   :  { %6241 = vmatpush1.bf16.msra.mxu1 %v6100_v36  ;;  %v6125_v36 = vld [vmem:[#allocation11 + $0x138] sm:$0xff] }
 0xdf0   :  { %6242 = vmatprep.subr.bf16.mxu1 %v6103_v32  ;;  %v6124_v32 = vld [vmem:[#allocation11 + $0x130] sm:$0xff] }
 0xdf3   :  { %6243 = vmatpush1.bf16.msra.mxu1 %v6102_v47  ;;  %v6127_v47 = vld [vmem:[#allocation11 + $0x148] sm:$0xff] }
 0xdf4   :  { %6244 = vmatprep.subr.bf16.mxu1 %v6105_v54  ;;  %v6129_v54 = vld [vmem:[#allocation11 + $0x158] sm:$0xff] }
 0xdf7   :  { %6245 = vmatpush1.bf16.msra.mxu1 %v6104_v38  ;;  %v6131_v38 = vld [vmem:[#allocation11 + $0x168] sm:$0xff] }
 0xdf8   :  { %6246 = vmatprep.subr.bf16.mxu1 %v6107_v49  ;;  %v6133_v49 = vld [vmem:[#allocation11 + $0x178] sm:$0xff] }
 0xdfb   :  { %6247 = vmatpush1.bf16.msra.mxu1 %v6106_v10  ;;  %v6135_v10 = vld [vmem:[#allocation11 + $0x188] sm:$0xff] }
 0xdfc   :  { %6248 = vmatprep.subr.bf16.mxu1 %v6109_v3  ;;  %v6137_v3 = vld [vmem:[#allocation11 + $0x198] sm:$0xff] }
 0xdff   :  { %6249 = vmatpush1.bf16.msra.mxu1 %v6108_v25  ;;  %v6139_v25 = vld [vmem:[#allocation11 + $0x1a8] sm:$0xff] }
 0xe00   :  { %6250 = vmatprep.subr.bf16.mxu1 %v6111_v50  ;;  %v6141_v50 = vld [vmem:[#allocation11 + $0x1b8] sm:$0xff] }
 0xe03   :  { %6251 = vmatpush1.bf16.msra.mxu1 %v6110_v15  ;;  %v6143_v15 = vld [vmem:[#allocation11 + $0x1c8] sm:$0xff] }
 0xe04   :  { %6252 = vmatprep.subr.bf16.mxu1 %v6113_v48  ;;  %v6145_v48 = vld [vmem:[#allocation11 + $0x1d8] sm:$0xff] }
 0xe07   :  { %6253 = vmatpush1.bf16.msra.mxu1 %v6112_v46  ;;  %v6147_v46 = vld [vmem:[#allocation11 + $0x1e8] sm:$0xff] }
 0xe08   :  { %6254 = vmatprep.subr.bf16.mxu1 %v6115_v56  ;;  %v6149_v56 = vld [vmem:[#allocation11 + $0x1f8] sm:$0xff] }
 0xe0b   :  { %6255 = vmatpush1.bf16.msra.mxu1 %v6114_v33  ;;  %v6151_v33 = vld [vmem:[#allocation11 + $0x208] sm:$0xff] }
 0xe0c   :  { %6256 = vmatprep.subr.bf16.mxu1 %v6117_v14  ;;  %v6153_v14 = vld [vmem:[#allocation11 + $0x218] sm:$0xff] }
 0xe0f   :  { %6257 = vmatpush1.bf16.msra.mxu1 %v6116_v22  ;;  %v6155_v22 = vld [vmem:[#allocation11 + $0x228] sm:$0xff] }
 0xe10   :  { %6339 = vmatprep.subr.bf16.mxu1 %v6119_v24  ;;  %v6157_v24 = vld [vmem:[#allocation11 + $0x238] sm:$0xff] }
 0xe12   :  { %6259 = vmatmul.mubr.bf16.vlgmr.msra.gmra.mrb[200].mxu1 %v9880_v57  ;;  %v6126_v57 = vld [vmem:[#allocation11 + $0x140] sm:$0xff] }
 0xe13   :  { %6340 = vmatpush1.bf16.msra.mxu1 %v6118_v40  ;;  %6268 = vmatprep.mubr.bf16.mxu1 %v9900_v53  ;;  %v6128_v53 = vld [vmem:[#allocation11 + $0x150] sm:$0xff]  ;;  %v6159_v40 = vld [vmem:[#allocation11 + $0x248] sm:$0xff] }
 0xe14   :  { %6341 = vmatprep.subr.bf16.mxu1 %v6121_v27  ;;  %v6161_v27 = vld [vmem:[#allocation11 + $0x258] sm:$0xff] }
 0xe17   :  { %6342 = vmatpush1.bf16.msra.mxu1 %v6120_v26  ;;  %v6163_v26 = vld [vmem:[#allocation11 + $0x268] sm:$0xff] }
 0xe18   :  { %6343 = vmatprep.subr.bf16.mxu1 %v6123_v7  ;;  %v6165_v7 = vld [vmem:[#allocation11 + $0x278] sm:$0xff] }
 0xe1a   :  { %6269 = vmatmul.mubr.bf16.gmra.mrb[204].mxu1 %v9896_v6  ;;  %v6130_v6 = vld [vmem:[#allocation11 + $0x160] sm:$0xff] }
 0xe1b   :  { %6344 = vmatpush1.bf16.msra.mxu1 %v6122_v30  ;;  %6278 = vmatprep.mubr.bf16.mxu1 %v9916_v17  ;;  %v6132_v17 = vld [vmem:[#allocation11 + $0x170] sm:$0xff]  ;;  %v6167_v30 = vld [vmem:[#allocation11 + $0x288] sm:$0xff] }
 0xe1c   :  { %6345 = vmatprep.subr.bf16.mxu1 %v6125_v36  ;;  %v6169_v36 = vld [vmem:[#allocation11 + $0x298] sm:$0xff] }
 0xe1f   :  { %6346 = vmatpush1.bf16.msra.mxu1 %v6124_v32  ;;  %v6171_v32 = vld [vmem:[#allocation11 + $0x2a8] sm:$0xff] }
 0xe20   :  { %6347 = vmatprep.subr.bf16.mxu1 %v6127_v47  ;;  %v6173_v47 = vld [vmem:[#allocation11 + $0x2b8] sm:$0xff] }
 0xe22   :  { %6279 = vmatmul.mubr.bf16.gmra.mrb[208].mxu1 %v9912_v60  ;;  %v6134_v60 = vld [vmem:[#allocation11 + $0x180] sm:$0xff] }
 0xe23   :  { %6348 = vmatpush1.bf16.msra.mxu1 %v6126_v57  ;;  %6288 = vmatprep.mubr.bf16.mxu1 %v9932_v29  ;;  %v6136_v29 = vld [vmem:[#allocation11 + $0x190] sm:$0xff]  ;;  %v6175_v57 = vld [vmem:[#allocation11 + $0x2c8] sm:$0xff] }
 0xe24   :  { %6349 = vmatprep.subr.bf16.mxu1 %v6129_v54  ;;  %v6177_v54 = vld [vmem:[#allocation11 + $0x2d8] sm:$0xff] }
 0xe27   :  { %6350 = vmatpush1.bf16.msra.mxu1 %v6128_v53  ;;  %v6179_v53 = vld [vmem:[#allocation11 + $0x2e8] sm:$0xff] }
 0xe28   :  { %6351 = vmatprep.subr.bf16.mxu1 %v6131_v38  ;;  %v6181_v38 = vld [vmem:[#allocation11 + $0x2f8] sm:$0xff] }
 0xe2a   :  { %6289 = vmatmul.mubr.bf16.gmra.mrb[212].mxu1 %v9928_v31  ;;  %v6138_v31 = vld [vmem:[#allocation11 + $0x1a0] sm:$0xff] }
 0xe2b   :  { %6352 = vmatpush1.bf16.msra.mxu1 %v6130_v6  ;;  %6298 = vmatprep.mubr.bf16.mxu1 %v9948_v2  ;;  %v6140_v2 = vld [vmem:[#allocation11 + $0x1b0] sm:$0xff]  ;;  %v6183_v6 = vld [vmem:[#allocation11 + $0x308] sm:$0xff] }
 0xe2c   :  { %6353 = vmatprep.subr.bf16.mxu1 %v6133_v49  ;;  %v6185_v49 = vld [vmem:[#allocation11 + $0x318] sm:$0xff] }
 0xe2f   :  { %6354 = vmatpush1.bf16.msra.mxu1 %v6132_v17  ;;  %v6187_v17 = vld [vmem:[#allocation11 + $0x328] sm:$0xff] }
 0xe30   :  { %6355 = vmatprep.subr.bf16.mxu1 %v6135_v10  ;;  %v6189_v10 = vld [vmem:[#allocation11 + $0x338] sm:$0xff] }
 0xe32   :  { %6299 = vmatmul.mubr.bf16.gmra.mrb[216].mxu1 %v9944_v63  ;;  %v6142_v63 = vld [vmem:[#allocation11 + $0x1c0] sm:$0xff] }
 0xe33   :  { %6356 = vmatpush1.bf16.msra.mxu1 %v6134_v60  ;;  %6308 = vmatprep.mubr.bf16.mxu1 %v9964_v44  ;;  %v6144_v44 = vld [vmem:[#allocation11 + $0x1d0] sm:$0xff]  ;;  %v6191_v60 = vld [vmem:[#allocation11 + $0x348] sm:$0xff] }
 0xe34   :  { %6357 = vmatprep.subr.bf16.mxu1 %v6137_v3  ;;  %v6193_v3 = vld [vmem:[#allocation11 + $0x358] sm:$0xff] }
 0xe37   :  { %6358 = vmatpush1.bf16.msra.mxu1 %v6136_v29  ;;  %v10486_v29 = vld [vmem:[#allocation76_spill] sm:$0xff] }
 0xe38   :  { %6359 = vmatprep.subr.bf16.mxu1 %v6139_v25  ;;  %v6192_v25 = vld [vmem:[#allocation11 + $0x350] sm:$0xff] }
 0xe3a   :  { %6309 = vmatmul.mubr.bf16.gmra.mrb[220].mxu1 %v9960_v20  ;;  %v6146_v20 = vld [vmem:[#allocation11 + $0x1e0] sm:$0xff] }
 0xe3b   :  { %6360 = vmatpush1.bf16.msra.mxu1 %v6138_v31  ;;  %6318 = vmatprep.mubr.bf16.mxu1 %v9980_v0  ;;  %v6148_v0 = vld [vmem:[#allocation11 + $0x1f0] sm:$0xff]  ;;  %v6195_v31 = vld [vmem:[#allocation11 + $0x368] sm:$0xff] }
 0xe3c   :  { %6361 = vmatprep.subr.bf16.mxu1 %v6141_v50  ;;  %v6197_v50 = vld [vmem:[#allocation11 + $0x378] sm:$0xff] }
 0xe3f   :  { %6362 = vmatpush1.bf16.msra.mxu1 %v6140_v2  ;;  %v10488_v2 = vld [vmem:[#allocation80_spill] sm:$0xff] }
 0xe40   :  { %6363 = vmatprep.subr.bf16.mxu1 %v6143_v15  ;;  %v6196_v15 = vld [vmem:[#allocation11 + $0x370] sm:$0xff] }
 0xe42   :  { %6319 = vmatmul.mubr.bf16.gmra.mrb[224].mxu1 %v9976_v51  ;;  %v6150_v51 = vld [vmem:[#allocation11 + $0x200] sm:$0xff] }
 0xe43   :  { %6364 = vmatpush1.bf16.msra.mxu1 %v6142_v63  ;;  %6328 = vmatprep.mubr.bf16.mxu1 %v9996_v18  ;;  %v6152_v18 = vld [vmem:[#allocation11 + $0x210] sm:$0xff]  ;;  %v6199_v63 = vld [vmem:[#allocation11 + $0x388] sm:$0xff] }
 0xe44   :  { %6365 = vmatprep.subr.bf16.mxu1 %v6145_v48  ;;  %v6198_v48 = vld [vmem:[#allocation11 + $0x380] sm:$0xff] }
 0xe47   :  { %6366 = vmatpush1.bf16.msra.mxu1 %v6144_v44  ;;  %v6201_v44 = vld [vmem:[#allocation11 + $0x398] sm:$0xff] }
 0xe48   :  { %6367 = vmatprep.subr.bf16.mxu1 %v6147_v46  ;;  %v10489_v46 = vld [vmem:[#allocation78_spill] sm:$0xff] }
 0xe4a   :  { %6329 = vmatmul.mubr.bf16.gmra.mrb[228].mxu1 %v9992_v52  ;;  %v6154_v52 = vld [vmem:[#allocation11 + $0x220] sm:$0xff] }
 0xe4b   :  { %6368 = vmatpush1.bf16.msra.mxu1 %v6146_v20  ;;  %6371 = vmatprep.mubr.bf16.mxu1 %v9886_v9  ;;  %v6156_v9 = vld [vmem:[#allocation11 + $0x230] sm:$0xff] }
 0xe4c   :  { %6369 = vmatprep.subr.bf16.mxu1 %v6149_v56  ;;  %v10490_v20 = vld [vmem:[#allocation75_spill] sm:$0xff] }
 0xe4d   :  { %v6200_v56 = vld [vmem:[#allocation11 + $0x390] sm:$0xff] }
 0xe4f   :  { %6370 = vmatpush1.bf16.msra.mxu1 %v6148_v0  ;;  %v6203_v0 = vld [vmem:[#allocation11 + $0x3a8] sm:$0xff] }
 0xe50   :  { %6452 = vmatprep.subr.bf16.mxu1 %v6151_v33  ;;  %v6202_v33 = vld [vmem:[#allocation11 + $0x3a0] sm:$0xff] }
 0xe52   :  { %6372 = vmatmul.mubr.bf16.vlgmr.msra.gmra.mrb[200].mxu1 %v9882_v4  ;;  %v6158_v4 = vld [vmem:[#allocation11 + $0x240] sm:$0xff] }
 0xe53   :  { %6453 = vmatpush1.bf16.msra.mxu1 %v6150_v51  ;;  %6381 = vmatprep.mubr.bf16.mxu1 %v9902_v58  ;;  %v6160_v58 = vld [vmem:[#allocation11 + $0x250] sm:$0xff]  ;;  %v6205_v51 = vld [vmem:[#allocation11 + $0x3b8] sm:$0xff] }
 0xe54   :  { %6454 = vmatprep.subr.bf16.mxu1 %v6153_v14  ;;  %v10491_v14 = vld [vmem:[#allocation82_spill] sm:$0xff] }
 0xe57   :  { %6455 = vmatpush1.bf16.msra.mxu1 %v6152_v18  ;;  %v6204_v18 = vld [vmem:[#allocation11 + $0x3b0] sm:$0xff] }
 0xe58   :  { %6456 = vmatprep.subr.bf16.mxu1 %v6155_v22  ;;  %v6207_v22 = vld [vmem:[#allocation11 + $0x3c8] sm:$0xff] }
 0xe5a   :  { %6382 = vmatmul.mubr.bf16.gmra.mrb[204].mxu1 %v9898_v43  ;;  %v6162_v43 = vld [vmem:[#allocation11 + $0x260] sm:$0xff] }
 0xe5b   :  { %6457 = vmatpush1.bf16.msra.mxu1 %v6154_v52  ;;  %6391 = vmatprep.mubr.bf16.mxu1 %v9918_v62  ;;  %v6164_v62 = vld [vmem:[#allocation11 + $0x270] sm:$0xff]  ;;  %v6206_v52 = vld [vmem:[#allocation11 + $0x3c0] sm:$0xff] }
 0xe5c   :  { %6458 = vmatprep.subr.bf16.mxu1 %v6157_v24  ;;  %v6209_v24 = vld [vmem:[#allocation11 + $0x3d8] sm:$0xff] }
 0xe5f   :  { %6459 = vmatpush1.bf16.msra.mxu1 %v6156_v9  ;;  %v10492_v9 = vld [vmem:[#allocation41_spill] sm:$0xff] }
 0xe60   :  { %6460 = vmatprep.subr.bf16.mxu1 %v6159_v40  ;;  %v6208_v40 = vld [vmem:[#allocation11 + $0x3d0] sm:$0xff] }
 0xe62   :  { %6392 = vmatmul.mubr.bf16.gmra.mrb[208].mxu1 %v9914_v37  ;;  %v6166_v37 = vld [vmem:[#allocation11 + $0x280] sm:$0xff] }
 0xe63   :  { %6461 = vmatpush1.bf16.msra.mxu1 %v6158_v4  ;;  %6401 = vmatprep.mubr.bf16.mxu1 %v9934_v13  ;;  %v6168_v13 = vld [vmem:[#allocation11 + $0x290] sm:$0xff]  ;;  %v6211_v4 = vld [vmem:[#allocation11 + $0x3e8] sm:$0xff] }
 0xe64   :  { %6462 = vmatprep.subr.bf16.mxu1 %v6161_v27  ;;  %v6210_v27 = vld [vmem:[#allocation11 + $0x3e0] sm:$0xff] }
 0xe67   :  { %6463 = vmatpush1.bf16.msra.mxu1 %v6160_v58  ;;  %v6213_v58 = vld [vmem:[#allocation11 + $0x3f8] sm:$0xff] }
 0xe68   :  { %6464 = vmatprep.subr.bf16.mxu1 %v6163_v26  ;;  %v6212_v26 = vld [vmem:[#allocation11 + $0x3f0] sm:$0xff] }
 0xe6a   :  { %6402 = vmatmul.mubr.bf16.gmra.mrb[212].mxu1 %v9930_v55  ;;  %v6170_v55 = vld [vmem:[#allocation11 + $0x2a0] sm:$0xff] }
 0xe6b   :  { %6465 = vmatpush1.bf16.msra.mxu1 %v6162_v43  ;;  %6411 = vmatprep.mubr.bf16.mxu1 %v9950_v35  ;;  %v6172_v35 = vld [vmem:[#allocation11 + $0x2b0] sm:$0xff] }
 0xe6c   :  { %6466 = vmatprep.subr.bf16.mxu1 %v6165_v7  ;;  %v10494_v43 = vld [vmem:[#allocation67_spill] sm:$0xff]  ;;  %v10495_v7 = vld [vmem:[#allocation68_spill] sm:$0xff] }
 0xe6f   :  { %6467 = vmatpush1.bf16.msra.mxu1 %v6164_v62  ;;  %v10497_v62 = vld [vmem:[#allocation73_spill] sm:$0xff] }
 0xe70   :  { %6468 = vmatprep.subr.bf16.mxu1 %v6167_v30  ;;  %v10498_v30 = vld [vmem:[#allocation70_spill] sm:$0xff] }
 0xe72   :  { %6412 = vmatmul.mubr.bf16.gmra.mrb[216].mxu1 %v9946_v1  ;;  %v6174_v1 = vld [vmem:[#allocation11 + $0x2c0] sm:$0xff] }
 0xe73   :  { %6469 = vmatpush1.bf16.msra.mxu1 %v6166_v37  ;;  %6421 = vmatprep.mubr.bf16.mxu1 %v9966_v61  ;;  %v6176_v61 = vld [vmem:[#allocation11 + $0x2d0] sm:$0xff] }
 0xe74   :  { %6470 = vmatprep.subr.bf16.mxu1 %v6169_v36  ;;  %v10499_v37 = vld [vmem:[#allocation79_spill] sm:$0xff]  ;;  %v10500_v36 = vld [vmem:[#allocation77_spill] sm:$0xff] }
 0xe77   :  { %6471 = vmatpush1.bf16.msra.mxu1 %v6168_v13  ;;  %v10502_v13 = vld [vmem:[#allocation81_spill] sm:$0xff] }
 0xe78   :  { %6472 = vmatprep.subr.bf16.mxu1 %v6171_v32  ;;  %v10503_v32 = vld [vmem:[#allocation49_spill] sm:$0xff] }
 0xe7a   :  { %6422 = vmatmul.mubr.bf16.gmra.mrb[220].mxu1 %v9962_v41  ;;  %v6178_v41 = vld [vmem:[#allocation11 + $0x2e0] sm:$0xff] }
 0xe7b   :  { %6473 = vmatpush1.bf16.msra.mxu1 %v6170_v55  ;;  %6431 = vmatprep.mubr.bf16.mxu1 %v9982_v12  ;;  %v6180_v12 = vld [vmem:[#allocation11 + $0x2f0] sm:$0xff]  ;;  %v10504_v55 = vld [vmem:[#allocation74_spill] sm:$0xff] }
 0xe7c   :  { %6474 = vmatprep.subr.bf16.mxu1 %v6173_v47  ;;  %v10505_v47 = vld [vmem:[#allocation42_spill] sm:$0xff] }
 0xe7f   :  { %6475 = vmatpush1.bf16.msra.mxu1 %v6172_v35  ;;  %v10506_v35 = vld [vmem:[#allocation50_spill] sm:$0xff] }
 0xe80   :  { %6476 = vmatprep.subr.bf16.mxu1 %v6175_v57  ;;  %v6214_v57 = vld [vmem:[%s10277_s10] sm:$0x3]  ;;  %s7854_s10 = smov [#allocation13]  }
 0xe81   :  { %s6715_s22 = sshll.u32 %s7854_s10, 4  ;;  %s6716_s22 = int_to_ptr.vmem [resolvable:$true] %s6715_s22 }
 0xe82   :  { %6432 = vmatmul.mubr.bf16.gmra.mrb[224].mxu1 %v9978_v34  ;;  %v6182_v34 = vld [vmem:[#allocation11 + $0x300] sm:$0xff]  ;;  %s7786_s13 = scalar_lea.vmem %s6716_s22, 4096  ;;  %p7791_p1 = scmp.lt.s32.totalorder %s6716_s22, %s6716_s22 }
 0xe83   :  { %6477 = vmatpush1.bf16.msra.mxu1 %v6174_v1  ;;  %6441 = vmatprep.mubr.bf16.mxu1 %v9998_v28  ;;  %v6184_v28 = vld [vmem:[#allocation11 + $0x310] sm:$0xff]  ;;  %v10507_v1 = vld [vmem:[#allocation64_spill] sm:$0xff]  ;;  %p7787_p0 = scmp.ne.s32.totalorder %s6716_s22, %s7786_s13  ;;  %p7792_p2 = scmp.lt.s32.totalorder %s7786_s13, %s7786_s13 }
 0xe84   :  { %6478 = vmatprep.subr.bf16.mxu1 %v6177_v54  ;;  %v10216_v54 = vrot.slane %v6214_v57, %v10507_v1 }
 0xe85   :  { %p7793_p3 = por %p7792_p2, %p7791_p1 }
 0xe87   :  { %6479 = vmatpush1.bf16.msra.mxu1 %v6176_v61  ;;  %v10508_v61 = vld [vmem:[#allocation65_spill] sm:$0xff]  ;;  %p7794_p4 = pnand %p7793_p3, %p7787_p0 }
 0xe88   :  { %6480 = vmatprep.subr.bf16.mxu1 %v6179_v53  ;;  %v10219_v53 = vrot.slane %v6214_v57, %v10508_v61 }
 0xe8a   :  { %6442 = vmatmul.mubr.bf16.gmra.mrb[228].mxu1 %v9994_v11  ;;  %v6186_v11 = vld [vmem:[#allocation11 + $0x320] sm:$0xff] }
 0xe8b   :  { %6481 = vmatpush1.bf16.msra.mxu1 %v6178_v41  ;;  %6484 = vmatprep.mubr.bf16.mxu1 %v10032_v16  ;;  %v6188_v16 = vld [vmem:[#allocation11 + $0x330] sm:$0xff] }
 0xe8c   :  { %6482 = vmatprep.subr.bf16.mxu1 %v6181_v38 }
 0xe8f   :  { %6483 = vmatpush1.bf16.msra.mxu1 %v6180_v12 }
 0xe90   :  { %6565 = vmatprep.subr.bf16.mxu1 %v6183_v6 }
 0xe92   :  { %6485 = vmatmul.mubr.bf16.vlgmr.msra.gmra.mrb[200].mxu1 %v10028_v23  ;;  %v6190_v23 = vld [vmem:[#allocation11 + $0x340] sm:$0xff] }
 0xe93   :  { %6566 = vmatpush1.bf16.msra.mxu1 %v6182_v34  ;;  %6494 = vmatprep.mubr.bf16.mxu1 %v10048_v21  ;;  %v10485_v21 = vld [vmem:[#allocation71_spill] sm:$0xff] }
 0xe94   :  { %6567 = vmatprep.subr.bf16.mxu1 %v6185_v49 }
 0xe97   :  { %6568 = vmatpush1.bf16.msra.mxu1 %v6184_v28 }
 0xe98   :  { %6569 = vmatprep.subr.bf16.mxu1 %v6187_v17 }
 0xe9a   :  { %6495 = vmatmul.mubr.bf16.gmra.mrb[204].mxu1 %v10044_v19  ;;  %v6194_v19 = vld [vmem:[#allocation11 + $0x360] sm:$0xff] }
 0xe9b   :  { %6570 = vmatpush1.bf16.msra.mxu1 %v6186_v11  ;;  %6504 = vmatprep.mubr.bf16.mxu1 %v10064_v8  ;;  %v10487_v8 = vld [vmem:[#allocation72_spill] sm:$0xff] }
 0xe9c   :  { %6571 = vmatprep.subr.bf16.mxu1 %v6189_v10 }
 0xe9f   :  { %6572 = vmatpush1.bf16.msra.mxu1 %v6188_v16 }
 0xea0   :  { %6573 = vmatprep.subr.bf16.mxu1 %v6191_v60 }
 0xea2   :  { %6505 = vmatmul.mubr.bf16.gmra.mrb[208].mxu1 %v10485_v21 }
 0xea3   :  { %6574 = vmatpush1.bf16.msra.mxu1 %v6190_v23  ;;  %6514 = vmatprep.mubr.bf16.mxu1 %v10486_v29 }
 0xea4   :  { %6575 = vmatprep.subr.bf16.mxu1 %v6193_v3 }
 0xea7   :  { %6576 = vmatpush1.bf16.msra.mxu1 %v6192_v25 }
 0xea8   :  { %6577 = vmatprep.subr.bf16.mxu1 %v6195_v31 }
 0xeaa   :  { %6515 = vmatmul.mubr.bf16.gmra.mrb[212].mxu1 %v10487_v8 }
 0xeab   :  { %6578 = vmatpush1.bf16.msra.mxu1 %v6194_v19  ;;  %6524 = vmatprep.mubr.bf16.mxu1 %v10488_v2 }
 0xeac   :  { %6579 = vmatprep.subr.bf16.mxu1 %v6197_v50 }
 0xeaf   :  { %6580 = vmatpush1.bf16.msra.mxu1 %v6196_v15 }
 0xeb0   :  { %6581 = vmatprep.subr.bf16.mxu1 %v6199_v63 }
 0xeb2   :  { %6525 = vmatmul.mubr.bf16.gmra.mrb[216].mxu1 %v10489_v46 }
 0xeb3   :  { %6582 = vmatpush1.bf16.msra.mxu1 %v6198_v48  ;;  %6534 = vmatprep.mubr.bf16.mxu1 %v10490_v20 }
 0xeb4   :  { %6583 = vmatprep.subr.bf16.mxu1 %v6201_v44 }
 0xeb7   :  { %6584 = vmatpush1.bf16.msra.mxu1 %v6200_v56 }
 0xeb8   :  { %6585 = vmatprep.subr.bf16.mxu1 %v6203_v0 }
 0xeba   :  { %6535 = vmatmul.mubr.bf16.gmra.mrb[220].mxu1 %v10491_v14 }
 0xebb   :  { %6586 = vmatpush1.bf16.msra.mxu1 %v6202_v33  ;;  %6544 = vmatprep.mubr.bf16.mxu1 %v10128_v45  ;;  %v10493_v45 = vld [vmem:[#allocation66_spill] sm:$0xff] }
 0xebc   :  { %6587 = vmatprep.subr.bf16.mxu1 %v6205_v51 }
 0xebf   :  { %6588 = vmatpush1.bf16.msra.mxu1 %v6204_v18 }
 0xec0   :  { %6589 = vmatprep.subr.bf16.mxu1 %v6207_v22 }
 0xec2   :  { %6545 = vmatmul.mubr.bf16.gmra.mrb[224].mxu1 %v10492_v9 }
 0xec3   :  { %6590 = vmatpush1.bf16.msra.mxu1 %v6206_v52  ;;  %6554 = vmatprep.mubr.bf16.mxu1 %v10144_v59  ;;  %v10496_v59 = vld [vmem:[#allocation69_spill] sm:$0xff] }
 0xec4   :  { %6591 = vmatprep.subr.bf16.mxu1 %v6209_v24 }
 0xec7   :  { %6592 = vmatpush1.bf16.msra.mxu1 %v6208_v40 }
 0xec8   :  { %6593 = vmatprep.subr.bf16.mxu1 %v6211_v4 }
 0xeca   :  { %6555 = vmatmul.mubr.bf16.gmra.mrb[228].mxu1 %v10140_v42  ;;  %v10501_v42 = vld [vmem:[#allocation83_spill] sm:$0xff] }
 0xecb   :  { %6594 = vmatpush1.bf16.msra.mxu1 %v6210_v27  ;;  %6597 = vmatprep.mubr.bf16.mxu1 %v10493_v45 }
 0xecc   :  { %6595 = vmatprep.subr.bf16.mxu1 %v6213_v58 }
 0xecf   :  { %6596 = vmatpush1.bf16.msra.mxu1 %v6212_v26 }
 0xed2   :  { %6598 = vmatmul.mubr.bf16.vlgmr.msra.gmra.mrb[200].mxu1 %v10494_v43 }
 0xed3   :  { %6607 = vmatprep.mubr.bf16.mxu1 %v10495_v7 }
 0xeda   :  { %6608 = vmatmul.mubr.bf16.gmra.mrb[204].mxu1 %v10496_v59 }
 0xedb   :  { %6617 = vmatprep.mubr.bf16.mxu1 %v10497_v62 }
 0xee2   :  { %6618 = vmatmul.mubr.bf16.gmra.mrb[208].mxu1 %v10498_v30 }
 0xee3   :  { %6627 = vmatprep.mubr.bf16.mxu1 %v10499_v37 }
 0xeea   :  { %6628 = vmatmul.mubr.bf16.gmra.mrb[212].mxu1 %v10500_v36 }
 0xeeb   :  { %6637 = vmatprep.mubr.bf16.mxu1 %v10501_v42 }
 0xef2   :  { %6638 = vmatmul.mubr.bf16.gmra.mrb[216].mxu1 %v10502_v13 }
 0xef3   :  { %6647 = vmatprep.mubr.bf16.mxu1 %v10503_v32 }
 0xefa   :  { %6648 = vmatmul.mubr.bf16.gmra.mrb[220].mxu1 %v10504_v55 }
 0xefb   :  { %6657 = vmatprep.mubr.bf16.mxu1 %v10505_v47 }
 0xf02   :  { %6658 = vmatmul.mubr.bf16.gmra.mrb[224].mxu1 %v10506_v35 }
 0xf03   :  { %6667 = vmatprep.mubr.bf16.mxu1 %v10146_v5 }
 0xf0a   :  { %6668 = vmatmul.mubr.bf16.gmra.mrb[228].mxu1 %v10142_v39 }
 0xfa5   :  { %v6599_v41 = vpop.f32.mrb[200].mxu1 }
 0xfa6   :  { %v7280_v38 = vadd.f32 %v6599_v41, %v10216_v54  ;;  %v6601_v12 = vpop.f32.mrb[201].mxu1 }
 0xfa7   :  { %v7281_v6 = vadd.f32 %v6601_v12, %v10219_v53  ;;  %v6603_v34 = vpop.f32.mrb[202].mxu1 }
 0xfa8   :  { %6678 = vst [vmem:[#allocation13] sm:$0xff] %v7280_v38  ;;  %v7282_v39 = vadd.f32 %v6603_v34, %v10216_v54  ;;  %v6605_v5 = vpop.f32.mrb[203].mxu1 }
 0xfa9   :  { %6679 = vst [vmem:[#allocation13 + $0x8] sm:$0xff] %v7281_v6  ;;  %v7283_v49 = vadd.f32 %v6605_v5, %v10219_v53 }
 0xfaa   :  { %6680 = vst [vmem:[#allocation13 + $0x10] sm:$0xff] %v7282_v39 }
 0xfab   :  { %6681 = vst [vmem:[#allocation13 + $0x18] sm:$0xff] %v7283_v49 }
 0xfad   :  { %v6609_v28 = vpop.f32.mrb[204].mxu1 }
 0xfae   :  { %v7284_v17 = vadd.f32 %v6609_v28, %v10216_v54  ;;  %v6611_v11 = vpop.f32.mrb[205].mxu1 }
 0xfaf   :  { %v7285_v10 = vadd.f32 %v6611_v11, %v10219_v53  ;;  %v6613_v16 = vpop.f32.mrb[206].mxu1 }
 0xfb0   :  { %6682 = vst [vmem:[#allocation13 + $0x20] sm:$0xff] %v7284_v17  ;;  %v7286_v60 = vadd.f32 %v6613_v16, %v10216_v54  ;;  %v6615_v23 = vpop.f32.mrb[207].mxu1 }
 0xfb1   :  { %6683 = vst [vmem:[#allocation13 + $0x28] sm:$0xff] %v7285_v10  ;;  %v7287_v3 = vadd.f32 %v6615_v23, %v10219_v53 }
 0xfb2   :  { %6684 = vst [vmem:[#allocation13 + $0x30] sm:$0xff] %v7286_v60 }
 0xfb3   :  { %6685 = vst [vmem:[#allocation13 + $0x38] sm:$0xff] %v7287_v3 }
 0xfb5   :  { %v6619_v21 = vpop.f32.mrb[208].mxu1 }
 0xfb6   :  { %v7288_v29 = vadd.f32 %v6619_v21, %v10216_v54  ;;  %v6621_v25 = vpop.f32.mrb[209].mxu1 }
 0xfb7   :  { %v7289_v31 = vadd.f32 %v6621_v25, %v10219_v53  ;;  %v6623_v19 = vpop.f32.mrb[210].mxu1 }
 0xfb8   :  { %6686 = vst [vmem:[#allocation13 + $0x40] sm:$0xff] %v7288_v29  ;;  %v7290_v50 = vadd.f32 %v6623_v19, %v10216_v54  ;;  %v6625_v8 = vpop.f32.mrb[211].mxu1 }
 0xfb9   :  { %6687 = vst [vmem:[#allocation13 + $0x48] sm:$0xff] %v7289_v31  ;;  %v7291_v2 = vadd.f32 %v6625_v8, %v10219_v53 }
 0xfba   :  { %6688 = vst [vmem:[#allocation13 + $0x50] sm:$0xff] %v7290_v50 }
 0xfbb   :  { %6689 = vst [vmem:[#allocation13 + $0x58] sm:$0xff] %v7291_v2 }
 0xfbd   :  { %v6629_v15 = vpop.f32.mrb[212].mxu1 }
 0xfbe   :  { %v7292_v63 = vadd.f32 %v6629_v15, %v10216_v54  ;;  %v6631_v48 = vpop.f32.mrb[213].mxu1 }
 0xfbf   :  { %v7293_v44 = vadd.f32 %v6631_v48, %v10219_v53  ;;  %v6633_v46 = vpop.f32.mrb[214].mxu1 }
 0xfc0   :  { %6690 = vst [vmem:[#allocation13 + $0x60] sm:$0xff] %v7292_v63  ;;  %v7294_v20 = vadd.f32 %v6633_v46, %v10216_v54  ;;  %v6635_v56 = vpop.f32.mrb[215].mxu1 }
 0xfc1   :  { %6691 = vst [vmem:[#allocation13 + $0x68] sm:$0xff] %v7293_v44  ;;  %v7295_v0 = vadd.f32 %v6635_v56, %v10219_v53 }
 0xfc2   :  { %6692 = vst [vmem:[#allocation13 + $0x70] sm:$0xff] %v7294_v20 }
 0xfc3   :  { %6693 = vst [vmem:[#allocation13 + $0x78] sm:$0xff] %v7295_v0 }
 0xfc5   :  { %v6639_v33 = vpop.f32.mrb[216].mxu1 }
 0xfc6   :  { %v7296_v51 = vadd.f32 %v6639_v33, %v10216_v54  ;;  %v6641_v14 = vpop.f32.mrb[217].mxu1 }
 0xfc7   :  { %v7297_v18 = vadd.f32 %v6641_v14, %v10219_v53  ;;  %v6643_v22 = vpop.f32.mrb[218].mxu1 }
 0xfc8   :  { %6694 = vst [vmem:[#allocation13 + $0x80] sm:$0xff] %v7296_v51  ;;  %v7298_v52 = vadd.f32 %v6643_v22, %v10216_v54  ;;  %v6645_v24 = vpop.f32.mrb[219].mxu1 }
 0xfc9   :  { %6695 = vst [vmem:[#allocation13 + $0x88] sm:$0xff] %v7297_v18  ;;  %v7299_v9 = vadd.f32 %v6645_v24, %v10219_v53 }
 0xfca   :  { %6696 = vst [vmem:[#allocation13 + $0x90] sm:$0xff] %v7298_v52 }
 0xfcb   :  { %6697 = vst [vmem:[#allocation13 + $0x98] sm:$0xff] %v7299_v9 }
 0xfcd   :  { %v6649_v40 = vpop.f32.mrb[220].mxu1 }
 0xfce   :  { %v7300_v4 = vadd.f32 %v6649_v40, %v10216_v54  ;;  %v6651_v27 = vpop.f32.mrb[221].mxu1 }
 0xfcf   :  { %v7301_v58 = vadd.f32 %v6651_v27, %v10219_v53  ;;  %v6653_v45 = vpop.f32.mrb[222].mxu1 }
 0xfd0   :  { %6698 = vst [vmem:[#allocation13 + $0xa0] sm:$0xff] %v7300_v4  ;;  %v7302_v26 = vadd.f32 %v6653_v45, %v10216_v54  ;;  %v6655_v43 = vpop.f32.mrb[223].mxu1 }
 0xfd1   :  { %6699 = vst [vmem:[#allocation13 + $0xa8] sm:$0xff] %v7301_v58  ;;  %v7303_v7 = vadd.f32 %v6655_v43, %v10219_v53 }
 0xfd2   :  { %6700 = vst [vmem:[#allocation13 + $0xb0] sm:$0xff] %v7302_v26 }
 0xfd3   :  { %6701 = vst [vmem:[#allocation13 + $0xb8] sm:$0xff] %v7303_v7 }
 0xfd5   :  { %v6659_v59 = vpop.f32.mrb[224].mxu1 }
 0xfd6   :  { %v7304_v62 = vadd.f32 %v6659_v59, %v10216_v54  ;;  %v6661_v30 = vpop.f32.mrb[225].mxu1 }
 0xfd7   :  { %v7305_v37 = vadd.f32 %v6661_v30, %v10219_v53  ;;  %v6663_v36 = vpop.f32.mrb[226].mxu1 }
 0xfd8   :  { %6702 = vst [vmem:[#allocation13 + $0xc0] sm:$0xff] %v7304_v62  ;;  %v7306_v42 = vadd.f32 %v6663_v36, %v10216_v54  ;;  %v6665_v13 = vpop.f32.mrb[227].mxu1 }
 0xfd9   :  { %6703 = vst [vmem:[#allocation13 + $0xc8] sm:$0xff] %v7305_v37  ;;  %v7307_v32 = vadd.f32 %v6665_v13, %v10219_v53 }
 0xfda   :  { %6704 = vst [vmem:[#allocation13 + $0xd0] sm:$0xff] %v7306_v42 }
 0xfdb   :  { %6705 = vst [vmem:[#allocation13 + $0xd8] sm:$0xff] %v7307_v32 }
 0xfdd   :  { %v6669_v55 = vpop.f32.mrb[228].mxu1 }
 0xfde   :  { %v7308_v47 = vadd.f32 %v6669_v55, %v10216_v54  ;;  %v6671_v35 = vpop.f32.mrb[229].mxu1 }
 0xfdf   :  { %v7309_v57 = vadd.f32 %v6671_v35, %v10219_v53  ;;  %v6673_v1 = vpop.f32.mrb[230].mxu1 }
 0xfe0   :  { %6706 = vst [vmem:[#allocation13 + $0xe0] sm:$0xff] %v7308_v47  ;;  %v7310_v61 = vadd.f32 %v6673_v1, %v10216_v54  ;;  %v6675_v41 = vpop.f32.mrb[231].mxu1 }
 0xfe1   :  { %6707 = vst [vmem:[#allocation13 + $0xe8] sm:$0xff] %v7309_v57  ;;  %v7311_v38 = vadd.f32 %v6675_v41, %v10219_v53 }
 0xfe2   :  { %6708 = vst [vmem:[#allocation13 + $0xf0] sm:$0xff] %v7310_v61 }
 0xfe3   :  { %6709 = vst [vmem:[#allocation13 + $0xf8] sm:$0xff] %v7311_v38 }
 0xfe4   :  { %7797 = shalt.err (!%p7794_p4)
}
 0xfe5   :  { %s7798_s4 = scalar_lea.hbm %s10288_s21, 4096 }
 0xfe6   :  { %p7799_p5 = scmp.ne.s32.totalorder %s10288_s21, %s7798_s4  ;;  %p7802_p6 = scmp.lt.u32.totalorder %s7798_s4, %s10288_s21 }
 0xfe8   :  { %p7804_p7 = pnand %p7802_p6, %p7799_p5 }
 0xfea   :  { %7807 = shalt.err (!%p7804_p7)
}
 0xfeb   :  { %s7855_s3 = smov 16  }
 0xfec   :  { %6721 = dma.vmem_to_hbm [thread:$0]  %s6716_s22, 4096, %s10288_s21, [#allocation14], %s10386_s17, %s10386_s17, %s7855_s3  }
 0xfed   :  { %7828 = dma.done.wait [#allocation14], 4096  }
 0xfee   :  { %7829 = vsyncadd [#allocation14], 4294963200 }
 0xfef   :  { %6725 = vsyncpa [#allocation14], 1 }
 0xff0   :  { %6726 = vsyncmov [#allocation12] }
 0xff3   :  { %s6727_s23 = vpop.sfrf %6726 }
 0xff4   :  { %p6900_p8 = scmp.ne.s32.totalorder %s6727_s23, 0 }
 0xff6   :  { %6731 = shalt.err (%p6900_p8)  }
 0xff7   :  { %6733 = vsyncmov [#allocation12 + $0x1] }
 0xffa   :  { %s6734_s28 = vpop.sfrf %6733 }
 0xffb   :  { %p6901_p9 = scmp.ne.s32.totalorder %s6734_s28, 0 }
 0xffd   :  { %6738 = shalt.err (%p6901_p9)  }
 0xffe   :  { %6740 = vsyncmov [#allocation12 + $0x2] }
0x1001   :  { %s6741_s19 = vpop.sfrf %6740 }
0x1002   :  { %p6902_p10 = scmp.ne.s32.totalorder %s6741_s19, 0 }
0x1004   :  { %6745 = shalt.err (%p6902_p10)  }
0x1005   :  { %6747 = vsyncmov [#allocation12 + $0x3] }
0x1008   :  { %s6748_s5 = vpop.sfrf %6747 }
0x1009   :  { %p6903_p11 = scmp.ne.s32.totalorder %s6748_s5, 0 }
0x100b   :  { %6752 = shalt.err (%p6903_p11)  }
0x100c   :  { %6754 = vsyncmov [#allocation12 + $0x4] }
0x100f   :  { %s6755_s21 = vpop.sfrf %6754 }
0x1010   :  { %p6904_p12 = scmp.ne.s32.totalorder %s6755_s21, 0 }
0x1012   :  { %6759 = shalt.err (%p6904_p12)  }
0x1013   :  { %6761 = vsyncmov [#allocation12 + $0x5] }
0x1016   :  { %s6762_s17 = vpop.sfrf %6761 }
0x1017   :  { %p6905_p13 = scmp.ne.s32.totalorder %s6762_s17, 0 }
0x1019   :  { %6766 = shalt.err (%p6905_p13)  }
0x101a   :  { %6768 = vsyncmov [#allocation12 + $0x6] }
0x101d   :  { %s6769_s16 = vpop.sfrf %6768 }
0x101e   :  { %p6906_p0 = scmp.ne.s32.totalorder %s6769_s16, 0 }
0x1020   :  { %6773 = shalt.err (%p6906_p0)  }
0x1021   :  { %6775 = vsyncmov [#allocation12 + $0x7] }
0x1024   :  { %s6776_s0 = vpop.sfrf %6775 }
0x1025   :  { %p6907_p1 = scmp.ne.s32.totalorder %s6776_s0, 0 }
0x1027   :  { %6780 = shalt.err (%p6907_p1)  }
0x1028   :  { %6782 = vsyncmov [#allocation12 + $0x8] }
0x102b   :  { %s6783_s2 = vpop.sfrf %6782 }
0x102c   :  { %p6908_p2 = scmp.ne.s32.totalorder %s6783_s2, 0 }
0x102e   :  { %6787 = shalt.err (%p6908_p2)  }
0x102f   :  { %6789 = vsyncmov [#allocation12 + $0x9] }
0x1032   :  { %s6790_s14 = vpop.sfrf %6789 }
0x1033   :  { %p6909_p3 = scmp.ne.s32.totalorder %s6790_s14, 0 }
0x1035   :  { %6794 = shalt.err (%p6909_p3)  }

</bundles_post_ra>
